<compile_context>
chip_gen: v5e
topology: v5e:2x2
jax: 0.10.0
libtpu: 0.0.40
codegen_flags: <defaults>
</compile_context>

<pallas_src>
import functools

import jax
import jax.numpy as jnp
from jax import lax
from jax.experimental import pallas as pl
from jax.experimental.pallas import tpu as pltpu


# ------------------------------ Pallas kernel -------------------------------

def _quadra_dw_kernel(x_hbm, wa_ref, ba_ref, wb_ref, bb_ref, wc_ref, bc_ref,
                      o_ref, buf, sem, *, K, pad, rh, coff, n_h):
    """One grid step = (batch element b, output-row tile h).

    buf: (2, TH+K-1, Ws, C) VMEM scratch (double-buffered padded row tile).
    sem: (2, 3) DMA semaphores -> [slot, {main, top-halo, bottom-halo}].
    """
    b = pl.program_id(0)
    h = pl.program_id(1)
    H, W = x_hbm.shape[1], x_hbm.shape[2]
    _, TH, Wo, C = o_ref.shape
    rows_s = TH + K - 1                    # padded rows per tile
    main_rows = TH + K - 1 - 2 * pad       # x rows that are in-bounds for every tile
    cbase = coff - pad                     # scratch column holding padded column 0
    ws = buf.shape[2]
    slot = h % 2
    nslot = 1 - slot

    # ---- halo DMA helpers (start/wait descriptors mirror each other) -------
    def _copies(b_i, h_i, s_i):
        r0 = h_i * TH
        main = pltpu.make_async_copy(
            x_hbm.at[b_i, pl.ds(r0, main_rows), :, :],
            buf.at[s_i, pl.ds(pad, main_rows), pl.ds(coff, W), :],
            sem.at[s_i, 0])
        top = pltpu.make_async_copy(
            x_hbm.at[b_i, pl.ds(r0 - pad, pad), :, :],
            buf.at[s_i, pl.ds(0, pad), pl.ds(coff, W), :],
            sem.at[s_i, 1]) if pad > 0 else None
        bot = pltpu.make_async_copy(
            x_hbm.at[b_i, pl.ds(r0 + main_rows, pad), :, :],
            buf.at[s_i, pl.ds(pad + main_rows, pad), pl.ds(coff, W), :],
            sem.at[s_i, 2]) if pad > 0 else None
        return main, top, bot

    def issue(b_i, h_i, s_i):
        main, top, bot = _copies(b_i, h_i, s_i)
        main.start()
        if pad > 0:
            @pl.when(h_i > 0)               # top halo rows exist in x
            def _():
                top.start()

            @pl.when(h_i < n_h - 1)         # bottom halo rows exist in x
            def _():
                bot.start()

    def wait(b_i, h_i, s_i):
        main, top, bot = _copies(b_i, h_i, s_i)
        main.wait()
        if pad > 0:
            @pl.when(h_i > 0)
            def _():
                top.wait()

            @pl.when(h_i < n_h - 1)
            def _():
                bot.wait()

    # ---- prime (once per batch element) + zero the column halo -------------
    @pl.when(h == 0)
    def _():
        if pad > 0:
            # 1-col left/right zero halo: never written by any DMA.
            zcol = jnp.zeros((2, rows_s, pad, C), buf.dtype)
            buf[:, :, pl.ds(cbase, pad), :] = zcol
            buf[:, :, pl.ds(coff + W, pad), :] = zcol
            # top zero-pad rows of this batch's first tile (always slot 0).
            buf[0, pl.ds(0, pad), :, :] = jnp.zeros((pad, ws, C), buf.dtype)
        issue(b, h, 0)                      # exposed only once per batch element

    # ---- prefetch the next row tile (overlaps this tile's compute) ---------
    @pl.when(h + 1 < n_h)
    def _():
        issue(b, h + 1, nslot)

    # ---- this tile's data ---------------------------------------------------
    wait(b, h, slot)

    if pad > 0:
        @pl.when(h == n_h - 1)
        def _():
            # bottom zero-pad rows of this batch's last tile.
            buf[(n_h - 1) % 2, pl.ds(rows_s - pad, pad), :, :] = (
                jnp.zeros((pad, ws, C), buf.dtype))

    # ---- taps: register-blocked over small row chunks -----------------------
    bslot = buf.at[slot]
    wa = wa_ref[...]
    wb = wb_ref[...]
    wc = wc_ref[...]
    ba = ba_ref[0, 0, :].astype(jnp.float32)
    bb = bb_ref[0, 0, :].astype(jnp.float32)
    bc = bc_ref[0, 0, :].astype(jnp.float32)
    nc = TH // rh

    def chunk(c, carry):
        r0 = c * rh
        # bias-initialized accumulators (saves the 3 epilogue bias adds)
        acc_a = jnp.broadcast_to(ba, (rh, Wo, C))
        acc_b = jnp.broadcast_to(bb, (rh, Wo, C))
        acc_c = jnp.broadcast_to(bc, (rh, Wo, C))
        for kh in range(K):
            for kw in range(K):
                # Direct (possibly unaligned) load per tap straight from the
                # scratch ref; extra work lands on the vld slots, keeping the
                # VALU as the binding unit.
                slab = bslot[pl.ds(r0 + kh, rh),
                             pl.ds(cbase + kw, Wo), :].astype(jnp.float32)
                acc_a = acc_a + slab * wa[kh, kw]
                acc_b = acc_b + slab * wb[kh, kw]
                acc_c = acc_c + slab * wc[kh, kw]
        out = acc_a * acc_b + acc_c
        o_ref[0, pl.ds(r0, rh), :, :] = out.astype(o_ref.dtype)
        return carry

    lax.fori_loop(0, nc, chunk, 0, unroll=True)


# ------------------------------ Python wrappers ------------------------------

def quadra_conv_dw_nhwc(x, wa, ba, wb, bb, wc, bc, *, tile_rows=None):
    """NHWC core.  x: (B,H,W,C); wa/wb/wc: (K,K,C); ba/bb/bc: (C,) -> (B,Ho,Wo,C)."""
    B, H, W, C = x.shape
    K = wa.shape[0]
    pad = (K - 1) // 2
    Ho = H + 2 * pad - K + 1
    Wo = W + 2 * pad - K + 1

    isz = jnp.dtype(x.dtype).itemsize
    coff = max(8, ((pad + 7) // 8) * 8)       # x col 0 sits at an 8-aligned scratch col
    ws = ((coff + W + pad + 7) // 8) * 8      # scratch columns (multiple of 8)

    # Row tile: divisor of Ho (no output slice), bounded by a VMEM budget so the
    # double-buffered scratch + output block fit v7x's smaller VMEM.
    budget = 24 << 20
    divs = [d for d in range(1, Ho + 1) if Ho % d == 0]
    if tile_rows is not None:
        assert Ho % tile_rows == 0
        th = int(tile_rows)
    else:
        fits = [d for d in divs
                if 2 * (d + K - 1) * ws * C * isz + 2 * d * Wo * C * isz <= budget]
        th = max([d for d in fits if d <= 48] or [1])
    n_h = Ho // th

    # Inner register-blocking chunk: keep each f32 accumulator within ~8 vregs.
    vregs_per_row = max(1, -(-Wo // 8) * -(-C // 128))
    rh_max = max(1, 8 // vregs_per_row)
    rh = max(d for d in range(1, th + 1) if th % d == 0 and d <= rh_max)

    vmem_need = (2 * (th + K - 1) * ws * C * isz       # halo scratch (2 slots)
                 + 2 * th * Wo * C * isz               # output block (2 buffers)
                 + 2 * 3 * (K * K + 1) * C * 4)        # weights / biases
    vmem_limit = int(min(max(2 * vmem_need + (4 << 20), 32 << 20), 56 << 20))

    ba_, bb_, bc_ = (v.reshape(1, 1, C) for v in (ba, bb, bc))
    kernel = functools.partial(_quadra_dw_kernel, K=K, pad=pad, rh=rh,
                               coff=coff, n_h=n_h)
    const3 = lambda b, h: (0, 0, 0)

    return pl.pallas_call(
        kernel,
        out_shape=jax.ShapeDtypeStruct((B, Ho, Wo, C), x.dtype),
        grid=(B, n_h),
        in_specs=[
            pl.BlockSpec(memory_space=pl.ANY),    # x stays in HBM; manual halo DMA
            pl.BlockSpec((K, K, C), const3),      # wa
            pl.BlockSpec((1, 1, C), const3),      # ba
            pl.BlockSpec((K, K, C), const3),      # wb
            pl.BlockSpec((1, 1, C), const3),      # bb
            pl.BlockSpec((K, K, C), const3),      # wc
            pl.BlockSpec((1, 1, C), const3),      # bc
        ],
        out_specs=pl.BlockSpec((1, th, Wo, C), lambda b, h: (b, h, 0, 0)),
        scratch_shapes=[
            pltpu.VMEM((2, th + K - 1, ws, C), x.dtype),
            pltpu.SemaphoreType.DMA((2, 3)),
        ],
        compiler_params=pltpu.CompilerParams(
            # Batch axis shards across v7x TensorCores; the row-tile axis stays
            # "arbitrary" because it carries the per-core DMA prefetch chain.
            dimension_semantics=("parallel", "arbitrary"),
            vmem_limit_bytes=vmem_limit),
    )(x, wa, ba_, wb, bb_, wc, bc_)


def quadra_conv_dw(x_nchw, wa, ba, wb, bb, wc, bc, **kw):
    """Module-faithful NCHW entry (PyTorch weights (C,1,K,K), biases (C,)).

    NOTE: prefer `quadra_conv_dw_nhwc` inside an NHWC model — the transposes
    here are extra HBM round-trips around the kernel.
    """
    x = jnp.transpose(x_nchw, (0, 2, 3, 1))                   # NCHW -> NHWC
    to_kkc = lambda w: jnp.transpose(w[:, 0], (1, 2, 0))      # (C,1,K,K)->(K,K,C)
    y = quadra_conv_dw_nhwc(x, to_kkc(wa), ba, to_kkc(wb), bb, to_kkc(wc), bc, **kw)
    return jnp.transpose(y, (0, 3, 1, 2))                     # NHWC -> NCHW


# --------------------------- pure-JAX reference -----------------------------

def _reference_nhwc(x, wa, ba, wb, bb, wc, bc):
    """Exact f32 reference (explicit shifted-slab depthwise convs)."""
    B, H, W, C = x.shape
    K = wa.shape[0]
    pad = (K - 1) // 2
    Ho, Wo = H + 2 * pad - K + 1, W + 2 * pad - K + 1
    xp = jnp.pad(x.astype(jnp.float32), ((0, 0), (pad, pad), (pad, pad), (0, 0)))

    def dw(w, b):
        acc = jnp.zeros((B, Ho, Wo, C), jnp.float32)
        for kh in range(K):
            for kw in range(K):
                acc = acc + xp[:, kh:kh + Ho, kw:kw + Wo, :] * w[kh, kw]
        return acc + b

    return (dw(wa, ba) * dw(wb, bb) + dw(wc, bc)).astype(x.dtype)


# ----------------------------------- main -----------------------------------

if __name__ == "__main__":
    key = jax.random.PRNGKey(0)
    kx, k1, k2, k3, k4, k5, k6 = jax.random.split(key, 7)

    B, C, H, W, K = 2, 128, 16, 16, 4    # C=128 keeps output stores lane-dense

    x = jax.random.normal(kx, (B, H, W, C), jnp.float32)            # NHWC
    wa = 0.1 * jax.random.normal(k1, (K, K, C), jnp.float32)
    wb = 0.1 * jax.random.normal(k2, (K, K, C), jnp.float32)
    wc = 0.1 * jax.random.normal(k3, (K, K, C), jnp.float32)
    ba = 0.1 * jax.random.normal(k4, (C,), jnp.float32)
    bb = 0.1 * jax.random.normal(k5, (C,), jnp.float32)
    bc = 0.1 * jax.random.normal(k6, (C,), jnp.float32)

    ref = jax.block_until_ready(_reference_nhwc(x, wa, ba, wb, bb, wc, bc))

    # Default tiling (single row tile here): NHWC end-to-end, no transposes.
    fwd = jax.jit(quadra_conv_dw_nhwc)
    out = jax.block_until_ready(fwd(x, wa, ba, wb, bb, wc, bc))
    assert out.shape == ref.shape == (B, H - 1, W - 1, C), (out.shape, ref.shape)
    assert bool(jnp.all(jnp.isfinite(out)))
    err = float(jnp.max(jnp.abs(out - ref)))
    assert err < 1e-3, f"default-tile max abs err {err}"

    # Forced multi-tile path: exercises the halo-DMA prefetch chain and the
    # first/last-tile zero-row handling.
    fwd_mt = jax.jit(functools.partial(quadra_conv_dw_nhwc, tile_rows=5))
    out_mt = jax.block_until_ready(fwd_mt(x, wa, ba, wb, bb, wc, bc))
    err_mt = float(jnp.max(jnp.abs(out_mt - ref)))
    assert err_mt < 1e-3, f"multi-tile max abs err {err_mt}"

    # Module-faithful NCHW adapter (PyTorch layouts).
    x_nchw = jnp.transpose(x, (0, 3, 1, 2))
    to_t = lambda w: jnp.transpose(w, (2, 0, 1))[:, None]           # (C,1,K,K)
    out_nchw = jax.block_until_ready(
        jax.jit(quadra_conv_dw)(x_nchw, to_t(wa), ba, to_t(wb), bb, to_t(wc), bc))
    ref_nchw = jnp.transpose(ref, (0, 3, 1, 2))
    err_nchw = float(jnp.max(jnp.abs(out_nchw - ref_nchw)))
    assert err_nchw < 1e-3, f"NCHW adapter max abs err {err_nchw}"

    print("KERNEL_OK")
</pallas_src>

<mosaic_0001>
module attributes {stable_mosaic.version = 11 : i64} {
  func.func @_quadra_dw_kernel(%arg0: i32, %arg1: i32, %arg2: memref<2x16x16x128xf32, #tpu.memory_space<any>>, %arg3: memref<4x4x128xf32, #tpu.memory_space<vmem>>, %arg4: memref<1x1x128xf32, #tpu.memory_space<vmem>>, %arg5: memref<4x4x128xf32, #tpu.memory_space<vmem>>, %arg6: memref<1x1x128xf32, #tpu.memory_space<vmem>>, %arg7: memref<4x4x128xf32, #tpu.memory_space<vmem>>, %arg8: memref<1x1x128xf32, #tpu.memory_space<vmem>>, %arg9: memref<1x15x15x128xf32, #tpu.memory_space<vmem>>, %arg10: memref<2x18x32x128xf32, #tpu.memory_space<vmem>>, %arg11: memref<2x3x!tpu.dma_semaphore, #tpu.memory_space<semaphore_mem>>) attributes {dimension_semantics = [#tpu.dimension_semantics<parallel>, #tpu.dimension_semantics<arbitrary>], iteration_bounds = array<i64: 2, 1>, scalar_prefetch = 0 : i64, scratch_operands = 2 : i64, tpu.core_type = #tpu.core_type<tc>, window_params = [{}, {pipeline_mode = #tpu.pipeline_mode<synchronous>, transform_indices = @transform_1, window_bounds = array<i64: 4, 4, 128>}, {pipeline_mode = #tpu.pipeline_mode<synchronous>, transform_indices = @transform_2, window_bounds = array<i64: 1, 1, 128>}, {pipeline_mode = #tpu.pipeline_mode<synchronous>, transform_indices = @transform_3, window_bounds = array<i64: 4, 4, 128>}, {pipeline_mode = #tpu.pipeline_mode<synchronous>, transform_indices = @transform_4, window_bounds = array<i64: 1, 1, 128>}, {pipeline_mode = #tpu.pipeline_mode<synchronous>, transform_indices = @transform_5, window_bounds = array<i64: 4, 4, 128>}, {pipeline_mode = #tpu.pipeline_mode<synchronous>, transform_indices = @transform_6, window_bounds = array<i64: 1, 1, 128>}, {transform_indices = @transform_7, window_bounds = array<i64: 1, 15, 15, 128>}]} {
    %c2_i32 = arith.constant 2 : i32
    %c0_i32 = arith.constant 0 : i32
    %0 = arith.cmpi eq, %c2_i32, %c0_i32 : i32
    %c1_i32 = arith.constant 1 : i32
    %1 = arith.select %0, %c1_i32, %c2_i32 : i32
    %2 = arith.remsi %arg1, %1 : i32
    %c0_i32_0 = arith.constant 0 : i32
    %3 = arith.cmpi ne, %2, %c0_i32_0 : i32
    %c0_i32_1 = arith.constant 0 : i32
    %4 = arith.cmpi slt, %2, %c0_i32_1 : i32
    %c0_i32_2 = arith.constant 0 : i32
    %5 = arith.cmpi slt, %1, %c0_i32_2 : i32
    %6 = arith.xori %4, %5 : i1
    %7 = arith.andi %6, %3 : i1
    %8 = arith.addi %2, %1 : i32
    %9 = arith.select %7, %8, %2 : i32
    %c1_i32_3 = arith.constant 1 : i32
    %10 = arith.subi %c1_i32_3, %9 : i32
    %c0_i32_4 = arith.constant 0 : i32
    %11 = arith.cmpi eq, %arg1, %c0_i32_4 : i32
    %12 = arith.extui %11 : i1 to i32
    %c0_i32_5 = arith.constant 0 : i32
    %13 = arith.cmpi ne, %12, %c0_i32_5 : i32
    scf.if %13 {
      %cst = arith.constant 0.000000e+00 : f32
      %1950 = vector.broadcast %cst : f32 to vector<2x18x1x128xf32>
      %c0_539 = arith.constant 0 : index
      %c0_540 = arith.constant 0 : index
      %c7_541 = arith.constant 7 : index
      %c0_542 = arith.constant 0 : index
      %1951 = vector.load %arg10[%c0_539, %c0_540, %c7_541, %c0_542] : memref<2x18x32x128xf32, #tpu.memory_space<vmem>>, vector<2x18x1x128xf32>
      tpu.vector_store %arg10[%c0_539, %c0_540, %c7_541, %c0_542], %1950 {strides = array<i32>} : memref<2x18x32x128xf32, #tpu.memory_space<vmem>>, vector<2x18x1x128xf32>,
      %c0_543 = arith.constant 0 : index
      %c0_544 = arith.constant 0 : index
      %c24 = arith.constant 24 : index
      %c0_545 = arith.constant 0 : index
      %1952 = vector.load %arg10[%c0_543, %c0_544, %c24, %c0_545] : memref<2x18x32x128xf32, #tpu.memory_space<vmem>>, vector<2x18x1x128xf32>
      tpu.vector_store %arg10[%c0_543, %c0_544, %c24, %c0_545], %1950 {strides = array<i32>} : memref<2x18x32x128xf32, #tpu.memory_space<vmem>>, vector<2x18x1x128xf32>,
      %cst_546 = arith.constant 0.000000e+00 : f32
      %1953 = vector.broadcast %cst_546 : f32 to vector<1x32x128xf32>
      %c0_547 = arith.constant 0 : index
      %c0_548 = arith.constant 0 : index
      %c0_549 = arith.constant 0 : index
      %c0_550 = arith.constant 0 : index
      %1954 = vector.load %arg10[%c0_547, %c0_548, %c0_549, %c0_550] : memref<2x18x32x128xf32, #tpu.memory_space<vmem>>, vector<1x1x32x128xf32>
      %1955 = vector.shape_cast %1954 : vector<1x1x32x128xf32> to vector<1x32x128xf32>
      %1956 = vector.shape_cast %1953 : vector<1x32x128xf32> to vector<1x1x32x128xf32>
      tpu.vector_store %arg10[%c0_547, %c0_548, %c0_549, %c0_550], %1956 {strides = array<i32>} : memref<2x18x32x128xf32, #tpu.memory_space<vmem>>, vector<1x1x32x128xf32>,
      %c15_i32_551 = arith.constant 15 : i32
      %1957 = arith.muli %arg1, %c15_i32_551 : i32
      %c1_i32_552 = arith.constant 1 : i32
      %1958 = arith.subi %1957, %c1_i32_552 : i32
      %c16_i32_553 = arith.constant 16 : i32
      %1959 = arith.addi %1957, %c16_i32_553 : i32
      %c0_i32_554 = arith.constant 0 : i32
      %c0_i32_555 = arith.constant 0 : i32
      %c0_i32_556 = arith.constant 0 : i32
      %c0_i32_557 = arith.constant 0 : i32
      %c0_i32_558 = arith.constant 0 : i32
      %1960 = tpu.memref_slice %arg2[%arg0, %1957, %c0_i32_557, %c0_i32_558] : memref<2x16x16x128xf32, #tpu.memory_space<any>> -> memref<1x16x16x128xf32, #tpu.memory_space<any>>
      %1961 = tpu.memref_squeeze %1960 : memref<1x16x16x128xf32, #tpu.memory_space<any>> -> memref<16x16x128xf32, #tpu.memory_space<any>>
      %c1_i32_559 = arith.constant 1 : i32
      %c8_i32_560 = arith.constant 8 : i32
      %c0_i32_561 = arith.constant 0 : i32
      %1962 = tpu.memref_slice %arg10[%c0_i32_554, %c1_i32_559, %c8_i32_560, %c0_i32_561] : memref<2x18x32x128xf32, #tpu.memory_space<vmem>> -> memref<1x16x16x128xf32, #tpu.memory_space<vmem>>
      %1963 = tpu.memref_squeeze %1962 : memref<1x16x16x128xf32, #tpu.memory_space<vmem>> -> memref<16x16x128xf32, #tpu.memory_space<vmem>>
      %1964 = tpu.memref_slice %arg11[%c0_i32_555, %c0_i32_556] : memref<2x3x!tpu.dma_semaphore, #tpu.memory_space<semaphore_mem>> -> memref<1x1x!tpu.dma_semaphore, #tpu.memory_space<semaphore_mem>>
      %1965 = tpu.memref_squeeze %1964 : memref<1x1x!tpu.dma_semaphore, #tpu.memory_space<semaphore_mem>> -> memref<!tpu.dma_semaphore, #tpu.memory_space<semaphore_mem>>
      tpu.enqueue_dma source(%1961 : memref<16x16x128xf32, #tpu.memory_space<any>>) target(%1963 : memref<16x16x128xf32, #tpu.memory_space<vmem>>) target_semaphore(%1965 : memref<!tpu.dma_semaphore, #tpu.memory_space<semaphore_mem>>)
      %c0_i32_562 = arith.constant 0 : i32
      %1966 = arith.cmpi sgt, %arg1, %c0_i32_562 : i32
      %1967 = arith.extui %1966 : i1 to i32
      %c0_i32_563 = arith.constant 0 : i32
      %c0_i32_564 = arith.constant 0 : i32
      %c1_i32_565 = arith.constant 1 : i32
      %c0_i32_566 = arith.constant 0 : i32
      %1968 = arith.cmpi ne, %1967, %c0_i32_566 : i32
      scf.if %1968 {
        %c0_i32_572 = arith.constant 0 : i32
        %c0_i32_573 = arith.constant 0 : i32
        %1972 = tpu.memref_slice %arg2[%arg0, %1958, %c0_i32_572, %c0_i32_573] : memref<2x16x16x128xf32, #tpu.memory_space<any>> -> memref<1x1x16x128xf32, #tpu.memory_space<any>>
        %1973 = tpu.memref_squeeze %1972 : memref<1x1x16x128xf32, #tpu.memory_space<any>> -> memref<1x16x128xf32, #tpu.memory_space<any>>
        %c0_i32_574 = arith.constant 0 : i32
        %c8_i32_575 = arith.constant 8 : i32
        %c0_i32_576 = arith.constant 0 : i32
        %1974 = tpu.memref_slice %arg10[%c0_i32_563, %c0_i32_574, %c8_i32_575, %c0_i32_576] : memref<2x18x32x128xf32, #tpu.memory_space<vmem>> -> memref<1x1x16x128xf32, #tpu.memory_space<vmem>>
        %1975 = tpu.memref_squeeze %1974 : memref<1x1x16x128xf32, #tpu.memory_space<vmem>> -> memref<1x16x128xf32, #tpu.memory_space<vmem>>
        %1976 = tpu.memref_slice %arg11[%c0_i32_564, %c1_i32_565] : memref<2x3x!tpu.dma_semaphore, #tpu.memory_space<semaphore_mem>> -> memref<1x1x!tpu.dma_semaphore, #tpu.memory_space<semaphore_mem>>
        %1977 = tpu.memref_squeeze %1976 : memref<1x1x!tpu.dma_semaphore, #tpu.memory_space<semaphore_mem>> -> memref<!tpu.dma_semaphore, #tpu.memory_space<semaphore_mem>>
        tpu.enqueue_dma source(%1973 : memref<1x16x128xf32, #tpu.memory_space<any>>) target(%1975 : memref<1x16x128xf32, #tpu.memory_space<vmem>>) target_semaphore(%1977 : memref<!tpu.dma_semaphore, #tpu.memory_space<semaphore_mem>>)
      } else {
      }
      %c0_i32_567 = arith.constant 0 : i32
      %1969 = arith.cmpi slt, %arg1, %c0_i32_567 : i32
      %1970 = arith.extui %1969 : i1 to i32
      %c0_i32_568 = arith.constant 0 : i32
      %c0_i32_569 = arith.constant 0 : i32
      %c2_i32_570 = arith.constant 2 : i32
      %c0_i32_571 = arith.constant 0 : i32
      %1971 = arith.cmpi ne, %1970, %c0_i32_571 : i32
      scf.if %1971 {
        %c0_i32_572 = arith.constant 0 : i32
        %c0_i32_573 = arith.constant 0 : i32
        %1972 = tpu.memref_slice %arg2[%arg0, %1959, %c0_i32_572, %c0_i32_573] : memref<2x16x16x128xf32, #tpu.memory_space<any>> -> memref<1x1x16x128xf32, #tpu.memory_space<any>>
        %1973 = tpu.memref_squeeze %1972 : memref<1x1x16x128xf32, #tpu.memory_space<any>> -> memref<1x16x128xf32, #tpu.memory_space<any>>
        %c17_i32 = arith.constant 17 : i32
        %c8_i32_574 = arith.constant 8 : i32
        %c0_i32_575 = arith.constant 0 : i32
        %1974 = tpu.memref_slice %arg10[%c0_i32_568, %c17_i32, %c8_i32_574, %c0_i32_575] : memref<2x18x32x128xf32, #tpu.memory_space<vmem>> -> memref<1x1x16x128xf32, #tpu.memory_space<vmem>>
        %1975 = tpu.memref_squeeze %1974 : memref<1x1x16x128xf32, #tpu.memory_space<vmem>> -> memref<1x16x128xf32, #tpu.memory_space<vmem>>
        %1976 = tpu.memref_slice %arg11[%c0_i32_569, %c2_i32_570] : memref<2x3x!tpu.dma_semaphore, #tpu.memory_space<semaphore_mem>> -> memref<1x1x!tpu.dma_semaphore, #tpu.memory_space<semaphore_mem>>
        %1977 = tpu.memref_squeeze %1976 : memref<1x1x!tpu.dma_semaphore, #tpu.memory_space<semaphore_mem>> -> memref<!tpu.dma_semaphore, #tpu.memory_space<semaphore_mem>>
        tpu.enqueue_dma source(%1973 : memref<1x16x128xf32, #tpu.memory_space<any>>) target(%1975 : memref<1x16x128xf32, #tpu.memory_space<vmem>>) target_semaphore(%1977 : memref<!tpu.dma_semaphore, #tpu.memory_space<semaphore_mem>>)
      } else {
      }
    } else {
    }
    %c1_i32_6 = arith.constant 1 : i32
    %14 = arith.addi %arg1, %c1_i32_6 : i32
    %c1_i32_7 = arith.constant 1 : i32
    %15 = arith.cmpi slt, %14, %c1_i32_7 : i32
    %16 = arith.extui %15 : i1 to i32
    %c0_i32_8 = arith.constant 0 : i32
    %17 = arith.cmpi ne, %16, %c0_i32_8 : i32
    scf.if %17 {
      %c1_i32_539 = arith.constant 1 : i32
      %1950 = arith.addi %arg1, %c1_i32_539 : i32
      %c15_i32_540 = arith.constant 15 : i32
      %1951 = arith.muli %1950, %c15_i32_540 : i32
      %c1_i32_541 = arith.constant 1 : i32
      %1952 = arith.subi %1951, %c1_i32_541 : i32
      %c16_i32_542 = arith.constant 16 : i32
      %1953 = arith.addi %1951, %c16_i32_542 : i32
      %c0_i32_543 = arith.constant 0 : i32
      %c0_i32_544 = arith.constant 0 : i32
      %c0_i32_545 = arith.constant 0 : i32
      %1954 = tpu.memref_slice %arg2[%arg0, %1951, %c0_i32_544, %c0_i32_545] : memref<2x16x16x128xf32, #tpu.memory_space<any>> -> memref<1x16x16x128xf32, #tpu.memory_space<any>>
      %1955 = tpu.memref_squeeze %1954 : memref<1x16x16x128xf32, #tpu.memory_space<any>> -> memref<16x16x128xf32, #tpu.memory_space<any>>
      %c1_i32_546 = arith.constant 1 : i32
      %c8_i32_547 = arith.constant 8 : i32
      %c0_i32_548 = arith.constant 0 : i32
      %1956 = tpu.memref_slice %arg10[%10, %c1_i32_546, %c8_i32_547, %c0_i32_548] : memref<2x18x32x128xf32, #tpu.memory_space<vmem>> -> memref<1x16x16x128xf32, #tpu.memory_space<vmem>>
      %1957 = tpu.memref_squeeze %1956 : memref<1x16x16x128xf32, #tpu.memory_space<vmem>> -> memref<16x16x128xf32, #tpu.memory_space<vmem>>
      %1958 = tpu.memref_slice %arg11[%10, %c0_i32_543] : memref<2x3x!tpu.dma_semaphore, #tpu.memory_space<semaphore_mem>> -> memref<1x1x!tpu.dma_semaphore, #tpu.memory_space<semaphore_mem>>
      %1959 = tpu.memref_squeeze %1958 : memref<1x1x!tpu.dma_semaphore, #tpu.memory_space<semaphore_mem>> -> memref<!tpu.dma_semaphore, #tpu.memory_space<semaphore_mem>>
      tpu.enqueue_dma source(%1955 : memref<16x16x128xf32, #tpu.memory_space<any>>) target(%1957 : memref<16x16x128xf32, #tpu.memory_space<vmem>>) target_semaphore(%1959 : memref<!tpu.dma_semaphore, #tpu.memory_space<semaphore_mem>>)
      %c0_i32_549 = arith.constant 0 : i32
      %1960 = arith.cmpi sgt, %1950, %c0_i32_549 : i32
      %1961 = arith.extui %1960 : i1 to i32
      %c1_i32_550 = arith.constant 1 : i32
      %c0_i32_551 = arith.constant 0 : i32
      %1962 = arith.cmpi ne, %1961, %c0_i32_551 : i32
      scf.if %1962 {
        %c0_i32_555 = arith.constant 0 : i32
        %c0_i32_556 = arith.constant 0 : i32
        %1966 = tpu.memref_slice %arg2[%arg0, %1952, %c0_i32_555, %c0_i32_556] : memref<2x16x16x128xf32, #tpu.memory_space<any>> -> memref<1x1x16x128xf32, #tpu.memory_space<any>>
        %1967 = tpu.memref_squeeze %1966 : memref<1x1x16x128xf32, #tpu.memory_space<any>> -> memref<1x16x128xf32, #tpu.memory_space<any>>
        %c0_i32_557 = arith.constant 0 : i32
        %c8_i32_558 = arith.constant 8 : i32
        %c0_i32_559 = arith.constant 0 : i32
        %1968 = tpu.memref_slice %arg10[%10, %c0_i32_557, %c8_i32_558, %c0_i32_559] : memref<2x18x32x128xf32, #tpu.memory_space<vmem>> -> memref<1x1x16x128xf32, #tpu.memory_space<vmem>>
        %1969 = tpu.memref_squeeze %1968 : memref<1x1x16x128xf32, #tpu.memory_space<vmem>> -> memref<1x16x128xf32, #tpu.memory_space<vmem>>
        %1970 = tpu.memref_slice %arg11[%10, %c1_i32_550] : memref<2x3x!tpu.dma_semaphore, #tpu.memory_space<semaphore_mem>> -> memref<1x1x!tpu.dma_semaphore, #tpu.memory_space<semaphore_mem>>
        %1971 = tpu.memref_squeeze %1970 : memref<1x1x!tpu.dma_semaphore, #tpu.memory_space<semaphore_mem>> -> memref<!tpu.dma_semaphore, #tpu.memory_space<semaphore_mem>>
        tpu.enqueue_dma source(%1967 : memref<1x16x128xf32, #tpu.memory_space<any>>) target(%1969 : memref<1x16x128xf32, #tpu.memory_space<vmem>>) target_semaphore(%1971 : memref<!tpu.dma_semaphore, #tpu.memory_space<semaphore_mem>>)
      } else {
      }
      %c0_i32_552 = arith.constant 0 : i32
      %1963 = arith.cmpi slt, %1950, %c0_i32_552 : i32
      %1964 = arith.extui %1963 : i1 to i32
      %c2_i32_553 = arith.constant 2 : i32
      %c0_i32_554 = arith.constant 0 : i32
      %1965 = arith.cmpi ne, %1964, %c0_i32_554 : i32
      scf.if %1965 {
        %c0_i32_555 = arith.constant 0 : i32
        %c0_i32_556 = arith.constant 0 : i32
        %1966 = tpu.memref_slice %arg2[%arg0, %1953, %c0_i32_555, %c0_i32_556] : memref<2x16x16x128xf32, #tpu.memory_space<any>> -> memref<1x1x16x128xf32, #tpu.memory_space<any>>
        %1967 = tpu.memref_squeeze %1966 : memref<1x1x16x128xf32, #tpu.memory_space<any>> -> memref<1x16x128xf32, #tpu.memory_space<any>>
        %c17_i32 = arith.constant 17 : i32
        %c8_i32_557 = arith.constant 8 : i32
        %c0_i32_558 = arith.constant 0 : i32
        %1968 = tpu.memref_slice %arg10[%10, %c17_i32, %c8_i32_557, %c0_i32_558] : memref<2x18x32x128xf32, #tpu.memory_space<vmem>> -> memref<1x1x16x128xf32, #tpu.memory_space<vmem>>
        %1969 = tpu.memref_squeeze %1968 : memref<1x1x16x128xf32, #tpu.memory_space<vmem>> -> memref<1x16x128xf32, #tpu.memory_space<vmem>>
        %1970 = tpu.memref_slice %arg11[%10, %c2_i32_553] : memref<2x3x!tpu.dma_semaphore, #tpu.memory_space<semaphore_mem>> -> memref<1x1x!tpu.dma_semaphore, #tpu.memory_space<semaphore_mem>>
        %1971 = tpu.memref_squeeze %1970 : memref<1x1x!tpu.dma_semaphore, #tpu.memory_space<semaphore_mem>> -> memref<!tpu.dma_semaphore, #tpu.memory_space<semaphore_mem>>
        tpu.enqueue_dma source(%1967 : memref<1x16x128xf32, #tpu.memory_space<any>>) target(%1969 : memref<1x16x128xf32, #tpu.memory_space<vmem>>) target_semaphore(%1971 : memref<!tpu.dma_semaphore, #tpu.memory_space<semaphore_mem>>)
      } else {
      }
    } else {
    }
    %c15_i32 = arith.constant 15 : i32
    %18 = arith.muli %arg1, %c15_i32 : i32
    %c1_i32_9 = arith.constant 1 : i32
    %19 = arith.subi %18, %c1_i32_9 : i32
    %c16_i32 = arith.constant 16 : i32
    %20 = arith.addi %18, %c16_i32 : i32
    %c0_i32_10 = arith.constant 0 : i32
    %c0_i32_11 = arith.constant 0 : i32
    %c0_i32_12 = arith.constant 0 : i32
    %21 = tpu.memref_slice %arg2[%arg0, %18, %c0_i32_11, %c0_i32_12] : memref<2x16x16x128xf32, #tpu.memory_space<any>> -> memref<1x16x16x128xf32, #tpu.memory_space<any>>
    %22 = tpu.memref_squeeze %21 : memref<1x16x16x128xf32, #tpu.memory_space<any>> -> memref<16x16x128xf32, #tpu.memory_space<any>>
    %c1_i32_13 = arith.constant 1 : i32
    %c8_i32 = arith.constant 8 : i32
    %c0_i32_14 = arith.constant 0 : i32
    %23 = tpu.memref_slice %arg10[%9, %c1_i32_13, %c8_i32, %c0_i32_14] : memref<2x18x32x128xf32, #tpu.memory_space<vmem>> -> memref<1x16x16x128xf32, #tpu.memory_space<vmem>>
    %24 = tpu.memref_squeeze %23 : memref<1x16x16x128xf32, #tpu.memory_space<vmem>> -> memref<16x16x128xf32, #tpu.memory_space<vmem>>
    %25 = tpu.memref_slice %arg11[%9, %c0_i32_10] : memref<2x3x!tpu.dma_semaphore, #tpu.memory_space<semaphore_mem>> -> memref<1x1x!tpu.dma_semaphore, #tpu.memory_space<semaphore_mem>>
    %26 = tpu.memref_squeeze %25 : memref<1x1x!tpu.dma_semaphore, #tpu.memory_space<semaphore_mem>> -> memref<!tpu.dma_semaphore, #tpu.memory_space<semaphore_mem>>
    tpu.wait_dma2 semaphore(%26 : memref<!tpu.dma_semaphore, #tpu.memory_space<semaphore_mem>>) src(%22 : memref<16x16x128xf32, #tpu.memory_space<any>>) dst(%24 : memref<16x16x128xf32, #tpu.memory_space<vmem>>)
    %c0_i32_15 = arith.constant 0 : i32
    %27 = arith.cmpi sgt, %arg1, %c0_i32_15 : i32
    %28 = arith.extui %27 : i1 to i32
    %c1_i32_16 = arith.constant 1 : i32
    %c0_i32_17 = arith.constant 0 : i32
    %29 = arith.cmpi ne, %28, %c0_i32_17 : i32
    scf.if %29 {
      %c0_i32_539 = arith.constant 0 : i32
      %c0_i32_540 = arith.constant 0 : i32
      %1950 = tpu.memref_slice %arg2[%arg0, %19, %c0_i32_539, %c0_i32_540] : memref<2x16x16x128xf32, #tpu.memory_space<any>> -> memref<1x1x16x128xf32, #tpu.memory_space<any>>
      %1951 = tpu.memref_squeeze %1950 : memref<1x1x16x128xf32, #tpu.memory_space<any>> -> memref<1x16x128xf32, #tpu.memory_space<any>>
      %c0_i32_541 = arith.constant 0 : i32
      %c8_i32_542 = arith.constant 8 : i32
      %c0_i32_543 = arith.constant 0 : i32
      %1952 = tpu.memref_slice %arg10[%9, %c0_i32_541, %c8_i32_542, %c0_i32_543] : memref<2x18x32x128xf32, #tpu.memory_space<vmem>> -> memref<1x1x16x128xf32, #tpu.memory_space<vmem>>
      %1953 = tpu.memref_squeeze %1952 : memref<1x1x16x128xf32, #tpu.memory_space<vmem>> -> memref<1x16x128xf32, #tpu.memory_space<vmem>>
      %1954 = tpu.memref_slice %arg11[%9, %c1_i32_16] : memref<2x3x!tpu.dma_semaphore, #tpu.memory_space<semaphore_mem>> -> memref<1x1x!tpu.dma_semaphore, #tpu.memory_space<semaphore_mem>>
      %1955 = tpu.memref_squeeze %1954 : memref<1x1x!tpu.dma_semaphore, #tpu.memory_space<semaphore_mem>> -> memref<!tpu.dma_semaphore, #tpu.memory_space<semaphore_mem>>
      tpu.wait_dma2 semaphore(%1955 : memref<!tpu.dma_semaphore, #tpu.memory_space<semaphore_mem>>) src(%1951 : memref<1x16x128xf32, #tpu.memory_space<any>>) dst(%1953 : memref<1x16x128xf32, #tpu.memory_space<vmem>>)
    } else {
    }
    %c0_i32_18 = arith.constant 0 : i32
    %30 = arith.cmpi slt, %arg1, %c0_i32_18 : i32
    %31 = arith.extui %30 : i1 to i32
    %c2_i32_19 = arith.constant 2 : i32
    %c0_i32_20 = arith.constant 0 : i32
    %32 = arith.cmpi ne, %31, %c0_i32_20 : i32
    scf.if %32 {
      %c0_i32_539 = arith.constant 0 : i32
      %c0_i32_540 = arith.constant 0 : i32
      %1950 = tpu.memref_slice %arg2[%arg0, %20, %c0_i32_539, %c0_i32_540] : memref<2x16x16x128xf32, #tpu.memory_space<any>> -> memref<1x1x16x128xf32, #tpu.memory_space<any>>
      %1951 = tpu.memref_squeeze %1950 : memref<1x1x16x128xf32, #tpu.memory_space<any>> -> memref<1x16x128xf32, #tpu.memory_space<any>>
      %c17_i32 = arith.constant 17 : i32
      %c8_i32_541 = arith.constant 8 : i32
      %c0_i32_542 = arith.constant 0 : i32
      %1952 = tpu.memref_slice %arg10[%9, %c17_i32, %c8_i32_541, %c0_i32_542] : memref<2x18x32x128xf32, #tpu.memory_space<vmem>> -> memref<1x1x16x128xf32, #tpu.memory_space<vmem>>
      %1953 = tpu.memref_squeeze %1952 : memref<1x1x16x128xf32, #tpu.memory_space<vmem>> -> memref<1x16x128xf32, #tpu.memory_space<vmem>>
      %1954 = tpu.memref_slice %arg11[%9, %c2_i32_19] : memref<2x3x!tpu.dma_semaphore, #tpu.memory_space<semaphore_mem>> -> memref<1x1x!tpu.dma_semaphore, #tpu.memory_space<semaphore_mem>>
      %1955 = tpu.memref_squeeze %1954 : memref<1x1x!tpu.dma_semaphore, #tpu.memory_space<semaphore_mem>> -> memref<!tpu.dma_semaphore, #tpu.memory_space<semaphore_mem>>
      tpu.wait_dma2 semaphore(%1955 : memref<!tpu.dma_semaphore, #tpu.memory_space<semaphore_mem>>) src(%1951 : memref<1x16x128xf32, #tpu.memory_space<any>>) dst(%1953 : memref<1x16x128xf32, #tpu.memory_space<vmem>>)
    } else {
    }
    %c0_i32_21 = arith.constant 0 : i32
    %33 = arith.cmpi eq, %arg1, %c0_i32_21 : i32
    %34 = arith.extui %33 : i1 to i32
    %c0_i32_22 = arith.constant 0 : i32
    %35 = arith.cmpi ne, %34, %c0_i32_22 : i32
    scf.if %35 {
      %cst = arith.constant 0.000000e+00 : f32
      %1950 = vector.broadcast %cst : f32 to vector<1x32x128xf32>
      %c0_539 = arith.constant 0 : index
      %c17 = arith.constant 17 : index
      %c0_540 = arith.constant 0 : index
      %c0_541 = arith.constant 0 : index
      %1951 = vector.load %arg10[%c0_539, %c17, %c0_540, %c0_541] : memref<2x18x32x128xf32, #tpu.memory_space<vmem>>, vector<1x1x32x128xf32>
      %1952 = vector.shape_cast %1951 : vector<1x1x32x128xf32> to vector<1x32x128xf32>
      %1953 = vector.shape_cast %1950 : vector<1x32x128xf32> to vector<1x1x32x128xf32>
      tpu.vector_store %arg10[%c0_539, %c17, %c0_540, %c0_541], %1953 {strides = array<i32>} : memref<2x18x32x128xf32, #tpu.memory_space<vmem>>, vector<1x1x32x128xf32>,
    } else {
    }
    %c0 = arith.constant 0 : index
    %c0_23 = arith.constant 0 : index
    %c0_24 = arith.constant 0 : index
    %36 = vector.load %arg3[%c0, %c0_23, %c0_24] : memref<4x4x128xf32, #tpu.memory_space<vmem>>, vector<4x4x128xf32>
    %c0_25 = arith.constant 0 : index
    %c0_26 = arith.constant 0 : index
    %c0_27 = arith.constant 0 : index
    %37 = vector.load %arg5[%c0_25, %c0_26, %c0_27] : memref<4x4x128xf32, #tpu.memory_space<vmem>>, vector<4x4x128xf32>
    %c0_28 = arith.constant 0 : index
    %c0_29 = arith.constant 0 : index
    %c0_30 = arith.constant 0 : index
    %38 = vector.load %arg7[%c0_28, %c0_29, %c0_30] : memref<4x4x128xf32, #tpu.memory_space<vmem>>, vector<4x4x128xf32>
    %c0_31 = arith.constant 0 : index
    %c0_32 = arith.constant 0 : index
    %c0_33 = arith.constant 0 : index
    %39 = vector.load %arg4[%c0_31, %c0_32, %c0_33] : memref<1x1x128xf32, #tpu.memory_space<vmem>>, vector<1x1x128xf32>
    %40 = vector.shape_cast %39 : vector<1x1x128xf32> to vector<128xf32>
    %c0_34 = arith.constant 0 : index
    %c0_35 = arith.constant 0 : index
    %c0_36 = arith.constant 0 : index
    %41 = vector.load %arg6[%c0_34, %c0_35, %c0_36] : memref<1x1x128xf32, #tpu.memory_space<vmem>>, vector<1x1x128xf32>
    %42 = vector.shape_cast %41 : vector<1x1x128xf32> to vector<128xf32>
    %c0_37 = arith.constant 0 : index
    %c0_38 = arith.constant 0 : index
    %c0_39 = arith.constant 0 : index
    %43 = vector.load %arg8[%c0_37, %c0_38, %c0_39] : memref<1x1x128xf32, #tpu.memory_space<vmem>>, vector<1x1x128xf32>
    %44 = vector.shape_cast %43 : vector<1x1x128xf32> to vector<128xf32>
    %c0_i32_40 = arith.constant 0 : i32
    %c3_i32 = arith.constant 3 : i32
    %45 = arith.muli %c0_i32_40, %c3_i32 : i32
    %46 = vector.shape_cast %40 : vector<128xf32> to vector<1x1x128xf32>
    %47 = vector.broadcast %46 : vector<1x1x128xf32> to vector<3x15x128xf32>
    %48 = vector.shape_cast %42 : vector<128xf32> to vector<1x1x128xf32>
    %49 = vector.broadcast %48 : vector<1x1x128xf32> to vector<3x15x128xf32>
    %50 = vector.shape_cast %44 : vector<128xf32> to vector<1x1x128xf32>
    %51 = vector.broadcast %50 : vector<1x1x128xf32> to vector<3x15x128xf32>
    %c0_i32_41 = arith.constant 0 : i32
    %52 = arith.addi %45, %c0_i32_41 : i32
    %c0_i32_42 = arith.constant 0 : i32
    %c0_i32_43 = arith.constant 0 : i32
    %c0_i32_44 = arith.constant 0 : i32
    %53 = tpu.memref_slice %arg10[%9, %c0_i32_42, %c0_i32_43, %c0_i32_44] : memref<2x18x32x128xf32, #tpu.memory_space<vmem>> -> memref<1x18x32x128xf32, #tpu.memory_space<vmem>>
    %54 = tpu.memref_squeeze %53 : memref<1x18x32x128xf32, #tpu.memory_space<vmem>> -> memref<18x32x128xf32, #tpu.memory_space<vmem>>
    %55 = arith.index_cast %52 : i32 to index
    %c7 = arith.constant 7 : index
    %c0_45 = arith.constant 0 : index
    %56 = vector.load %54[%55, %c7, %c0_45] : memref<18x32x128xf32, #tpu.memory_space<vmem>>, vector<3x15x128xf32>
    %57 = vector.extract_strided_slice %36 {offsets = [0, 0, 0], sizes = [1, 1, 128], strides = [1, 1, 1]} : vector<4x4x128xf32> to vector<1x1x128xf32>
    %58 = vector.shape_cast %57 : vector<1x1x128xf32> to vector<128xf32>
    %59 = vector.shape_cast %58 : vector<128xf32> to vector<1x1x128xf32>
    %60 = vector.broadcast %59 : vector<1x1x128xf32> to vector<3x15x128xf32>
    %61 = arith.mulf %56, %60 : vector<3x15x128xf32>
    %62 = arith.addf %47, %61 : vector<3x15x128xf32>
    %63 = vector.extract_strided_slice %37 {offsets = [0, 0, 0], sizes = [1, 1, 128], strides = [1, 1, 1]} : vector<4x4x128xf32> to vector<1x1x128xf32>
    %64 = vector.shape_cast %63 : vector<1x1x128xf32> to vector<128xf32>
    %65 = vector.shape_cast %64 : vector<128xf32> to vector<1x1x128xf32>
    %66 = vector.broadcast %65 : vector<1x1x128xf32> to vector<3x15x128xf32>
    %67 = arith.mulf %56, %66 : vector<3x15x128xf32>
    %68 = arith.addf %49, %67 : vector<3x15x128xf32>
    %69 = vector.extract_strided_slice %38 {offsets = [0, 0, 0], sizes = [1, 1, 128], strides = [1, 1, 1]} : vector<4x4x128xf32> to vector<1x1x128xf32>
    %70 = vector.shape_cast %69 : vector<1x1x128xf32> to vector<128xf32>
    %71 = vector.shape_cast %70 : vector<128xf32> to vector<1x1x128xf32>
    %72 = vector.broadcast %71 : vector<1x1x128xf32> to vector<3x15x128xf32>
    %73 = arith.mulf %56, %72 : vector<3x15x128xf32>
    %74 = arith.addf %51, %73 : vector<3x15x128xf32>
    %c0_i32_46 = arith.constant 0 : i32
    %75 = arith.addi %45, %c0_i32_46 : i32
    %c0_i32_47 = arith.constant 0 : i32
    %c0_i32_48 = arith.constant 0 : i32
    %c0_i32_49 = arith.constant 0 : i32
    %76 = tpu.memref_slice %arg10[%9, %c0_i32_47, %c0_i32_48, %c0_i32_49] : memref<2x18x32x128xf32, #tpu.memory_space<vmem>> -> memref<1x18x32x128xf32, #tpu.memory_space<vmem>>
    %77 = tpu.memref_squeeze %76 : memref<1x18x32x128xf32, #tpu.memory_space<vmem>> -> memref<18x32x128xf32, #tpu.memory_space<vmem>>
    %78 = arith.index_cast %75 : i32 to index
    %c8 = arith.constant 8 : index
    %c0_50 = arith.constant 0 : index
    %79 = vector.load %77[%78, %c8, %c0_50] : memref<18x32x128xf32, #tpu.memory_space<vmem>>, vector<3x15x128xf32>
    %80 = vector.extract_strided_slice %36 {offsets = [0, 1, 0], sizes = [1, 1, 128], strides = [1, 1, 1]} : vector<4x4x128xf32> to vector<1x1x128xf32>
    %81 = vector.shape_cast %80 : vector<1x1x128xf32> to vector<128xf32>
    %82 = vector.shape_cast %81 : vector<128xf32> to vector<1x1x128xf32>
    %83 = vector.broadcast %82 : vector<1x1x128xf32> to vector<3x15x128xf32>
    %84 = arith.mulf %79, %83 : vector<3x15x128xf32>
    %85 = arith.addf %62, %84 : vector<3x15x128xf32>
    %86 = vector.extract_strided_slice %37 {offsets = [0, 1, 0], sizes = [1, 1, 128], strides = [1, 1, 1]} : vector<4x4x128xf32> to vector<1x1x128xf32>
    %87 = vector.shape_cast %86 : vector<1x1x128xf32> to vector<128xf32>
    %88 = vector.shape_cast %87 : vector<128xf32> to vector<1x1x128xf32>
    %89 = vector.broadcast %88 : vector<1x1x128xf32> to vector<3x15x128xf32>
    %90 = arith.mulf %79, %89 : vector<3x15x128xf32>
    %91 = arith.addf %68, %90 : vector<3x15x128xf32>
    %92 = vector.extract_strided_slice %38 {offsets = [0, 1, 0], sizes = [1, 1, 128], strides = [1, 1, 1]} : vector<4x4x128xf32> to vector<1x1x128xf32>
    %93 = vector.shape_cast %92 : vector<1x1x128xf32> to vector<128xf32>
    %94 = vector.shape_cast %93 : vector<128xf32> to vector<1x1x128xf32>
    %95 = vector.broadcast %94 : vector<1x1x128xf32> to vector<3x15x128xf32>
    %96 = arith.mulf %79, %95 : vector<3x15x128xf32>
    %97 = arith.addf %74, %96 : vector<3x15x128xf32>
    %c0_i32_51 = arith.constant 0 : i32
    %98 = arith.addi %45, %c0_i32_51 : i32
    %c0_i32_52 = arith.constant 0 : i32
    %c0_i32_53 = arith.constant 0 : i32
    %c0_i32_54 = arith.constant 0 : i32
    %99 = tpu.memref_slice %arg10[%9, %c0_i32_52, %c0_i32_53, %c0_i32_54] : memref<2x18x32x128xf32, #tpu.memory_space<vmem>> -> memref<1x18x32x128xf32, #tpu.memory_space<vmem>>
    %100 = tpu.memref_squeeze %99 : memref<1x18x32x128xf32, #tpu.memory_space<vmem>> -> memref<18x32x128xf32, #tpu.memory_space<vmem>>
    %101 = arith.index_cast %98 : i32 to index
    %c9 = arith.constant 9 : index
    %c0_55 = arith.constant 0 : index
    %102 = vector.load %100[%101, %c9, %c0_55] : memref<18x32x128xf32, #tpu.memory_space<vmem>>, vector<3x15x128xf32>
    %103 = vector.extract_strided_slice %36 {offsets = [0, 2, 0], sizes = [1, 1, 128], strides = [1, 1, 1]} : vector<4x4x128xf32> to vector<1x1x128xf32>
    %104 = vector.shape_cast %103 : vector<1x1x128xf32> to vector<128xf32>
    %105 = vector.shape_cast %104 : vector<128xf32> to vector<1x1x128xf32>
    %106 = vector.broadcast %105 : vector<1x1x128xf32> to vector<3x15x128xf32>
    %107 = arith.mulf %102, %106 : vector<3x15x128xf32>
    %108 = arith.addf %85, %107 : vector<3x15x128xf32>
    %109 = vector.extract_strided_slice %37 {offsets = [0, 2, 0], sizes = [1, 1, 128], strides = [1, 1, 1]} : vector<4x4x128xf32> to vector<1x1x128xf32>
    %110 = vector.shape_cast %109 : vector<1x1x128xf32> to vector<128xf32>
    %111 = vector.shape_cast %110 : vector<128xf32> to vector<1x1x128xf32>
    %112 = vector.broadcast %111 : vector<1x1x128xf32> to vector<3x15x128xf32>
    %113 = arith.mulf %102, %112 : vector<3x15x128xf32>
    %114 = arith.addf %91, %113 : vector<3x15x128xf32>
    %115 = vector.extract_strided_slice %38 {offsets = [0, 2, 0], sizes = [1, 1, 128], strides = [1, 1, 1]} : vector<4x4x128xf32> to vector<1x1x128xf32>
    %116 = vector.shape_cast %115 : vector<1x1x128xf32> to vector<128xf32>
    %117 = vector.shape_cast %116 : vector<128xf32> to vector<1x1x128xf32>
    %118 = vector.broadcast %117 : vector<1x1x128xf32> to vector<3x15x128xf32>
    %119 = arith.mulf %102, %118 : vector<3x15x128xf32>
    %120 = arith.addf %97, %119 : vector<3x15x128xf32>
    %c0_i32_56 = arith.constant 0 : i32
    %121 = arith.addi %45, %c0_i32_56 : i32
    %c0_i32_57 = arith.constant 0 : i32
    %c0_i32_58 = arith.constant 0 : i32
    %c0_i32_59 = arith.constant 0 : i32
    %122 = tpu.memref_slice %arg10[%9, %c0_i32_57, %c0_i32_58, %c0_i32_59] : memref<2x18x32x128xf32, #tpu.memory_space<vmem>> -> memref<1x18x32x128xf32, #tpu.memory_space<vmem>>
    %123 = tpu.memref_squeeze %122 : memref<1x18x32x128xf32, #tpu.memory_space<vmem>> -> memref<18x32x128xf32, #tpu.memory_space<vmem>>
    %124 = arith.index_cast %121 : i32 to index
    %c10 = arith.constant 10 : index
    %c0_60 = arith.constant 0 : index
    %125 = vector.load %123[%124, %c10, %c0_60] : memref<18x32x128xf32, #tpu.memory_space<vmem>>, vector<3x15x128xf32>
    %126 = vector.extract_strided_slice %36 {offsets = [0, 3, 0], sizes = [1, 1, 128], strides = [1, 1, 1]} : vector<4x4x128xf32> to vector<1x1x128xf32>
    %127 = vector.shape_cast %126 : vector<1x1x128xf32> to vector<128xf32>
    %128 = vector.shape_cast %127 : vector<128xf32> to vector<1x1x128xf32>
    %129 = vector.broadcast %128 : vector<1x1x128xf32> to vector<3x15x128xf32>
    %130 = arith.mulf %125, %129 : vector<3x15x128xf32>
    %131 = arith.addf %108, %130 : vector<3x15x128xf32>
    %132 = vector.extract_strided_slice %37 {offsets = [0, 3, 0], sizes = [1, 1, 128], strides = [1, 1, 1]} : vector<4x4x128xf32> to vector<1x1x128xf32>
    %133 = vector.shape_cast %132 : vector<1x1x128xf32> to vector<128xf32>
    %134 = vector.shape_cast %133 : vector<128xf32> to vector<1x1x128xf32>
    %135 = vector.broadcast %134 : vector<1x1x128xf32> to vector<3x15x128xf32>
    %136 = arith.mulf %125, %135 : vector<3x15x128xf32>
    %137 = arith.addf %114, %136 : vector<3x15x128xf32>
    %138 = vector.extract_strided_slice %38 {offsets = [0, 3, 0], sizes = [1, 1, 128], strides = [1, 1, 1]} : vector<4x4x128xf32> to vector<1x1x128xf32>
    %139 = vector.shape_cast %138 : vector<1x1x128xf32> to vector<128xf32>
    %140 = vector.shape_cast %139 : vector<128xf32> to vector<1x1x128xf32>
    %141 = vector.broadcast %140 : vector<1x1x128xf32> to vector<3x15x128xf32>
    %142 = arith.mulf %125, %141 : vector<3x15x128xf32>
    %143 = arith.addf %120, %142 : vector<3x15x128xf32>
    %c1_i32_61 = arith.constant 1 : i32
    %144 = arith.addi %45, %c1_i32_61 : i32
    %c0_i32_62 = arith.constant 0 : i32
    %c0_i32_63 = arith.constant 0 : i32
    %c0_i32_64 = arith.constant 0 : i32
    %145 = tpu.memref_slice %arg10[%9, %c0_i32_62, %c0_i32_63, %c0_i32_64] : memref<2x18x32x128xf32, #tpu.memory_space<vmem>> -> memref<1x18x32x128xf32, #tpu.memory_space<vmem>>
    %146 = tpu.memref_squeeze %145 : memref<1x18x32x128xf32, #tpu.memory_space<vmem>> -> memref<18x32x128xf32, #tpu.memory_space<vmem>>
    %147 = arith.index_cast %144 : i32 to index
    %c7_65 = arith.constant 7 : index
    %c0_66 = arith.constant 0 : index
    %148 = vector.load %146[%147, %c7_65, %c0_66] : memref<18x32x128xf32, #tpu.memory_space<vmem>>, vector<3x15x128xf32>
    %149 = vector.extract_strided_slice %36 {offsets = [1, 0, 0], sizes = [1, 1, 128], strides = [1, 1, 1]} : vector<4x4x128xf32> to vector<1x1x128xf32>
    %150 = vector.shape_cast %149 : vector<1x1x128xf32> to vector<128xf32>
    %151 = vector.shape_cast %150 : vector<128xf32> to vector<1x1x128xf32>
    %152 = vector.broadcast %151 : vector<1x1x128xf32> to vector<3x15x128xf32>
    %153 = arith.mulf %148, %152 : vector<3x15x128xf32>
    %154 = arith.addf %131, %153 : vector<3x15x128xf32>
    %155 = vector.extract_strided_slice %37 {offsets = [1, 0, 0], sizes = [1, 1, 128], strides = [1, 1, 1]} : vector<4x4x128xf32> to vector<1x1x128xf32>
    %156 = vector.shape_cast %155 : vector<1x1x128xf32> to vector<128xf32>
    %157 = vector.shape_cast %156 : vector<128xf32> to vector<1x1x128xf32>
    %158 = vector.broadcast %157 : vector<1x1x128xf32> to vector<3x15x128xf32>
    %159 = arith.mulf %148, %158 : vector<3x15x128xf32>
    %160 = arith.addf %137, %159 : vector<3x15x128xf32>
    %161 = vector.extract_strided_slice %38 {offsets = [1, 0, 0], sizes = [1, 1, 128], strides = [1, 1, 1]} : vector<4x4x128xf32> to vector<1x1x128xf32>
    %162 = vector.shape_cast %161 : vector<1x1x128xf32> to vector<128xf32>
    %163 = vector.shape_cast %162 : vector<128xf32> to vector<1x1x128xf32>
    %164 = vector.broadcast %163 : vector<1x1x128xf32> to vector<3x15x128xf32>
    %165 = arith.mulf %148, %164 : vector<3x15x128xf32>
    %166 = arith.addf %143, %165 : vector<3x15x128xf32>
    %c1_i32_67 = arith.constant 1 : i32
    %167 = arith.addi %45, %c1_i32_67 : i32
    %c0_i32_68 = arith.constant 0 : i32
    %c0_i32_69 = arith.constant 0 : i32
    %c0_i32_70 = arith.constant 0 : i32
    %168 = tpu.memref_slice %arg10[%9, %c0_i32_68, %c0_i32_69, %c0_i32_70] : memref<2x18x32x128xf32, #tpu.memory_space<vmem>> -> memref<1x18x32x128xf32, #tpu.memory_space<vmem>>
    %169 = tpu.memref_squeeze %168 : memref<1x18x32x128xf32, #tpu.memory_space<vmem>> -> memref<18x32x128xf32, #tpu.memory_space<vmem>>
    %170 = arith.index_cast %167 : i32 to index
    %c8_71 = arith.constant 8 : index
    %c0_72 = arith.constant 0 : index
    %171 = vector.load %169[%170, %c8_71, %c0_72] : memref<18x32x128xf32, #tpu.memory_space<vmem>>, vector<3x15x128xf32>
    %172 = vector.extract_strided_slice %36 {offsets = [1, 1, 0], sizes = [1, 1, 128], strides = [1, 1, 1]} : vector<4x4x128xf32> to vector<1x1x128xf32>
    %173 = vector.shape_cast %172 : vector<1x1x128xf32> to vector<128xf32>
    %174 = vector.shape_cast %173 : vector<128xf32> to vector<1x1x128xf32>
    %175 = vector.broadcast %174 : vector<1x1x128xf32> to vector<3x15x128xf32>
    %176 = arith.mulf %171, %175 : vector<3x15x128xf32>
    %177 = arith.addf %154, %176 : vector<3x15x128xf32>
    %178 = vector.extract_strided_slice %37 {offsets = [1, 1, 0], sizes = [1, 1, 128], strides = [1, 1, 1]} : vector<4x4x128xf32> to vector<1x1x128xf32>
    %179 = vector.shape_cast %178 : vector<1x1x128xf32> to vector<128xf32>
    %180 = vector.shape_cast %179 : vector<128xf32> to vector<1x1x128xf32>
    %181 = vector.broadcast %180 : vector<1x1x128xf32> to vector<3x15x128xf32>
    %182 = arith.mulf %171, %181 : vector<3x15x128xf32>
    %183 = arith.addf %160, %182 : vector<3x15x128xf32>
    %184 = vector.extract_strided_slice %38 {offsets = [1, 1, 0], sizes = [1, 1, 128], strides = [1, 1, 1]} : vector<4x4x128xf32> to vector<1x1x128xf32>
    %185 = vector.shape_cast %184 : vector<1x1x128xf32> to vector<128xf32>
    %186 = vector.shape_cast %185 : vector<128xf32> to vector<1x1x128xf32>
    %187 = vector.broadcast %186 : vector<1x1x128xf32> to vector<3x15x128xf32>
    %188 = arith.mulf %171, %187 : vector<3x15x128xf32>
    %189 = arith.addf %166, %188 : vector<3x15x128xf32>
    %c1_i32_73 = arith.constant 1 : i32
    %190 = arith.addi %45, %c1_i32_73 : i32
    %c0_i32_74 = arith.constant 0 : i32
    %c0_i32_75 = arith.constant 0 : i32
    %c0_i32_76 = arith.constant 0 : i32
    %191 = tpu.memref_slice %arg10[%9, %c0_i32_74, %c0_i32_75, %c0_i32_76] : memref<2x18x32x128xf32, #tpu.memory_space<vmem>> -> memref<1x18x32x128xf32, #tpu.memory_space<vmem>>
    %192 = tpu.memref_squeeze %191 : memref<1x18x32x128xf32, #tpu.memory_space<vmem>> -> memref<18x32x128xf32, #tpu.memory_space<vmem>>
    %193 = arith.index_cast %190 : i32 to index
    %c9_77 = arith.constant 9 : index
    %c0_78 = arith.constant 0 : index
    %194 = vector.load %192[%193, %c9_77, %c0_78] : memref<18x32x128xf32, #tpu.memory_space<vmem>>, vector<3x15x128xf32>
    %195 = vector.extract_strided_slice %36 {offsets = [1, 2, 0], sizes = [1, 1, 128], strides = [1, 1, 1]} : vector<4x4x128xf32> to vector<1x1x128xf32>
    %196 = vector.shape_cast %195 : vector<1x1x128xf32> to vector<128xf32>
    %197 = vector.shape_cast %196 : vector<128xf32> to vector<1x1x128xf32>
    %198 = vector.broadcast %197 : vector<1x1x128xf32> to vector<3x15x128xf32>
    %199 = arith.mulf %194, %198 : vector<3x15x128xf32>
    %200 = arith.addf %177, %199 : vector<3x15x128xf32>
    %201 = vector.extract_strided_slice %37 {offsets = [1, 2, 0], sizes = [1, 1, 128], strides = [1, 1, 1]} : vector<4x4x128xf32> to vector<1x1x128xf32>
    %202 = vector.shape_cast %201 : vector<1x1x128xf32> to vector<128xf32>
    %203 = vector.shape_cast %202 : vector<128xf32> to vector<1x1x128xf32>
    %204 = vector.broadcast %203 : vector<1x1x128xf32> to vector<3x15x128xf32>
    %205 = arith.mulf %194, %204 : vector<3x15x128xf32>
    %206 = arith.addf %183, %205 : vector<3x15x128xf32>
    %207 = vector.extract_strided_slice %38 {offsets = [1, 2, 0], sizes = [1, 1, 128], strides = [1, 1, 1]} : vector<4x4x128xf32> to vector<1x1x128xf32>
    %208 = vector.shape_cast %207 : vector<1x1x128xf32> to vector<128xf32>
    %209 = vector.shape_cast %208 : vector<128xf32> to vector<1x1x128xf32>
    %210 = vector.broadcast %209 : vector<1x1x128xf32> to vector<3x15x128xf32>
    %211 = arith.mulf %194, %210 : vector<3x15x128xf32>
    %212 = arith.addf %189, %211 : vector<3x15x128xf32>
    %c1_i32_79 = arith.constant 1 : i32
    %213 = arith.addi %45, %c1_i32_79 : i32
    %c0_i32_80 = arith.constant 0 : i32
    %c0_i32_81 = arith.constant 0 : i32
    %c0_i32_82 = arith.constant 0 : i32
    %214 = tpu.memref_slice %arg10[%9, %c0_i32_80, %c0_i32_81, %c0_i32_82] : memref<2x18x32x128xf32, #tpu.memory_space<vmem>> -> memref<1x18x32x128xf32, #tpu.memory_space<vmem>>
    %215 = tpu.memref_squeeze %214 : memref<1x18x32x128xf32, #tpu.memory_space<vmem>> -> memref<18x32x128xf32, #tpu.memory_space<vmem>>
    %216 = arith.index_cast %213 : i32 to index
    %c10_83 = arith.constant 10 : index
    %c0_84 = arith.constant 0 : index
    %217 = vector.load %215[%216, %c10_83, %c0_84] : memref<18x32x128xf32, #tpu.memory_space<vmem>>, vector<3x15x128xf32>
    %218 = vector.extract_strided_slice %36 {offsets = [1, 3, 0], sizes = [1, 1, 128], strides = [1, 1, 1]} : vector<4x4x128xf32> to vector<1x1x128xf32>
    %219 = vector.shape_cast %218 : vector<1x1x128xf32> to vector<128xf32>
    %220 = vector.shape_cast %219 : vector<128xf32> to vector<1x1x128xf32>
    %221 = vector.broadcast %220 : vector<1x1x128xf32> to vector<3x15x128xf32>
    %222 = arith.mulf %217, %221 : vector<3x15x128xf32>
    %223 = arith.addf %200, %222 : vector<3x15x128xf32>
    %224 = vector.extract_strided_slice %37 {offsets = [1, 3, 0], sizes = [1, 1, 128], strides = [1, 1, 1]} : vector<4x4x128xf32> to vector<1x1x128xf32>
    %225 = vector.shape_cast %224 : vector<1x1x128xf32> to vector<128xf32>
    %226 = vector.shape_cast %225 : vector<128xf32> to vector<1x1x128xf32>
    %227 = vector.broadcast %226 : vector<1x1x128xf32> to vector<3x15x128xf32>
    %228 = arith.mulf %217, %227 : vector<3x15x128xf32>
    %229 = arith.addf %206, %228 : vector<3x15x128xf32>
    %230 = vector.extract_strided_slice %38 {offsets = [1, 3, 0], sizes = [1, 1, 128], strides = [1, 1, 1]} : vector<4x4x128xf32> to vector<1x1x128xf32>
    %231 = vector.shape_cast %230 : vector<1x1x128xf32> to vector<128xf32>
    %232 = vector.shape_cast %231 : vector<128xf32> to vector<1x1x128xf32>
    %233 = vector.broadcast %232 : vector<1x1x128xf32> to vector<3x15x128xf32>
    %234 = arith.mulf %217, %233 : vector<3x15x128xf32>
    %235 = arith.addf %212, %234 : vector<3x15x128xf32>
    %c2_i32_85 = arith.constant 2 : i32
    %236 = arith.addi %45, %c2_i32_85 : i32
    %c0_i32_86 = arith.constant 0 : i32
    %c0_i32_87 = arith.constant 0 : i32
    %c0_i32_88 = arith.constant 0 : i32
    %237 = tpu.memref_slice %arg10[%9, %c0_i32_86, %c0_i32_87, %c0_i32_88] : memref<2x18x32x128xf32, #tpu.memory_space<vmem>> -> memref<1x18x32x128xf32, #tpu.memory_space<vmem>>
    %238 = tpu.memref_squeeze %237 : memref<1x18x32x128xf32, #tpu.memory_space<vmem>> -> memref<18x32x128xf32, #tpu.memory_space<vmem>>
    %239 = arith.index_cast %236 : i32 to index
    %c7_89 = arith.constant 7 : index
    %c0_90 = arith.constant 0 : index
    %240 = vector.load %238[%239, %c7_89, %c0_90] : memref<18x32x128xf32, #tpu.memory_space<vmem>>, vector<3x15x128xf32>
    %241 = vector.extract_strided_slice %36 {offsets = [2, 0, 0], sizes = [1, 1, 128], strides = [1, 1, 1]} : vector<4x4x128xf32> to vector<1x1x128xf32>
    %242 = vector.shape_cast %241 : vector<1x1x128xf32> to vector<128xf32>
    %243 = vector.shape_cast %242 : vector<128xf32> to vector<1x1x128xf32>
    %244 = vector.broadcast %243 : vector<1x1x128xf32> to vector<3x15x128xf32>
    %245 = arith.mulf %240, %244 : vector<3x15x128xf32>
    %246 = arith.addf %223, %245 : vector<3x15x128xf32>
    %247 = vector.extract_strided_slice %37 {offsets = [2, 0, 0], sizes = [1, 1, 128], strides = [1, 1, 1]} : vector<4x4x128xf32> to vector<1x1x128xf32>
    %248 = vector.shape_cast %247 : vector<1x1x128xf32> to vector<128xf32>
    %249 = vector.shape_cast %248 : vector<128xf32> to vector<1x1x128xf32>
    %250 = vector.broadcast %249 : vector<1x1x128xf32> to vector<3x15x128xf32>
    %251 = arith.mulf %240, %250 : vector<3x15x128xf32>
    %252 = arith.addf %229, %251 : vector<3x15x128xf32>
    %253 = vector.extract_strided_slice %38 {offsets = [2, 0, 0], sizes = [1, 1, 128], strides = [1, 1, 1]} : vector<4x4x128xf32> to vector<1x1x128xf32>
    %254 = vector.shape_cast %253 : vector<1x1x128xf32> to vector<128xf32>
    %255 = vector.shape_cast %254 : vector<128xf32> to vector<1x1x128xf32>
    %256 = vector.broadcast %255 : vector<1x1x128xf32> to vector<3x15x128xf32>
    %257 = arith.mulf %240, %256 : vector<3x15x128xf32>
    %258 = arith.addf %235, %257 : vector<3x15x128xf32>
    %c2_i32_91 = arith.constant 2 : i32
    %259 = arith.addi %45, %c2_i32_91 : i32
    %c0_i32_92 = arith.constant 0 : i32
    %c0_i32_93 = arith.constant 0 : i32
    %c0_i32_94 = arith.constant 0 : i32
    %260 = tpu.memref_slice %arg10[%9, %c0_i32_92, %c0_i32_93, %c0_i32_94] : memref<2x18x32x128xf32, #tpu.memory_space<vmem>> -> memref<1x18x32x128xf32, #tpu.memory_space<vmem>>
    %261 = tpu.memref_squeeze %260 : memref<1x18x32x128xf32, #tpu.memory_space<vmem>> -> memref<18x32x128xf32, #tpu.memory_space<vmem>>
    %262 = arith.index_cast %259 : i32 to index
    %c8_95 = arith.constant 8 : index
    %c0_96 = arith.constant 0 : index
    %263 = vector.load %261[%262, %c8_95, %c0_96] : memref<18x32x128xf32, #tpu.memory_space<vmem>>, vector<3x15x128xf32>
    %264 = vector.extract_strided_slice %36 {offsets = [2, 1, 0], sizes = [1, 1, 128], strides = [1, 1, 1]} : vector<4x4x128xf32> to vector<1x1x128xf32>
    %265 = vector.shape_cast %264 : vector<1x1x128xf32> to vector<128xf32>
    %266 = vector.shape_cast %265 : vector<128xf32> to vector<1x1x128xf32>
    %267 = vector.broadcast %266 : vector<1x1x128xf32> to vector<3x15x128xf32>
    %268 = arith.mulf %263, %267 : vector<3x15x128xf32>
    %269 = arith.addf %246, %268 : vector<3x15x128xf32>
    %270 = vector.extract_strided_slice %37 {offsets = [2, 1, 0], sizes = [1, 1, 128], strides = [1, 1, 1]} : vector<4x4x128xf32> to vector<1x1x128xf32>
    %271 = vector.shape_cast %270 : vector<1x1x128xf32> to vector<128xf32>
    %272 = vector.shape_cast %271 : vector<128xf32> to vector<1x1x128xf32>
    %273 = vector.broadcast %272 : vector<1x1x128xf32> to vector<3x15x128xf32>
    %274 = arith.mulf %263, %273 : vector<3x15x128xf32>
    %275 = arith.addf %252, %274 : vector<3x15x128xf32>
    %276 = vector.extract_strided_slice %38 {offsets = [2, 1, 0], sizes = [1, 1, 128], strides = [1, 1, 1]} : vector<4x4x128xf32> to vector<1x1x128xf32>
    %277 = vector.shape_cast %276 : vector<1x1x128xf32> to vector<128xf32>
    %278 = vector.shape_cast %277 : vector<128xf32> to vector<1x1x128xf32>
    %279 = vector.broadcast %278 : vector<1x1x128xf32> to vector<3x15x128xf32>
    %280 = arith.mulf %263, %279 : vector<3x15x128xf32>
    %281 = arith.addf %258, %280 : vector<3x15x128xf32>
    %c2_i32_97 = arith.constant 2 : i32
    %282 = arith.addi %45, %c2_i32_97 : i32
    %c0_i32_98 = arith.constant 0 : i32
    %c0_i32_99 = arith.constant 0 : i32
    %c0_i32_100 = arith.constant 0 : i32
    %283 = tpu.memref_slice %arg10[%9, %c0_i32_98, %c0_i32_99, %c0_i32_100] : memref<2x18x32x128xf32, #tpu.memory_space<vmem>> -> memref<1x18x32x128xf32, #tpu.memory_space<vmem>>
    %284 = tpu.memref_squeeze %283 : memref<1x18x32x128xf32, #tpu.memory_space<vmem>> -> memref<18x32x128xf32, #tpu.memory_space<vmem>>
    %285 = arith.index_cast %282 : i32 to index
    %c9_101 = arith.constant 9 : index
    %c0_102 = arith.constant 0 : index
    %286 = vector.load %284[%285, %c9_101, %c0_102] : memref<18x32x128xf32, #tpu.memory_space<vmem>>, vector<3x15x128xf32>
    %287 = vector.extract_strided_slice %36 {offsets = [2, 2, 0], sizes = [1, 1, 128], strides = [1, 1, 1]} : vector<4x4x128xf32> to vector<1x1x128xf32>
    %288 = vector.shape_cast %287 : vector<1x1x128xf32> to vector<128xf32>
    %289 = vector.shape_cast %288 : vector<128xf32> to vector<1x1x128xf32>
    %290 = vector.broadcast %289 : vector<1x1x128xf32> to vector<3x15x128xf32>
    %291 = arith.mulf %286, %290 : vector<3x15x128xf32>
    %292 = arith.addf %269, %291 : vector<3x15x128xf32>
    %293 = vector.extract_strided_slice %37 {offsets = [2, 2, 0], sizes = [1, 1, 128], strides = [1, 1, 1]} : vector<4x4x128xf32> to vector<1x1x128xf32>
    %294 = vector.shape_cast %293 : vector<1x1x128xf32> to vector<128xf32>
    %295 = vector.shape_cast %294 : vector<128xf32> to vector<1x1x128xf32>
    %296 = vector.broadcast %295 : vector<1x1x128xf32> to vector<3x15x128xf32>
    %297 = arith.mulf %286, %296 : vector<3x15x128xf32>
    %298 = arith.addf %275, %297 : vector<3x15x128xf32>
    %299 = vector.extract_strided_slice %38 {offsets = [2, 2, 0], sizes = [1, 1, 128], strides = [1, 1, 1]} : vector<4x4x128xf32> to vector<1x1x128xf32>
    %300 = vector.shape_cast %299 : vector<1x1x128xf32> to vector<128xf32>
    %301 = vector.shape_cast %300 : vector<128xf32> to vector<1x1x128xf32>
    %302 = vector.broadcast %301 : vector<1x1x128xf32> to vector<3x15x128xf32>
    %303 = arith.mulf %286, %302 : vector<3x15x128xf32>
    %304 = arith.addf %281, %303 : vector<3x15x128xf32>
    %c2_i32_103 = arith.constant 2 : i32
    %305 = arith.addi %45, %c2_i32_103 : i32
    %c0_i32_104 = arith.constant 0 : i32
    %c0_i32_105 = arith.constant 0 : i32
    %c0_i32_106 = arith.constant 0 : i32
    %306 = tpu.memref_slice %arg10[%9, %c0_i32_104, %c0_i32_105, %c0_i32_106] : memref<2x18x32x128xf32, #tpu.memory_space<vmem>> -> memref<1x18x32x128xf32, #tpu.memory_space<vmem>>
    %307 = tpu.memref_squeeze %306 : memref<1x18x32x128xf32, #tpu.memory_space<vmem>> -> memref<18x32x128xf32, #tpu.memory_space<vmem>>
    %308 = arith.index_cast %305 : i32 to index
    %c10_107 = arith.constant 10 : index
    %c0_108 = arith.constant 0 : index
    %309 = vector.load %307[%308, %c10_107, %c0_108] : memref<18x32x128xf32, #tpu.memory_space<vmem>>, vector<3x15x128xf32>
    %310 = vector.extract_strided_slice %36 {offsets = [2, 3, 0], sizes = [1, 1, 128], strides = [1, 1, 1]} : vector<4x4x128xf32> to vector<1x1x128xf32>
    %311 = vector.shape_cast %310 : vector<1x1x128xf32> to vector<128xf32>
    %312 = vector.shape_cast %311 : vector<128xf32> to vector<1x1x128xf32>
    %313 = vector.broadcast %312 : vector<1x1x128xf32> to vector<3x15x128xf32>
    %314 = arith.mulf %309, %313 : vector<3x15x128xf32>
    %315 = arith.addf %292, %314 : vector<3x15x128xf32>
    %316 = vector.extract_strided_slice %37 {offsets = [2, 3, 0], sizes = [1, 1, 128], strides = [1, 1, 1]} : vector<4x4x128xf32> to vector<1x1x128xf32>
    %317 = vector.shape_cast %316 : vector<1x1x128xf32> to vector<128xf32>
    %318 = vector.shape_cast %317 : vector<128xf32> to vector<1x1x128xf32>
    %319 = vector.broadcast %318 : vector<1x1x128xf32> to vector<3x15x128xf32>
    %320 = arith.mulf %309, %319 : vector<3x15x128xf32>
    %321 = arith.addf %298, %320 : vector<3x15x128xf32>
    %322 = vector.extract_strided_slice %38 {offsets = [2, 3, 0], sizes = [1, 1, 128], strides = [1, 1, 1]} : vector<4x4x128xf32> to vector<1x1x128xf32>
    %323 = vector.shape_cast %322 : vector<1x1x128xf32> to vector<128xf32>
    %324 = vector.shape_cast %323 : vector<128xf32> to vector<1x1x128xf32>
    %325 = vector.broadcast %324 : vector<1x1x128xf32> to vector<3x15x128xf32>
    %326 = arith.mulf %309, %325 : vector<3x15x128xf32>
    %327 = arith.addf %304, %326 : vector<3x15x128xf32>
    %c3_i32_109 = arith.constant 3 : i32
    %328 = arith.addi %45, %c3_i32_109 : i32
    %c0_i32_110 = arith.constant 0 : i32
    %c0_i32_111 = arith.constant 0 : i32
    %c0_i32_112 = arith.constant 0 : i32
    %329 = tpu.memref_slice %arg10[%9, %c0_i32_110, %c0_i32_111, %c0_i32_112] : memref<2x18x32x128xf32, #tpu.memory_space<vmem>> -> memref<1x18x32x128xf32, #tpu.memory_space<vmem>>
    %330 = tpu.memref_squeeze %329 : memref<1x18x32x128xf32, #tpu.memory_space<vmem>> -> memref<18x32x128xf32, #tpu.memory_space<vmem>>
    %331 = arith.index_cast %328 : i32 to index
    %c7_113 = arith.constant 7 : index
    %c0_114 = arith.constant 0 : index
    %332 = vector.load %330[%331, %c7_113, %c0_114] : memref<18x32x128xf32, #tpu.memory_space<vmem>>, vector<3x15x128xf32>
    %333 = vector.extract_strided_slice %36 {offsets = [3, 0, 0], sizes = [1, 1, 128], strides = [1, 1, 1]} : vector<4x4x128xf32> to vector<1x1x128xf32>
    %334 = vector.shape_cast %333 : vector<1x1x128xf32> to vector<128xf32>
    %335 = vector.shape_cast %334 : vector<128xf32> to vector<1x1x128xf32>
    %336 = vector.broadcast %335 : vector<1x1x128xf32> to vector<3x15x128xf32>
    %337 = arith.mulf %332, %336 : vector<3x15x128xf32>
    %338 = arith.addf %315, %337 : vector<3x15x128xf32>
    %339 = vector.extract_strided_slice %37 {offsets = [3, 0, 0], sizes = [1, 1, 128], strides = [1, 1, 1]} : vector<4x4x128xf32> to vector<1x1x128xf32>
    %340 = vector.shape_cast %339 : vector<1x1x128xf32> to vector<128xf32>
    %341 = vector.shape_cast %340 : vector<128xf32> to vector<1x1x128xf32>
    %342 = vector.broadcast %341 : vector<1x1x128xf32> to vector<3x15x128xf32>
    %343 = arith.mulf %332, %342 : vector<3x15x128xf32>
    %344 = arith.addf %321, %343 : vector<3x15x128xf32>
    %345 = vector.extract_strided_slice %38 {offsets = [3, 0, 0], sizes = [1, 1, 128], strides = [1, 1, 1]} : vector<4x4x128xf32> to vector<1x1x128xf32>
    %346 = vector.shape_cast %345 : vector<1x1x128xf32> to vector<128xf32>
    %347 = vector.shape_cast %346 : vector<128xf32> to vector<1x1x128xf32>
    %348 = vector.broadcast %347 : vector<1x1x128xf32> to vector<3x15x128xf32>
    %349 = arith.mulf %332, %348 : vector<3x15x128xf32>
    %350 = arith.addf %327, %349 : vector<3x15x128xf32>
    %c3_i32_115 = arith.constant 3 : i32
    %351 = arith.addi %45, %c3_i32_115 : i32
    %c0_i32_116 = arith.constant 0 : i32
    %c0_i32_117 = arith.constant 0 : i32
    %c0_i32_118 = arith.constant 0 : i32
    %352 = tpu.memref_slice %arg10[%9, %c0_i32_116, %c0_i32_117, %c0_i32_118] : memref<2x18x32x128xf32, #tpu.memory_space<vmem>> -> memref<1x18x32x128xf32, #tpu.memory_space<vmem>>
    %353 = tpu.memref_squeeze %352 : memref<1x18x32x128xf32, #tpu.memory_space<vmem>> -> memref<18x32x128xf32, #tpu.memory_space<vmem>>
    %354 = arith.index_cast %351 : i32 to index
    %c8_119 = arith.constant 8 : index
    %c0_120 = arith.constant 0 : index
    %355 = vector.load %353[%354, %c8_119, %c0_120] : memref<18x32x128xf32, #tpu.memory_space<vmem>>, vector<3x15x128xf32>
    %356 = vector.extract_strided_slice %36 {offsets = [3, 1, 0], sizes = [1, 1, 128], strides = [1, 1, 1]} : vector<4x4x128xf32> to vector<1x1x128xf32>
    %357 = vector.shape_cast %356 : vector<1x1x128xf32> to vector<128xf32>
    %358 = vector.shape_cast %357 : vector<128xf32> to vector<1x1x128xf32>
    %359 = vector.broadcast %358 : vector<1x1x128xf32> to vector<3x15x128xf32>
    %360 = arith.mulf %355, %359 : vector<3x15x128xf32>
    %361 = arith.addf %338, %360 : vector<3x15x128xf32>
    %362 = vector.extract_strided_slice %37 {offsets = [3, 1, 0], sizes = [1, 1, 128], strides = [1, 1, 1]} : vector<4x4x128xf32> to vector<1x1x128xf32>
    %363 = vector.shape_cast %362 : vector<1x1x128xf32> to vector<128xf32>
    %364 = vector.shape_cast %363 : vector<128xf32> to vector<1x1x128xf32>
    %365 = vector.broadcast %364 : vector<1x1x128xf32> to vector<3x15x128xf32>
    %366 = arith.mulf %355, %365 : vector<3x15x128xf32>
    %367 = arith.addf %344, %366 : vector<3x15x128xf32>
    %368 = vector.extract_strided_slice %38 {offsets = [3, 1, 0], sizes = [1, 1, 128], strides = [1, 1, 1]} : vector<4x4x128xf32> to vector<1x1x128xf32>
    %369 = vector.shape_cast %368 : vector<1x1x128xf32> to vector<128xf32>
    %370 = vector.shape_cast %369 : vector<128xf32> to vector<1x1x128xf32>
    %371 = vector.broadcast %370 : vector<1x1x128xf32> to vector<3x15x128xf32>
    %372 = arith.mulf %355, %371 : vector<3x15x128xf32>
    %373 = arith.addf %350, %372 : vector<3x15x128xf32>
    %c3_i32_121 = arith.constant 3 : i32
    %374 = arith.addi %45, %c3_i32_121 : i32
    %c0_i32_122 = arith.constant 0 : i32
    %c0_i32_123 = arith.constant 0 : i32
    %c0_i32_124 = arith.constant 0 : i32
    %375 = tpu.memref_slice %arg10[%9, %c0_i32_122, %c0_i32_123, %c0_i32_124] : memref<2x18x32x128xf32, #tpu.memory_space<vmem>> -> memref<1x18x32x128xf32, #tpu.memory_space<vmem>>
    %376 = tpu.memref_squeeze %375 : memref<1x18x32x128xf32, #tpu.memory_space<vmem>> -> memref<18x32x128xf32, #tpu.memory_space<vmem>>
    %377 = arith.index_cast %374 : i32 to index
    %c9_125 = arith.constant 9 : index
    %c0_126 = arith.constant 0 : index
    %378 = vector.load %376[%377, %c9_125, %c0_126] : memref<18x32x128xf32, #tpu.memory_space<vmem>>, vector<3x15x128xf32>
    %379 = vector.extract_strided_slice %36 {offsets = [3, 2, 0], sizes = [1, 1, 128], strides = [1, 1, 1]} : vector<4x4x128xf32> to vector<1x1x128xf32>
    %380 = vector.shape_cast %379 : vector<1x1x128xf32> to vector<128xf32>
    %381 = vector.shape_cast %380 : vector<128xf32> to vector<1x1x128xf32>
    %382 = vector.broadcast %381 : vector<1x1x128xf32> to vector<3x15x128xf32>
    %383 = arith.mulf %378, %382 : vector<3x15x128xf32>
    %384 = arith.addf %361, %383 : vector<3x15x128xf32>
    %385 = vector.extract_strided_slice %37 {offsets = [3, 2, 0], sizes = [1, 1, 128], strides = [1, 1, 1]} : vector<4x4x128xf32> to vector<1x1x128xf32>
    %386 = vector.shape_cast %385 : vector<1x1x128xf32> to vector<128xf32>
    %387 = vector.shape_cast %386 : vector<128xf32> to vector<1x1x128xf32>
    %388 = vector.broadcast %387 : vector<1x1x128xf32> to vector<3x15x128xf32>
    %389 = arith.mulf %378, %388 : vector<3x15x128xf32>
    %390 = arith.addf %367, %389 : vector<3x15x128xf32>
    %391 = vector.extract_strided_slice %38 {offsets = [3, 2, 0], sizes = [1, 1, 128], strides = [1, 1, 1]} : vector<4x4x128xf32> to vector<1x1x128xf32>
    %392 = vector.shape_cast %391 : vector<1x1x128xf32> to vector<128xf32>
    %393 = vector.shape_cast %392 : vector<128xf32> to vector<1x1x128xf32>
    %394 = vector.broadcast %393 : vector<1x1x128xf32> to vector<3x15x128xf32>
    %395 = arith.mulf %378, %394 : vector<3x15x128xf32>
    %396 = arith.addf %373, %395 : vector<3x15x128xf32>
    %c3_i32_127 = arith.constant 3 : i32
    %397 = arith.addi %45, %c3_i32_127 : i32
    %c0_i32_128 = arith.constant 0 : i32
    %c0_i32_129 = arith.constant 0 : i32
    %c0_i32_130 = arith.constant 0 : i32
    %398 = tpu.memref_slice %arg10[%9, %c0_i32_128, %c0_i32_129, %c0_i32_130] : memref<2x18x32x128xf32, #tpu.memory_space<vmem>> -> memref<1x18x32x128xf32, #tpu.memory_space<vmem>>
    %399 = tpu.memref_squeeze %398 : memref<1x18x32x128xf32, #tpu.memory_space<vmem>> -> memref<18x32x128xf32, #tpu.memory_space<vmem>>
    %400 = arith.index_cast %397 : i32 to index
    %c10_131 = arith.constant 10 : index
    %c0_132 = arith.constant 0 : index
    %401 = vector.load %399[%400, %c10_131, %c0_132] : memref<18x32x128xf32, #tpu.memory_space<vmem>>, vector<3x15x128xf32>
    %402 = vector.extract_strided_slice %36 {offsets = [3, 3, 0], sizes = [1, 1, 128], strides = [1, 1, 1]} : vector<4x4x128xf32> to vector<1x1x128xf32>
    %403 = vector.shape_cast %402 : vector<1x1x128xf32> to vector<128xf32>
    %404 = vector.shape_cast %403 : vector<128xf32> to vector<1x1x128xf32>
    %405 = vector.broadcast %404 : vector<1x1x128xf32> to vector<3x15x128xf32>
    %406 = arith.mulf %401, %405 : vector<3x15x128xf32>
    %407 = arith.addf %384, %406 : vector<3x15x128xf32>
    %408 = vector.extract_strided_slice %37 {offsets = [3, 3, 0], sizes = [1, 1, 128], strides = [1, 1, 1]} : vector<4x4x128xf32> to vector<1x1x128xf32>
    %409 = vector.shape_cast %408 : vector<1x1x128xf32> to vector<128xf32>
    %410 = vector.shape_cast %409 : vector<128xf32> to vector<1x1x128xf32>
    %411 = vector.broadcast %410 : vector<1x1x128xf32> to vector<3x15x128xf32>
    %412 = arith.mulf %401, %411 : vector<3x15x128xf32>
    %413 = arith.addf %390, %412 : vector<3x15x128xf32>
    %414 = vector.extract_strided_slice %38 {offsets = [3, 3, 0], sizes = [1, 1, 128], strides = [1, 1, 1]} : vector<4x4x128xf32> to vector<1x1x128xf32>
    %415 = vector.shape_cast %414 : vector<1x1x128xf32> to vector<128xf32>
    %416 = vector.shape_cast %415 : vector<128xf32> to vector<1x1x128xf32>
    %417 = vector.broadcast %416 : vector<1x1x128xf32> to vector<3x15x128xf32>
    %418 = arith.mulf %401, %417 : vector<3x15x128xf32>
    %419 = arith.addf %396, %418 : vector<3x15x128xf32>
    %420 = arith.mulf %407, %413 : vector<3x15x128xf32>
    %421 = arith.addf %420, %419 : vector<3x15x128xf32>
    %c0_133 = arith.constant 0 : index
    %422 = arith.index_cast %45 : i32 to index
    %c0_134 = arith.constant 0 : index
    %c0_135 = arith.constant 0 : index
    %423 = vector.load %arg9[%c0_133, %422, %c0_134, %c0_135] : memref<1x15x15x128xf32, #tpu.memory_space<vmem>>, vector<1x3x15x128xf32>
    %424 = vector.shape_cast %423 : vector<1x3x15x128xf32> to vector<3x15x128xf32>
    %425 = vector.shape_cast %421 : vector<3x15x128xf32> to vector<1x3x15x128xf32>
    tpu.vector_store %arg9[%c0_133, %422, %c0_134, %c0_135], %425 {strides = array<i32>} : memref<1x15x15x128xf32, #tpu.memory_space<vmem>>, vector<1x3x15x128xf32>,
    %c1_i32_136 = arith.constant 1 : i32
    %c3_i32_137 = arith.constant 3 : i32
    %426 = arith.muli %c1_i32_136, %c3_i32_137 : i32
    %427 = vector.shape_cast %40 : vector<128xf32> to vector<1x1x128xf32>
    %428 = vector.broadcast %427 : vector<1x1x128xf32> to vector<3x15x128xf32>
    %429 = vector.shape_cast %42 : vector<128xf32> to vector<1x1x128xf32>
    %430 = vector.broadcast %429 : vector<1x1x128xf32> to vector<3x15x128xf32>
    %431 = vector.shape_cast %44 : vector<128xf32> to vector<1x1x128xf32>
    %432 = vector.broadcast %431 : vector<1x1x128xf32> to vector<3x15x128xf32>
    %c0_i32_138 = arith.constant 0 : i32
    %433 = arith.addi %426, %c0_i32_138 : i32
    %c0_i32_139 = arith.constant 0 : i32
    %c0_i32_140 = arith.constant 0 : i32
    %c0_i32_141 = arith.constant 0 : i32
    %434 = tpu.memref_slice %arg10[%9, %c0_i32_139, %c0_i32_140, %c0_i32_141] : memref<2x18x32x128xf32, #tpu.memory_space<vmem>> -> memref<1x18x32x128xf32, #tpu.memory_space<vmem>>
    %435 = tpu.memref_squeeze %434 : memref<1x18x32x128xf32, #tpu.memory_space<vmem>> -> memref<18x32x128xf32, #tpu.memory_space<vmem>>
    %436 = arith.index_cast %433 : i32 to index
    %c7_142 = arith.constant 7 : index
    %c0_143 = arith.constant 0 : index
    %437 = vector.load %435[%436, %c7_142, %c0_143] : memref<18x32x128xf32, #tpu.memory_space<vmem>>, vector<3x15x128xf32>
    %438 = vector.extract_strided_slice %36 {offsets = [0, 0, 0], sizes = [1, 1, 128], strides = [1, 1, 1]} : vector<4x4x128xf32> to vector<1x1x128xf32>
    %439 = vector.shape_cast %438 : vector<1x1x128xf32> to vector<128xf32>
    %440 = vector.shape_cast %439 : vector<128xf32> to vector<1x1x128xf32>
    %441 = vector.broadcast %440 : vector<1x1x128xf32> to vector<3x15x128xf32>
    %442 = arith.mulf %437, %441 : vector<3x15x128xf32>
    %443 = arith.addf %428, %442 : vector<3x15x128xf32>
    %444 = vector.extract_strided_slice %37 {offsets = [0, 0, 0], sizes = [1, 1, 128], strides = [1, 1, 1]} : vector<4x4x128xf32> to vector<1x1x128xf32>
    %445 = vector.shape_cast %444 : vector<1x1x128xf32> to vector<128xf32>
    %446 = vector.shape_cast %445 : vector<128xf32> to vector<1x1x128xf32>
    %447 = vector.broadcast %446 : vector<1x1x128xf32> to vector<3x15x128xf32>
    %448 = arith.mulf %437, %447 : vector<3x15x128xf32>
    %449 = arith.addf %430, %448 : vector<3x15x128xf32>
    %450 = vector.extract_strided_slice %38 {offsets = [0, 0, 0], sizes = [1, 1, 128], strides = [1, 1, 1]} : vector<4x4x128xf32> to vector<1x1x128xf32>
    %451 = vector.shape_cast %450 : vector<1x1x128xf32> to vector<128xf32>
    %452 = vector.shape_cast %451 : vector<128xf32> to vector<1x1x128xf32>
    %453 = vector.broadcast %452 : vector<1x1x128xf32> to vector<3x15x128xf32>
    %454 = arith.mulf %437, %453 : vector<3x15x128xf32>
    %455 = arith.addf %432, %454 : vector<3x15x128xf32>
    %c0_i32_144 = arith.constant 0 : i32
    %456 = arith.addi %426, %c0_i32_144 : i32
    %c0_i32_145 = arith.constant 0 : i32
    %c0_i32_146 = arith.constant 0 : i32
    %c0_i32_147 = arith.constant 0 : i32
    %457 = tpu.memref_slice %arg10[%9, %c0_i32_145, %c0_i32_146, %c0_i32_147] : memref<2x18x32x128xf32, #tpu.memory_space<vmem>> -> memref<1x18x32x128xf32, #tpu.memory_space<vmem>>
    %458 = tpu.memref_squeeze %457 : memref<1x18x32x128xf32, #tpu.memory_space<vmem>> -> memref<18x32x128xf32, #tpu.memory_space<vmem>>
    %459 = arith.index_cast %456 : i32 to index
    %c8_148 = arith.constant 8 : index
    %c0_149 = arith.constant 0 : index
    %460 = vector.load %458[%459, %c8_148, %c0_149] : memref<18x32x128xf32, #tpu.memory_space<vmem>>, vector<3x15x128xf32>
    %461 = vector.extract_strided_slice %36 {offsets = [0, 1, 0], sizes = [1, 1, 128], strides = [1, 1, 1]} : vector<4x4x128xf32> to vector<1x1x128xf32>
    %462 = vector.shape_cast %461 : vector<1x1x128xf32> to vector<128xf32>
    %463 = vector.shape_cast %462 : vector<128xf32> to vector<1x1x128xf32>
    %464 = vector.broadcast %463 : vector<1x1x128xf32> to vector<3x15x128xf32>
    %465 = arith.mulf %460, %464 : vector<3x15x128xf32>
    %466 = arith.addf %443, %465 : vector<3x15x128xf32>
    %467 = vector.extract_strided_slice %37 {offsets = [0, 1, 0], sizes = [1, 1, 128], strides = [1, 1, 1]} : vector<4x4x128xf32> to vector<1x1x128xf32>
    %468 = vector.shape_cast %467 : vector<1x1x128xf32> to vector<128xf32>
    %469 = vector.shape_cast %468 : vector<128xf32> to vector<1x1x128xf32>
    %470 = vector.broadcast %469 : vector<1x1x128xf32> to vector<3x15x128xf32>
    %471 = arith.mulf %460, %470 : vector<3x15x128xf32>
    %472 = arith.addf %449, %471 : vector<3x15x128xf32>
    %473 = vector.extract_strided_slice %38 {offsets = [0, 1, 0], sizes = [1, 1, 128], strides = [1, 1, 1]} : vector<4x4x128xf32> to vector<1x1x128xf32>
    %474 = vector.shape_cast %473 : vector<1x1x128xf32> to vector<128xf32>
    %475 = vector.shape_cast %474 : vector<128xf32> to vector<1x1x128xf32>
    %476 = vector.broadcast %475 : vector<1x1x128xf32> to vector<3x15x128xf32>
    %477 = arith.mulf %460, %476 : vector<3x15x128xf32>
    %478 = arith.addf %455, %477 : vector<3x15x128xf32>
    %c0_i32_150 = arith.constant 0 : i32
    %479 = arith.addi %426, %c0_i32_150 : i32
    %c0_i32_151 = arith.constant 0 : i32
    %c0_i32_152 = arith.constant 0 : i32
    %c0_i32_153 = arith.constant 0 : i32
    %480 = tpu.memref_slice %arg10[%9, %c0_i32_151, %c0_i32_152, %c0_i32_153] : memref<2x18x32x128xf32, #tpu.memory_space<vmem>> -> memref<1x18x32x128xf32, #tpu.memory_space<vmem>>
    %481 = tpu.memref_squeeze %480 : memref<1x18x32x128xf32, #tpu.memory_space<vmem>> -> memref<18x32x128xf32, #tpu.memory_space<vmem>>
    %482 = arith.index_cast %479 : i32 to index
    %c9_154 = arith.constant 9 : index
    %c0_155 = arith.constant 0 : index
    %483 = vector.load %481[%482, %c9_154, %c0_155] : memref<18x32x128xf32, #tpu.memory_space<vmem>>, vector<3x15x128xf32>
    %484 = vector.extract_strided_slice %36 {offsets = [0, 2, 0], sizes = [1, 1, 128], strides = [1, 1, 1]} : vector<4x4x128xf32> to vector<1x1x128xf32>
    %485 = vector.shape_cast %484 : vector<1x1x128xf32> to vector<128xf32>
    %486 = vector.shape_cast %485 : vector<128xf32> to vector<1x1x128xf32>
    %487 = vector.broadcast %486 : vector<1x1x128xf32> to vector<3x15x128xf32>
    %488 = arith.mulf %483, %487 : vector<3x15x128xf32>
    %489 = arith.addf %466, %488 : vector<3x15x128xf32>
    %490 = vector.extract_strided_slice %37 {offsets = [0, 2, 0], sizes = [1, 1, 128], strides = [1, 1, 1]} : vector<4x4x128xf32> to vector<1x1x128xf32>
    %491 = vector.shape_cast %490 : vector<1x1x128xf32> to vector<128xf32>
    %492 = vector.shape_cast %491 : vector<128xf32> to vector<1x1x128xf32>
    %493 = vector.broadcast %492 : vector<1x1x128xf32> to vector<3x15x128xf32>
    %494 = arith.mulf %483, %493 : vector<3x15x128xf32>
    %495 = arith.addf %472, %494 : vector<3x15x128xf32>
    %496 = vector.extract_strided_slice %38 {offsets = [0, 2, 0], sizes = [1, 1, 128], strides = [1, 1, 1]} : vector<4x4x128xf32> to vector<1x1x128xf32>
    %497 = vector.shape_cast %496 : vector<1x1x128xf32> to vector<128xf32>
    %498 = vector.shape_cast %497 : vector<128xf32> to vector<1x1x128xf32>
    %499 = vector.broadcast %498 : vector<1x1x128xf32> to vector<3x15x128xf32>
    %500 = arith.mulf %483, %499 : vector<3x15x128xf32>
    %501 = arith.addf %478, %500 : vector<3x15x128xf32>
    %c0_i32_156 = arith.constant 0 : i32
    %502 = arith.addi %426, %c0_i32_156 : i32
    %c0_i32_157 = arith.constant 0 : i32
    %c0_i32_158 = arith.constant 0 : i32
    %c0_i32_159 = arith.constant 0 : i32
    %503 = tpu.memref_slice %arg10[%9, %c0_i32_157, %c0_i32_158, %c0_i32_159] : memref<2x18x32x128xf32, #tpu.memory_space<vmem>> -> memref<1x18x32x128xf32, #tpu.memory_space<vmem>>
    %504 = tpu.memref_squeeze %503 : memref<1x18x32x128xf32, #tpu.memory_space<vmem>> -> memref<18x32x128xf32, #tpu.memory_space<vmem>>
    %505 = arith.index_cast %502 : i32 to index
    %c10_160 = arith.constant 10 : index
    %c0_161 = arith.constant 0 : index
    %506 = vector.load %504[%505, %c10_160, %c0_161] : memref<18x32x128xf32, #tpu.memory_space<vmem>>, vector<3x15x128xf32>
    %507 = vector.extract_strided_slice %36 {offsets = [0, 3, 0], sizes = [1, 1, 128], strides = [1, 1, 1]} : vector<4x4x128xf32> to vector<1x1x128xf32>
    %508 = vector.shape_cast %507 : vector<1x1x128xf32> to vector<128xf32>
    %509 = vector.shape_cast %508 : vector<128xf32> to vector<1x1x128xf32>
    %510 = vector.broadcast %509 : vector<1x1x128xf32> to vector<3x15x128xf32>
    %511 = arith.mulf %506, %510 : vector<3x15x128xf32>
    %512 = arith.addf %489, %511 : vector<3x15x128xf32>
    %513 = vector.extract_strided_slice %37 {offsets = [0, 3, 0], sizes = [1, 1, 128], strides = [1, 1, 1]} : vector<4x4x128xf32> to vector<1x1x128xf32>
    %514 = vector.shape_cast %513 : vector<1x1x128xf32> to vector<128xf32>
    %515 = vector.shape_cast %514 : vector<128xf32> to vector<1x1x128xf32>
    %516 = vector.broadcast %515 : vector<1x1x128xf32> to vector<3x15x128xf32>
    %517 = arith.mulf %506, %516 : vector<3x15x128xf32>
    %518 = arith.addf %495, %517 : vector<3x15x128xf32>
    %519 = vector.extract_strided_slice %38 {offsets = [0, 3, 0], sizes = [1, 1, 128], strides = [1, 1, 1]} : vector<4x4x128xf32> to vector<1x1x128xf32>
    %520 = vector.shape_cast %519 : vector<1x1x128xf32> to vector<128xf32>
    %521 = vector.shape_cast %520 : vector<128xf32> to vector<1x1x128xf32>
    %522 = vector.broadcast %521 : vector<1x1x128xf32> to vector<3x15x128xf32>
    %523 = arith.mulf %506, %522 : vector<3x15x128xf32>
    %524 = arith.addf %501, %523 : vector<3x15x128xf32>
    %c1_i32_162 = arith.constant 1 : i32
    %525 = arith.addi %426, %c1_i32_162 : i32
    %c0_i32_163 = arith.constant 0 : i32
    %c0_i32_164 = arith.constant 0 : i32
    %c0_i32_165 = arith.constant 0 : i32
    %526 = tpu.memref_slice %arg10[%9, %c0_i32_163, %c0_i32_164, %c0_i32_165] : memref<2x18x32x128xf32, #tpu.memory_space<vmem>> -> memref<1x18x32x128xf32, #tpu.memory_space<vmem>>
    %527 = tpu.memref_squeeze %526 : memref<1x18x32x128xf32, #tpu.memory_space<vmem>> -> memref<18x32x128xf32, #tpu.memory_space<vmem>>
    %528 = arith.index_cast %525 : i32 to index
    %c7_166 = arith.constant 7 : index
    %c0_167 = arith.constant 0 : index
    %529 = vector.load %527[%528, %c7_166, %c0_167] : memref<18x32x128xf32, #tpu.memory_space<vmem>>, vector<3x15x128xf32>
    %530 = vector.extract_strided_slice %36 {offsets = [1, 0, 0], sizes = [1, 1, 128], strides = [1, 1, 1]} : vector<4x4x128xf32> to vector<1x1x128xf32>
    %531 = vector.shape_cast %530 : vector<1x1x128xf32> to vector<128xf32>
    %532 = vector.shape_cast %531 : vector<128xf32> to vector<1x1x128xf32>
    %533 = vector.broadcast %532 : vector<1x1x128xf32> to vector<3x15x128xf32>
    %534 = arith.mulf %529, %533 : vector<3x15x128xf32>
    %535 = arith.addf %512, %534 : vector<3x15x128xf32>
    %536 = vector.extract_strided_slice %37 {offsets = [1, 0, 0], sizes = [1, 1, 128], strides = [1, 1, 1]} : vector<4x4x128xf32> to vector<1x1x128xf32>
    %537 = vector.shape_cast %536 : vector<1x1x128xf32> to vector<128xf32>
    %538 = vector.shape_cast %537 : vector<128xf32> to vector<1x1x128xf32>
    %539 = vector.broadcast %538 : vector<1x1x128xf32> to vector<3x15x128xf32>
    %540 = arith.mulf %529, %539 : vector<3x15x128xf32>
    %541 = arith.addf %518, %540 : vector<3x15x128xf32>
    %542 = vector.extract_strided_slice %38 {offsets = [1, 0, 0], sizes = [1, 1, 128], strides = [1, 1, 1]} : vector<4x4x128xf32> to vector<1x1x128xf32>
    %543 = vector.shape_cast %542 : vector<1x1x128xf32> to vector<128xf32>
    %544 = vector.shape_cast %543 : vector<128xf32> to vector<1x1x128xf32>
    %545 = vector.broadcast %544 : vector<1x1x128xf32> to vector<3x15x128xf32>
    %546 = arith.mulf %529, %545 : vector<3x15x128xf32>
    %547 = arith.addf %524, %546 : vector<3x15x128xf32>
    %c1_i32_168 = arith.constant 1 : i32
    %548 = arith.addi %426, %c1_i32_168 : i32
    %c0_i32_169 = arith.constant 0 : i32
    %c0_i32_170 = arith.constant 0 : i32
    %c0_i32_171 = arith.constant 0 : i32
    %549 = tpu.memref_slice %arg10[%9, %c0_i32_169, %c0_i32_170, %c0_i32_171] : memref<2x18x32x128xf32, #tpu.memory_space<vmem>> -> memref<1x18x32x128xf32, #tpu.memory_space<vmem>>
    %550 = tpu.memref_squeeze %549 : memref<1x18x32x128xf32, #tpu.memory_space<vmem>> -> memref<18x32x128xf32, #tpu.memory_space<vmem>>
    %551 = arith.index_cast %548 : i32 to index
    %c8_172 = arith.constant 8 : index
    %c0_173 = arith.constant 0 : index
    %552 = vector.load %550[%551, %c8_172, %c0_173] : memref<18x32x128xf32, #tpu.memory_space<vmem>>, vector<3x15x128xf32>
    %553 = vector.extract_strided_slice %36 {offsets = [1, 1, 0], sizes = [1, 1, 128], strides = [1, 1, 1]} : vector<4x4x128xf32> to vector<1x1x128xf32>
    %554 = vector.shape_cast %553 : vector<1x1x128xf32> to vector<128xf32>
    %555 = vector.shape_cast %554 : vector<128xf32> to vector<1x1x128xf32>
    %556 = vector.broadcast %555 : vector<1x1x128xf32> to vector<3x15x128xf32>
    %557 = arith.mulf %552, %556 : vector<3x15x128xf32>
    %558 = arith.addf %535, %557 : vector<3x15x128xf32>
    %559 = vector.extract_strided_slice %37 {offsets = [1, 1, 0], sizes = [1, 1, 128], strides = [1, 1, 1]} : vector<4x4x128xf32> to vector<1x1x128xf32>
    %560 = vector.shape_cast %559 : vector<1x1x128xf32> to vector<128xf32>
    %561 = vector.shape_cast %560 : vector<128xf32> to vector<1x1x128xf32>
    %562 = vector.broadcast %561 : vector<1x1x128xf32> to vector<3x15x128xf32>
    %563 = arith.mulf %552, %562 : vector<3x15x128xf32>
    %564 = arith.addf %541, %563 : vector<3x15x128xf32>
    %565 = vector.extract_strided_slice %38 {offsets = [1, 1, 0], sizes = [1, 1, 128], strides = [1, 1, 1]} : vector<4x4x128xf32> to vector<1x1x128xf32>
    %566 = vector.shape_cast %565 : vector<1x1x128xf32> to vector<128xf32>
    %567 = vector.shape_cast %566 : vector<128xf32> to vector<1x1x128xf32>
    %568 = vector.broadcast %567 : vector<1x1x128xf32> to vector<3x15x128xf32>
    %569 = arith.mulf %552, %568 : vector<3x15x128xf32>
    %570 = arith.addf %547, %569 : vector<3x15x128xf32>
    %c1_i32_174 = arith.constant 1 : i32
    %571 = arith.addi %426, %c1_i32_174 : i32
    %c0_i32_175 = arith.constant 0 : i32
    %c0_i32_176 = arith.constant 0 : i32
    %c0_i32_177 = arith.constant 0 : i32
    %572 = tpu.memref_slice %arg10[%9, %c0_i32_175, %c0_i32_176, %c0_i32_177] : memref<2x18x32x128xf32, #tpu.memory_space<vmem>> -> memref<1x18x32x128xf32, #tpu.memory_space<vmem>>
    %573 = tpu.memref_squeeze %572 : memref<1x18x32x128xf32, #tpu.memory_space<vmem>> -> memref<18x32x128xf32, #tpu.memory_space<vmem>>
    %574 = arith.index_cast %571 : i32 to index
    %c9_178 = arith.constant 9 : index
    %c0_179 = arith.constant 0 : index
    %575 = vector.load %573[%574, %c9_178, %c0_179] : memref<18x32x128xf32, #tpu.memory_space<vmem>>, vector<3x15x128xf32>
    %576 = vector.extract_strided_slice %36 {offsets = [1, 2, 0], sizes = [1, 1, 128], strides = [1, 1, 1]} : vector<4x4x128xf32> to vector<1x1x128xf32>
    %577 = vector.shape_cast %576 : vector<1x1x128xf32> to vector<128xf32>
    %578 = vector.shape_cast %577 : vector<128xf32> to vector<1x1x128xf32>
    %579 = vector.broadcast %578 : vector<1x1x128xf32> to vector<3x15x128xf32>
    %580 = arith.mulf %575, %579 : vector<3x15x128xf32>
    %581 = arith.addf %558, %580 : vector<3x15x128xf32>
    %582 = vector.extract_strided_slice %37 {offsets = [1, 2, 0], sizes = [1, 1, 128], strides = [1, 1, 1]} : vector<4x4x128xf32> to vector<1x1x128xf32>
    %583 = vector.shape_cast %582 : vector<1x1x128xf32> to vector<128xf32>
    %584 = vector.shape_cast %583 : vector<128xf32> to vector<1x1x128xf32>
    %585 = vector.broadcast %584 : vector<1x1x128xf32> to vector<3x15x128xf32>
    %586 = arith.mulf %575, %585 : vector<3x15x128xf32>
    %587 = arith.addf %564, %586 : vector<3x15x128xf32>
    %588 = vector.extract_strided_slice %38 {offsets = [1, 2, 0], sizes = [1, 1, 128], strides = [1, 1, 1]} : vector<4x4x128xf32> to vector<1x1x128xf32>
    %589 = vector.shape_cast %588 : vector<1x1x128xf32> to vector<128xf32>
    %590 = vector.shape_cast %589 : vector<128xf32> to vector<1x1x128xf32>
    %591 = vector.broadcast %590 : vector<1x1x128xf32> to vector<3x15x128xf32>
    %592 = arith.mulf %575, %591 : vector<3x15x128xf32>
    %593 = arith.addf %570, %592 : vector<3x15x128xf32>
    %c1_i32_180 = arith.constant 1 : i32
    %594 = arith.addi %426, %c1_i32_180 : i32
    %c0_i32_181 = arith.constant 0 : i32
    %c0_i32_182 = arith.constant 0 : i32
    %c0_i32_183 = arith.constant 0 : i32
    %595 = tpu.memref_slice %arg10[%9, %c0_i32_181, %c0_i32_182, %c0_i32_183] : memref<2x18x32x128xf32, #tpu.memory_space<vmem>> -> memref<1x18x32x128xf32, #tpu.memory_space<vmem>>
    %596 = tpu.memref_squeeze %595 : memref<1x18x32x128xf32, #tpu.memory_space<vmem>> -> memref<18x32x128xf32, #tpu.memory_space<vmem>>
    %597 = arith.index_cast %594 : i32 to index
    %c10_184 = arith.constant 10 : index
    %c0_185 = arith.constant 0 : index
    %598 = vector.load %596[%597, %c10_184, %c0_185] : memref<18x32x128xf32, #tpu.memory_space<vmem>>, vector<3x15x128xf32>
    %599 = vector.extract_strided_slice %36 {offsets = [1, 3, 0], sizes = [1, 1, 128], strides = [1, 1, 1]} : vector<4x4x128xf32> to vector<1x1x128xf32>
    %600 = vector.shape_cast %599 : vector<1x1x128xf32> to vector<128xf32>
    %601 = vector.shape_cast %600 : vector<128xf32> to vector<1x1x128xf32>
    %602 = vector.broadcast %601 : vector<1x1x128xf32> to vector<3x15x128xf32>
    %603 = arith.mulf %598, %602 : vector<3x15x128xf32>
    %604 = arith.addf %581, %603 : vector<3x15x128xf32>
    %605 = vector.extract_strided_slice %37 {offsets = [1, 3, 0], sizes = [1, 1, 128], strides = [1, 1, 1]} : vector<4x4x128xf32> to vector<1x1x128xf32>
    %606 = vector.shape_cast %605 : vector<1x1x128xf32> to vector<128xf32>
    %607 = vector.shape_cast %606 : vector<128xf32> to vector<1x1x128xf32>
    %608 = vector.broadcast %607 : vector<1x1x128xf32> to vector<3x15x128xf32>
    %609 = arith.mulf %598, %608 : vector<3x15x128xf32>
    %610 = arith.addf %587, %609 : vector<3x15x128xf32>
    %611 = vector.extract_strided_slice %38 {offsets = [1, 3, 0], sizes = [1, 1, 128], strides = [1, 1, 1]} : vector<4x4x128xf32> to vector<1x1x128xf32>
    %612 = vector.shape_cast %611 : vector<1x1x128xf32> to vector<128xf32>
    %613 = vector.shape_cast %612 : vector<128xf32> to vector<1x1x128xf32>
    %614 = vector.broadcast %613 : vector<1x1x128xf32> to vector<3x15x128xf32>
    %615 = arith.mulf %598, %614 : vector<3x15x128xf32>
    %616 = arith.addf %593, %615 : vector<3x15x128xf32>
    %c2_i32_186 = arith.constant 2 : i32
    %617 = arith.addi %426, %c2_i32_186 : i32
    %c0_i32_187 = arith.constant 0 : i32
    %c0_i32_188 = arith.constant 0 : i32
    %c0_i32_189 = arith.constant 0 : i32
    %618 = tpu.memref_slice %arg10[%9, %c0_i32_187, %c0_i32_188, %c0_i32_189] : memref<2x18x32x128xf32, #tpu.memory_space<vmem>> -> memref<1x18x32x128xf32, #tpu.memory_space<vmem>>
    %619 = tpu.memref_squeeze %618 : memref<1x18x32x128xf32, #tpu.memory_space<vmem>> -> memref<18x32x128xf32, #tpu.memory_space<vmem>>
    %620 = arith.index_cast %617 : i32 to index
    %c7_190 = arith.constant 7 : index
    %c0_191 = arith.constant 0 : index
    %621 = vector.load %619[%620, %c7_190, %c0_191] : memref<18x32x128xf32, #tpu.memory_space<vmem>>, vector<3x15x128xf32>
    %622 = vector.extract_strided_slice %36 {offsets = [2, 0, 0], sizes = [1, 1, 128], strides = [1, 1, 1]} : vector<4x4x128xf32> to vector<1x1x128xf32>
    %623 = vector.shape_cast %622 : vector<1x1x128xf32> to vector<128xf32>
    %624 = vector.shape_cast %623 : vector<128xf32> to vector<1x1x128xf32>
    %625 = vector.broadcast %624 : vector<1x1x128xf32> to vector<3x15x128xf32>
    %626 = arith.mulf %621, %625 : vector<3x15x128xf32>
    %627 = arith.addf %604, %626 : vector<3x15x128xf32>
    %628 = vector.extract_strided_slice %37 {offsets = [2, 0, 0], sizes = [1, 1, 128], strides = [1, 1, 1]} : vector<4x4x128xf32> to vector<1x1x128xf32>
    %629 = vector.shape_cast %628 : vector<1x1x128xf32> to vector<128xf32>
    %630 = vector.shape_cast %629 : vector<128xf32> to vector<1x1x128xf32>
    %631 = vector.broadcast %630 : vector<1x1x128xf32> to vector<3x15x128xf32>
    %632 = arith.mulf %621, %631 : vector<3x15x128xf32>
    %633 = arith.addf %610, %632 : vector<3x15x128xf32>
    %634 = vector.extract_strided_slice %38 {offsets = [2, 0, 0], sizes = [1, 1, 128], strides = [1, 1, 1]} : vector<4x4x128xf32> to vector<1x1x128xf32>
    %635 = vector.shape_cast %634 : vector<1x1x128xf32> to vector<128xf32>
    %636 = vector.shape_cast %635 : vector<128xf32> to vector<1x1x128xf32>
    %637 = vector.broadcast %636 : vector<1x1x128xf32> to vector<3x15x128xf32>
    %638 = arith.mulf %621, %637 : vector<3x15x128xf32>
    %639 = arith.addf %616, %638 : vector<3x15x128xf32>
    %c2_i32_192 = arith.constant 2 : i32
    %640 = arith.addi %426, %c2_i32_192 : i32
    %c0_i32_193 = arith.constant 0 : i32
    %c0_i32_194 = arith.constant 0 : i32
    %c0_i32_195 = arith.constant 0 : i32
    %641 = tpu.memref_slice %arg10[%9, %c0_i32_193, %c0_i32_194, %c0_i32_195] : memref<2x18x32x128xf32, #tpu.memory_space<vmem>> -> memref<1x18x32x128xf32, #tpu.memory_space<vmem>>
    %642 = tpu.memref_squeeze %641 : memref<1x18x32x128xf32, #tpu.memory_space<vmem>> -> memref<18x32x128xf32, #tpu.memory_space<vmem>>
    %643 = arith.index_cast %640 : i32 to index
    %c8_196 = arith.constant 8 : index
    %c0_197 = arith.constant 0 : index
    %644 = vector.load %642[%643, %c8_196, %c0_197] : memref<18x32x128xf32, #tpu.memory_space<vmem>>, vector<3x15x128xf32>
    %645 = vector.extract_strided_slice %36 {offsets = [2, 1, 0], sizes = [1, 1, 128], strides = [1, 1, 1]} : vector<4x4x128xf32> to vector<1x1x128xf32>
    %646 = vector.shape_cast %645 : vector<1x1x128xf32> to vector<128xf32>
    %647 = vector.shape_cast %646 : vector<128xf32> to vector<1x1x128xf32>
    %648 = vector.broadcast %647 : vector<1x1x128xf32> to vector<3x15x128xf32>
    %649 = arith.mulf %644, %648 : vector<3x15x128xf32>
    %650 = arith.addf %627, %649 : vector<3x15x128xf32>
    %651 = vector.extract_strided_slice %37 {offsets = [2, 1, 0], sizes = [1, 1, 128], strides = [1, 1, 1]} : vector<4x4x128xf32> to vector<1x1x128xf32>
    %652 = vector.shape_cast %651 : vector<1x1x128xf32> to vector<128xf32>
    %653 = vector.shape_cast %652 : vector<128xf32> to vector<1x1x128xf32>
    %654 = vector.broadcast %653 : vector<1x1x128xf32> to vector<3x15x128xf32>
    %655 = arith.mulf %644, %654 : vector<3x15x128xf32>
    %656 = arith.addf %633, %655 : vector<3x15x128xf32>
    %657 = vector.extract_strided_slice %38 {offsets = [2, 1, 0], sizes = [1, 1, 128], strides = [1, 1, 1]} : vector<4x4x128xf32> to vector<1x1x128xf32>
    %658 = vector.shape_cast %657 : vector<1x1x128xf32> to vector<128xf32>
    %659 = vector.shape_cast %658 : vector<128xf32> to vector<1x1x128xf32>
    %660 = vector.broadcast %659 : vector<1x1x128xf32> to vector<3x15x128xf32>
    %661 = arith.mulf %644, %660 : vector<3x15x128xf32>
    %662 = arith.addf %639, %661 : vector<3x15x128xf32>
    %c2_i32_198 = arith.constant 2 : i32
    %663 = arith.addi %426, %c2_i32_198 : i32
    %c0_i32_199 = arith.constant 0 : i32
    %c0_i32_200 = arith.constant 0 : i32
    %c0_i32_201 = arith.constant 0 : i32
    %664 = tpu.memref_slice %arg10[%9, %c0_i32_199, %c0_i32_200, %c0_i32_201] : memref<2x18x32x128xf32, #tpu.memory_space<vmem>> -> memref<1x18x32x128xf32, #tpu.memory_space<vmem>>
    %665 = tpu.memref_squeeze %664 : memref<1x18x32x128xf32, #tpu.memory_space<vmem>> -> memref<18x32x128xf32, #tpu.memory_space<vmem>>
    %666 = arith.index_cast %663 : i32 to index
    %c9_202 = arith.constant 9 : index
    %c0_203 = arith.constant 0 : index
    %667 = vector.load %665[%666, %c9_202, %c0_203] : memref<18x32x128xf32, #tpu.memory_space<vmem>>, vector<3x15x128xf32>
    %668 = vector.extract_strided_slice %36 {offsets = [2, 2, 0], sizes = [1, 1, 128], strides = [1, 1, 1]} : vector<4x4x128xf32> to vector<1x1x128xf32>
    %669 = vector.shape_cast %668 : vector<1x1x128xf32> to vector<128xf32>
    %670 = vector.shape_cast %669 : vector<128xf32> to vector<1x1x128xf32>
    %671 = vector.broadcast %670 : vector<1x1x128xf32> to vector<3x15x128xf32>
    %672 = arith.mulf %667, %671 : vector<3x15x128xf32>
    %673 = arith.addf %650, %672 : vector<3x15x128xf32>
    %674 = vector.extract_strided_slice %37 {offsets = [2, 2, 0], sizes = [1, 1, 128], strides = [1, 1, 1]} : vector<4x4x128xf32> to vector<1x1x128xf32>
    %675 = vector.shape_cast %674 : vector<1x1x128xf32> to vector<128xf32>
    %676 = vector.shape_cast %675 : vector<128xf32> to vector<1x1x128xf32>
    %677 = vector.broadcast %676 : vector<1x1x128xf32> to vector<3x15x128xf32>
    %678 = arith.mulf %667, %677 : vector<3x15x128xf32>
    %679 = arith.addf %656, %678 : vector<3x15x128xf32>
    %680 = vector.extract_strided_slice %38 {offsets = [2, 2, 0], sizes = [1, 1, 128], strides = [1, 1, 1]} : vector<4x4x128xf32> to vector<1x1x128xf32>
    %681 = vector.shape_cast %680 : vector<1x1x128xf32> to vector<128xf32>
    %682 = vector.shape_cast %681 : vector<128xf32> to vector<1x1x128xf32>
    %683 = vector.broadcast %682 : vector<1x1x128xf32> to vector<3x15x128xf32>
    %684 = arith.mulf %667, %683 : vector<3x15x128xf32>
    %685 = arith.addf %662, %684 : vector<3x15x128xf32>
    %c2_i32_204 = arith.constant 2 : i32
    %686 = arith.addi %426, %c2_i32_204 : i32
    %c0_i32_205 = arith.constant 0 : i32
    %c0_i32_206 = arith.constant 0 : i32
    %c0_i32_207 = arith.constant 0 : i32
    %687 = tpu.memref_slice %arg10[%9, %c0_i32_205, %c0_i32_206, %c0_i32_207] : memref<2x18x32x128xf32, #tpu.memory_space<vmem>> -> memref<1x18x32x128xf32, #tpu.memory_space<vmem>>
    %688 = tpu.memref_squeeze %687 : memref<1x18x32x128xf32, #tpu.memory_space<vmem>> -> memref<18x32x128xf32, #tpu.memory_space<vmem>>
    %689 = arith.index_cast %686 : i32 to index
    %c10_208 = arith.constant 10 : index
    %c0_209 = arith.constant 0 : index
    %690 = vector.load %688[%689, %c10_208, %c0_209] : memref<18x32x128xf32, #tpu.memory_space<vmem>>, vector<3x15x128xf32>
    %691 = vector.extract_strided_slice %36 {offsets = [2, 3, 0], sizes = [1, 1, 128], strides = [1, 1, 1]} : vector<4x4x128xf32> to vector<1x1x128xf32>
    %692 = vector.shape_cast %691 : vector<1x1x128xf32> to vector<128xf32>
    %693 = vector.shape_cast %692 : vector<128xf32> to vector<1x1x128xf32>
    %694 = vector.broadcast %693 : vector<1x1x128xf32> to vector<3x15x128xf32>
    %695 = arith.mulf %690, %694 : vector<3x15x128xf32>
    %696 = arith.addf %673, %695 : vector<3x15x128xf32>
    %697 = vector.extract_strided_slice %37 {offsets = [2, 3, 0], sizes = [1, 1, 128], strides = [1, 1, 1]} : vector<4x4x128xf32> to vector<1x1x128xf32>
    %698 = vector.shape_cast %697 : vector<1x1x128xf32> to vector<128xf32>
    %699 = vector.shape_cast %698 : vector<128xf32> to vector<1x1x128xf32>
    %700 = vector.broadcast %699 : vector<1x1x128xf32> to vector<3x15x128xf32>
    %701 = arith.mulf %690, %700 : vector<3x15x128xf32>
    %702 = arith.addf %679, %701 : vector<3x15x128xf32>
    %703 = vector.extract_strided_slice %38 {offsets = [2, 3, 0], sizes = [1, 1, 128], strides = [1, 1, 1]} : vector<4x4x128xf32> to vector<1x1x128xf32>
    %704 = vector.shape_cast %703 : vector<1x1x128xf32> to vector<128xf32>
    %705 = vector.shape_cast %704 : vector<128xf32> to vector<1x1x128xf32>
    %706 = vector.broadcast %705 : vector<1x1x128xf32> to vector<3x15x128xf32>
    %707 = arith.mulf %690, %706 : vector<3x15x128xf32>
    %708 = arith.addf %685, %707 : vector<3x15x128xf32>
    %c3_i32_210 = arith.constant 3 : i32
    %709 = arith.addi %426, %c3_i32_210 : i32
    %c0_i32_211 = arith.constant 0 : i32
    %c0_i32_212 = arith.constant 0 : i32
    %c0_i32_213 = arith.constant 0 : i32
    %710 = tpu.memref_slice %arg10[%9, %c0_i32_211, %c0_i32_212, %c0_i32_213] : memref<2x18x32x128xf32, #tpu.memory_space<vmem>> -> memref<1x18x32x128xf32, #tpu.memory_space<vmem>>
    %711 = tpu.memref_squeeze %710 : memref<1x18x32x128xf32, #tpu.memory_space<vmem>> -> memref<18x32x128xf32, #tpu.memory_space<vmem>>
    %712 = arith.index_cast %709 : i32 to index
    %c7_214 = arith.constant 7 : index
    %c0_215 = arith.constant 0 : index
    %713 = vector.load %711[%712, %c7_214, %c0_215] : memref<18x32x128xf32, #tpu.memory_space<vmem>>, vector<3x15x128xf32>
    %714 = vector.extract_strided_slice %36 {offsets = [3, 0, 0], sizes = [1, 1, 128], strides = [1, 1, 1]} : vector<4x4x128xf32> to vector<1x1x128xf32>
    %715 = vector.shape_cast %714 : vector<1x1x128xf32> to vector<128xf32>
    %716 = vector.shape_cast %715 : vector<128xf32> to vector<1x1x128xf32>
    %717 = vector.broadcast %716 : vector<1x1x128xf32> to vector<3x15x128xf32>
    %718 = arith.mulf %713, %717 : vector<3x15x128xf32>
    %719 = arith.addf %696, %718 : vector<3x15x128xf32>
    %720 = vector.extract_strided_slice %37 {offsets = [3, 0, 0], sizes = [1, 1, 128], strides = [1, 1, 1]} : vector<4x4x128xf32> to vector<1x1x128xf32>
    %721 = vector.shape_cast %720 : vector<1x1x128xf32> to vector<128xf32>
    %722 = vector.shape_cast %721 : vector<128xf32> to vector<1x1x128xf32>
    %723 = vector.broadcast %722 : vector<1x1x128xf32> to vector<3x15x128xf32>
    %724 = arith.mulf %713, %723 : vector<3x15x128xf32>
    %725 = arith.addf %702, %724 : vector<3x15x128xf32>
    %726 = vector.extract_strided_slice %38 {offsets = [3, 0, 0], sizes = [1, 1, 128], strides = [1, 1, 1]} : vector<4x4x128xf32> to vector<1x1x128xf32>
    %727 = vector.shape_cast %726 : vector<1x1x128xf32> to vector<128xf32>
    %728 = vector.shape_cast %727 : vector<128xf32> to vector<1x1x128xf32>
    %729 = vector.broadcast %728 : vector<1x1x128xf32> to vector<3x15x128xf32>
    %730 = arith.mulf %713, %729 : vector<3x15x128xf32>
    %731 = arith.addf %708, %730 : vector<3x15x128xf32>
    %c3_i32_216 = arith.constant 3 : i32
    %732 = arith.addi %426, %c3_i32_216 : i32
    %c0_i32_217 = arith.constant 0 : i32
    %c0_i32_218 = arith.constant 0 : i32
    %c0_i32_219 = arith.constant 0 : i32
    %733 = tpu.memref_slice %arg10[%9, %c0_i32_217, %c0_i32_218, %c0_i32_219] : memref<2x18x32x128xf32, #tpu.memory_space<vmem>> -> memref<1x18x32x128xf32, #tpu.memory_space<vmem>>
    %734 = tpu.memref_squeeze %733 : memref<1x18x32x128xf32, #tpu.memory_space<vmem>> -> memref<18x32x128xf32, #tpu.memory_space<vmem>>
    %735 = arith.index_cast %732 : i32 to index
    %c8_220 = arith.constant 8 : index
    %c0_221 = arith.constant 0 : index
    %736 = vector.load %734[%735, %c8_220, %c0_221] : memref<18x32x128xf32, #tpu.memory_space<vmem>>, vector<3x15x128xf32>
    %737 = vector.extract_strided_slice %36 {offsets = [3, 1, 0], sizes = [1, 1, 128], strides = [1, 1, 1]} : vector<4x4x128xf32> to vector<1x1x128xf32>
    %738 = vector.shape_cast %737 : vector<1x1x128xf32> to vector<128xf32>
    %739 = vector.shape_cast %738 : vector<128xf32> to vector<1x1x128xf32>
    %740 = vector.broadcast %739 : vector<1x1x128xf32> to vector<3x15x128xf32>
    %741 = arith.mulf %736, %740 : vector<3x15x128xf32>
    %742 = arith.addf %719, %741 : vector<3x15x128xf32>
    %743 = vector.extract_strided_slice %37 {offsets = [3, 1, 0], sizes = [1, 1, 128], strides = [1, 1, 1]} : vector<4x4x128xf32> to vector<1x1x128xf32>
    %744 = vector.shape_cast %743 : vector<1x1x128xf32> to vector<128xf32>
    %745 = vector.shape_cast %744 : vector<128xf32> to vector<1x1x128xf32>
    %746 = vector.broadcast %745 : vector<1x1x128xf32> to vector<3x15x128xf32>
    %747 = arith.mulf %736, %746 : vector<3x15x128xf32>
    %748 = arith.addf %725, %747 : vector<3x15x128xf32>
    %749 = vector.extract_strided_slice %38 {offsets = [3, 1, 0], sizes = [1, 1, 128], strides = [1, 1, 1]} : vector<4x4x128xf32> to vector<1x1x128xf32>
    %750 = vector.shape_cast %749 : vector<1x1x128xf32> to vector<128xf32>
    %751 = vector.shape_cast %750 : vector<128xf32> to vector<1x1x128xf32>
    %752 = vector.broadcast %751 : vector<1x1x128xf32> to vector<3x15x128xf32>
    %753 = arith.mulf %736, %752 : vector<3x15x128xf32>
    %754 = arith.addf %731, %753 : vector<3x15x128xf32>
    %c3_i32_222 = arith.constant 3 : i32
    %755 = arith.addi %426, %c3_i32_222 : i32
    %c0_i32_223 = arith.constant 0 : i32
    %c0_i32_224 = arith.constant 0 : i32
    %c0_i32_225 = arith.constant 0 : i32
    %756 = tpu.memref_slice %arg10[%9, %c0_i32_223, %c0_i32_224, %c0_i32_225] : memref<2x18x32x128xf32, #tpu.memory_space<vmem>> -> memref<1x18x32x128xf32, #tpu.memory_space<vmem>>
    %757 = tpu.memref_squeeze %756 : memref<1x18x32x128xf32, #tpu.memory_space<vmem>> -> memref<18x32x128xf32, #tpu.memory_space<vmem>>
    %758 = arith.index_cast %755 : i32 to index
    %c9_226 = arith.constant 9 : index
    %c0_227 = arith.constant 0 : index
    %759 = vector.load %757[%758, %c9_226, %c0_227] : memref<18x32x128xf32, #tpu.memory_space<vmem>>, vector<3x15x128xf32>
    %760 = vector.extract_strided_slice %36 {offsets = [3, 2, 0], sizes = [1, 1, 128], strides = [1, 1, 1]} : vector<4x4x128xf32> to vector<1x1x128xf32>
    %761 = vector.shape_cast %760 : vector<1x1x128xf32> to vector<128xf32>
    %762 = vector.shape_cast %761 : vector<128xf32> to vector<1x1x128xf32>
    %763 = vector.broadcast %762 : vector<1x1x128xf32> to vector<3x15x128xf32>
    %764 = arith.mulf %759, %763 : vector<3x15x128xf32>
    %765 = arith.addf %742, %764 : vector<3x15x128xf32>
    %766 = vector.extract_strided_slice %37 {offsets = [3, 2, 0], sizes = [1, 1, 128], strides = [1, 1, 1]} : vector<4x4x128xf32> to vector<1x1x128xf32>
    %767 = vector.shape_cast %766 : vector<1x1x128xf32> to vector<128xf32>
    %768 = vector.shape_cast %767 : vector<128xf32> to vector<1x1x128xf32>
    %769 = vector.broadcast %768 : vector<1x1x128xf32> to vector<3x15x128xf32>
    %770 = arith.mulf %759, %769 : vector<3x15x128xf32>
    %771 = arith.addf %748, %770 : vector<3x15x128xf32>
    %772 = vector.extract_strided_slice %38 {offsets = [3, 2, 0], sizes = [1, 1, 128], strides = [1, 1, 1]} : vector<4x4x128xf32> to vector<1x1x128xf32>
    %773 = vector.shape_cast %772 : vector<1x1x128xf32> to vector<128xf32>
    %774 = vector.shape_cast %773 : vector<128xf32> to vector<1x1x128xf32>
    %775 = vector.broadcast %774 : vector<1x1x128xf32> to vector<3x15x128xf32>
    %776 = arith.mulf %759, %775 : vector<3x15x128xf32>
    %777 = arith.addf %754, %776 : vector<3x15x128xf32>
    %c3_i32_228 = arith.constant 3 : i32
    %778 = arith.addi %426, %c3_i32_228 : i32
    %c0_i32_229 = arith.constant 0 : i32
    %c0_i32_230 = arith.constant 0 : i32
    %c0_i32_231 = arith.constant 0 : i32
    %779 = tpu.memref_slice %arg10[%9, %c0_i32_229, %c0_i32_230, %c0_i32_231] : memref<2x18x32x128xf32, #tpu.memory_space<vmem>> -> memref<1x18x32x128xf32, #tpu.memory_space<vmem>>
    %780 = tpu.memref_squeeze %779 : memref<1x18x32x128xf32, #tpu.memory_space<vmem>> -> memref<18x32x128xf32, #tpu.memory_space<vmem>>
    %781 = arith.index_cast %778 : i32 to index
    %c10_232 = arith.constant 10 : index
    %c0_233 = arith.constant 0 : index
    %782 = vector.load %780[%781, %c10_232, %c0_233] : memref<18x32x128xf32, #tpu.memory_space<vmem>>, vector<3x15x128xf32>
    %783 = vector.extract_strided_slice %36 {offsets = [3, 3, 0], sizes = [1, 1, 128], strides = [1, 1, 1]} : vector<4x4x128xf32> to vector<1x1x128xf32>
    %784 = vector.shape_cast %783 : vector<1x1x128xf32> to vector<128xf32>
    %785 = vector.shape_cast %784 : vector<128xf32> to vector<1x1x128xf32>
    %786 = vector.broadcast %785 : vector<1x1x128xf32> to vector<3x15x128xf32>
    %787 = arith.mulf %782, %786 : vector<3x15x128xf32>
    %788 = arith.addf %765, %787 : vector<3x15x128xf32>
    %789 = vector.extract_strided_slice %37 {offsets = [3, 3, 0], sizes = [1, 1, 128], strides = [1, 1, 1]} : vector<4x4x128xf32> to vector<1x1x128xf32>
    %790 = vector.shape_cast %789 : vector<1x1x128xf32> to vector<128xf32>
    %791 = vector.shape_cast %790 : vector<128xf32> to vector<1x1x128xf32>
    %792 = vector.broadcast %791 : vector<1x1x128xf32> to vector<3x15x128xf32>
    %793 = arith.mulf %782, %792 : vector<3x15x128xf32>
    %794 = arith.addf %771, %793 : vector<3x15x128xf32>
    %795 = vector.extract_strided_slice %38 {offsets = [3, 3, 0], sizes = [1, 1, 128], strides = [1, 1, 1]} : vector<4x4x128xf32> to vector<1x1x128xf32>
    %796 = vector.shape_cast %795 : vector<1x1x128xf32> to vector<128xf32>
    %797 = vector.shape_cast %796 : vector<128xf32> to vector<1x1x128xf32>
    %798 = vector.broadcast %797 : vector<1x1x128xf32> to vector<3x15x128xf32>
    %799 = arith.mulf %782, %798 : vector<3x15x128xf32>
    %800 = arith.addf %777, %799 : vector<3x15x128xf32>
    %801 = arith.mulf %788, %794 : vector<3x15x128xf32>
    %802 = arith.addf %801, %800 : vector<3x15x128xf32>
    %c0_234 = arith.constant 0 : index
    %803 = arith.index_cast %426 : i32 to index
    %c0_235 = arith.constant 0 : index
    %c0_236 = arith.constant 0 : index
    %804 = vector.load %arg9[%c0_234, %803, %c0_235, %c0_236] : memref<1x15x15x128xf32, #tpu.memory_space<vmem>>, vector<1x3x15x128xf32>
    %805 = vector.shape_cast %804 : vector<1x3x15x128xf32> to vector<3x15x128xf32>
    %806 = vector.shape_cast %802 : vector<3x15x128xf32> to vector<1x3x15x128xf32>
    tpu.vector_store %arg9[%c0_234, %803, %c0_235, %c0_236], %806 {strides = array<i32>} : memref<1x15x15x128xf32, #tpu.memory_space<vmem>>, vector<1x3x15x128xf32>,
    %c2_i32_237 = arith.constant 2 : i32
    %c3_i32_238 = arith.constant 3 : i32
    %807 = arith.muli %c2_i32_237, %c3_i32_238 : i32
    %808 = vector.shape_cast %40 : vector<128xf32> to vector<1x1x128xf32>
    %809 = vector.broadcast %808 : vector<1x1x128xf32> to vector<3x15x128xf32>
    %810 = vector.shape_cast %42 : vector<128xf32> to vector<1x1x128xf32>
    %811 = vector.broadcast %810 : vector<1x1x128xf32> to vector<3x15x128xf32>
    %812 = vector.shape_cast %44 : vector<128xf32> to vector<1x1x128xf32>
    %813 = vector.broadcast %812 : vector<1x1x128xf32> to vector<3x15x128xf32>
    %c0_i32_239 = arith.constant 0 : i32
    %814 = arith.addi %807, %c0_i32_239 : i32
    %c0_i32_240 = arith.constant 0 : i32
    %c0_i32_241 = arith.constant 0 : i32
    %c0_i32_242 = arith.constant 0 : i32
    %815 = tpu.memref_slice %arg10[%9, %c0_i32_240, %c0_i32_241, %c0_i32_242] : memref<2x18x32x128xf32, #tpu.memory_space<vmem>> -> memref<1x18x32x128xf32, #tpu.memory_space<vmem>>
    %816 = tpu.memref_squeeze %815 : memref<1x18x32x128xf32, #tpu.memory_space<vmem>> -> memref<18x32x128xf32, #tpu.memory_space<vmem>>
    %817 = arith.index_cast %814 : i32 to index
    %c7_243 = arith.constant 7 : index
    %c0_244 = arith.constant 0 : index
    %818 = vector.load %816[%817, %c7_243, %c0_244] : memref<18x32x128xf32, #tpu.memory_space<vmem>>, vector<3x15x128xf32>
    %819 = vector.extract_strided_slice %36 {offsets = [0, 0, 0], sizes = [1, 1, 128], strides = [1, 1, 1]} : vector<4x4x128xf32> to vector<1x1x128xf32>
    %820 = vector.shape_cast %819 : vector<1x1x128xf32> to vector<128xf32>
    %821 = vector.shape_cast %820 : vector<128xf32> to vector<1x1x128xf32>
    %822 = vector.broadcast %821 : vector<1x1x128xf32> to vector<3x15x128xf32>
    %823 = arith.mulf %818, %822 : vector<3x15x128xf32>
    %824 = arith.addf %809, %823 : vector<3x15x128xf32>
    %825 = vector.extract_strided_slice %37 {offsets = [0, 0, 0], sizes = [1, 1, 128], strides = [1, 1, 1]} : vector<4x4x128xf32> to vector<1x1x128xf32>
    %826 = vector.shape_cast %825 : vector<1x1x128xf32> to vector<128xf32>
    %827 = vector.shape_cast %826 : vector<128xf32> to vector<1x1x128xf32>
    %828 = vector.broadcast %827 : vector<1x1x128xf32> to vector<3x15x128xf32>
    %829 = arith.mulf %818, %828 : vector<3x15x128xf32>
    %830 = arith.addf %811, %829 : vector<3x15x128xf32>
    %831 = vector.extract_strided_slice %38 {offsets = [0, 0, 0], sizes = [1, 1, 128], strides = [1, 1, 1]} : vector<4x4x128xf32> to vector<1x1x128xf32>
    %832 = vector.shape_cast %831 : vector<1x1x128xf32> to vector<128xf32>
    %833 = vector.shape_cast %832 : vector<128xf32> to vector<1x1x128xf32>
    %834 = vector.broadcast %833 : vector<1x1x128xf32> to vector<3x15x128xf32>
    %835 = arith.mulf %818, %834 : vector<3x15x128xf32>
    %836 = arith.addf %813, %835 : vector<3x15x128xf32>
    %c0_i32_245 = arith.constant 0 : i32
    %837 = arith.addi %807, %c0_i32_245 : i32
    %c0_i32_246 = arith.constant 0 : i32
    %c0_i32_247 = arith.constant 0 : i32
    %c0_i32_248 = arith.constant 0 : i32
    %838 = tpu.memref_slice %arg10[%9, %c0_i32_246, %c0_i32_247, %c0_i32_248] : memref<2x18x32x128xf32, #tpu.memory_space<vmem>> -> memref<1x18x32x128xf32, #tpu.memory_space<vmem>>
    %839 = tpu.memref_squeeze %838 : memref<1x18x32x128xf32, #tpu.memory_space<vmem>> -> memref<18x32x128xf32, #tpu.memory_space<vmem>>
    %840 = arith.index_cast %837 : i32 to index
    %c8_249 = arith.constant 8 : index
    %c0_250 = arith.constant 0 : index
    %841 = vector.load %839[%840, %c8_249, %c0_250] : memref<18x32x128xf32, #tpu.memory_space<vmem>>, vector<3x15x128xf32>
    %842 = vector.extract_strided_slice %36 {offsets = [0, 1, 0], sizes = [1, 1, 128], strides = [1, 1, 1]} : vector<4x4x128xf32> to vector<1x1x128xf32>
    %843 = vector.shape_cast %842 : vector<1x1x128xf32> to vector<128xf32>
    %844 = vector.shape_cast %843 : vector<128xf32> to vector<1x1x128xf32>
    %845 = vector.broadcast %844 : vector<1x1x128xf32> to vector<3x15x128xf32>
    %846 = arith.mulf %841, %845 : vector<3x15x128xf32>
    %847 = arith.addf %824, %846 : vector<3x15x128xf32>
    %848 = vector.extract_strided_slice %37 {offsets = [0, 1, 0], sizes = [1, 1, 128], strides = [1, 1, 1]} : vector<4x4x128xf32> to vector<1x1x128xf32>
    %849 = vector.shape_cast %848 : vector<1x1x128xf32> to vector<128xf32>
    %850 = vector.shape_cast %849 : vector<128xf32> to vector<1x1x128xf32>
    %851 = vector.broadcast %850 : vector<1x1x128xf32> to vector<3x15x128xf32>
    %852 = arith.mulf %841, %851 : vector<3x15x128xf32>
    %853 = arith.addf %830, %852 : vector<3x15x128xf32>
    %854 = vector.extract_strided_slice %38 {offsets = [0, 1, 0], sizes = [1, 1, 128], strides = [1, 1, 1]} : vector<4x4x128xf32> to vector<1x1x128xf32>
    %855 = vector.shape_cast %854 : vector<1x1x128xf32> to vector<128xf32>
    %856 = vector.shape_cast %855 : vector<128xf32> to vector<1x1x128xf32>
    %857 = vector.broadcast %856 : vector<1x1x128xf32> to vector<3x15x128xf32>
    %858 = arith.mulf %841, %857 : vector<3x15x128xf32>
    %859 = arith.addf %836, %858 : vector<3x15x128xf32>
    %c0_i32_251 = arith.constant 0 : i32
    %860 = arith.addi %807, %c0_i32_251 : i32
    %c0_i32_252 = arith.constant 0 : i32
    %c0_i32_253 = arith.constant 0 : i32
    %c0_i32_254 = arith.constant 0 : i32
    %861 = tpu.memref_slice %arg10[%9, %c0_i32_252, %c0_i32_253, %c0_i32_254] : memref<2x18x32x128xf32, #tpu.memory_space<vmem>> -> memref<1x18x32x128xf32, #tpu.memory_space<vmem>>
    %862 = tpu.memref_squeeze %861 : memref<1x18x32x128xf32, #tpu.memory_space<vmem>> -> memref<18x32x128xf32, #tpu.memory_space<vmem>>
    %863 = arith.index_cast %860 : i32 to index
    %c9_255 = arith.constant 9 : index
    %c0_256 = arith.constant 0 : index
    %864 = vector.load %862[%863, %c9_255, %c0_256] : memref<18x32x128xf32, #tpu.memory_space<vmem>>, vector<3x15x128xf32>
    %865 = vector.extract_strided_slice %36 {offsets = [0, 2, 0], sizes = [1, 1, 128], strides = [1, 1, 1]} : vector<4x4x128xf32> to vector<1x1x128xf32>
    %866 = vector.shape_cast %865 : vector<1x1x128xf32> to vector<128xf32>
    %867 = vector.shape_cast %866 : vector<128xf32> to vector<1x1x128xf32>
    %868 = vector.broadcast %867 : vector<1x1x128xf32> to vector<3x15x128xf32>
    %869 = arith.mulf %864, %868 : vector<3x15x128xf32>
    %870 = arith.addf %847, %869 : vector<3x15x128xf32>
    %871 = vector.extract_strided_slice %37 {offsets = [0, 2, 0], sizes = [1, 1, 128], strides = [1, 1, 1]} : vector<4x4x128xf32> to vector<1x1x128xf32>
    %872 = vector.shape_cast %871 : vector<1x1x128xf32> to vector<128xf32>
    %873 = vector.shape_cast %872 : vector<128xf32> to vector<1x1x128xf32>
    %874 = vector.broadcast %873 : vector<1x1x128xf32> to vector<3x15x128xf32>
    %875 = arith.mulf %864, %874 : vector<3x15x128xf32>
    %876 = arith.addf %853, %875 : vector<3x15x128xf32>
    %877 = vector.extract_strided_slice %38 {offsets = [0, 2, 0], sizes = [1, 1, 128], strides = [1, 1, 1]} : vector<4x4x128xf32> to vector<1x1x128xf32>
    %878 = vector.shape_cast %877 : vector<1x1x128xf32> to vector<128xf32>
    %879 = vector.shape_cast %878 : vector<128xf32> to vector<1x1x128xf32>
    %880 = vector.broadcast %879 : vector<1x1x128xf32> to vector<3x15x128xf32>
    %881 = arith.mulf %864, %880 : vector<3x15x128xf32>
    %882 = arith.addf %859, %881 : vector<3x15x128xf32>
    %c0_i32_257 = arith.constant 0 : i32
    %883 = arith.addi %807, %c0_i32_257 : i32
    %c0_i32_258 = arith.constant 0 : i32
    %c0_i32_259 = arith.constant 0 : i32
    %c0_i32_260 = arith.constant 0 : i32
    %884 = tpu.memref_slice %arg10[%9, %c0_i32_258, %c0_i32_259, %c0_i32_260] : memref<2x18x32x128xf32, #tpu.memory_space<vmem>> -> memref<1x18x32x128xf32, #tpu.memory_space<vmem>>
    %885 = tpu.memref_squeeze %884 : memref<1x18x32x128xf32, #tpu.memory_space<vmem>> -> memref<18x32x128xf32, #tpu.memory_space<vmem>>
    %886 = arith.index_cast %883 : i32 to index
    %c10_261 = arith.constant 10 : index
    %c0_262 = arith.constant 0 : index
    %887 = vector.load %885[%886, %c10_261, %c0_262] : memref<18x32x128xf32, #tpu.memory_space<vmem>>, vector<3x15x128xf32>
    %888 = vector.extract_strided_slice %36 {offsets = [0, 3, 0], sizes = [1, 1, 128], strides = [1, 1, 1]} : vector<4x4x128xf32> to vector<1x1x128xf32>
    %889 = vector.shape_cast %888 : vector<1x1x128xf32> to vector<128xf32>
    %890 = vector.shape_cast %889 : vector<128xf32> to vector<1x1x128xf32>
    %891 = vector.broadcast %890 : vector<1x1x128xf32> to vector<3x15x128xf32>
    %892 = arith.mulf %887, %891 : vector<3x15x128xf32>
    %893 = arith.addf %870, %892 : vector<3x15x128xf32>
    %894 = vector.extract_strided_slice %37 {offsets = [0, 3, 0], sizes = [1, 1, 128], strides = [1, 1, 1]} : vector<4x4x128xf32> to vector<1x1x128xf32>
    %895 = vector.shape_cast %894 : vector<1x1x128xf32> to vector<128xf32>
    %896 = vector.shape_cast %895 : vector<128xf32> to vector<1x1x128xf32>
    %897 = vector.broadcast %896 : vector<1x1x128xf32> to vector<3x15x128xf32>
    %898 = arith.mulf %887, %897 : vector<3x15x128xf32>
    %899 = arith.addf %876, %898 : vector<3x15x128xf32>
    %900 = vector.extract_strided_slice %38 {offsets = [0, 3, 0], sizes = [1, 1, 128], strides = [1, 1, 1]} : vector<4x4x128xf32> to vector<1x1x128xf32>
    %901 = vector.shape_cast %900 : vector<1x1x128xf32> to vector<128xf32>
    %902 = vector.shape_cast %901 : vector<128xf32> to vector<1x1x128xf32>
    %903 = vector.broadcast %902 : vector<1x1x128xf32> to vector<3x15x128xf32>
    %904 = arith.mulf %887, %903 : vector<3x15x128xf32>
    %905 = arith.addf %882, %904 : vector<3x15x128xf32>
    %c1_i32_263 = arith.constant 1 : i32
    %906 = arith.addi %807, %c1_i32_263 : i32
    %c0_i32_264 = arith.constant 0 : i32
    %c0_i32_265 = arith.constant 0 : i32
    %c0_i32_266 = arith.constant 0 : i32
    %907 = tpu.memref_slice %arg10[%9, %c0_i32_264, %c0_i32_265, %c0_i32_266] : memref<2x18x32x128xf32, #tpu.memory_space<vmem>> -> memref<1x18x32x128xf32, #tpu.memory_space<vmem>>
    %908 = tpu.memref_squeeze %907 : memref<1x18x32x128xf32, #tpu.memory_space<vmem>> -> memref<18x32x128xf32, #tpu.memory_space<vmem>>
    %909 = arith.index_cast %906 : i32 to index
    %c7_267 = arith.constant 7 : index
    %c0_268 = arith.constant 0 : index
    %910 = vector.load %908[%909, %c7_267, %c0_268] : memref<18x32x128xf32, #tpu.memory_space<vmem>>, vector<3x15x128xf32>
    %911 = vector.extract_strided_slice %36 {offsets = [1, 0, 0], sizes = [1, 1, 128], strides = [1, 1, 1]} : vector<4x4x128xf32> to vector<1x1x128xf32>
    %912 = vector.shape_cast %911 : vector<1x1x128xf32> to vector<128xf32>
    %913 = vector.shape_cast %912 : vector<128xf32> to vector<1x1x128xf32>
    %914 = vector.broadcast %913 : vector<1x1x128xf32> to vector<3x15x128xf32>
    %915 = arith.mulf %910, %914 : vector<3x15x128xf32>
    %916 = arith.addf %893, %915 : vector<3x15x128xf32>
    %917 = vector.extract_strided_slice %37 {offsets = [1, 0, 0], sizes = [1, 1, 128], strides = [1, 1, 1]} : vector<4x4x128xf32> to vector<1x1x128xf32>
    %918 = vector.shape_cast %917 : vector<1x1x128xf32> to vector<128xf32>
    %919 = vector.shape_cast %918 : vector<128xf32> to vector<1x1x128xf32>
    %920 = vector.broadcast %919 : vector<1x1x128xf32> to vector<3x15x128xf32>
    %921 = arith.mulf %910, %920 : vector<3x15x128xf32>
    %922 = arith.addf %899, %921 : vector<3x15x128xf32>
    %923 = vector.extract_strided_slice %38 {offsets = [1, 0, 0], sizes = [1, 1, 128], strides = [1, 1, 1]} : vector<4x4x128xf32> to vector<1x1x128xf32>
    %924 = vector.shape_cast %923 : vector<1x1x128xf32> to vector<128xf32>
    %925 = vector.shape_cast %924 : vector<128xf32> to vector<1x1x128xf32>
    %926 = vector.broadcast %925 : vector<1x1x128xf32> to vector<3x15x128xf32>
    %927 = arith.mulf %910, %926 : vector<3x15x128xf32>
    %928 = arith.addf %905, %927 : vector<3x15x128xf32>
    %c1_i32_269 = arith.constant 1 : i32
    %929 = arith.addi %807, %c1_i32_269 : i32
    %c0_i32_270 = arith.constant 0 : i32
    %c0_i32_271 = arith.constant 0 : i32
    %c0_i32_272 = arith.constant 0 : i32
    %930 = tpu.memref_slice %arg10[%9, %c0_i32_270, %c0_i32_271, %c0_i32_272] : memref<2x18x32x128xf32, #tpu.memory_space<vmem>> -> memref<1x18x32x128xf32, #tpu.memory_space<vmem>>
    %931 = tpu.memref_squeeze %930 : memref<1x18x32x128xf32, #tpu.memory_space<vmem>> -> memref<18x32x128xf32, #tpu.memory_space<vmem>>
    %932 = arith.index_cast %929 : i32 to index
    %c8_273 = arith.constant 8 : index
    %c0_274 = arith.constant 0 : index
    %933 = vector.load %931[%932, %c8_273, %c0_274] : memref<18x32x128xf32, #tpu.memory_space<vmem>>, vector<3x15x128xf32>
    %934 = vector.extract_strided_slice %36 {offsets = [1, 1, 0], sizes = [1, 1, 128], strides = [1, 1, 1]} : vector<4x4x128xf32> to vector<1x1x128xf32>
    %935 = vector.shape_cast %934 : vector<1x1x128xf32> to vector<128xf32>
    %936 = vector.shape_cast %935 : vector<128xf32> to vector<1x1x128xf32>
    %937 = vector.broadcast %936 : vector<1x1x128xf32> to vector<3x15x128xf32>
    %938 = arith.mulf %933, %937 : vector<3x15x128xf32>
    %939 = arith.addf %916, %938 : vector<3x15x128xf32>
    %940 = vector.extract_strided_slice %37 {offsets = [1, 1, 0], sizes = [1, 1, 128], strides = [1, 1, 1]} : vector<4x4x128xf32> to vector<1x1x128xf32>
    %941 = vector.shape_cast %940 : vector<1x1x128xf32> to vector<128xf32>
    %942 = vector.shape_cast %941 : vector<128xf32> to vector<1x1x128xf32>
    %943 = vector.broadcast %942 : vector<1x1x128xf32> to vector<3x15x128xf32>
    %944 = arith.mulf %933, %943 : vector<3x15x128xf32>
    %945 = arith.addf %922, %944 : vector<3x15x128xf32>
    %946 = vector.extract_strided_slice %38 {offsets = [1, 1, 0], sizes = [1, 1, 128], strides = [1, 1, 1]} : vector<4x4x128xf32> to vector<1x1x128xf32>
    %947 = vector.shape_cast %946 : vector<1x1x128xf32> to vector<128xf32>
    %948 = vector.shape_cast %947 : vector<128xf32> to vector<1x1x128xf32>
    %949 = vector.broadcast %948 : vector<1x1x128xf32> to vector<3x15x128xf32>
    %950 = arith.mulf %933, %949 : vector<3x15x128xf32>
    %951 = arith.addf %928, %950 : vector<3x15x128xf32>
    %c1_i32_275 = arith.constant 1 : i32
    %952 = arith.addi %807, %c1_i32_275 : i32
    %c0_i32_276 = arith.constant 0 : i32
    %c0_i32_277 = arith.constant 0 : i32
    %c0_i32_278 = arith.constant 0 : i32
    %953 = tpu.memref_slice %arg10[%9, %c0_i32_276, %c0_i32_277, %c0_i32_278] : memref<2x18x32x128xf32, #tpu.memory_space<vmem>> -> memref<1x18x32x128xf32, #tpu.memory_space<vmem>>
    %954 = tpu.memref_squeeze %953 : memref<1x18x32x128xf32, #tpu.memory_space<vmem>> -> memref<18x32x128xf32, #tpu.memory_space<vmem>>
    %955 = arith.index_cast %952 : i32 to index
    %c9_279 = arith.constant 9 : index
    %c0_280 = arith.constant 0 : index
    %956 = vector.load %954[%955, %c9_279, %c0_280] : memref<18x32x128xf32, #tpu.memory_space<vmem>>, vector<3x15x128xf32>
    %957 = vector.extract_strided_slice %36 {offsets = [1, 2, 0], sizes = [1, 1, 128], strides = [1, 1, 1]} : vector<4x4x128xf32> to vector<1x1x128xf32>
    %958 = vector.shape_cast %957 : vector<1x1x128xf32> to vector<128xf32>
    %959 = vector.shape_cast %958 : vector<128xf32> to vector<1x1x128xf32>
    %960 = vector.broadcast %959 : vector<1x1x128xf32> to vector<3x15x128xf32>
    %961 = arith.mulf %956, %960 : vector<3x15x128xf32>
    %962 = arith.addf %939, %961 : vector<3x15x128xf32>
    %963 = vector.extract_strided_slice %37 {offsets = [1, 2, 0], sizes = [1, 1, 128], strides = [1, 1, 1]} : vector<4x4x128xf32> to vector<1x1x128xf32>
    %964 = vector.shape_cast %963 : vector<1x1x128xf32> to vector<128xf32>
    %965 = vector.shape_cast %964 : vector<128xf32> to vector<1x1x128xf32>
    %966 = vector.broadcast %965 : vector<1x1x128xf32> to vector<3x15x128xf32>
    %967 = arith.mulf %956, %966 : vector<3x15x128xf32>
    %968 = arith.addf %945, %967 : vector<3x15x128xf32>
    %969 = vector.extract_strided_slice %38 {offsets = [1, 2, 0], sizes = [1, 1, 128], strides = [1, 1, 1]} : vector<4x4x128xf32> to vector<1x1x128xf32>
    %970 = vector.shape_cast %969 : vector<1x1x128xf32> to vector<128xf32>
    %971 = vector.shape_cast %970 : vector<128xf32> to vector<1x1x128xf32>
    %972 = vector.broadcast %971 : vector<1x1x128xf32> to vector<3x15x128xf32>
    %973 = arith.mulf %956, %972 : vector<3x15x128xf32>
    %974 = arith.addf %951, %973 : vector<3x15x128xf32>
    %c1_i32_281 = arith.constant 1 : i32
    %975 = arith.addi %807, %c1_i32_281 : i32
    %c0_i32_282 = arith.constant 0 : i32
    %c0_i32_283 = arith.constant 0 : i32
    %c0_i32_284 = arith.constant 0 : i32
    %976 = tpu.memref_slice %arg10[%9, %c0_i32_282, %c0_i32_283, %c0_i32_284] : memref<2x18x32x128xf32, #tpu.memory_space<vmem>> -> memref<1x18x32x128xf32, #tpu.memory_space<vmem>>
    %977 = tpu.memref_squeeze %976 : memref<1x18x32x128xf32, #tpu.memory_space<vmem>> -> memref<18x32x128xf32, #tpu.memory_space<vmem>>
    %978 = arith.index_cast %975 : i32 to index
    %c10_285 = arith.constant 10 : index
    %c0_286 = arith.constant 0 : index
    %979 = vector.load %977[%978, %c10_285, %c0_286] : memref<18x32x128xf32, #tpu.memory_space<vmem>>, vector<3x15x128xf32>
    %980 = vector.extract_strided_slice %36 {offsets = [1, 3, 0], sizes = [1, 1, 128], strides = [1, 1, 1]} : vector<4x4x128xf32> to vector<1x1x128xf32>
    %981 = vector.shape_cast %980 : vector<1x1x128xf32> to vector<128xf32>
    %982 = vector.shape_cast %981 : vector<128xf32> to vector<1x1x128xf32>
    %983 = vector.broadcast %982 : vector<1x1x128xf32> to vector<3x15x128xf32>
    %984 = arith.mulf %979, %983 : vector<3x15x128xf32>
    %985 = arith.addf %962, %984 : vector<3x15x128xf32>
    %986 = vector.extract_strided_slice %37 {offsets = [1, 3, 0], sizes = [1, 1, 128], strides = [1, 1, 1]} : vector<4x4x128xf32> to vector<1x1x128xf32>
    %987 = vector.shape_cast %986 : vector<1x1x128xf32> to vector<128xf32>
    %988 = vector.shape_cast %987 : vector<128xf32> to vector<1x1x128xf32>
    %989 = vector.broadcast %988 : vector<1x1x128xf32> to vector<3x15x128xf32>
    %990 = arith.mulf %979, %989 : vector<3x15x128xf32>
    %991 = arith.addf %968, %990 : vector<3x15x128xf32>
    %992 = vector.extract_strided_slice %38 {offsets = [1, 3, 0], sizes = [1, 1, 128], strides = [1, 1, 1]} : vector<4x4x128xf32> to vector<1x1x128xf32>
    %993 = vector.shape_cast %992 : vector<1x1x128xf32> to vector<128xf32>
    %994 = vector.shape_cast %993 : vector<128xf32> to vector<1x1x128xf32>
    %995 = vector.broadcast %994 : vector<1x1x128xf32> to vector<3x15x128xf32>
    %996 = arith.mulf %979, %995 : vector<3x15x128xf32>
    %997 = arith.addf %974, %996 : vector<3x15x128xf32>
    %c2_i32_287 = arith.constant 2 : i32
    %998 = arith.addi %807, %c2_i32_287 : i32
    %c0_i32_288 = arith.constant 0 : i32
    %c0_i32_289 = arith.constant 0 : i32
    %c0_i32_290 = arith.constant 0 : i32
    %999 = tpu.memref_slice %arg10[%9, %c0_i32_288, %c0_i32_289, %c0_i32_290] : memref<2x18x32x128xf32, #tpu.memory_space<vmem>> -> memref<1x18x32x128xf32, #tpu.memory_space<vmem>>
    %1000 = tpu.memref_squeeze %999 : memref<1x18x32x128xf32, #tpu.memory_space<vmem>> -> memref<18x32x128xf32, #tpu.memory_space<vmem>>
    %1001 = arith.index_cast %998 : i32 to index
    %c7_291 = arith.constant 7 : index
    %c0_292 = arith.constant 0 : index
    %1002 = vector.load %1000[%1001, %c7_291, %c0_292] : memref<18x32x128xf32, #tpu.memory_space<vmem>>, vector<3x15x128xf32>
    %1003 = vector.extract_strided_slice %36 {offsets = [2, 0, 0], sizes = [1, 1, 128], strides = [1, 1, 1]} : vector<4x4x128xf32> to vector<1x1x128xf32>
    %1004 = vector.shape_cast %1003 : vector<1x1x128xf32> to vector<128xf32>
    %1005 = vector.shape_cast %1004 : vector<128xf32> to vector<1x1x128xf32>
    %1006 = vector.broadcast %1005 : vector<1x1x128xf32> to vector<3x15x128xf32>
    %1007 = arith.mulf %1002, %1006 : vector<3x15x128xf32>
    %1008 = arith.addf %985, %1007 : vector<3x15x128xf32>
    %1009 = vector.extract_strided_slice %37 {offsets = [2, 0, 0], sizes = [1, 1, 128], strides = [1, 1, 1]} : vector<4x4x128xf32> to vector<1x1x128xf32>
    %1010 = vector.shape_cast %1009 : vector<1x1x128xf32> to vector<128xf32>
    %1011 = vector.shape_cast %1010 : vector<128xf32> to vector<1x1x128xf32>
    %1012 = vector.broadcast %1011 : vector<1x1x128xf32> to vector<3x15x128xf32>
    %1013 = arith.mulf %1002, %1012 : vector<3x15x128xf32>
    %1014 = arith.addf %991, %1013 : vector<3x15x128xf32>
    %1015 = vector.extract_strided_slice %38 {offsets = [2, 0, 0], sizes = [1, 1, 128], strides = [1, 1, 1]} : vector<4x4x128xf32> to vector<1x1x128xf32>
    %1016 = vector.shape_cast %1015 : vector<1x1x128xf32> to vector<128xf32>
    %1017 = vector.shape_cast %1016 : vector<128xf32> to vector<1x1x128xf32>
    %1018 = vector.broadcast %1017 : vector<1x1x128xf32> to vector<3x15x128xf32>
    %1019 = arith.mulf %1002, %1018 : vector<3x15x128xf32>
    %1020 = arith.addf %997, %1019 : vector<3x15x128xf32>
    %c2_i32_293 = arith.constant 2 : i32
    %1021 = arith.addi %807, %c2_i32_293 : i32
    %c0_i32_294 = arith.constant 0 : i32
    %c0_i32_295 = arith.constant 0 : i32
    %c0_i32_296 = arith.constant 0 : i32
    %1022 = tpu.memref_slice %arg10[%9, %c0_i32_294, %c0_i32_295, %c0_i32_296] : memref<2x18x32x128xf32, #tpu.memory_space<vmem>> -> memref<1x18x32x128xf32, #tpu.memory_space<vmem>>
    %1023 = tpu.memref_squeeze %1022 : memref<1x18x32x128xf32, #tpu.memory_space<vmem>> -> memref<18x32x128xf32, #tpu.memory_space<vmem>>
    %1024 = arith.index_cast %1021 : i32 to index
    %c8_297 = arith.constant 8 : index
    %c0_298 = arith.constant 0 : index
    %1025 = vector.load %1023[%1024, %c8_297, %c0_298] : memref<18x32x128xf32, #tpu.memory_space<vmem>>, vector<3x15x128xf32>
    %1026 = vector.extract_strided_slice %36 {offsets = [2, 1, 0], sizes = [1, 1, 128], strides = [1, 1, 1]} : vector<4x4x128xf32> to vector<1x1x128xf32>
    %1027 = vector.shape_cast %1026 : vector<1x1x128xf32> to vector<128xf32>
    %1028 = vector.shape_cast %1027 : vector<128xf32> to vector<1x1x128xf32>
    %1029 = vector.broadcast %1028 : vector<1x1x128xf32> to vector<3x15x128xf32>
    %1030 = arith.mulf %1025, %1029 : vector<3x15x128xf32>
    %1031 = arith.addf %1008, %1030 : vector<3x15x128xf32>
    %1032 = vector.extract_strided_slice %37 {offsets = [2, 1, 0], sizes = [1, 1, 128], strides = [1, 1, 1]} : vector<4x4x128xf32> to vector<1x1x128xf32>
    %1033 = vector.shape_cast %1032 : vector<1x1x128xf32> to vector<128xf32>
    %1034 = vector.shape_cast %1033 : vector<128xf32> to vector<1x1x128xf32>
    %1035 = vector.broadcast %1034 : vector<1x1x128xf32> to vector<3x15x128xf32>
    %1036 = arith.mulf %1025, %1035 : vector<3x15x128xf32>
    %1037 = arith.addf %1014, %1036 : vector<3x15x128xf32>
    %1038 = vector.extract_strided_slice %38 {offsets = [2, 1, 0], sizes = [1, 1, 128], strides = [1, 1, 1]} : vector<4x4x128xf32> to vector<1x1x128xf32>
    %1039 = vector.shape_cast %1038 : vector<1x1x128xf32> to vector<128xf32>
    %1040 = vector.shape_cast %1039 : vector<128xf32> to vector<1x1x128xf32>
    %1041 = vector.broadcast %1040 : vector<1x1x128xf32> to vector<3x15x128xf32>
    %1042 = arith.mulf %1025, %1041 : vector<3x15x128xf32>
    %1043 = arith.addf %1020, %1042 : vector<3x15x128xf32>
    %c2_i32_299 = arith.constant 2 : i32
    %1044 = arith.addi %807, %c2_i32_299 : i32
    %c0_i32_300 = arith.constant 0 : i32
    %c0_i32_301 = arith.constant 0 : i32
    %c0_i32_302 = arith.constant 0 : i32
    %1045 = tpu.memref_slice %arg10[%9, %c0_i32_300, %c0_i32_301, %c0_i32_302] : memref<2x18x32x128xf32, #tpu.memory_space<vmem>> -> memref<1x18x32x128xf32, #tpu.memory_space<vmem>>
    %1046 = tpu.memref_squeeze %1045 : memref<1x18x32x128xf32, #tpu.memory_space<vmem>> -> memref<18x32x128xf32, #tpu.memory_space<vmem>>
    %1047 = arith.index_cast %1044 : i32 to index
    %c9_303 = arith.constant 9 : index
    %c0_304 = arith.constant 0 : index
    %1048 = vector.load %1046[%1047, %c9_303, %c0_304] : memref<18x32x128xf32, #tpu.memory_space<vmem>>, vector<3x15x128xf32>
    %1049 = vector.extract_strided_slice %36 {offsets = [2, 2, 0], sizes = [1, 1, 128], strides = [1, 1, 1]} : vector<4x4x128xf32> to vector<1x1x128xf32>
    %1050 = vector.shape_cast %1049 : vector<1x1x128xf32> to vector<128xf32>
    %1051 = vector.shape_cast %1050 : vector<128xf32> to vector<1x1x128xf32>
    %1052 = vector.broadcast %1051 : vector<1x1x128xf32> to vector<3x15x128xf32>
    %1053 = arith.mulf %1048, %1052 : vector<3x15x128xf32>
    %1054 = arith.addf %1031, %1053 : vector<3x15x128xf32>
    %1055 = vector.extract_strided_slice %37 {offsets = [2, 2, 0], sizes = [1, 1, 128], strides = [1, 1, 1]} : vector<4x4x128xf32> to vector<1x1x128xf32>
    %1056 = vector.shape_cast %1055 : vector<1x1x128xf32> to vector<128xf32>
    %1057 = vector.shape_cast %1056 : vector<128xf32> to vector<1x1x128xf32>
    %1058 = vector.broadcast %1057 : vector<1x1x128xf32> to vector<3x15x128xf32>
    %1059 = arith.mulf %1048, %1058 : vector<3x15x128xf32>
    %1060 = arith.addf %1037, %1059 : vector<3x15x128xf32>
    %1061 = vector.extract_strided_slice %38 {offsets = [2, 2, 0], sizes = [1, 1, 128], strides = [1, 1, 1]} : vector<4x4x128xf32> to vector<1x1x128xf32>
    %1062 = vector.shape_cast %1061 : vector<1x1x128xf32> to vector<128xf32>
    %1063 = vector.shape_cast %1062 : vector<128xf32> to vector<1x1x128xf32>
    %1064 = vector.broadcast %1063 : vector<1x1x128xf32> to vector<3x15x128xf32>
    %1065 = arith.mulf %1048, %1064 : vector<3x15x128xf32>
    %1066 = arith.addf %1043, %1065 : vector<3x15x128xf32>
    %c2_i32_305 = arith.constant 2 : i32
    %1067 = arith.addi %807, %c2_i32_305 : i32
    %c0_i32_306 = arith.constant 0 : i32
    %c0_i32_307 = arith.constant 0 : i32
    %c0_i32_308 = arith.constant 0 : i32
    %1068 = tpu.memref_slice %arg10[%9, %c0_i32_306, %c0_i32_307, %c0_i32_308] : memref<2x18x32x128xf32, #tpu.memory_space<vmem>> -> memref<1x18x32x128xf32, #tpu.memory_space<vmem>>
    %1069 = tpu.memref_squeeze %1068 : memref<1x18x32x128xf32, #tpu.memory_space<vmem>> -> memref<18x32x128xf32, #tpu.memory_space<vmem>>
    %1070 = arith.index_cast %1067 : i32 to index
    %c10_309 = arith.constant 10 : index
    %c0_310 = arith.constant 0 : index
    %1071 = vector.load %1069[%1070, %c10_309, %c0_310] : memref<18x32x128xf32, #tpu.memory_space<vmem>>, vector<3x15x128xf32>
    %1072 = vector.extract_strided_slice %36 {offsets = [2, 3, 0], sizes = [1, 1, 128], strides = [1, 1, 1]} : vector<4x4x128xf32> to vector<1x1x128xf32>
    %1073 = vector.shape_cast %1072 : vector<1x1x128xf32> to vector<128xf32>
    %1074 = vector.shape_cast %1073 : vector<128xf32> to vector<1x1x128xf32>
    %1075 = vector.broadcast %1074 : vector<1x1x128xf32> to vector<3x15x128xf32>
    %1076 = arith.mulf %1071, %1075 : vector<3x15x128xf32>
    %1077 = arith.addf %1054, %1076 : vector<3x15x128xf32>
    %1078 = vector.extract_strided_slice %37 {offsets = [2, 3, 0], sizes = [1, 1, 128], strides = [1, 1, 1]} : vector<4x4x128xf32> to vector<1x1x128xf32>
    %1079 = vector.shape_cast %1078 : vector<1x1x128xf32> to vector<128xf32>
    %1080 = vector.shape_cast %1079 : vector<128xf32> to vector<1x1x128xf32>
    %1081 = vector.broadcast %1080 : vector<1x1x128xf32> to vector<3x15x128xf32>
    %1082 = arith.mulf %1071, %1081 : vector<3x15x128xf32>
    %1083 = arith.addf %1060, %1082 : vector<3x15x128xf32>
    %1084 = vector.extract_strided_slice %38 {offsets = [2, 3, 0], sizes = [1, 1, 128], strides = [1, 1, 1]} : vector<4x4x128xf32> to vector<1x1x128xf32>
    %1085 = vector.shape_cast %1084 : vector<1x1x128xf32> to vector<128xf32>
    %1086 = vector.shape_cast %1085 : vector<128xf32> to vector<1x1x128xf32>
    %1087 = vector.broadcast %1086 : vector<1x1x128xf32> to vector<3x15x128xf32>
    %1088 = arith.mulf %1071, %1087 : vector<3x15x128xf32>
    %1089 = arith.addf %1066, %1088 : vector<3x15x128xf32>
    %c3_i32_311 = arith.constant 3 : i32
    %1090 = arith.addi %807, %c3_i32_311 : i32
    %c0_i32_312 = arith.constant 0 : i32
    %c0_i32_313 = arith.constant 0 : i32
    %c0_i32_314 = arith.constant 0 : i32
    %1091 = tpu.memref_slice %arg10[%9, %c0_i32_312, %c0_i32_313, %c0_i32_314] : memref<2x18x32x128xf32, #tpu.memory_space<vmem>> -> memref<1x18x32x128xf32, #tpu.memory_space<vmem>>
    %1092 = tpu.memref_squeeze %1091 : memref<1x18x32x128xf32, #tpu.memory_space<vmem>> -> memref<18x32x128xf32, #tpu.memory_space<vmem>>
    %1093 = arith.index_cast %1090 : i32 to index
    %c7_315 = arith.constant 7 : index
    %c0_316 = arith.constant 0 : index
    %1094 = vector.load %1092[%1093, %c7_315, %c0_316] : memref<18x32x128xf32, #tpu.memory_space<vmem>>, vector<3x15x128xf32>
    %1095 = vector.extract_strided_slice %36 {offsets = [3, 0, 0], sizes = [1, 1, 128], strides = [1, 1, 1]} : vector<4x4x128xf32> to vector<1x1x128xf32>
    %1096 = vector.shape_cast %1095 : vector<1x1x128xf32> to vector<128xf32>
    %1097 = vector.shape_cast %1096 : vector<128xf32> to vector<1x1x128xf32>
    %1098 = vector.broadcast %1097 : vector<1x1x128xf32> to vector<3x15x128xf32>
    %1099 = arith.mulf %1094, %1098 : vector<3x15x128xf32>
    %1100 = arith.addf %1077, %1099 : vector<3x15x128xf32>
    %1101 = vector.extract_strided_slice %37 {offsets = [3, 0, 0], sizes = [1, 1, 128], strides = [1, 1, 1]} : vector<4x4x128xf32> to vector<1x1x128xf32>
    %1102 = vector.shape_cast %1101 : vector<1x1x128xf32> to vector<128xf32>
    %1103 = vector.shape_cast %1102 : vector<128xf32> to vector<1x1x128xf32>
    %1104 = vector.broadcast %1103 : vector<1x1x128xf32> to vector<3x15x128xf32>
    %1105 = arith.mulf %1094, %1104 : vector<3x15x128xf32>
    %1106 = arith.addf %1083, %1105 : vector<3x15x128xf32>
    %1107 = vector.extract_strided_slice %38 {offsets = [3, 0, 0], sizes = [1, 1, 128], strides = [1, 1, 1]} : vector<4x4x128xf32> to vector<1x1x128xf32>
    %1108 = vector.shape_cast %1107 : vector<1x1x128xf32> to vector<128xf32>
    %1109 = vector.shape_cast %1108 : vector<128xf32> to vector<1x1x128xf32>
    %1110 = vector.broadcast %1109 : vector<1x1x128xf32> to vector<3x15x128xf32>
    %1111 = arith.mulf %1094, %1110 : vector<3x15x128xf32>
    %1112 = arith.addf %1089, %1111 : vector<3x15x128xf32>
    %c3_i32_317 = arith.constant 3 : i32
    %1113 = arith.addi %807, %c3_i32_317 : i32
    %c0_i32_318 = arith.constant 0 : i32
    %c0_i32_319 = arith.constant 0 : i32
    %c0_i32_320 = arith.constant 0 : i32
    %1114 = tpu.memref_slice %arg10[%9, %c0_i32_318, %c0_i32_319, %c0_i32_320] : memref<2x18x32x128xf32, #tpu.memory_space<vmem>> -> memref<1x18x32x128xf32, #tpu.memory_space<vmem>>
    %1115 = tpu.memref_squeeze %1114 : memref<1x18x32x128xf32, #tpu.memory_space<vmem>> -> memref<18x32x128xf32, #tpu.memory_space<vmem>>
    %1116 = arith.index_cast %1113 : i32 to index
    %c8_321 = arith.constant 8 : index
    %c0_322 = arith.constant 0 : index
    %1117 = vector.load %1115[%1116, %c8_321, %c0_322] : memref<18x32x128xf32, #tpu.memory_space<vmem>>, vector<3x15x128xf32>
    %1118 = vector.extract_strided_slice %36 {offsets = [3, 1, 0], sizes = [1, 1, 128], strides = [1, 1, 1]} : vector<4x4x128xf32> to vector<1x1x128xf32>
    %1119 = vector.shape_cast %1118 : vector<1x1x128xf32> to vector<128xf32>
    %1120 = vector.shape_cast %1119 : vector<128xf32> to vector<1x1x128xf32>
    %1121 = vector.broadcast %1120 : vector<1x1x128xf32> to vector<3x15x128xf32>
    %1122 = arith.mulf %1117, %1121 : vector<3x15x128xf32>
    %1123 = arith.addf %1100, %1122 : vector<3x15x128xf32>
    %1124 = vector.extract_strided_slice %37 {offsets = [3, 1, 0], sizes = [1, 1, 128], strides = [1, 1, 1]} : vector<4x4x128xf32> to vector<1x1x128xf32>
    %1125 = vector.shape_cast %1124 : vector<1x1x128xf32> to vector<128xf32>
    %1126 = vector.shape_cast %1125 : vector<128xf32> to vector<1x1x128xf32>
    %1127 = vector.broadcast %1126 : vector<1x1x128xf32> to vector<3x15x128xf32>
    %1128 = arith.mulf %1117, %1127 : vector<3x15x128xf32>
    %1129 = arith.addf %1106, %1128 : vector<3x15x128xf32>
    %1130 = vector.extract_strided_slice %38 {offsets = [3, 1, 0], sizes = [1, 1, 128], strides = [1, 1, 1]} : vector<4x4x128xf32> to vector<1x1x128xf32>
    %1131 = vector.shape_cast %1130 : vector<1x1x128xf32> to vector<128xf32>
    %1132 = vector.shape_cast %1131 : vector<128xf32> to vector<1x1x128xf32>
    %1133 = vector.broadcast %1132 : vector<1x1x128xf32> to vector<3x15x128xf32>
    %1134 = arith.mulf %1117, %1133 : vector<3x15x128xf32>
    %1135 = arith.addf %1112, %1134 : vector<3x15x128xf32>
    %c3_i32_323 = arith.constant 3 : i32
    %1136 = arith.addi %807, %c3_i32_323 : i32
    %c0_i32_324 = arith.constant 0 : i32
    %c0_i32_325 = arith.constant 0 : i32
    %c0_i32_326 = arith.constant 0 : i32
    %1137 = tpu.memref_slice %arg10[%9, %c0_i32_324, %c0_i32_325, %c0_i32_326] : memref<2x18x32x128xf32, #tpu.memory_space<vmem>> -> memref<1x18x32x128xf32, #tpu.memory_space<vmem>>
    %1138 = tpu.memref_squeeze %1137 : memref<1x18x32x128xf32, #tpu.memory_space<vmem>> -> memref<18x32x128xf32, #tpu.memory_space<vmem>>
    %1139 = arith.index_cast %1136 : i32 to index
    %c9_327 = arith.constant 9 : index
    %c0_328 = arith.constant 0 : index
    %1140 = vector.load %1138[%1139, %c9_327, %c0_328] : memref<18x32x128xf32, #tpu.memory_space<vmem>>, vector<3x15x128xf32>
    %1141 = vector.extract_strided_slice %36 {offsets = [3, 2, 0], sizes = [1, 1, 128], strides = [1, 1, 1]} : vector<4x4x128xf32> to vector<1x1x128xf32>
    %1142 = vector.shape_cast %1141 : vector<1x1x128xf32> to vector<128xf32>
    %1143 = vector.shape_cast %1142 : vector<128xf32> to vector<1x1x128xf32>
    %1144 = vector.broadcast %1143 : vector<1x1x128xf32> to vector<3x15x128xf32>
    %1145 = arith.mulf %1140, %1144 : vector<3x15x128xf32>
    %1146 = arith.addf %1123, %1145 : vector<3x15x128xf32>
    %1147 = vector.extract_strided_slice %37 {offsets = [3, 2, 0], sizes = [1, 1, 128], strides = [1, 1, 1]} : vector<4x4x128xf32> to vector<1x1x128xf32>
    %1148 = vector.shape_cast %1147 : vector<1x1x128xf32> to vector<128xf32>
    %1149 = vector.shape_cast %1148 : vector<128xf32> to vector<1x1x128xf32>
    %1150 = vector.broadcast %1149 : vector<1x1x128xf32> to vector<3x15x128xf32>
    %1151 = arith.mulf %1140, %1150 : vector<3x15x128xf32>
    %1152 = arith.addf %1129, %1151 : vector<3x15x128xf32>
    %1153 = vector.extract_strided_slice %38 {offsets = [3, 2, 0], sizes = [1, 1, 128], strides = [1, 1, 1]} : vector<4x4x128xf32> to vector<1x1x128xf32>
    %1154 = vector.shape_cast %1153 : vector<1x1x128xf32> to vector<128xf32>
    %1155 = vector.shape_cast %1154 : vector<128xf32> to vector<1x1x128xf32>
    %1156 = vector.broadcast %1155 : vector<1x1x128xf32> to vector<3x15x128xf32>
    %1157 = arith.mulf %1140, %1156 : vector<3x15x128xf32>
    %1158 = arith.addf %1135, %1157 : vector<3x15x128xf32>
    %c3_i32_329 = arith.constant 3 : i32
    %1159 = arith.addi %807, %c3_i32_329 : i32
    %c0_i32_330 = arith.constant 0 : i32
    %c0_i32_331 = arith.constant 0 : i32
    %c0_i32_332 = arith.constant 0 : i32
    %1160 = tpu.memref_slice %arg10[%9, %c0_i32_330, %c0_i32_331, %c0_i32_332] : memref<2x18x32x128xf32, #tpu.memory_space<vmem>> -> memref<1x18x32x128xf32, #tpu.memory_space<vmem>>
    %1161 = tpu.memref_squeeze %1160 : memref<1x18x32x128xf32, #tpu.memory_space<vmem>> -> memref<18x32x128xf32, #tpu.memory_space<vmem>>
    %1162 = arith.index_cast %1159 : i32 to index
    %c10_333 = arith.constant 10 : index
    %c0_334 = arith.constant 0 : index
    %1163 = vector.load %1161[%1162, %c10_333, %c0_334] : memref<18x32x128xf32, #tpu.memory_space<vmem>>, vector<3x15x128xf32>
    %1164 = vector.extract_strided_slice %36 {offsets = [3, 3, 0], sizes = [1, 1, 128], strides = [1, 1, 1]} : vector<4x4x128xf32> to vector<1x1x128xf32>
    %1165 = vector.shape_cast %1164 : vector<1x1x128xf32> to vector<128xf32>
    %1166 = vector.shape_cast %1165 : vector<128xf32> to vector<1x1x128xf32>
    %1167 = vector.broadcast %1166 : vector<1x1x128xf32> to vector<3x15x128xf32>
    %1168 = arith.mulf %1163, %1167 : vector<3x15x128xf32>
    %1169 = arith.addf %1146, %1168 : vector<3x15x128xf32>
    %1170 = vector.extract_strided_slice %37 {offsets = [3, 3, 0], sizes = [1, 1, 128], strides = [1, 1, 1]} : vector<4x4x128xf32> to vector<1x1x128xf32>
    %1171 = vector.shape_cast %1170 : vector<1x1x128xf32> to vector<128xf32>
    %1172 = vector.shape_cast %1171 : vector<128xf32> to vector<1x1x128xf32>
    %1173 = vector.broadcast %1172 : vector<1x1x128xf32> to vector<3x15x128xf32>
    %1174 = arith.mulf %1163, %1173 : vector<3x15x128xf32>
    %1175 = arith.addf %1152, %1174 : vector<3x15x128xf32>
    %1176 = vector.extract_strided_slice %38 {offsets = [3, 3, 0], sizes = [1, 1, 128], strides = [1, 1, 1]} : vector<4x4x128xf32> to vector<1x1x128xf32>
    %1177 = vector.shape_cast %1176 : vector<1x1x128xf32> to vector<128xf32>
    %1178 = vector.shape_cast %1177 : vector<128xf32> to vector<1x1x128xf32>
    %1179 = vector.broadcast %1178 : vector<1x1x128xf32> to vector<3x15x128xf32>
    %1180 = arith.mulf %1163, %1179 : vector<3x15x128xf32>
    %1181 = arith.addf %1158, %1180 : vector<3x15x128xf32>
    %1182 = arith.mulf %1169, %1175 : vector<3x15x128xf32>
    %1183 = arith.addf %1182, %1181 : vector<3x15x128xf32>
    %c0_335 = arith.constant 0 : index
    %1184 = arith.index_cast %807 : i32 to index
    %c0_336 = arith.constant 0 : index
    %c0_337 = arith.constant 0 : index
    %1185 = vector.load %arg9[%c0_335, %1184, %c0_336, %c0_337] : memref<1x15x15x128xf32, #tpu.memory_space<vmem>>, vector<1x3x15x128xf32>
    %1186 = vector.shape_cast %1185 : vector<1x3x15x128xf32> to vector<3x15x128xf32>
    %1187 = vector.shape_cast %1183 : vector<3x15x128xf32> to vector<1x3x15x128xf32>
    tpu.vector_store %arg9[%c0_335, %1184, %c0_336, %c0_337], %1187 {strides = array<i32>} : memref<1x15x15x128xf32, #tpu.memory_space<vmem>>, vector<1x3x15x128xf32>,
    %c3_i32_338 = arith.constant 3 : i32
    %c3_i32_339 = arith.constant 3 : i32
    %1188 = arith.muli %c3_i32_338, %c3_i32_339 : i32
    %1189 = vector.shape_cast %40 : vector<128xf32> to vector<1x1x128xf32>
    %1190 = vector.broadcast %1189 : vector<1x1x128xf32> to vector<3x15x128xf32>
    %1191 = vector.shape_cast %42 : vector<128xf32> to vector<1x1x128xf32>
    %1192 = vector.broadcast %1191 : vector<1x1x128xf32> to vector<3x15x128xf32>
    %1193 = vector.shape_cast %44 : vector<128xf32> to vector<1x1x128xf32>
    %1194 = vector.broadcast %1193 : vector<1x1x128xf32> to vector<3x15x128xf32>
    %c0_i32_340 = arith.constant 0 : i32
    %1195 = arith.addi %1188, %c0_i32_340 : i32
    %c0_i32_341 = arith.constant 0 : i32
    %c0_i32_342 = arith.constant 0 : i32
    %c0_i32_343 = arith.constant 0 : i32
    %1196 = tpu.memref_slice %arg10[%9, %c0_i32_341, %c0_i32_342, %c0_i32_343] : memref<2x18x32x128xf32, #tpu.memory_space<vmem>> -> memref<1x18x32x128xf32, #tpu.memory_space<vmem>>
    %1197 = tpu.memref_squeeze %1196 : memref<1x18x32x128xf32, #tpu.memory_space<vmem>> -> memref<18x32x128xf32, #tpu.memory_space<vmem>>
    %1198 = arith.index_cast %1195 : i32 to index
    %c7_344 = arith.constant 7 : index
    %c0_345 = arith.constant 0 : index
    %1199 = vector.load %1197[%1198, %c7_344, %c0_345] : memref<18x32x128xf32, #tpu.memory_space<vmem>>, vector<3x15x128xf32>
    %1200 = vector.extract_strided_slice %36 {offsets = [0, 0, 0], sizes = [1, 1, 128], strides = [1, 1, 1]} : vector<4x4x128xf32> to vector<1x1x128xf32>
    %1201 = vector.shape_cast %1200 : vector<1x1x128xf32> to vector<128xf32>
    %1202 = vector.shape_cast %1201 : vector<128xf32> to vector<1x1x128xf32>
    %1203 = vector.broadcast %1202 : vector<1x1x128xf32> to vector<3x15x128xf32>
    %1204 = arith.mulf %1199, %1203 : vector<3x15x128xf32>
    %1205 = arith.addf %1190, %1204 : vector<3x15x128xf32>
    %1206 = vector.extract_strided_slice %37 {offsets = [0, 0, 0], sizes = [1, 1, 128], strides = [1, 1, 1]} : vector<4x4x128xf32> to vector<1x1x128xf32>
    %1207 = vector.shape_cast %1206 : vector<1x1x128xf32> to vector<128xf32>
    %1208 = vector.shape_cast %1207 : vector<128xf32> to vector<1x1x128xf32>
    %1209 = vector.broadcast %1208 : vector<1x1x128xf32> to vector<3x15x128xf32>
    %1210 = arith.mulf %1199, %1209 : vector<3x15x128xf32>
    %1211 = arith.addf %1192, %1210 : vector<3x15x128xf32>
    %1212 = vector.extract_strided_slice %38 {offsets = [0, 0, 0], sizes = [1, 1, 128], strides = [1, 1, 1]} : vector<4x4x128xf32> to vector<1x1x128xf32>
    %1213 = vector.shape_cast %1212 : vector<1x1x128xf32> to vector<128xf32>
    %1214 = vector.shape_cast %1213 : vector<128xf32> to vector<1x1x128xf32>
    %1215 = vector.broadcast %1214 : vector<1x1x128xf32> to vector<3x15x128xf32>
    %1216 = arith.mulf %1199, %1215 : vector<3x15x128xf32>
    %1217 = arith.addf %1194, %1216 : vector<3x15x128xf32>
    %c0_i32_346 = arith.constant 0 : i32
    %1218 = arith.addi %1188, %c0_i32_346 : i32
    %c0_i32_347 = arith.constant 0 : i32
    %c0_i32_348 = arith.constant 0 : i32
    %c0_i32_349 = arith.constant 0 : i32
    %1219 = tpu.memref_slice %arg10[%9, %c0_i32_347, %c0_i32_348, %c0_i32_349] : memref<2x18x32x128xf32, #tpu.memory_space<vmem>> -> memref<1x18x32x128xf32, #tpu.memory_space<vmem>>
    %1220 = tpu.memref_squeeze %1219 : memref<1x18x32x128xf32, #tpu.memory_space<vmem>> -> memref<18x32x128xf32, #tpu.memory_space<vmem>>
    %1221 = arith.index_cast %1218 : i32 to index
    %c8_350 = arith.constant 8 : index
    %c0_351 = arith.constant 0 : index
    %1222 = vector.load %1220[%1221, %c8_350, %c0_351] : memref<18x32x128xf32, #tpu.memory_space<vmem>>, vector<3x15x128xf32>
    %1223 = vector.extract_strided_slice %36 {offsets = [0, 1, 0], sizes = [1, 1, 128], strides = [1, 1, 1]} : vector<4x4x128xf32> to vector<1x1x128xf32>
    %1224 = vector.shape_cast %1223 : vector<1x1x128xf32> to vector<128xf32>
    %1225 = vector.shape_cast %1224 : vector<128xf32> to vector<1x1x128xf32>
    %1226 = vector.broadcast %1225 : vector<1x1x128xf32> to vector<3x15x128xf32>
    %1227 = arith.mulf %1222, %1226 : vector<3x15x128xf32>
    %1228 = arith.addf %1205, %1227 : vector<3x15x128xf32>
    %1229 = vector.extract_strided_slice %37 {offsets = [0, 1, 0], sizes = [1, 1, 128], strides = [1, 1, 1]} : vector<4x4x128xf32> to vector<1x1x128xf32>
    %1230 = vector.shape_cast %1229 : vector<1x1x128xf32> to vector<128xf32>
    %1231 = vector.shape_cast %1230 : vector<128xf32> to vector<1x1x128xf32>
    %1232 = vector.broadcast %1231 : vector<1x1x128xf32> to vector<3x15x128xf32>
    %1233 = arith.mulf %1222, %1232 : vector<3x15x128xf32>
    %1234 = arith.addf %1211, %1233 : vector<3x15x128xf32>
    %1235 = vector.extract_strided_slice %38 {offsets = [0, 1, 0], sizes = [1, 1, 128], strides = [1, 1, 1]} : vector<4x4x128xf32> to vector<1x1x128xf32>
    %1236 = vector.shape_cast %1235 : vector<1x1x128xf32> to vector<128xf32>
    %1237 = vector.shape_cast %1236 : vector<128xf32> to vector<1x1x128xf32>
    %1238 = vector.broadcast %1237 : vector<1x1x128xf32> to vector<3x15x128xf32>
    %1239 = arith.mulf %1222, %1238 : vector<3x15x128xf32>
    %1240 = arith.addf %1217, %1239 : vector<3x15x128xf32>
    %c0_i32_352 = arith.constant 0 : i32
    %1241 = arith.addi %1188, %c0_i32_352 : i32
    %c0_i32_353 = arith.constant 0 : i32
    %c0_i32_354 = arith.constant 0 : i32
    %c0_i32_355 = arith.constant 0 : i32
    %1242 = tpu.memref_slice %arg10[%9, %c0_i32_353, %c0_i32_354, %c0_i32_355] : memref<2x18x32x128xf32, #tpu.memory_space<vmem>> -> memref<1x18x32x128xf32, #tpu.memory_space<vmem>>
    %1243 = tpu.memref_squeeze %1242 : memref<1x18x32x128xf32, #tpu.memory_space<vmem>> -> memref<18x32x128xf32, #tpu.memory_space<vmem>>
    %1244 = arith.index_cast %1241 : i32 to index
    %c9_356 = arith.constant 9 : index
    %c0_357 = arith.constant 0 : index
    %1245 = vector.load %1243[%1244, %c9_356, %c0_357] : memref<18x32x128xf32, #tpu.memory_space<vmem>>, vector<3x15x128xf32>
    %1246 = vector.extract_strided_slice %36 {offsets = [0, 2, 0], sizes = [1, 1, 128], strides = [1, 1, 1]} : vector<4x4x128xf32> to vector<1x1x128xf32>
    %1247 = vector.shape_cast %1246 : vector<1x1x128xf32> to vector<128xf32>
    %1248 = vector.shape_cast %1247 : vector<128xf32> to vector<1x1x128xf32>
    %1249 = vector.broadcast %1248 : vector<1x1x128xf32> to vector<3x15x128xf32>
    %1250 = arith.mulf %1245, %1249 : vector<3x15x128xf32>
    %1251 = arith.addf %1228, %1250 : vector<3x15x128xf32>
    %1252 = vector.extract_strided_slice %37 {offsets = [0, 2, 0], sizes = [1, 1, 128], strides = [1, 1, 1]} : vector<4x4x128xf32> to vector<1x1x128xf32>
    %1253 = vector.shape_cast %1252 : vector<1x1x128xf32> to vector<128xf32>
    %1254 = vector.shape_cast %1253 : vector<128xf32> to vector<1x1x128xf32>
    %1255 = vector.broadcast %1254 : vector<1x1x128xf32> to vector<3x15x128xf32>
    %1256 = arith.mulf %1245, %1255 : vector<3x15x128xf32>
    %1257 = arith.addf %1234, %1256 : vector<3x15x128xf32>
    %1258 = vector.extract_strided_slice %38 {offsets = [0, 2, 0], sizes = [1, 1, 128], strides = [1, 1, 1]} : vector<4x4x128xf32> to vector<1x1x128xf32>
    %1259 = vector.shape_cast %1258 : vector<1x1x128xf32> to vector<128xf32>
    %1260 = vector.shape_cast %1259 : vector<128xf32> to vector<1x1x128xf32>
    %1261 = vector.broadcast %1260 : vector<1x1x128xf32> to vector<3x15x128xf32>
    %1262 = arith.mulf %1245, %1261 : vector<3x15x128xf32>
    %1263 = arith.addf %1240, %1262 : vector<3x15x128xf32>
    %c0_i32_358 = arith.constant 0 : i32
    %1264 = arith.addi %1188, %c0_i32_358 : i32
    %c0_i32_359 = arith.constant 0 : i32
    %c0_i32_360 = arith.constant 0 : i32
    %c0_i32_361 = arith.constant 0 : i32
    %1265 = tpu.memref_slice %arg10[%9, %c0_i32_359, %c0_i32_360, %c0_i32_361] : memref<2x18x32x128xf32, #tpu.memory_space<vmem>> -> memref<1x18x32x128xf32, #tpu.memory_space<vmem>>
    %1266 = tpu.memref_squeeze %1265 : memref<1x18x32x128xf32, #tpu.memory_space<vmem>> -> memref<18x32x128xf32, #tpu.memory_space<vmem>>
    %1267 = arith.index_cast %1264 : i32 to index
    %c10_362 = arith.constant 10 : index
    %c0_363 = arith.constant 0 : index
    %1268 = vector.load %1266[%1267, %c10_362, %c0_363] : memref<18x32x128xf32, #tpu.memory_space<vmem>>, vector<3x15x128xf32>
    %1269 = vector.extract_strided_slice %36 {offsets = [0, 3, 0], sizes = [1, 1, 128], strides = [1, 1, 1]} : vector<4x4x128xf32> to vector<1x1x128xf32>
    %1270 = vector.shape_cast %1269 : vector<1x1x128xf32> to vector<128xf32>
    %1271 = vector.shape_cast %1270 : vector<128xf32> to vector<1x1x128xf32>
    %1272 = vector.broadcast %1271 : vector<1x1x128xf32> to vector<3x15x128xf32>
    %1273 = arith.mulf %1268, %1272 : vector<3x15x128xf32>
    %1274 = arith.addf %1251, %1273 : vector<3x15x128xf32>
    %1275 = vector.extract_strided_slice %37 {offsets = [0, 3, 0], sizes = [1, 1, 128], strides = [1, 1, 1]} : vector<4x4x128xf32> to vector<1x1x128xf32>
    %1276 = vector.shape_cast %1275 : vector<1x1x128xf32> to vector<128xf32>
    %1277 = vector.shape_cast %1276 : vector<128xf32> to vector<1x1x128xf32>
    %1278 = vector.broadcast %1277 : vector<1x1x128xf32> to vector<3x15x128xf32>
    %1279 = arith.mulf %1268, %1278 : vector<3x15x128xf32>
    %1280 = arith.addf %1257, %1279 : vector<3x15x128xf32>
    %1281 = vector.extract_strided_slice %38 {offsets = [0, 3, 0], sizes = [1, 1, 128], strides = [1, 1, 1]} : vector<4x4x128xf32> to vector<1x1x128xf32>
    %1282 = vector.shape_cast %1281 : vector<1x1x128xf32> to vector<128xf32>
    %1283 = vector.shape_cast %1282 : vector<128xf32> to vector<1x1x128xf32>
    %1284 = vector.broadcast %1283 : vector<1x1x128xf32> to vector<3x15x128xf32>
    %1285 = arith.mulf %1268, %1284 : vector<3x15x128xf32>
    %1286 = arith.addf %1263, %1285 : vector<3x15x128xf32>
    %c1_i32_364 = arith.constant 1 : i32
    %1287 = arith.addi %1188, %c1_i32_364 : i32
    %c0_i32_365 = arith.constant 0 : i32
    %c0_i32_366 = arith.constant 0 : i32
    %c0_i32_367 = arith.constant 0 : i32
    %1288 = tpu.memref_slice %arg10[%9, %c0_i32_365, %c0_i32_366, %c0_i32_367] : memref<2x18x32x128xf32, #tpu.memory_space<vmem>> -> memref<1x18x32x128xf32, #tpu.memory_space<vmem>>
    %1289 = tpu.memref_squeeze %1288 : memref<1x18x32x128xf32, #tpu.memory_space<vmem>> -> memref<18x32x128xf32, #tpu.memory_space<vmem>>
    %1290 = arith.index_cast %1287 : i32 to index
    %c7_368 = arith.constant 7 : index
    %c0_369 = arith.constant 0 : index
    %1291 = vector.load %1289[%1290, %c7_368, %c0_369] : memref<18x32x128xf32, #tpu.memory_space<vmem>>, vector<3x15x128xf32>
    %1292 = vector.extract_strided_slice %36 {offsets = [1, 0, 0], sizes = [1, 1, 128], strides = [1, 1, 1]} : vector<4x4x128xf32> to vector<1x1x128xf32>
    %1293 = vector.shape_cast %1292 : vector<1x1x128xf32> to vector<128xf32>
    %1294 = vector.shape_cast %1293 : vector<128xf32> to vector<1x1x128xf32>
    %1295 = vector.broadcast %1294 : vector<1x1x128xf32> to vector<3x15x128xf32>
    %1296 = arith.mulf %1291, %1295 : vector<3x15x128xf32>
    %1297 = arith.addf %1274, %1296 : vector<3x15x128xf32>
    %1298 = vector.extract_strided_slice %37 {offsets = [1, 0, 0], sizes = [1, 1, 128], strides = [1, 1, 1]} : vector<4x4x128xf32> to vector<1x1x128xf32>
    %1299 = vector.shape_cast %1298 : vector<1x1x128xf32> to vector<128xf32>
    %1300 = vector.shape_cast %1299 : vector<128xf32> to vector<1x1x128xf32>
    %1301 = vector.broadcast %1300 : vector<1x1x128xf32> to vector<3x15x128xf32>
    %1302 = arith.mulf %1291, %1301 : vector<3x15x128xf32>
    %1303 = arith.addf %1280, %1302 : vector<3x15x128xf32>
    %1304 = vector.extract_strided_slice %38 {offsets = [1, 0, 0], sizes = [1, 1, 128], strides = [1, 1, 1]} : vector<4x4x128xf32> to vector<1x1x128xf32>
    %1305 = vector.shape_cast %1304 : vector<1x1x128xf32> to vector<128xf32>
    %1306 = vector.shape_cast %1305 : vector<128xf32> to vector<1x1x128xf32>
    %1307 = vector.broadcast %1306 : vector<1x1x128xf32> to vector<3x15x128xf32>
    %1308 = arith.mulf %1291, %1307 : vector<3x15x128xf32>
    %1309 = arith.addf %1286, %1308 : vector<3x15x128xf32>
    %c1_i32_370 = arith.constant 1 : i32
    %1310 = arith.addi %1188, %c1_i32_370 : i32
    %c0_i32_371 = arith.constant 0 : i32
    %c0_i32_372 = arith.constant 0 : i32
    %c0_i32_373 = arith.constant 0 : i32
    %1311 = tpu.memref_slice %arg10[%9, %c0_i32_371, %c0_i32_372, %c0_i32_373] : memref<2x18x32x128xf32, #tpu.memory_space<vmem>> -> memref<1x18x32x128xf32, #tpu.memory_space<vmem>>
    %1312 = tpu.memref_squeeze %1311 : memref<1x18x32x128xf32, #tpu.memory_space<vmem>> -> memref<18x32x128xf32, #tpu.memory_space<vmem>>
    %1313 = arith.index_cast %1310 : i32 to index
    %c8_374 = arith.constant 8 : index
    %c0_375 = arith.constant 0 : index
    %1314 = vector.load %1312[%1313, %c8_374, %c0_375] : memref<18x32x128xf32, #tpu.memory_space<vmem>>, vector<3x15x128xf32>
    %1315 = vector.extract_strided_slice %36 {offsets = [1, 1, 0], sizes = [1, 1, 128], strides = [1, 1, 1]} : vector<4x4x128xf32> to vector<1x1x128xf32>
    %1316 = vector.shape_cast %1315 : vector<1x1x128xf32> to vector<128xf32>
    %1317 = vector.shape_cast %1316 : vector<128xf32> to vector<1x1x128xf32>
    %1318 = vector.broadcast %1317 : vector<1x1x128xf32> to vector<3x15x128xf32>
    %1319 = arith.mulf %1314, %1318 : vector<3x15x128xf32>
    %1320 = arith.addf %1297, %1319 : vector<3x15x128xf32>
    %1321 = vector.extract_strided_slice %37 {offsets = [1, 1, 0], sizes = [1, 1, 128], strides = [1, 1, 1]} : vector<4x4x128xf32> to vector<1x1x128xf32>
    %1322 = vector.shape_cast %1321 : vector<1x1x128xf32> to vector<128xf32>
    %1323 = vector.shape_cast %1322 : vector<128xf32> to vector<1x1x128xf32>
    %1324 = vector.broadcast %1323 : vector<1x1x128xf32> to vector<3x15x128xf32>
    %1325 = arith.mulf %1314, %1324 : vector<3x15x128xf32>
    %1326 = arith.addf %1303, %1325 : vector<3x15x128xf32>
    %1327 = vector.extract_strided_slice %38 {offsets = [1, 1, 0], sizes = [1, 1, 128], strides = [1, 1, 1]} : vector<4x4x128xf32> to vector<1x1x128xf32>
    %1328 = vector.shape_cast %1327 : vector<1x1x128xf32> to vector<128xf32>
    %1329 = vector.shape_cast %1328 : vector<128xf32> to vector<1x1x128xf32>
    %1330 = vector.broadcast %1329 : vector<1x1x128xf32> to vector<3x15x128xf32>
    %1331 = arith.mulf %1314, %1330 : vector<3x15x128xf32>
    %1332 = arith.addf %1309, %1331 : vector<3x15x128xf32>
    %c1_i32_376 = arith.constant 1 : i32
    %1333 = arith.addi %1188, %c1_i32_376 : i32
    %c0_i32_377 = arith.constant 0 : i32
    %c0_i32_378 = arith.constant 0 : i32
    %c0_i32_379 = arith.constant 0 : i32
    %1334 = tpu.memref_slice %arg10[%9, %c0_i32_377, %c0_i32_378, %c0_i32_379] : memref<2x18x32x128xf32, #tpu.memory_space<vmem>> -> memref<1x18x32x128xf32, #tpu.memory_space<vmem>>
    %1335 = tpu.memref_squeeze %1334 : memref<1x18x32x128xf32, #tpu.memory_space<vmem>> -> memref<18x32x128xf32, #tpu.memory_space<vmem>>
    %1336 = arith.index_cast %1333 : i32 to index
    %c9_380 = arith.constant 9 : index
    %c0_381 = arith.constant 0 : index
    %1337 = vector.load %1335[%1336, %c9_380, %c0_381] : memref<18x32x128xf32, #tpu.memory_space<vmem>>, vector<3x15x128xf32>
    %1338 = vector.extract_strided_slice %36 {offsets = [1, 2, 0], sizes = [1, 1, 128], strides = [1, 1, 1]} : vector<4x4x128xf32> to vector<1x1x128xf32>
    %1339 = vector.shape_cast %1338 : vector<1x1x128xf32> to vector<128xf32>
    %1340 = vector.shape_cast %1339 : vector<128xf32> to vector<1x1x128xf32>
    %1341 = vector.broadcast %1340 : vector<1x1x128xf32> to vector<3x15x128xf32>
    %1342 = arith.mulf %1337, %1341 : vector<3x15x128xf32>
    %1343 = arith.addf %1320, %1342 : vector<3x15x128xf32>
    %1344 = vector.extract_strided_slice %37 {offsets = [1, 2, 0], sizes = [1, 1, 128], strides = [1, 1, 1]} : vector<4x4x128xf32> to vector<1x1x128xf32>
    %1345 = vector.shape_cast %1344 : vector<1x1x128xf32> to vector<128xf32>
    %1346 = vector.shape_cast %1345 : vector<128xf32> to vector<1x1x128xf32>
    %1347 = vector.broadcast %1346 : vector<1x1x128xf32> to vector<3x15x128xf32>
    %1348 = arith.mulf %1337, %1347 : vector<3x15x128xf32>
    %1349 = arith.addf %1326, %1348 : vector<3x15x128xf32>
    %1350 = vector.extract_strided_slice %38 {offsets = [1, 2, 0], sizes = [1, 1, 128], strides = [1, 1, 1]} : vector<4x4x128xf32> to vector<1x1x128xf32>
    %1351 = vector.shape_cast %1350 : vector<1x1x128xf32> to vector<128xf32>
    %1352 = vector.shape_cast %1351 : vector<128xf32> to vector<1x1x128xf32>
    %1353 = vector.broadcast %1352 : vector<1x1x128xf32> to vector<3x15x128xf32>
    %1354 = arith.mulf %1337, %1353 : vector<3x15x128xf32>
    %1355 = arith.addf %1332, %1354 : vector<3x15x128xf32>
    %c1_i32_382 = arith.constant 1 : i32
    %1356 = arith.addi %1188, %c1_i32_382 : i32
    %c0_i32_383 = arith.constant 0 : i32
    %c0_i32_384 = arith.constant 0 : i32
    %c0_i32_385 = arith.constant 0 : i32
    %1357 = tpu.memref_slice %arg10[%9, %c0_i32_383, %c0_i32_384, %c0_i32_385] : memref<2x18x32x128xf32, #tpu.memory_space<vmem>> -> memref<1x18x32x128xf32, #tpu.memory_space<vmem>>
    %1358 = tpu.memref_squeeze %1357 : memref<1x18x32x128xf32, #tpu.memory_space<vmem>> -> memref<18x32x128xf32, #tpu.memory_space<vmem>>
    %1359 = arith.index_cast %1356 : i32 to index
    %c10_386 = arith.constant 10 : index
    %c0_387 = arith.constant 0 : index
    %1360 = vector.load %1358[%1359, %c10_386, %c0_387] : memref<18x32x128xf32, #tpu.memory_space<vmem>>, vector<3x15x128xf32>
    %1361 = vector.extract_strided_slice %36 {offsets = [1, 3, 0], sizes = [1, 1, 128], strides = [1, 1, 1]} : vector<4x4x128xf32> to vector<1x1x128xf32>
    %1362 = vector.shape_cast %1361 : vector<1x1x128xf32> to vector<128xf32>
    %1363 = vector.shape_cast %1362 : vector<128xf32> to vector<1x1x128xf32>
    %1364 = vector.broadcast %1363 : vector<1x1x128xf32> to vector<3x15x128xf32>
    %1365 = arith.mulf %1360, %1364 : vector<3x15x128xf32>
    %1366 = arith.addf %1343, %1365 : vector<3x15x128xf32>
    %1367 = vector.extract_strided_slice %37 {offsets = [1, 3, 0], sizes = [1, 1, 128], strides = [1, 1, 1]} : vector<4x4x128xf32> to vector<1x1x128xf32>
    %1368 = vector.shape_cast %1367 : vector<1x1x128xf32> to vector<128xf32>
    %1369 = vector.shape_cast %1368 : vector<128xf32> to vector<1x1x128xf32>
    %1370 = vector.broadcast %1369 : vector<1x1x128xf32> to vector<3x15x128xf32>
    %1371 = arith.mulf %1360, %1370 : vector<3x15x128xf32>
    %1372 = arith.addf %1349, %1371 : vector<3x15x128xf32>
    %1373 = vector.extract_strided_slice %38 {offsets = [1, 3, 0], sizes = [1, 1, 128], strides = [1, 1, 1]} : vector<4x4x128xf32> to vector<1x1x128xf32>
    %1374 = vector.shape_cast %1373 : vector<1x1x128xf32> to vector<128xf32>
    %1375 = vector.shape_cast %1374 : vector<128xf32> to vector<1x1x128xf32>
    %1376 = vector.broadcast %1375 : vector<1x1x128xf32> to vector<3x15x128xf32>
    %1377 = arith.mulf %1360, %1376 : vector<3x15x128xf32>
    %1378 = arith.addf %1355, %1377 : vector<3x15x128xf32>
    %c2_i32_388 = arith.constant 2 : i32
    %1379 = arith.addi %1188, %c2_i32_388 : i32
    %c0_i32_389 = arith.constant 0 : i32
    %c0_i32_390 = arith.constant 0 : i32
    %c0_i32_391 = arith.constant 0 : i32
    %1380 = tpu.memref_slice %arg10[%9, %c0_i32_389, %c0_i32_390, %c0_i32_391] : memref<2x18x32x128xf32, #tpu.memory_space<vmem>> -> memref<1x18x32x128xf32, #tpu.memory_space<vmem>>
    %1381 = tpu.memref_squeeze %1380 : memref<1x18x32x128xf32, #tpu.memory_space<vmem>> -> memref<18x32x128xf32, #tpu.memory_space<vmem>>
    %1382 = arith.index_cast %1379 : i32 to index
    %c7_392 = arith.constant 7 : index
    %c0_393 = arith.constant 0 : index
    %1383 = vector.load %1381[%1382, %c7_392, %c0_393] : memref<18x32x128xf32, #tpu.memory_space<vmem>>, vector<3x15x128xf32>
    %1384 = vector.extract_strided_slice %36 {offsets = [2, 0, 0], sizes = [1, 1, 128], strides = [1, 1, 1]} : vector<4x4x128xf32> to vector<1x1x128xf32>
    %1385 = vector.shape_cast %1384 : vector<1x1x128xf32> to vector<128xf32>
    %1386 = vector.shape_cast %1385 : vector<128xf32> to vector<1x1x128xf32>
    %1387 = vector.broadcast %1386 : vector<1x1x128xf32> to vector<3x15x128xf32>
    %1388 = arith.mulf %1383, %1387 : vector<3x15x128xf32>
    %1389 = arith.addf %1366, %1388 : vector<3x15x128xf32>
    %1390 = vector.extract_strided_slice %37 {offsets = [2, 0, 0], sizes = [1, 1, 128], strides = [1, 1, 1]} : vector<4x4x128xf32> to vector<1x1x128xf32>
    %1391 = vector.shape_cast %1390 : vector<1x1x128xf32> to vector<128xf32>
    %1392 = vector.shape_cast %1391 : vector<128xf32> to vector<1x1x128xf32>
    %1393 = vector.broadcast %1392 : vector<1x1x128xf32> to vector<3x15x128xf32>
    %1394 = arith.mulf %1383, %1393 : vector<3x15x128xf32>
    %1395 = arith.addf %1372, %1394 : vector<3x15x128xf32>
    %1396 = vector.extract_strided_slice %38 {offsets = [2, 0, 0], sizes = [1, 1, 128], strides = [1, 1, 1]} : vector<4x4x128xf32> to vector<1x1x128xf32>
    %1397 = vector.shape_cast %1396 : vector<1x1x128xf32> to vector<128xf32>
    %1398 = vector.shape_cast %1397 : vector<128xf32> to vector<1x1x128xf32>
    %1399 = vector.broadcast %1398 : vector<1x1x128xf32> to vector<3x15x128xf32>
    %1400 = arith.mulf %1383, %1399 : vector<3x15x128xf32>
    %1401 = arith.addf %1378, %1400 : vector<3x15x128xf32>
    %c2_i32_394 = arith.constant 2 : i32
    %1402 = arith.addi %1188, %c2_i32_394 : i32
    %c0_i32_395 = arith.constant 0 : i32
    %c0_i32_396 = arith.constant 0 : i32
    %c0_i32_397 = arith.constant 0 : i32
    %1403 = tpu.memref_slice %arg10[%9, %c0_i32_395, %c0_i32_396, %c0_i32_397] : memref<2x18x32x128xf32, #tpu.memory_space<vmem>> -> memref<1x18x32x128xf32, #tpu.memory_space<vmem>>
    %1404 = tpu.memref_squeeze %1403 : memref<1x18x32x128xf32, #tpu.memory_space<vmem>> -> memref<18x32x128xf32, #tpu.memory_space<vmem>>
    %1405 = arith.index_cast %1402 : i32 to index
    %c8_398 = arith.constant 8 : index
    %c0_399 = arith.constant 0 : index
    %1406 = vector.load %1404[%1405, %c8_398, %c0_399] : memref<18x32x128xf32, #tpu.memory_space<vmem>>, vector<3x15x128xf32>
    %1407 = vector.extract_strided_slice %36 {offsets = [2, 1, 0], sizes = [1, 1, 128], strides = [1, 1, 1]} : vector<4x4x128xf32> to vector<1x1x128xf32>
    %1408 = vector.shape_cast %1407 : vector<1x1x128xf32> to vector<128xf32>
    %1409 = vector.shape_cast %1408 : vector<128xf32> to vector<1x1x128xf32>
    %1410 = vector.broadcast %1409 : vector<1x1x128xf32> to vector<3x15x128xf32>
    %1411 = arith.mulf %1406, %1410 : vector<3x15x128xf32>
    %1412 = arith.addf %1389, %1411 : vector<3x15x128xf32>
    %1413 = vector.extract_strided_slice %37 {offsets = [2, 1, 0], sizes = [1, 1, 128], strides = [1, 1, 1]} : vector<4x4x128xf32> to vector<1x1x128xf32>
    %1414 = vector.shape_cast %1413 : vector<1x1x128xf32> to vector<128xf32>
    %1415 = vector.shape_cast %1414 : vector<128xf32> to vector<1x1x128xf32>
    %1416 = vector.broadcast %1415 : vector<1x1x128xf32> to vector<3x15x128xf32>
    %1417 = arith.mulf %1406, %1416 : vector<3x15x128xf32>
    %1418 = arith.addf %1395, %1417 : vector<3x15x128xf32>
    %1419 = vector.extract_strided_slice %38 {offsets = [2, 1, 0], sizes = [1, 1, 128], strides = [1, 1, 1]} : vector<4x4x128xf32> to vector<1x1x128xf32>
    %1420 = vector.shape_cast %1419 : vector<1x1x128xf32> to vector<128xf32>
    %1421 = vector.shape_cast %1420 : vector<128xf32> to vector<1x1x128xf32>
    %1422 = vector.broadcast %1421 : vector<1x1x128xf32> to vector<3x15x128xf32>
    %1423 = arith.mulf %1406, %1422 : vector<3x15x128xf32>
    %1424 = arith.addf %1401, %1423 : vector<3x15x128xf32>
    %c2_i32_400 = arith.constant 2 : i32
    %1425 = arith.addi %1188, %c2_i32_400 : i32
    %c0_i32_401 = arith.constant 0 : i32
    %c0_i32_402 = arith.constant 0 : i32
    %c0_i32_403 = arith.constant 0 : i32
    %1426 = tpu.memref_slice %arg10[%9, %c0_i32_401, %c0_i32_402, %c0_i32_403] : memref<2x18x32x128xf32, #tpu.memory_space<vmem>> -> memref<1x18x32x128xf32, #tpu.memory_space<vmem>>
    %1427 = tpu.memref_squeeze %1426 : memref<1x18x32x128xf32, #tpu.memory_space<vmem>> -> memref<18x32x128xf32, #tpu.memory_space<vmem>>
    %1428 = arith.index_cast %1425 : i32 to index
    %c9_404 = arith.constant 9 : index
    %c0_405 = arith.constant 0 : index
    %1429 = vector.load %1427[%1428, %c9_404, %c0_405] : memref<18x32x128xf32, #tpu.memory_space<vmem>>, vector<3x15x128xf32>
    %1430 = vector.extract_strided_slice %36 {offsets = [2, 2, 0], sizes = [1, 1, 128], strides = [1, 1, 1]} : vector<4x4x128xf32> to vector<1x1x128xf32>
    %1431 = vector.shape_cast %1430 : vector<1x1x128xf32> to vector<128xf32>
    %1432 = vector.shape_cast %1431 : vector<128xf32> to vector<1x1x128xf32>
    %1433 = vector.broadcast %1432 : vector<1x1x128xf32> to vector<3x15x128xf32>
    %1434 = arith.mulf %1429, %1433 : vector<3x15x128xf32>
    %1435 = arith.addf %1412, %1434 : vector<3x15x128xf32>
    %1436 = vector.extract_strided_slice %37 {offsets = [2, 2, 0], sizes = [1, 1, 128], strides = [1, 1, 1]} : vector<4x4x128xf32> to vector<1x1x128xf32>
    %1437 = vector.shape_cast %1436 : vector<1x1x128xf32> to vector<128xf32>
    %1438 = vector.shape_cast %1437 : vector<128xf32> to vector<1x1x128xf32>
    %1439 = vector.broadcast %1438 : vector<1x1x128xf32> to vector<3x15x128xf32>
    %1440 = arith.mulf %1429, %1439 : vector<3x15x128xf32>
    %1441 = arith.addf %1418, %1440 : vector<3x15x128xf32>
    %1442 = vector.extract_strided_slice %38 {offsets = [2, 2, 0], sizes = [1, 1, 128], strides = [1, 1, 1]} : vector<4x4x128xf32> to vector<1x1x128xf32>
    %1443 = vector.shape_cast %1442 : vector<1x1x128xf32> to vector<128xf32>
    %1444 = vector.shape_cast %1443 : vector<128xf32> to vector<1x1x128xf32>
    %1445 = vector.broadcast %1444 : vector<1x1x128xf32> to vector<3x15x128xf32>
    %1446 = arith.mulf %1429, %1445 : vector<3x15x128xf32>
    %1447 = arith.addf %1424, %1446 : vector<3x15x128xf32>
    %c2_i32_406 = arith.constant 2 : i32
    %1448 = arith.addi %1188, %c2_i32_406 : i32
    %c0_i32_407 = arith.constant 0 : i32
    %c0_i32_408 = arith.constant 0 : i32
    %c0_i32_409 = arith.constant 0 : i32
    %1449 = tpu.memref_slice %arg10[%9, %c0_i32_407, %c0_i32_408, %c0_i32_409] : memref<2x18x32x128xf32, #tpu.memory_space<vmem>> -> memref<1x18x32x128xf32, #tpu.memory_space<vmem>>
    %1450 = tpu.memref_squeeze %1449 : memref<1x18x32x128xf32, #tpu.memory_space<vmem>> -> memref<18x32x128xf32, #tpu.memory_space<vmem>>
    %1451 = arith.index_cast %1448 : i32 to index
    %c10_410 = arith.constant 10 : index
    %c0_411 = arith.constant 0 : index
    %1452 = vector.load %1450[%1451, %c10_410, %c0_411] : memref<18x32x128xf32, #tpu.memory_space<vmem>>, vector<3x15x128xf32>
    %1453 = vector.extract_strided_slice %36 {offsets = [2, 3, 0], sizes = [1, 1, 128], strides = [1, 1, 1]} : vector<4x4x128xf32> to vector<1x1x128xf32>
    %1454 = vector.shape_cast %1453 : vector<1x1x128xf32> to vector<128xf32>
    %1455 = vector.shape_cast %1454 : vector<128xf32> to vector<1x1x128xf32>
    %1456 = vector.broadcast %1455 : vector<1x1x128xf32> to vector<3x15x128xf32>
    %1457 = arith.mulf %1452, %1456 : vector<3x15x128xf32>
    %1458 = arith.addf %1435, %1457 : vector<3x15x128xf32>
    %1459 = vector.extract_strided_slice %37 {offsets = [2, 3, 0], sizes = [1, 1, 128], strides = [1, 1, 1]} : vector<4x4x128xf32> to vector<1x1x128xf32>
    %1460 = vector.shape_cast %1459 : vector<1x1x128xf32> to vector<128xf32>
    %1461 = vector.shape_cast %1460 : vector<128xf32> to vector<1x1x128xf32>
    %1462 = vector.broadcast %1461 : vector<1x1x128xf32> to vector<3x15x128xf32>
    %1463 = arith.mulf %1452, %1462 : vector<3x15x128xf32>
    %1464 = arith.addf %1441, %1463 : vector<3x15x128xf32>
    %1465 = vector.extract_strided_slice %38 {offsets = [2, 3, 0], sizes = [1, 1, 128], strides = [1, 1, 1]} : vector<4x4x128xf32> to vector<1x1x128xf32>
    %1466 = vector.shape_cast %1465 : vector<1x1x128xf32> to vector<128xf32>
    %1467 = vector.shape_cast %1466 : vector<128xf32> to vector<1x1x128xf32>
    %1468 = vector.broadcast %1467 : vector<1x1x128xf32> to vector<3x15x128xf32>
    %1469 = arith.mulf %1452, %1468 : vector<3x15x128xf32>
    %1470 = arith.addf %1447, %1469 : vector<3x15x128xf32>
    %c3_i32_412 = arith.constant 3 : i32
    %1471 = arith.addi %1188, %c3_i32_412 : i32
    %c0_i32_413 = arith.constant 0 : i32
    %c0_i32_414 = arith.constant 0 : i32
    %c0_i32_415 = arith.constant 0 : i32
    %1472 = tpu.memref_slice %arg10[%9, %c0_i32_413, %c0_i32_414, %c0_i32_415] : memref<2x18x32x128xf32, #tpu.memory_space<vmem>> -> memref<1x18x32x128xf32, #tpu.memory_space<vmem>>
    %1473 = tpu.memref_squeeze %1472 : memref<1x18x32x128xf32, #tpu.memory_space<vmem>> -> memref<18x32x128xf32, #tpu.memory_space<vmem>>
    %1474 = arith.index_cast %1471 : i32 to index
    %c7_416 = arith.constant 7 : index
    %c0_417 = arith.constant 0 : index
    %1475 = vector.load %1473[%1474, %c7_416, %c0_417] : memref<18x32x128xf32, #tpu.memory_space<vmem>>, vector<3x15x128xf32>
    %1476 = vector.extract_strided_slice %36 {offsets = [3, 0, 0], sizes = [1, 1, 128], strides = [1, 1, 1]} : vector<4x4x128xf32> to vector<1x1x128xf32>
    %1477 = vector.shape_cast %1476 : vector<1x1x128xf32> to vector<128xf32>
    %1478 = vector.shape_cast %1477 : vector<128xf32> to vector<1x1x128xf32>
    %1479 = vector.broadcast %1478 : vector<1x1x128xf32> to vector<3x15x128xf32>
    %1480 = arith.mulf %1475, %1479 : vector<3x15x128xf32>
    %1481 = arith.addf %1458, %1480 : vector<3x15x128xf32>
    %1482 = vector.extract_strided_slice %37 {offsets = [3, 0, 0], sizes = [1, 1, 128], strides = [1, 1, 1]} : vector<4x4x128xf32> to vector<1x1x128xf32>
    %1483 = vector.shape_cast %1482 : vector<1x1x128xf32> to vector<128xf32>
    %1484 = vector.shape_cast %1483 : vector<128xf32> to vector<1x1x128xf32>
    %1485 = vector.broadcast %1484 : vector<1x1x128xf32> to vector<3x15x128xf32>
    %1486 = arith.mulf %1475, %1485 : vector<3x15x128xf32>
    %1487 = arith.addf %1464, %1486 : vector<3x15x128xf32>
    %1488 = vector.extract_strided_slice %38 {offsets = [3, 0, 0], sizes = [1, 1, 128], strides = [1, 1, 1]} : vector<4x4x128xf32> to vector<1x1x128xf32>
    %1489 = vector.shape_cast %1488 : vector<1x1x128xf32> to vector<128xf32>
    %1490 = vector.shape_cast %1489 : vector<128xf32> to vector<1x1x128xf32>
    %1491 = vector.broadcast %1490 : vector<1x1x128xf32> to vector<3x15x128xf32>
    %1492 = arith.mulf %1475, %1491 : vector<3x15x128xf32>
    %1493 = arith.addf %1470, %1492 : vector<3x15x128xf32>
    %c3_i32_418 = arith.constant 3 : i32
    %1494 = arith.addi %1188, %c3_i32_418 : i32
    %c0_i32_419 = arith.constant 0 : i32
    %c0_i32_420 = arith.constant 0 : i32
    %c0_i32_421 = arith.constant 0 : i32
    %1495 = tpu.memref_slice %arg10[%9, %c0_i32_419, %c0_i32_420, %c0_i32_421] : memref<2x18x32x128xf32, #tpu.memory_space<vmem>> -> memref<1x18x32x128xf32, #tpu.memory_space<vmem>>
    %1496 = tpu.memref_squeeze %1495 : memref<1x18x32x128xf32, #tpu.memory_space<vmem>> -> memref<18x32x128xf32, #tpu.memory_space<vmem>>
    %1497 = arith.index_cast %1494 : i32 to index
    %c8_422 = arith.constant 8 : index
    %c0_423 = arith.constant 0 : index
    %1498 = vector.load %1496[%1497, %c8_422, %c0_423] : memref<18x32x128xf32, #tpu.memory_space<vmem>>, vector<3x15x128xf32>
    %1499 = vector.extract_strided_slice %36 {offsets = [3, 1, 0], sizes = [1, 1, 128], strides = [1, 1, 1]} : vector<4x4x128xf32> to vector<1x1x128xf32>
    %1500 = vector.shape_cast %1499 : vector<1x1x128xf32> to vector<128xf32>
    %1501 = vector.shape_cast %1500 : vector<128xf32> to vector<1x1x128xf32>
    %1502 = vector.broadcast %1501 : vector<1x1x128xf32> to vector<3x15x128xf32>
    %1503 = arith.mulf %1498, %1502 : vector<3x15x128xf32>
    %1504 = arith.addf %1481, %1503 : vector<3x15x128xf32>
    %1505 = vector.extract_strided_slice %37 {offsets = [3, 1, 0], sizes = [1, 1, 128], strides = [1, 1, 1]} : vector<4x4x128xf32> to vector<1x1x128xf32>
    %1506 = vector.shape_cast %1505 : vector<1x1x128xf32> to vector<128xf32>
    %1507 = vector.shape_cast %1506 : vector<128xf32> to vector<1x1x128xf32>
    %1508 = vector.broadcast %1507 : vector<1x1x128xf32> to vector<3x15x128xf32>
    %1509 = arith.mulf %1498, %1508 : vector<3x15x128xf32>
    %1510 = arith.addf %1487, %1509 : vector<3x15x128xf32>
    %1511 = vector.extract_strided_slice %38 {offsets = [3, 1, 0], sizes = [1, 1, 128], strides = [1, 1, 1]} : vector<4x4x128xf32> to vector<1x1x128xf32>
    %1512 = vector.shape_cast %1511 : vector<1x1x128xf32> to vector<128xf32>
    %1513 = vector.shape_cast %1512 : vector<128xf32> to vector<1x1x128xf32>
    %1514 = vector.broadcast %1513 : vector<1x1x128xf32> to vector<3x15x128xf32>
    %1515 = arith.mulf %1498, %1514 : vector<3x15x128xf32>
    %1516 = arith.addf %1493, %1515 : vector<3x15x128xf32>
    %c3_i32_424 = arith.constant 3 : i32
    %1517 = arith.addi %1188, %c3_i32_424 : i32
    %c0_i32_425 = arith.constant 0 : i32
    %c0_i32_426 = arith.constant 0 : i32
    %c0_i32_427 = arith.constant 0 : i32
    %1518 = tpu.memref_slice %arg10[%9, %c0_i32_425, %c0_i32_426, %c0_i32_427] : memref<2x18x32x128xf32, #tpu.memory_space<vmem>> -> memref<1x18x32x128xf32, #tpu.memory_space<vmem>>
    %1519 = tpu.memref_squeeze %1518 : memref<1x18x32x128xf32, #tpu.memory_space<vmem>> -> memref<18x32x128xf32, #tpu.memory_space<vmem>>
    %1520 = arith.index_cast %1517 : i32 to index
    %c9_428 = arith.constant 9 : index
    %c0_429 = arith.constant 0 : index
    %1521 = vector.load %1519[%1520, %c9_428, %c0_429] : memref<18x32x128xf32, #tpu.memory_space<vmem>>, vector<3x15x128xf32>
    %1522 = vector.extract_strided_slice %36 {offsets = [3, 2, 0], sizes = [1, 1, 128], strides = [1, 1, 1]} : vector<4x4x128xf32> to vector<1x1x128xf32>
    %1523 = vector.shape_cast %1522 : vector<1x1x128xf32> to vector<128xf32>
    %1524 = vector.shape_cast %1523 : vector<128xf32> to vector<1x1x128xf32>
    %1525 = vector.broadcast %1524 : vector<1x1x128xf32> to vector<3x15x128xf32>
    %1526 = arith.mulf %1521, %1525 : vector<3x15x128xf32>
    %1527 = arith.addf %1504, %1526 : vector<3x15x128xf32>
    %1528 = vector.extract_strided_slice %37 {offsets = [3, 2, 0], sizes = [1, 1, 128], strides = [1, 1, 1]} : vector<4x4x128xf32> to vector<1x1x128xf32>
    %1529 = vector.shape_cast %1528 : vector<1x1x128xf32> to vector<128xf32>
    %1530 = vector.shape_cast %1529 : vector<128xf32> to vector<1x1x128xf32>
    %1531 = vector.broadcast %1530 : vector<1x1x128xf32> to vector<3x15x128xf32>
    %1532 = arith.mulf %1521, %1531 : vector<3x15x128xf32>
    %1533 = arith.addf %1510, %1532 : vector<3x15x128xf32>
    %1534 = vector.extract_strided_slice %38 {offsets = [3, 2, 0], sizes = [1, 1, 128], strides = [1, 1, 1]} : vector<4x4x128xf32> to vector<1x1x128xf32>
    %1535 = vector.shape_cast %1534 : vector<1x1x128xf32> to vector<128xf32>
    %1536 = vector.shape_cast %1535 : vector<128xf32> to vector<1x1x128xf32>
    %1537 = vector.broadcast %1536 : vector<1x1x128xf32> to vector<3x15x128xf32>
    %1538 = arith.mulf %1521, %1537 : vector<3x15x128xf32>
    %1539 = arith.addf %1516, %1538 : vector<3x15x128xf32>
    %c3_i32_430 = arith.constant 3 : i32
    %1540 = arith.addi %1188, %c3_i32_430 : i32
    %c0_i32_431 = arith.constant 0 : i32
    %c0_i32_432 = arith.constant 0 : i32
    %c0_i32_433 = arith.constant 0 : i32
    %1541 = tpu.memref_slice %arg10[%9, %c0_i32_431, %c0_i32_432, %c0_i32_433] : memref<2x18x32x128xf32, #tpu.memory_space<vmem>> -> memref<1x18x32x128xf32, #tpu.memory_space<vmem>>
    %1542 = tpu.memref_squeeze %1541 : memref<1x18x32x128xf32, #tpu.memory_space<vmem>> -> memref<18x32x128xf32, #tpu.memory_space<vmem>>
    %1543 = arith.index_cast %1540 : i32 to index
    %c10_434 = arith.constant 10 : index
    %c0_435 = arith.constant 0 : index
    %1544 = vector.load %1542[%1543, %c10_434, %c0_435] : memref<18x32x128xf32, #tpu.memory_space<vmem>>, vector<3x15x128xf32>
    %1545 = vector.extract_strided_slice %36 {offsets = [3, 3, 0], sizes = [1, 1, 128], strides = [1, 1, 1]} : vector<4x4x128xf32> to vector<1x1x128xf32>
    %1546 = vector.shape_cast %1545 : vector<1x1x128xf32> to vector<128xf32>
    %1547 = vector.shape_cast %1546 : vector<128xf32> to vector<1x1x128xf32>
    %1548 = vector.broadcast %1547 : vector<1x1x128xf32> to vector<3x15x128xf32>
    %1549 = arith.mulf %1544, %1548 : vector<3x15x128xf32>
    %1550 = arith.addf %1527, %1549 : vector<3x15x128xf32>
    %1551 = vector.extract_strided_slice %37 {offsets = [3, 3, 0], sizes = [1, 1, 128], strides = [1, 1, 1]} : vector<4x4x128xf32> to vector<1x1x128xf32>
    %1552 = vector.shape_cast %1551 : vector<1x1x128xf32> to vector<128xf32>
    %1553 = vector.shape_cast %1552 : vector<128xf32> to vector<1x1x128xf32>
    %1554 = vector.broadcast %1553 : vector<1x1x128xf32> to vector<3x15x128xf32>
    %1555 = arith.mulf %1544, %1554 : vector<3x15x128xf32>
    %1556 = arith.addf %1533, %1555 : vector<3x15x128xf32>
    %1557 = vector.extract_strided_slice %38 {offsets = [3, 3, 0], sizes = [1, 1, 128], strides = [1, 1, 1]} : vector<4x4x128xf32> to vector<1x1x128xf32>
    %1558 = vector.shape_cast %1557 : vector<1x1x128xf32> to vector<128xf32>
    %1559 = vector.shape_cast %1558 : vector<128xf32> to vector<1x1x128xf32>
    %1560 = vector.broadcast %1559 : vector<1x1x128xf32> to vector<3x15x128xf32>
    %1561 = arith.mulf %1544, %1560 : vector<3x15x128xf32>
    %1562 = arith.addf %1539, %1561 : vector<3x15x128xf32>
    %1563 = arith.mulf %1550, %1556 : vector<3x15x128xf32>
    %1564 = arith.addf %1563, %1562 : vector<3x15x128xf32>
    %c0_436 = arith.constant 0 : index
    %1565 = arith.index_cast %1188 : i32 to index
    %c0_437 = arith.constant 0 : index
    %c0_438 = arith.constant 0 : index
    %1566 = vector.load %arg9[%c0_436, %1565, %c0_437, %c0_438] : memref<1x15x15x128xf32, #tpu.memory_space<vmem>>, vector<1x3x15x128xf32>
    %1567 = vector.shape_cast %1566 : vector<1x3x15x128xf32> to vector<3x15x128xf32>
    %1568 = vector.shape_cast %1564 : vector<3x15x128xf32> to vector<1x3x15x128xf32>
    tpu.vector_store %arg9[%c0_436, %1565, %c0_437, %c0_438], %1568 {strides = array<i32>} : memref<1x15x15x128xf32, #tpu.memory_space<vmem>>, vector<1x3x15x128xf32>,
    %c4_i32 = arith.constant 4 : i32
    %c3_i32_439 = arith.constant 3 : i32
    %1569 = arith.muli %c4_i32, %c3_i32_439 : i32
    %1570 = vector.shape_cast %40 : vector<128xf32> to vector<1x1x128xf32>
    %1571 = vector.broadcast %1570 : vector<1x1x128xf32> to vector<3x15x128xf32>
    %1572 = vector.shape_cast %42 : vector<128xf32> to vector<1x1x128xf32>
    %1573 = vector.broadcast %1572 : vector<1x1x128xf32> to vector<3x15x128xf32>
    %1574 = vector.shape_cast %44 : vector<128xf32> to vector<1x1x128xf32>
    %1575 = vector.broadcast %1574 : vector<1x1x128xf32> to vector<3x15x128xf32>
    %c0_i32_440 = arith.constant 0 : i32
    %1576 = arith.addi %1569, %c0_i32_440 : i32
    %c0_i32_441 = arith.constant 0 : i32
    %c0_i32_442 = arith.constant 0 : i32
    %c0_i32_443 = arith.constant 0 : i32
    %1577 = tpu.memref_slice %arg10[%9, %c0_i32_441, %c0_i32_442, %c0_i32_443] : memref<2x18x32x128xf32, #tpu.memory_space<vmem>> -> memref<1x18x32x128xf32, #tpu.memory_space<vmem>>
    %1578 = tpu.memref_squeeze %1577 : memref<1x18x32x128xf32, #tpu.memory_space<vmem>> -> memref<18x32x128xf32, #tpu.memory_space<vmem>>
    %1579 = arith.index_cast %1576 : i32 to index
    %c7_444 = arith.constant 7 : index
    %c0_445 = arith.constant 0 : index
    %1580 = vector.load %1578[%1579, %c7_444, %c0_445] : memref<18x32x128xf32, #tpu.memory_space<vmem>>, vector<3x15x128xf32>
    %1581 = vector.extract_strided_slice %36 {offsets = [0, 0, 0], sizes = [1, 1, 128], strides = [1, 1, 1]} : vector<4x4x128xf32> to vector<1x1x128xf32>
    %1582 = vector.shape_cast %1581 : vector<1x1x128xf32> to vector<128xf32>
    %1583 = vector.shape_cast %1582 : vector<128xf32> to vector<1x1x128xf32>
    %1584 = vector.broadcast %1583 : vector<1x1x128xf32> to vector<3x15x128xf32>
    %1585 = arith.mulf %1580, %1584 : vector<3x15x128xf32>
    %1586 = arith.addf %1571, %1585 : vector<3x15x128xf32>
    %1587 = vector.extract_strided_slice %37 {offsets = [0, 0, 0], sizes = [1, 1, 128], strides = [1, 1, 1]} : vector<4x4x128xf32> to vector<1x1x128xf32>
    %1588 = vector.shape_cast %1587 : vector<1x1x128xf32> to vector<128xf32>
    %1589 = vector.shape_cast %1588 : vector<128xf32> to vector<1x1x128xf32>
    %1590 = vector.broadcast %1589 : vector<1x1x128xf32> to vector<3x15x128xf32>
    %1591 = arith.mulf %1580, %1590 : vector<3x15x128xf32>
    %1592 = arith.addf %1573, %1591 : vector<3x15x128xf32>
    %1593 = vector.extract_strided_slice %38 {offsets = [0, 0, 0], sizes = [1, 1, 128], strides = [1, 1, 1]} : vector<4x4x128xf32> to vector<1x1x128xf32>
    %1594 = vector.shape_cast %1593 : vector<1x1x128xf32> to vector<128xf32>
    %1595 = vector.shape_cast %1594 : vector<128xf32> to vector<1x1x128xf32>
    %1596 = vector.broadcast %1595 : vector<1x1x128xf32> to vector<3x15x128xf32>
    %1597 = arith.mulf %1580, %1596 : vector<3x15x128xf32>
    %1598 = arith.addf %1575, %1597 : vector<3x15x128xf32>
    %c0_i32_446 = arith.constant 0 : i32
    %1599 = arith.addi %1569, %c0_i32_446 : i32
    %c0_i32_447 = arith.constant 0 : i32
    %c0_i32_448 = arith.constant 0 : i32
    %c0_i32_449 = arith.constant 0 : i32
    %1600 = tpu.memref_slice %arg10[%9, %c0_i32_447, %c0_i32_448, %c0_i32_449] : memref<2x18x32x128xf32, #tpu.memory_space<vmem>> -> memref<1x18x32x128xf32, #tpu.memory_space<vmem>>
    %1601 = tpu.memref_squeeze %1600 : memref<1x18x32x128xf32, #tpu.memory_space<vmem>> -> memref<18x32x128xf32, #tpu.memory_space<vmem>>
    %1602 = arith.index_cast %1599 : i32 to index
    %c8_450 = arith.constant 8 : index
    %c0_451 = arith.constant 0 : index
    %1603 = vector.load %1601[%1602, %c8_450, %c0_451] : memref<18x32x128xf32, #tpu.memory_space<vmem>>, vector<3x15x128xf32>
    %1604 = vector.extract_strided_slice %36 {offsets = [0, 1, 0], sizes = [1, 1, 128], strides = [1, 1, 1]} : vector<4x4x128xf32> to vector<1x1x128xf32>
    %1605 = vector.shape_cast %1604 : vector<1x1x128xf32> to vector<128xf32>
    %1606 = vector.shape_cast %1605 : vector<128xf32> to vector<1x1x128xf32>
    %1607 = vector.broadcast %1606 : vector<1x1x128xf32> to vector<3x15x128xf32>
    %1608 = arith.mulf %1603, %1607 : vector<3x15x128xf32>
    %1609 = arith.addf %1586, %1608 : vector<3x15x128xf32>
    %1610 = vector.extract_strided_slice %37 {offsets = [0, 1, 0], sizes = [1, 1, 128], strides = [1, 1, 1]} : vector<4x4x128xf32> to vector<1x1x128xf32>
    %1611 = vector.shape_cast %1610 : vector<1x1x128xf32> to vector<128xf32>
    %1612 = vector.shape_cast %1611 : vector<128xf32> to vector<1x1x128xf32>
    %1613 = vector.broadcast %1612 : vector<1x1x128xf32> to vector<3x15x128xf32>
    %1614 = arith.mulf %1603, %1613 : vector<3x15x128xf32>
    %1615 = arith.addf %1592, %1614 : vector<3x15x128xf32>
    %1616 = vector.extract_strided_slice %38 {offsets = [0, 1, 0], sizes = [1, 1, 128], strides = [1, 1, 1]} : vector<4x4x128xf32> to vector<1x1x128xf32>
    %1617 = vector.shape_cast %1616 : vector<1x1x128xf32> to vector<128xf32>
    %1618 = vector.shape_cast %1617 : vector<128xf32> to vector<1x1x128xf32>
    %1619 = vector.broadcast %1618 : vector<1x1x128xf32> to vector<3x15x128xf32>
    %1620 = arith.mulf %1603, %1619 : vector<3x15x128xf32>
    %1621 = arith.addf %1598, %1620 : vector<3x15x128xf32>
    %c0_i32_452 = arith.constant 0 : i32
    %1622 = arith.addi %1569, %c0_i32_452 : i32
    %c0_i32_453 = arith.constant 0 : i32
    %c0_i32_454 = arith.constant 0 : i32
    %c0_i32_455 = arith.constant 0 : i32
    %1623 = tpu.memref_slice %arg10[%9, %c0_i32_453, %c0_i32_454, %c0_i32_455] : memref<2x18x32x128xf32, #tpu.memory_space<vmem>> -> memref<1x18x32x128xf32, #tpu.memory_space<vmem>>
    %1624 = tpu.memref_squeeze %1623 : memref<1x18x32x128xf32, #tpu.memory_space<vmem>> -> memref<18x32x128xf32, #tpu.memory_space<vmem>>
    %1625 = arith.index_cast %1622 : i32 to index
    %c9_456 = arith.constant 9 : index
    %c0_457 = arith.constant 0 : index
    %1626 = vector.load %1624[%1625, %c9_456, %c0_457] : memref<18x32x128xf32, #tpu.memory_space<vmem>>, vector<3x15x128xf32>
    %1627 = vector.extract_strided_slice %36 {offsets = [0, 2, 0], sizes = [1, 1, 128], strides = [1, 1, 1]} : vector<4x4x128xf32> to vector<1x1x128xf32>
    %1628 = vector.shape_cast %1627 : vector<1x1x128xf32> to vector<128xf32>
    %1629 = vector.shape_cast %1628 : vector<128xf32> to vector<1x1x128xf32>
    %1630 = vector.broadcast %1629 : vector<1x1x128xf32> to vector<3x15x128xf32>
    %1631 = arith.mulf %1626, %1630 : vector<3x15x128xf32>
    %1632 = arith.addf %1609, %1631 : vector<3x15x128xf32>
    %1633 = vector.extract_strided_slice %37 {offsets = [0, 2, 0], sizes = [1, 1, 128], strides = [1, 1, 1]} : vector<4x4x128xf32> to vector<1x1x128xf32>
    %1634 = vector.shape_cast %1633 : vector<1x1x128xf32> to vector<128xf32>
    %1635 = vector.shape_cast %1634 : vector<128xf32> to vector<1x1x128xf32>
    %1636 = vector.broadcast %1635 : vector<1x1x128xf32> to vector<3x15x128xf32>
    %1637 = arith.mulf %1626, %1636 : vector<3x15x128xf32>
    %1638 = arith.addf %1615, %1637 : vector<3x15x128xf32>
    %1639 = vector.extract_strided_slice %38 {offsets = [0, 2, 0], sizes = [1, 1, 128], strides = [1, 1, 1]} : vector<4x4x128xf32> to vector<1x1x128xf32>
    %1640 = vector.shape_cast %1639 : vector<1x1x128xf32> to vector<128xf32>
    %1641 = vector.shape_cast %1640 : vector<128xf32> to vector<1x1x128xf32>
    %1642 = vector.broadcast %1641 : vector<1x1x128xf32> to vector<3x15x128xf32>
    %1643 = arith.mulf %1626, %1642 : vector<3x15x128xf32>
    %1644 = arith.addf %1621, %1643 : vector<3x15x128xf32>
    %c0_i32_458 = arith.constant 0 : i32
    %1645 = arith.addi %1569, %c0_i32_458 : i32
    %c0_i32_459 = arith.constant 0 : i32
    %c0_i32_460 = arith.constant 0 : i32
    %c0_i32_461 = arith.constant 0 : i32
    %1646 = tpu.memref_slice %arg10[%9, %c0_i32_459, %c0_i32_460, %c0_i32_461] : memref<2x18x32x128xf32, #tpu.memory_space<vmem>> -> memref<1x18x32x128xf32, #tpu.memory_space<vmem>>
    %1647 = tpu.memref_squeeze %1646 : memref<1x18x32x128xf32, #tpu.memory_space<vmem>> -> memref<18x32x128xf32, #tpu.memory_space<vmem>>
    %1648 = arith.index_cast %1645 : i32 to index
    %c10_462 = arith.constant 10 : index
    %c0_463 = arith.constant 0 : index
    %1649 = vector.load %1647[%1648, %c10_462, %c0_463] : memref<18x32x128xf32, #tpu.memory_space<vmem>>, vector<3x15x128xf32>
    %1650 = vector.extract_strided_slice %36 {offsets = [0, 3, 0], sizes = [1, 1, 128], strides = [1, 1, 1]} : vector<4x4x128xf32> to vector<1x1x128xf32>
    %1651 = vector.shape_cast %1650 : vector<1x1x128xf32> to vector<128xf32>
    %1652 = vector.shape_cast %1651 : vector<128xf32> to vector<1x1x128xf32>
    %1653 = vector.broadcast %1652 : vector<1x1x128xf32> to vector<3x15x128xf32>
    %1654 = arith.mulf %1649, %1653 : vector<3x15x128xf32>
    %1655 = arith.addf %1632, %1654 : vector<3x15x128xf32>
    %1656 = vector.extract_strided_slice %37 {offsets = [0, 3, 0], sizes = [1, 1, 128], strides = [1, 1, 1]} : vector<4x4x128xf32> to vector<1x1x128xf32>
    %1657 = vector.shape_cast %1656 : vector<1x1x128xf32> to vector<128xf32>
    %1658 = vector.shape_cast %1657 : vector<128xf32> to vector<1x1x128xf32>
    %1659 = vector.broadcast %1658 : vector<1x1x128xf32> to vector<3x15x128xf32>
    %1660 = arith.mulf %1649, %1659 : vector<3x15x128xf32>
    %1661 = arith.addf %1638, %1660 : vector<3x15x128xf32>
    %1662 = vector.extract_strided_slice %38 {offsets = [0, 3, 0], sizes = [1, 1, 128], strides = [1, 1, 1]} : vector<4x4x128xf32> to vector<1x1x128xf32>
    %1663 = vector.shape_cast %1662 : vector<1x1x128xf32> to vector<128xf32>
    %1664 = vector.shape_cast %1663 : vector<128xf32> to vector<1x1x128xf32>
    %1665 = vector.broadcast %1664 : vector<1x1x128xf32> to vector<3x15x128xf32>
    %1666 = arith.mulf %1649, %1665 : vector<3x15x128xf32>
    %1667 = arith.addf %1644, %1666 : vector<3x15x128xf32>
    %c1_i32_464 = arith.constant 1 : i32
    %1668 = arith.addi %1569, %c1_i32_464 : i32
    %c0_i32_465 = arith.constant 0 : i32
    %c0_i32_466 = arith.constant 0 : i32
    %c0_i32_467 = arith.constant 0 : i32
    %1669 = tpu.memref_slice %arg10[%9, %c0_i32_465, %c0_i32_466, %c0_i32_467] : memref<2x18x32x128xf32, #tpu.memory_space<vmem>> -> memref<1x18x32x128xf32, #tpu.memory_space<vmem>>
    %1670 = tpu.memref_squeeze %1669 : memref<1x18x32x128xf32, #tpu.memory_space<vmem>> -> memref<18x32x128xf32, #tpu.memory_space<vmem>>
    %1671 = arith.index_cast %1668 : i32 to index
    %c7_468 = arith.constant 7 : index
    %c0_469 = arith.constant 0 : index
    %1672 = vector.load %1670[%1671, %c7_468, %c0_469] : memref<18x32x128xf32, #tpu.memory_space<vmem>>, vector<3x15x128xf32>
    %1673 = vector.extract_strided_slice %36 {offsets = [1, 0, 0], sizes = [1, 1, 128], strides = [1, 1, 1]} : vector<4x4x128xf32> to vector<1x1x128xf32>
    %1674 = vector.shape_cast %1673 : vector<1x1x128xf32> to vector<128xf32>
    %1675 = vector.shape_cast %1674 : vector<128xf32> to vector<1x1x128xf32>
    %1676 = vector.broadcast %1675 : vector<1x1x128xf32> to vector<3x15x128xf32>
    %1677 = arith.mulf %1672, %1676 : vector<3x15x128xf32>
    %1678 = arith.addf %1655, %1677 : vector<3x15x128xf32>
    %1679 = vector.extract_strided_slice %37 {offsets = [1, 0, 0], sizes = [1, 1, 128], strides = [1, 1, 1]} : vector<4x4x128xf32> to vector<1x1x128xf32>
    %1680 = vector.shape_cast %1679 : vector<1x1x128xf32> to vector<128xf32>
    %1681 = vector.shape_cast %1680 : vector<128xf32> to vector<1x1x128xf32>
    %1682 = vector.broadcast %1681 : vector<1x1x128xf32> to vector<3x15x128xf32>
    %1683 = arith.mulf %1672, %1682 : vector<3x15x128xf32>
    %1684 = arith.addf %1661, %1683 : vector<3x15x128xf32>
    %1685 = vector.extract_strided_slice %38 {offsets = [1, 0, 0], sizes = [1, 1, 128], strides = [1, 1, 1]} : vector<4x4x128xf32> to vector<1x1x128xf32>
    %1686 = vector.shape_cast %1685 : vector<1x1x128xf32> to vector<128xf32>
    %1687 = vector.shape_cast %1686 : vector<128xf32> to vector<1x1x128xf32>
    %1688 = vector.broadcast %1687 : vector<1x1x128xf32> to vector<3x15x128xf32>
    %1689 = arith.mulf %1672, %1688 : vector<3x15x128xf32>
    %1690 = arith.addf %1667, %1689 : vector<3x15x128xf32>
    %c1_i32_470 = arith.constant 1 : i32
    %1691 = arith.addi %1569, %c1_i32_470 : i32
    %c0_i32_471 = arith.constant 0 : i32
    %c0_i32_472 = arith.constant 0 : i32
    %c0_i32_473 = arith.constant 0 : i32
    %1692 = tpu.memref_slice %arg10[%9, %c0_i32_471, %c0_i32_472, %c0_i32_473] : memref<2x18x32x128xf32, #tpu.memory_space<vmem>> -> memref<1x18x32x128xf32, #tpu.memory_space<vmem>>
    %1693 = tpu.memref_squeeze %1692 : memref<1x18x32x128xf32, #tpu.memory_space<vmem>> -> memref<18x32x128xf32, #tpu.memory_space<vmem>>
    %1694 = arith.index_cast %1691 : i32 to index
    %c8_474 = arith.constant 8 : index
    %c0_475 = arith.constant 0 : index
    %1695 = vector.load %1693[%1694, %c8_474, %c0_475] : memref<18x32x128xf32, #tpu.memory_space<vmem>>, vector<3x15x128xf32>
    %1696 = vector.extract_strided_slice %36 {offsets = [1, 1, 0], sizes = [1, 1, 128], strides = [1, 1, 1]} : vector<4x4x128xf32> to vector<1x1x128xf32>
    %1697 = vector.shape_cast %1696 : vector<1x1x128xf32> to vector<128xf32>
    %1698 = vector.shape_cast %1697 : vector<128xf32> to vector<1x1x128xf32>
    %1699 = vector.broadcast %1698 : vector<1x1x128xf32> to vector<3x15x128xf32>
    %1700 = arith.mulf %1695, %1699 : vector<3x15x128xf32>
    %1701 = arith.addf %1678, %1700 : vector<3x15x128xf32>
    %1702 = vector.extract_strided_slice %37 {offsets = [1, 1, 0], sizes = [1, 1, 128], strides = [1, 1, 1]} : vector<4x4x128xf32> to vector<1x1x128xf32>
    %1703 = vector.shape_cast %1702 : vector<1x1x128xf32> to vector<128xf32>
    %1704 = vector.shape_cast %1703 : vector<128xf32> to vector<1x1x128xf32>
    %1705 = vector.broadcast %1704 : vector<1x1x128xf32> to vector<3x15x128xf32>
    %1706 = arith.mulf %1695, %1705 : vector<3x15x128xf32>
    %1707 = arith.addf %1684, %1706 : vector<3x15x128xf32>
    %1708 = vector.extract_strided_slice %38 {offsets = [1, 1, 0], sizes = [1, 1, 128], strides = [1, 1, 1]} : vector<4x4x128xf32> to vector<1x1x128xf32>
    %1709 = vector.shape_cast %1708 : vector<1x1x128xf32> to vector<128xf32>
    %1710 = vector.shape_cast %1709 : vector<128xf32> to vector<1x1x128xf32>
    %1711 = vector.broadcast %1710 : vector<1x1x128xf32> to vector<3x15x128xf32>
    %1712 = arith.mulf %1695, %1711 : vector<3x15x128xf32>
    %1713 = arith.addf %1690, %1712 : vector<3x15x128xf32>
    %c1_i32_476 = arith.constant 1 : i32
    %1714 = arith.addi %1569, %c1_i32_476 : i32
    %c0_i32_477 = arith.constant 0 : i32
    %c0_i32_478 = arith.constant 0 : i32
    %c0_i32_479 = arith.constant 0 : i32
    %1715 = tpu.memref_slice %arg10[%9, %c0_i32_477, %c0_i32_478, %c0_i32_479] : memref<2x18x32x128xf32, #tpu.memory_space<vmem>> -> memref<1x18x32x128xf32, #tpu.memory_space<vmem>>
    %1716 = tpu.memref_squeeze %1715 : memref<1x18x32x128xf32, #tpu.memory_space<vmem>> -> memref<18x32x128xf32, #tpu.memory_space<vmem>>
    %1717 = arith.index_cast %1714 : i32 to index
    %c9_480 = arith.constant 9 : index
    %c0_481 = arith.constant 0 : index
    %1718 = vector.load %1716[%1717, %c9_480, %c0_481] : memref<18x32x128xf32, #tpu.memory_space<vmem>>, vector<3x15x128xf32>
    %1719 = vector.extract_strided_slice %36 {offsets = [1, 2, 0], sizes = [1, 1, 128], strides = [1, 1, 1]} : vector<4x4x128xf32> to vector<1x1x128xf32>
    %1720 = vector.shape_cast %1719 : vector<1x1x128xf32> to vector<128xf32>
    %1721 = vector.shape_cast %1720 : vector<128xf32> to vector<1x1x128xf32>
    %1722 = vector.broadcast %1721 : vector<1x1x128xf32> to vector<3x15x128xf32>
    %1723 = arith.mulf %1718, %1722 : vector<3x15x128xf32>
    %1724 = arith.addf %1701, %1723 : vector<3x15x128xf32>
    %1725 = vector.extract_strided_slice %37 {offsets = [1, 2, 0], sizes = [1, 1, 128], strides = [1, 1, 1]} : vector<4x4x128xf32> to vector<1x1x128xf32>
    %1726 = vector.shape_cast %1725 : vector<1x1x128xf32> to vector<128xf32>
    %1727 = vector.shape_cast %1726 : vector<128xf32> to vector<1x1x128xf32>
    %1728 = vector.broadcast %1727 : vector<1x1x128xf32> to vector<3x15x128xf32>
    %1729 = arith.mulf %1718, %1728 : vector<3x15x128xf32>
    %1730 = arith.addf %1707, %1729 : vector<3x15x128xf32>
    %1731 = vector.extract_strided_slice %38 {offsets = [1, 2, 0], sizes = [1, 1, 128], strides = [1, 1, 1]} : vector<4x4x128xf32> to vector<1x1x128xf32>
    %1732 = vector.shape_cast %1731 : vector<1x1x128xf32> to vector<128xf32>
    %1733 = vector.shape_cast %1732 : vector<128xf32> to vector<1x1x128xf32>
    %1734 = vector.broadcast %1733 : vector<1x1x128xf32> to vector<3x15x128xf32>
    %1735 = arith.mulf %1718, %1734 : vector<3x15x128xf32>
    %1736 = arith.addf %1713, %1735 : vector<3x15x128xf32>
    %c1_i32_482 = arith.constant 1 : i32
    %1737 = arith.addi %1569, %c1_i32_482 : i32
    %c0_i32_483 = arith.constant 0 : i32
    %c0_i32_484 = arith.constant 0 : i32
    %c0_i32_485 = arith.constant 0 : i32
    %1738 = tpu.memref_slice %arg10[%9, %c0_i32_483, %c0_i32_484, %c0_i32_485] : memref<2x18x32x128xf32, #tpu.memory_space<vmem>> -> memref<1x18x32x128xf32, #tpu.memory_space<vmem>>
    %1739 = tpu.memref_squeeze %1738 : memref<1x18x32x128xf32, #tpu.memory_space<vmem>> -> memref<18x32x128xf32, #tpu.memory_space<vmem>>
    %1740 = arith.index_cast %1737 : i32 to index
    %c10_486 = arith.constant 10 : index
    %c0_487 = arith.constant 0 : index
    %1741 = vector.load %1739[%1740, %c10_486, %c0_487] : memref<18x32x128xf32, #tpu.memory_space<vmem>>, vector<3x15x128xf32>
    %1742 = vector.extract_strided_slice %36 {offsets = [1, 3, 0], sizes = [1, 1, 128], strides = [1, 1, 1]} : vector<4x4x128xf32> to vector<1x1x128xf32>
    %1743 = vector.shape_cast %1742 : vector<1x1x128xf32> to vector<128xf32>
    %1744 = vector.shape_cast %1743 : vector<128xf32> to vector<1x1x128xf32>
    %1745 = vector.broadcast %1744 : vector<1x1x128xf32> to vector<3x15x128xf32>
    %1746 = arith.mulf %1741, %1745 : vector<3x15x128xf32>
    %1747 = arith.addf %1724, %1746 : vector<3x15x128xf32>
    %1748 = vector.extract_strided_slice %37 {offsets = [1, 3, 0], sizes = [1, 1, 128], strides = [1, 1, 1]} : vector<4x4x128xf32> to vector<1x1x128xf32>
    %1749 = vector.shape_cast %1748 : vector<1x1x128xf32> to vector<128xf32>
    %1750 = vector.shape_cast %1749 : vector<128xf32> to vector<1x1x128xf32>
    %1751 = vector.broadcast %1750 : vector<1x1x128xf32> to vector<3x15x128xf32>
    %1752 = arith.mulf %1741, %1751 : vector<3x15x128xf32>
    %1753 = arith.addf %1730, %1752 : vector<3x15x128xf32>
    %1754 = vector.extract_strided_slice %38 {offsets = [1, 3, 0], sizes = [1, 1, 128], strides = [1, 1, 1]} : vector<4x4x128xf32> to vector<1x1x128xf32>
    %1755 = vector.shape_cast %1754 : vector<1x1x128xf32> to vector<128xf32>
    %1756 = vector.shape_cast %1755 : vector<128xf32> to vector<1x1x128xf32>
    %1757 = vector.broadcast %1756 : vector<1x1x128xf32> to vector<3x15x128xf32>
    %1758 = arith.mulf %1741, %1757 : vector<3x15x128xf32>
    %1759 = arith.addf %1736, %1758 : vector<3x15x128xf32>
    %c2_i32_488 = arith.constant 2 : i32
    %1760 = arith.addi %1569, %c2_i32_488 : i32
    %c0_i32_489 = arith.constant 0 : i32
    %c0_i32_490 = arith.constant 0 : i32
    %c0_i32_491 = arith.constant 0 : i32
    %1761 = tpu.memref_slice %arg10[%9, %c0_i32_489, %c0_i32_490, %c0_i32_491] : memref<2x18x32x128xf32, #tpu.memory_space<vmem>> -> memref<1x18x32x128xf32, #tpu.memory_space<vmem>>
    %1762 = tpu.memref_squeeze %1761 : memref<1x18x32x128xf32, #tpu.memory_space<vmem>> -> memref<18x32x128xf32, #tpu.memory_space<vmem>>
    %1763 = arith.index_cast %1760 : i32 to index
    %c7_492 = arith.constant 7 : index
    %c0_493 = arith.constant 0 : index
    %1764 = vector.load %1762[%1763, %c7_492, %c0_493] : memref<18x32x128xf32, #tpu.memory_space<vmem>>, vector<3x15x128xf32>
    %1765 = vector.extract_strided_slice %36 {offsets = [2, 0, 0], sizes = [1, 1, 128], strides = [1, 1, 1]} : vector<4x4x128xf32> to vector<1x1x128xf32>
    %1766 = vector.shape_cast %1765 : vector<1x1x128xf32> to vector<128xf32>
    %1767 = vector.shape_cast %1766 : vector<128xf32> to vector<1x1x128xf32>
    %1768 = vector.broadcast %1767 : vector<1x1x128xf32> to vector<3x15x128xf32>
    %1769 = arith.mulf %1764, %1768 : vector<3x15x128xf32>
    %1770 = arith.addf %1747, %1769 : vector<3x15x128xf32>
    %1771 = vector.extract_strided_slice %37 {offsets = [2, 0, 0], sizes = [1, 1, 128], strides = [1, 1, 1]} : vector<4x4x128xf32> to vector<1x1x128xf32>
    %1772 = vector.shape_cast %1771 : vector<1x1x128xf32> to vector<128xf32>
    %1773 = vector.shape_cast %1772 : vector<128xf32> to vector<1x1x128xf32>
    %1774 = vector.broadcast %1773 : vector<1x1x128xf32> to vector<3x15x128xf32>
    %1775 = arith.mulf %1764, %1774 : vector<3x15x128xf32>
    %1776 = arith.addf %1753, %1775 : vector<3x15x128xf32>
    %1777 = vector.extract_strided_slice %38 {offsets = [2, 0, 0], sizes = [1, 1, 128], strides = [1, 1, 1]} : vector<4x4x128xf32> to vector<1x1x128xf32>
    %1778 = vector.shape_cast %1777 : vector<1x1x128xf32> to vector<128xf32>
    %1779 = vector.shape_cast %1778 : vector<128xf32> to vector<1x1x128xf32>
    %1780 = vector.broadcast %1779 : vector<1x1x128xf32> to vector<3x15x128xf32>
    %1781 = arith.mulf %1764, %1780 : vector<3x15x128xf32>
    %1782 = arith.addf %1759, %1781 : vector<3x15x128xf32>
    %c2_i32_494 = arith.constant 2 : i32
    %1783 = arith.addi %1569, %c2_i32_494 : i32
    %c0_i32_495 = arith.constant 0 : i32
    %c0_i32_496 = arith.constant 0 : i32
    %c0_i32_497 = arith.constant 0 : i32
    %1784 = tpu.memref_slice %arg10[%9, %c0_i32_495, %c0_i32_496, %c0_i32_497] : memref<2x18x32x128xf32, #tpu.memory_space<vmem>> -> memref<1x18x32x128xf32, #tpu.memory_space<vmem>>
    %1785 = tpu.memref_squeeze %1784 : memref<1x18x32x128xf32, #tpu.memory_space<vmem>> -> memref<18x32x128xf32, #tpu.memory_space<vmem>>
    %1786 = arith.index_cast %1783 : i32 to index
    %c8_498 = arith.constant 8 : index
    %c0_499 = arith.constant 0 : index
    %1787 = vector.load %1785[%1786, %c8_498, %c0_499] : memref<18x32x128xf32, #tpu.memory_space<vmem>>, vector<3x15x128xf32>
    %1788 = vector.extract_strided_slice %36 {offsets = [2, 1, 0], sizes = [1, 1, 128], strides = [1, 1, 1]} : vector<4x4x128xf32> to vector<1x1x128xf32>
    %1789 = vector.shape_cast %1788 : vector<1x1x128xf32> to vector<128xf32>
    %1790 = vector.shape_cast %1789 : vector<128xf32> to vector<1x1x128xf32>
    %1791 = vector.broadcast %1790 : vector<1x1x128xf32> to vector<3x15x128xf32>
    %1792 = arith.mulf %1787, %1791 : vector<3x15x128xf32>
    %1793 = arith.addf %1770, %1792 : vector<3x15x128xf32>
    %1794 = vector.extract_strided_slice %37 {offsets = [2, 1, 0], sizes = [1, 1, 128], strides = [1, 1, 1]} : vector<4x4x128xf32> to vector<1x1x128xf32>
    %1795 = vector.shape_cast %1794 : vector<1x1x128xf32> to vector<128xf32>
    %1796 = vector.shape_cast %1795 : vector<128xf32> to vector<1x1x128xf32>
    %1797 = vector.broadcast %1796 : vector<1x1x128xf32> to vector<3x15x128xf32>
    %1798 = arith.mulf %1787, %1797 : vector<3x15x128xf32>
    %1799 = arith.addf %1776, %1798 : vector<3x15x128xf32>
    %1800 = vector.extract_strided_slice %38 {offsets = [2, 1, 0], sizes = [1, 1, 128], strides = [1, 1, 1]} : vector<4x4x128xf32> to vector<1x1x128xf32>
    %1801 = vector.shape_cast %1800 : vector<1x1x128xf32> to vector<128xf32>
    %1802 = vector.shape_cast %1801 : vector<128xf32> to vector<1x1x128xf32>
    %1803 = vector.broadcast %1802 : vector<1x1x128xf32> to vector<3x15x128xf32>
    %1804 = arith.mulf %1787, %1803 : vector<3x15x128xf32>
    %1805 = arith.addf %1782, %1804 : vector<3x15x128xf32>
    %c2_i32_500 = arith.constant 2 : i32
    %1806 = arith.addi %1569, %c2_i32_500 : i32
    %c0_i32_501 = arith.constant 0 : i32
    %c0_i32_502 = arith.constant 0 : i32
    %c0_i32_503 = arith.constant 0 : i32
    %1807 = tpu.memref_slice %arg10[%9, %c0_i32_501, %c0_i32_502, %c0_i32_503] : memref<2x18x32x128xf32, #tpu.memory_space<vmem>> -> memref<1x18x32x128xf32, #tpu.memory_space<vmem>>
    %1808 = tpu.memref_squeeze %1807 : memref<1x18x32x128xf32, #tpu.memory_space<vmem>> -> memref<18x32x128xf32, #tpu.memory_space<vmem>>
    %1809 = arith.index_cast %1806 : i32 to index
    %c9_504 = arith.constant 9 : index
    %c0_505 = arith.constant 0 : index
    %1810 = vector.load %1808[%1809, %c9_504, %c0_505] : memref<18x32x128xf32, #tpu.memory_space<vmem>>, vector<3x15x128xf32>
    %1811 = vector.extract_strided_slice %36 {offsets = [2, 2, 0], sizes = [1, 1, 128], strides = [1, 1, 1]} : vector<4x4x128xf32> to vector<1x1x128xf32>
    %1812 = vector.shape_cast %1811 : vector<1x1x128xf32> to vector<128xf32>
    %1813 = vector.shape_cast %1812 : vector<128xf32> to vector<1x1x128xf32>
    %1814 = vector.broadcast %1813 : vector<1x1x128xf32> to vector<3x15x128xf32>
    %1815 = arith.mulf %1810, %1814 : vector<3x15x128xf32>
    %1816 = arith.addf %1793, %1815 : vector<3x15x128xf32>
    %1817 = vector.extract_strided_slice %37 {offsets = [2, 2, 0], sizes = [1, 1, 128], strides = [1, 1, 1]} : vector<4x4x128xf32> to vector<1x1x128xf32>
    %1818 = vector.shape_cast %1817 : vector<1x1x128xf32> to vector<128xf32>
    %1819 = vector.shape_cast %1818 : vector<128xf32> to vector<1x1x128xf32>
    %1820 = vector.broadcast %1819 : vector<1x1x128xf32> to vector<3x15x128xf32>
    %1821 = arith.mulf %1810, %1820 : vector<3x15x128xf32>
    %1822 = arith.addf %1799, %1821 : vector<3x15x128xf32>
    %1823 = vector.extract_strided_slice %38 {offsets = [2, 2, 0], sizes = [1, 1, 128], strides = [1, 1, 1]} : vector<4x4x128xf32> to vector<1x1x128xf32>
    %1824 = vector.shape_cast %1823 : vector<1x1x128xf32> to vector<128xf32>
    %1825 = vector.shape_cast %1824 : vector<128xf32> to vector<1x1x128xf32>
    %1826 = vector.broadcast %1825 : vector<1x1x128xf32> to vector<3x15x128xf32>
    %1827 = arith.mulf %1810, %1826 : vector<3x15x128xf32>
    %1828 = arith.addf %1805, %1827 : vector<3x15x128xf32>
    %c2_i32_506 = arith.constant 2 : i32
    %1829 = arith.addi %1569, %c2_i32_506 : i32
    %c0_i32_507 = arith.constant 0 : i32
    %c0_i32_508 = arith.constant 0 : i32
    %c0_i32_509 = arith.constant 0 : i32
    %1830 = tpu.memref_slice %arg10[%9, %c0_i32_507, %c0_i32_508, %c0_i32_509] : memref<2x18x32x128xf32, #tpu.memory_space<vmem>> -> memref<1x18x32x128xf32, #tpu.memory_space<vmem>>
    %1831 = tpu.memref_squeeze %1830 : memref<1x18x32x128xf32, #tpu.memory_space<vmem>> -> memref<18x32x128xf32, #tpu.memory_space<vmem>>
    %1832 = arith.index_cast %1829 : i32 to index
    %c10_510 = arith.constant 10 : index
    %c0_511 = arith.constant 0 : index
    %1833 = vector.load %1831[%1832, %c10_510, %c0_511] : memref<18x32x128xf32, #tpu.memory_space<vmem>>, vector<3x15x128xf32>
    %1834 = vector.extract_strided_slice %36 {offsets = [2, 3, 0], sizes = [1, 1, 128], strides = [1, 1, 1]} : vector<4x4x128xf32> to vector<1x1x128xf32>
    %1835 = vector.shape_cast %1834 : vector<1x1x128xf32> to vector<128xf32>
    %1836 = vector.shape_cast %1835 : vector<128xf32> to vector<1x1x128xf32>
    %1837 = vector.broadcast %1836 : vector<1x1x128xf32> to vector<3x15x128xf32>
    %1838 = arith.mulf %1833, %1837 : vector<3x15x128xf32>
    %1839 = arith.addf %1816, %1838 : vector<3x15x128xf32>
    %1840 = vector.extract_strided_slice %37 {offsets = [2, 3, 0], sizes = [1, 1, 128], strides = [1, 1, 1]} : vector<4x4x128xf32> to vector<1x1x128xf32>
    %1841 = vector.shape_cast %1840 : vector<1x1x128xf32> to vector<128xf32>
    %1842 = vector.shape_cast %1841 : vector<128xf32> to vector<1x1x128xf32>
    %1843 = vector.broadcast %1842 : vector<1x1x128xf32> to vector<3x15x128xf32>
    %1844 = arith.mulf %1833, %1843 : vector<3x15x128xf32>
    %1845 = arith.addf %1822, %1844 : vector<3x15x128xf32>
    %1846 = vector.extract_strided_slice %38 {offsets = [2, 3, 0], sizes = [1, 1, 128], strides = [1, 1, 1]} : vector<4x4x128xf32> to vector<1x1x128xf32>
    %1847 = vector.shape_cast %1846 : vector<1x1x128xf32> to vector<128xf32>
    %1848 = vector.shape_cast %1847 : vector<128xf32> to vector<1x1x128xf32>
    %1849 = vector.broadcast %1848 : vector<1x1x128xf32> to vector<3x15x128xf32>
    %1850 = arith.mulf %1833, %1849 : vector<3x15x128xf32>
    %1851 = arith.addf %1828, %1850 : vector<3x15x128xf32>
    %c3_i32_512 = arith.constant 3 : i32
    %1852 = arith.addi %1569, %c3_i32_512 : i32
    %c0_i32_513 = arith.constant 0 : i32
    %c0_i32_514 = arith.constant 0 : i32
    %c0_i32_515 = arith.constant 0 : i32
    %1853 = tpu.memref_slice %arg10[%9, %c0_i32_513, %c0_i32_514, %c0_i32_515] : memref<2x18x32x128xf32, #tpu.memory_space<vmem>> -> memref<1x18x32x128xf32, #tpu.memory_space<vmem>>
    %1854 = tpu.memref_squeeze %1853 : memref<1x18x32x128xf32, #tpu.memory_space<vmem>> -> memref<18x32x128xf32, #tpu.memory_space<vmem>>
    %1855 = arith.index_cast %1852 : i32 to index
    %c7_516 = arith.constant 7 : index
    %c0_517 = arith.constant 0 : index
    %1856 = vector.load %1854[%1855, %c7_516, %c0_517] : memref<18x32x128xf32, #tpu.memory_space<vmem>>, vector<3x15x128xf32>
    %1857 = vector.extract_strided_slice %36 {offsets = [3, 0, 0], sizes = [1, 1, 128], strides = [1, 1, 1]} : vector<4x4x128xf32> to vector<1x1x128xf32>
    %1858 = vector.shape_cast %1857 : vector<1x1x128xf32> to vector<128xf32>
    %1859 = vector.shape_cast %1858 : vector<128xf32> to vector<1x1x128xf32>
    %1860 = vector.broadcast %1859 : vector<1x1x128xf32> to vector<3x15x128xf32>
    %1861 = arith.mulf %1856, %1860 : vector<3x15x128xf32>
    %1862 = arith.addf %1839, %1861 : vector<3x15x128xf32>
    %1863 = vector.extract_strided_slice %37 {offsets = [3, 0, 0], sizes = [1, 1, 128], strides = [1, 1, 1]} : vector<4x4x128xf32> to vector<1x1x128xf32>
    %1864 = vector.shape_cast %1863 : vector<1x1x128xf32> to vector<128xf32>
    %1865 = vector.shape_cast %1864 : vector<128xf32> to vector<1x1x128xf32>
    %1866 = vector.broadcast %1865 : vector<1x1x128xf32> to vector<3x15x128xf32>
    %1867 = arith.mulf %1856, %1866 : vector<3x15x128xf32>
    %1868 = arith.addf %1845, %1867 : vector<3x15x128xf32>
    %1869 = vector.extract_strided_slice %38 {offsets = [3, 0, 0], sizes = [1, 1, 128], strides = [1, 1, 1]} : vector<4x4x128xf32> to vector<1x1x128xf32>
    %1870 = vector.shape_cast %1869 : vector<1x1x128xf32> to vector<128xf32>
    %1871 = vector.shape_cast %1870 : vector<128xf32> to vector<1x1x128xf32>
    %1872 = vector.broadcast %1871 : vector<1x1x128xf32> to vector<3x15x128xf32>
    %1873 = arith.mulf %1856, %1872 : vector<3x15x128xf32>
    %1874 = arith.addf %1851, %1873 : vector<3x15x128xf32>
    %c3_i32_518 = arith.constant 3 : i32
    %1875 = arith.addi %1569, %c3_i32_518 : i32
    %c0_i32_519 = arith.constant 0 : i32
    %c0_i32_520 = arith.constant 0 : i32
    %c0_i32_521 = arith.constant 0 : i32
    %1876 = tpu.memref_slice %arg10[%9, %c0_i32_519, %c0_i32_520, %c0_i32_521] : memref<2x18x32x128xf32, #tpu.memory_space<vmem>> -> memref<1x18x32x128xf32, #tpu.memory_space<vmem>>
    %1877 = tpu.memref_squeeze %1876 : memref<1x18x32x128xf32, #tpu.memory_space<vmem>> -> memref<18x32x128xf32, #tpu.memory_space<vmem>>
    %1878 = arith.index_cast %1875 : i32 to index
    %c8_522 = arith.constant 8 : index
    %c0_523 = arith.constant 0 : index
    %1879 = vector.load %1877[%1878, %c8_522, %c0_523] : memref<18x32x128xf32, #tpu.memory_space<vmem>>, vector<3x15x128xf32>
    %1880 = vector.extract_strided_slice %36 {offsets = [3, 1, 0], sizes = [1, 1, 128], strides = [1, 1, 1]} : vector<4x4x128xf32> to vector<1x1x128xf32>
    %1881 = vector.shape_cast %1880 : vector<1x1x128xf32> to vector<128xf32>
    %1882 = vector.shape_cast %1881 : vector<128xf32> to vector<1x1x128xf32>
    %1883 = vector.broadcast %1882 : vector<1x1x128xf32> to vector<3x15x128xf32>
    %1884 = arith.mulf %1879, %1883 : vector<3x15x128xf32>
    %1885 = arith.addf %1862, %1884 : vector<3x15x128xf32>
    %1886 = vector.extract_strided_slice %37 {offsets = [3, 1, 0], sizes = [1, 1, 128], strides = [1, 1, 1]} : vector<4x4x128xf32> to vector<1x1x128xf32>
    %1887 = vector.shape_cast %1886 : vector<1x1x128xf32> to vector<128xf32>
    %1888 = vector.shape_cast %1887 : vector<128xf32> to vector<1x1x128xf32>
    %1889 = vector.broadcast %1888 : vector<1x1x128xf32> to vector<3x15x128xf32>
    %1890 = arith.mulf %1879, %1889 : vector<3x15x128xf32>
    %1891 = arith.addf %1868, %1890 : vector<3x15x128xf32>
    %1892 = vector.extract_strided_slice %38 {offsets = [3, 1, 0], sizes = [1, 1, 128], strides = [1, 1, 1]} : vector<4x4x128xf32> to vector<1x1x128xf32>
    %1893 = vector.shape_cast %1892 : vector<1x1x128xf32> to vector<128xf32>
    %1894 = vector.shape_cast %1893 : vector<128xf32> to vector<1x1x128xf32>
    %1895 = vector.broadcast %1894 : vector<1x1x128xf32> to vector<3x15x128xf32>
    %1896 = arith.mulf %1879, %1895 : vector<3x15x128xf32>
    %1897 = arith.addf %1874, %1896 : vector<3x15x128xf32>
    %c3_i32_524 = arith.constant 3 : i32
    %1898 = arith.addi %1569, %c3_i32_524 : i32
    %c0_i32_525 = arith.constant 0 : i32
    %c0_i32_526 = arith.constant 0 : i32
    %c0_i32_527 = arith.constant 0 : i32
    %1899 = tpu.memref_slice %arg10[%9, %c0_i32_525, %c0_i32_526, %c0_i32_527] : memref<2x18x32x128xf32, #tpu.memory_space<vmem>> -> memref<1x18x32x128xf32, #tpu.memory_space<vmem>>
    %1900 = tpu.memref_squeeze %1899 : memref<1x18x32x128xf32, #tpu.memory_space<vmem>> -> memref<18x32x128xf32, #tpu.memory_space<vmem>>
    %1901 = arith.index_cast %1898 : i32 to index
    %c9_528 = arith.constant 9 : index
    %c0_529 = arith.constant 0 : index
    %1902 = vector.load %1900[%1901, %c9_528, %c0_529] : memref<18x32x128xf32, #tpu.memory_space<vmem>>, vector<3x15x128xf32>
    %1903 = vector.extract_strided_slice %36 {offsets = [3, 2, 0], sizes = [1, 1, 128], strides = [1, 1, 1]} : vector<4x4x128xf32> to vector<1x1x128xf32>
    %1904 = vector.shape_cast %1903 : vector<1x1x128xf32> to vector<128xf32>
    %1905 = vector.shape_cast %1904 : vector<128xf32> to vector<1x1x128xf32>
    %1906 = vector.broadcast %1905 : vector<1x1x128xf32> to vector<3x15x128xf32>
    %1907 = arith.mulf %1902, %1906 : vector<3x15x128xf32>
    %1908 = arith.addf %1885, %1907 : vector<3x15x128xf32>
    %1909 = vector.extract_strided_slice %37 {offsets = [3, 2, 0], sizes = [1, 1, 128], strides = [1, 1, 1]} : vector<4x4x128xf32> to vector<1x1x128xf32>
    %1910 = vector.shape_cast %1909 : vector<1x1x128xf32> to vector<128xf32>
    %1911 = vector.shape_cast %1910 : vector<128xf32> to vector<1x1x128xf32>
    %1912 = vector.broadcast %1911 : vector<1x1x128xf32> to vector<3x15x128xf32>
    %1913 = arith.mulf %1902, %1912 : vector<3x15x128xf32>
    %1914 = arith.addf %1891, %1913 : vector<3x15x128xf32>
    %1915 = vector.extract_strided_slice %38 {offsets = [3, 2, 0], sizes = [1, 1, 128], strides = [1, 1, 1]} : vector<4x4x128xf32> to vector<1x1x128xf32>
    %1916 = vector.shape_cast %1915 : vector<1x1x128xf32> to vector<128xf32>
    %1917 = vector.shape_cast %1916 : vector<128xf32> to vector<1x1x128xf32>
    %1918 = vector.broadcast %1917 : vector<1x1x128xf32> to vector<3x15x128xf32>
    %1919 = arith.mulf %1902, %1918 : vector<3x15x128xf32>
    %1920 = arith.addf %1897, %1919 : vector<3x15x128xf32>
    %c3_i32_530 = arith.constant 3 : i32
    %1921 = arith.addi %1569, %c3_i32_530 : i32
    %c0_i32_531 = arith.constant 0 : i32
    %c0_i32_532 = arith.constant 0 : i32
    %c0_i32_533 = arith.constant 0 : i32
    %1922 = tpu.memref_slice %arg10[%9, %c0_i32_531, %c0_i32_532, %c0_i32_533] : memref<2x18x32x128xf32, #tpu.memory_space<vmem>> -> memref<1x18x32x128xf32, #tpu.memory_space<vmem>>
    %1923 = tpu.memref_squeeze %1922 : memref<1x18x32x128xf32, #tpu.memory_space<vmem>> -> memref<18x32x128xf32, #tpu.memory_space<vmem>>
    %1924 = arith.index_cast %1921 : i32 to index
    %c10_534 = arith.constant 10 : index
    %c0_535 = arith.constant 0 : index
    %1925 = vector.load %1923[%1924, %c10_534, %c0_535] : memref<18x32x128xf32, #tpu.memory_space<vmem>>, vector<3x15x128xf32>
    %1926 = vector.extract_strided_slice %36 {offsets = [3, 3, 0], sizes = [1, 1, 128], strides = [1, 1, 1]} : vector<4x4x128xf32> to vector<1x1x128xf32>
    %1927 = vector.shape_cast %1926 : vector<1x1x128xf32> to vector<128xf32>
    %1928 = vector.shape_cast %1927 : vector<128xf32> to vector<1x1x128xf32>
    %1929 = vector.broadcast %1928 : vector<1x1x128xf32> to vector<3x15x128xf32>
    %1930 = arith.mulf %1925, %1929 : vector<3x15x128xf32>
    %1931 = arith.addf %1908, %1930 : vector<3x15x128xf32>
    %1932 = vector.extract_strided_slice %37 {offsets = [3, 3, 0], sizes = [1, 1, 128], strides = [1, 1, 1]} : vector<4x4x128xf32> to vector<1x1x128xf32>
    %1933 = vector.shape_cast %1932 : vector<1x1x128xf32> to vector<128xf32>
    %1934 = vector.shape_cast %1933 : vector<128xf32> to vector<1x1x128xf32>
    %1935 = vector.broadcast %1934 : vector<1x1x128xf32> to vector<3x15x128xf32>
    %1936 = arith.mulf %1925, %1935 : vector<3x15x128xf32>
    %1937 = arith.addf %1914, %1936 : vector<3x15x128xf32>
    %1938 = vector.extract_strided_slice %38 {offsets = [3, 3, 0], sizes = [1, 1, 128], strides = [1, 1, 1]} : vector<4x4x128xf32> to vector<1x1x128xf32>
    %1939 = vector.shape_cast %1938 : vector<1x1x128xf32> to vector<128xf32>
    %1940 = vector.shape_cast %1939 : vector<128xf32> to vector<1x1x128xf32>
    %1941 = vector.broadcast %1940 : vector<1x1x128xf32> to vector<3x15x128xf32>
    %1942 = arith.mulf %1925, %1941 : vector<3x15x128xf32>
    %1943 = arith.addf %1920, %1942 : vector<3x15x128xf32>
    %1944 = arith.mulf %1931, %1937 : vector<3x15x128xf32>
    %1945 = arith.addf %1944, %1943 : vector<3x15x128xf32>
    %c0_536 = arith.constant 0 : index
    %1946 = arith.index_cast %1569 : i32 to index
    %c0_537 = arith.constant 0 : index
    %c0_538 = arith.constant 0 : index
    %1947 = vector.load %arg9[%c0_536, %1946, %c0_537, %c0_538] : memref<1x15x15x128xf32, #tpu.memory_space<vmem>>, vector<1x3x15x128xf32>
    %1948 = vector.shape_cast %1947 : vector<1x3x15x128xf32> to vector<3x15x128xf32>
    %1949 = vector.shape_cast %1945 : vector<3x15x128xf32> to vector<1x3x15x128xf32>
    tpu.vector_store %arg9[%c0_536, %1946, %c0_537, %c0_538], %1949 {strides = array<i32>} : memref<1x15x15x128xf32, #tpu.memory_space<vmem>>, vector<1x3x15x128xf32>,
    %c5_i32 = arith.constant 5 : i32
    return
  }
  func.func @transform_1(%arg0: i32, %arg1: i32) -> (i32, i32, i32) {
    %c0_i32 = arith.constant 0 : i32
    %c0_i32_0 = arith.constant 0 : i32
    %c0_i32_1 = arith.constant 0 : i32
    %c0_i32_2 = arith.constant 0 : i32
    return %c0_i32, %c0_i32_0, %c0_i32_1 : i32, i32, i32
  }
  func.func @transform_2(%arg0: i32, %arg1: i32) -> (i32, i32, i32) {
    %c0_i32 = arith.constant 0 : i32
    %c0_i32_0 = arith.constant 0 : i32
    %c0_i32_1 = arith.constant 0 : i32
    %c0_i32_2 = arith.constant 0 : i32
    return %c0_i32, %c0_i32_0, %c0_i32_1 : i32, i32, i32
  }
  func.func @transform_3(%arg0: i32, %arg1: i32) -> (i32, i32, i32) {
    %c0_i32 = arith.constant 0 : i32
    %c0_i32_0 = arith.constant 0 : i32
    %c0_i32_1 = arith.constant 0 : i32
    %c0_i32_2 = arith.constant 0 : i32
    return %c0_i32, %c0_i32_0, %c0_i32_1 : i32, i32, i32
  }
  func.func @transform_4(%arg0: i32, %arg1: i32) -> (i32, i32, i32) {
    %c0_i32 = arith.constant 0 : i32
    %c0_i32_0 = arith.constant 0 : i32
    %c0_i32_1 = arith.constant 0 : i32
    %c0_i32_2 = arith.constant 0 : i32
    return %c0_i32, %c0_i32_0, %c0_i32_1 : i32, i32, i32
  }
  func.func @transform_5(%arg0: i32, %arg1: i32) -> (i32, i32, i32) {
    %c0_i32 = arith.constant 0 : i32
    %c0_i32_0 = arith.constant 0 : i32
    %c0_i32_1 = arith.constant 0 : i32
    %c0_i32_2 = arith.constant 0 : i32
    return %c0_i32, %c0_i32_0, %c0_i32_1 : i32, i32, i32
  }
  func.func @transform_6(%arg0: i32, %arg1: i32) -> (i32, i32, i32) {
    %c0_i32 = arith.constant 0 : i32
    %c0_i32_0 = arith.constant 0 : i32
    %c0_i32_1 = arith.constant 0 : i32
    %c0_i32_2 = arith.constant 0 : i32
    return %c0_i32, %c0_i32_0, %c0_i32_1 : i32, i32, i32
  }
  func.func @transform_7(%arg0: i32, %arg1: i32) -> (i32, i32, i32, i32) {
    %c0_i32 = arith.constant 0 : i32
    %c0_i32_0 = arith.constant 0 : i32
    %c0_i32_1 = arith.constant 0 : i32
    return %arg0, %arg1, %c0_i32, %c0_i32_0 : i32, i32, i32, i32
  }
}

</mosaic_0001>

<bundles_post_ra>
// kernel: quadra_conv_dw_nhwc.1
= control target key start
LH: loop header
LB: loop body
LE: loop exit
PB: predicated region body
PF: predicated region fallthrough
CT: control target
= control target key end

     0   :  { %12 = vsyncpa [#allocation5], 0  ;;  %s7603_s0 = inlined_call_operand.hbm [shape: f32[2,16,16,128], index: 0, kind: input, shape index: {}]   ;;  %s7604_s1 = inlined_call_operand.hbm [shape: f32[4,4,128], index: 1, kind: input, shape index: {}]   ;;  %s7605_s2 = inlined_call_operand.vmem [shape: f32[1,1,128], index: 2, kind: input, shape index: {}]   ;;  %s7606_s3 = inlined_call_operand.hbm [shape: f32[4,4,128], index: 3, kind: input, shape index: {}]   ;;  %s7607_s4 = inlined_call_operand.vmem [shape: f32[1,1,128], index: 4, kind: input, shape index: {}]   ;;  %s7608_s5 = inlined_call_operand.hbm [shape: f32[4,4,128], index: 5, kind: input, shape index: {}]   ;;  %s7609_s6 = inlined_call_operand.vmem [shape: f32[1,1,128], index: 6, kind: input, shape index: {}]   ;;  %s7610_s7 = inlined_call_operand.vmem [shape: f32[2,15,15,128], index: 7, kind: output, shape index: {}]  }
   0x1   :  { %13 = vsyncpa [#allocation7], 0  ;;  %s5100_s24 = smov 0   ;;  %s5102_s25 = smov 0  }
   0x2   :  { %s5104_s26 = smov 0  }
   0x3 LB: > { %s4314_s27 = sadd.s32 4294967295, %s5048_s26   ;;  %p4316_p0 = scmp.ge.s32.totalorder %s5048_s26, 1  ;;  %s5048_s26 = sphi %s5104_s26, %s19_s26   ;;  %s5044_s25 = sphi %s5102_s25, %s7965_s25   ;;  %s5040_s24 = sphi %s5100_s24, %s7964_s24  }
   0x4   : > { %p190_p1 = scmp.lt.s32.totalorder %s5048_s26, 3  ;;  %p5118_p2 = scmp.eq.s32.totalorder %s4314_s27, 0 }
   0x5   : > { %s218_s8 = sshll.u32 %s7606_s3, 4  ;;  %s5050_s10 = smov [#allocation6]   ;;  %s219_s8 = int_to_ptr.hbm [resolvable:$true] %s218_s8 }
   0x6   : > { %p5125_p3 = pnand %p4316_p0, %p190_p1  ;;  %s220_s11 = sshll.u32 %s5050_s10, 4  ;;  %s221_s11 = int_to_ptr.vmem [resolvable:$true] %s220_s11 }
   0x7   : > { %s31_s13 = sadd.s32 1, %s5044_s25  ;;  %s5051_s14 = smov 64  }
   0x8   : > { %p4836_p4 = pneg %p5125_p3  ;;  %p33_p6 = scmp.ge.s32.totalorder %s31_s13, 2 }
   0x9   : > { %s5052_s15 = smov 4   ;;  %s201_s18 = sshll.u32 %s7604_s1, 4  ;;  %s202_s18 = int_to_ptr.hbm [resolvable:$true] %s201_s18 }
   0xa   : > { %p5133_p5 = pnand %p5118_p2, %p4836_p4  ;;  %s7967_s13 = smov (%p33_p6, %s31_s13), 0 }
   0xb   : > { %s5053_s19 = smov [#allocation4]   ;;  %s235_s23 = sshll.u32 %s7608_s5, 4  ;;  %s236_s23 = int_to_ptr.hbm [resolvable:$true] %s235_s23 }
   0xc   : > { %4842 = dma.hbm_to_vmem [thread:$0]  (!%p5133_p5), %s219_s8, 256, %s221_s11, [#allocation7], %s5051_s14, %s5051_s14, %s5052_s15  }
   0xd   : > { %s203_s20 = sshll.u32 %s5053_s19, 4  ;;  %s5054_s27 = smov [#allocation8]   ;;  %s204_s20 = int_to_ptr.vmem [resolvable:$true] %s203_s20 }
   0xe   : > { %4839 = dma.hbm_to_vmem [thread:$0]  (!%p5133_p5), %s202_s18, 256, %s204_s20, [#allocation5], %s5051_s14, %s5051_s14, %s5052_s15  }
   0xf   : > { %s237_s29 = sshll.u32 %s5054_s27, 4  ;;  %256 = sbr.rel (%p5125_p3) target bundleno = 825 (0x339), region = 44  ;;  %s238_s29 = int_to_ptr.vmem [resolvable:$true] %s237_s29 }
  0x10   : > { %4845 = dma.hbm_to_vmem [thread:$0]  (!%p5133_p5), %s236_s23, 256, %s238_s29, [#allocation7], %s5051_s14, %s5051_s14, %s5052_s15  }
  0x14   : > { %5029 = dma.done.wait (%p5118_p2), [#allocation5], 256  }
  0x15   : > { %5031 = vsyncadd (%p5118_p2), [#allocation5], 4294967040 }
  0x16   : > { %5033 = dma.done.wait (%p5118_p2), [#allocation7], 512  }
  0x17   : > { %5035 = vsyncadd (%p5118_p2), [#allocation7], 4294966784  ;;  %p298_p7 = scmp.lt.s32.totalorder %s5040_s24, 1  ;;  %v5055_v0 = vmov 0.0   ;;  %s4325_s11 = sshll.u32 %s5040_s24, 8 }
  0x18   : > { %325 = vst [vmem:[#allocation2 + $0x7] sm:$0x1] %v5055_v0  ;;  %s407_s15 = scalar_lea.hbm %s7603_s0, %s4325_s11  ;;  %s5056_s17 = smov [#allocation2 + $0x28]  }
  0x19   : > { %s299_s30 = scalar_select %p298_p7, %s5040_s24, 1  ;;  %326 = vst [vmem:[#allocation2 + $0x27] sm:$0x1] %v5055_v0 }
  0x1a   : > { %327 = vst [vmem:[#allocation2 + $0x47] sm:$0x1] %v5055_v0  ;;  %s409_s16 = sshll.u32 %s407_s15, 4  ;;  %s411_s18 = sshll.u32 %s5056_s17, 4  ;;  %s410_s16 = int_to_ptr.hbm [resolvable:$true] %s409_s16  ;;  %s412_s18 = int_to_ptr.vmem [resolvable:$true] %s411_s18 }
  0x1b   : > { %s4823_s8 = smul.u32 240, %s299_s30  ;;  %328 = vst [vmem:[#allocation2 + $0x67] sm:$0x1] %v5055_v0  ;;  %s4992_s19 = sshra.s32 %s410_s16, 4  ;;  %s4993_s19 = int_to_ptr.hbm [resolvable:$true] %s4992_s19 }
  0x1c   : > { %329 = vst [vmem:[#allocation2 + $0x87] sm:$0x1] %v5055_v0  ;;  %s4994_s24 = scalar_lea.hbm %s4993_s19, 256  ;;  %s4996_s22 = scalar_lea.hbm %s7603_s0, 512 }
  0x1d   : > { %s5172_s28 = scalar_lea.vmem %s7610_s7, %s4823_s8  ;;  %330 = vst [vmem:[#allocation2 + $0xa7] sm:$0x1] %v5055_v0  ;;  %p4995_p8 = scmp.ne.s32.totalorder %s4993_s19, %s4994_s24 }
  0x1e   : > { %331 = vst [vmem:[#allocation2 + $0xc7] sm:$0x1] %v5055_v0  ;;  %p4997_p9 = scmp.lt.s32.totalorder %s4993_s19, %s7603_s0  ;;  %p4998_p10 = scmp.lt.s32.totalorder %s4996_s22, %s4994_s24 }
  0x1f   : > { %332 = vst [vmem:[#allocation2 + $0xe7] sm:$0x1] %v5055_v0 }
  0x20   : > { %333 = vst [vmem:[#allocation2 + $0x107] sm:$0x1] %v5055_v0  ;;  %p4999_p11 = por %p4998_p10, %p4997_p9 }
  0x21   : > { %334 = vst [vmem:[#allocation2 + $0x127] sm:$0x1] %v5055_v0 }
  0x22   : > { %335 = vst [vmem:[#allocation2 + $0x147] sm:$0x1] %v5055_v0  ;;  %p5000_p12 = pnand %p4999_p11, %p4995_p8 }
  0x23   : > { %336 = vst [vmem:[#allocation2 + $0x167] sm:$0x1] %v5055_v0 }
  0x24   : > { %337 = vst [vmem:[#allocation2 + $0x187] sm:$0x1] %v5055_v0 }
  0x25   : > { %338 = vst [vmem:[#allocation2 + $0x1a7] sm:$0x1] %v5055_v0 }
  0x26   : > { %339 = vst [vmem:[#allocation2 + $0x1c7] sm:$0x1] %v5055_v0 }
  0x27   : > { %340 = vst [vmem:[#allocation2 + $0x1e7] sm:$0x1] %v5055_v0 }
  0x28   : > { %341 = vst [vmem:[#allocation2 + $0x207] sm:$0x1] %v5055_v0 }
  0x29   : > { %342 = vst [vmem:[#allocation2 + $0x227] sm:$0x1] %v5055_v0 }
  0x2a   : > { %361 = vst [vmem:[#allocation2 + $0x18] sm:$0x1] %v5055_v0 }
  0x2b   : > { %362 = vst [vmem:[#allocation2 + $0x38] sm:$0x1] %v5055_v0 }
  0x2c   : > { %363 = vst [vmem:[#allocation2 + $0x58] sm:$0x1] %v5055_v0 }
  0x2d   : > { %364 = vst [vmem:[#allocation2 + $0x78] sm:$0x1] %v5055_v0 }
  0x2e   : > { %365 = vst [vmem:[#allocation2 + $0x98] sm:$0x1] %v5055_v0 }
  0x2f   : > { %366 = vst [vmem:[#allocation2 + $0xb8] sm:$0x1] %v5055_v0 }
  0x30   : > { %367 = vst [vmem:[#allocation2 + $0xd8] sm:$0x1] %v5055_v0 }
  0x31   : > { %368 = vst [vmem:[#allocation2 + $0xf8] sm:$0x1] %v5055_v0 }
  0x32   : > { %369 = vst [vmem:[#allocation2 + $0x118] sm:$0x1] %v5055_v0 }
  0x33   : > { %370 = vst [vmem:[#allocation2 + $0x138] sm:$0x1] %v5055_v0 }
  0x34   : > { %371 = vst [vmem:[#allocation2 + $0x158] sm:$0x1] %v5055_v0 }
  0x35   : > { %372 = vst [vmem:[#allocation2 + $0x178] sm:$0x1] %v5055_v0 }
  0x36   : > { %373 = vst [vmem:[#allocation2 + $0x198] sm:$0x1] %v5055_v0 }
  0x37   : > { %374 = vst [vmem:[#allocation2 + $0x1b8] sm:$0x1] %v5055_v0 }
  0x38   : > { %375 = vst [vmem:[#allocation2 + $0x1d8] sm:$0x1] %v5055_v0 }
  0x39   : > { %376 = vst [vmem:[#allocation2 + $0x1f8] sm:$0x1] %v5055_v0 }
  0x3a   : > { %377 = vst [vmem:[#allocation2 + $0x218] sm:$0x1] %v5055_v0 }
  0x3b   : > { %378 = vst [vmem:[#allocation2 + $0x238] sm:$0x1] %v5055_v0 }
  0x3c   : > { %397 = vst [vmem:[#allocation2] sm:$0xff] %v5055_v0 }
  0x3d   : > { %398 = vst [vmem:[#allocation2 + $0x8] sm:$0xff] %v5055_v0 }
  0x3e   : > { %399 = vst [vmem:[#allocation2 + $0x10] sm:$0xff] %v5055_v0 }
  0x3f   : > { %400 = vst [vmem:[#allocation2 + $0x18] sm:$0xff] %v5055_v0 }
  0x40   : > { %5003 = shalt.err (!%p5000_p12)  }
  0x41   : > { %s5057_s29 = smov 256   ;;  %s5058_s30 = smov 512  }
  0x42   : > { %s5059_s8 = smov 16  }
  0x43   : > { %416 = dma.hbm_to_vmem [thread:$0]  %s410_s16, 4096, %s412_s18, [#allocation3], %s5057_s29, %s5058_s30, %s5059_s8 }
  0x44   : > { %5036 = dma.done.wait [#allocation3], 4096 }
  0x45   : > { %5037 = vsyncadd [#allocation3], 4294963200  ;;  %564 = vst [vmem:[#allocation2 + $0x220] sm:$0xff] %v5055_v0  ;;  %v5223_v1 = vld [vmem:[#allocation4] sm:$0xf]  ;;  %v594_v5 = vld [vmem:[#allocation2 + $0x7] sm:$0xff] }
  0x46   : > { %565 = vst [vmem:[#allocation2 + $0x228] sm:$0xff] %v5055_v0  ;;  %v5225_v2 = vld [vmem:[#allocation6] sm:$0xf]  ;;  %v5227_v3 = vld [vmem:[#allocation8] sm:$0xf]  ;;  %v5232_v7 = vld [vmem:[#allocation2 + $0x27] sm:$0xff] }
  0x47   : > { %566 = vst [vmem:[#allocation2 + $0x230] sm:$0xff] %v5055_v0  ;;  %v4886_v4 = vld [vmem:[%s7605_s2] ss:$0 sm:$0xff]  ;;  %v595_v6 = vld [vmem:[#allocation2 + $0xf] sm:$0x7f]  ;;  %v5235_v8 = vperm.slane %v5223_v1, 0 }
  0x48   : > { %567 = vst [vmem:[#allocation2 + $0x238] sm:$0xff] %v5055_v0  ;;  %v5238_v9 = vperm.slane %v5225_v2, 0  ;;  %v597_v10 = vld [vmem:[#allocation2 + $0x2f] sm:$0x7f]  ;;  %v5240_v11 = vld [vmem:[#allocation2 + $0x47] sm:$0xff]  ;;  %v5243_v13 = vperm.slane %v5227_v3, 0 }
  0x49   : > { %v599_v12 = vld [vmem:[#allocation2 + $0x4f] sm:$0x7f]  ;;  %v4887_v14 = vld [vmem:[%s7607_s4] ss:$0 sm:$0xff]  ;;  %v601_v15 = vmul.f32 %v5235_v8, %v594_v5  ;;  %v602_v16 = vmul.f32 %v5235_v8, %v595_v6  ;;  %v603_v17 = vmul.f32 %v5235_v8, %v5232_v7  ;;  %v604_v18 = vmul.f32 %v5235_v8, %v597_v10 }
  0x4a   : > { %v605_v19 = vmul.f32 %v5235_v8, %v5240_v11  ;;  %v606_v20 = vmul.f32 %v5235_v8, %v599_v12  ;;  %v614_v21 = vmul.f32 %v5238_v9, %v594_v5  ;;  %v615_v22 = vmul.f32 %v5238_v9, %v595_v6  ;;  %v4888_v35 = vld [vmem:[%s7609_s6] ss:$0 sm:$0xff]  ;;  %v639_v44 = vld [vmem:[#allocation2 + $0x8] sm:$0xff]  ;;  %v640_v49 = vld [vmem:[#allocation2 + $0x10] sm:$0x7f] }
  0x4b   : > { %v607_v23 = vadd.f32 %v4886_v4, %v601_v15  ;;  %v608_v24 = vadd.f32 %v4886_v4, %v602_v16  ;;  %v609_v25 = vadd.f32 %v4886_v4, %v603_v17  ;;  %v610_v26 = vadd.f32 %v4886_v4, %v604_v18  ;;  %v5275_v50 = vld [vmem:[#allocation2 + $0x28] sm:$0xff]  ;;  %v642_v51 = vld [vmem:[#allocation2 + $0x30] sm:$0x7f] }
  0x4c   : > { %v611_v27 = vadd.f32 %v4886_v4, %v605_v19  ;;  %v612_v28 = vadd.f32 %v4886_v4, %v606_v20  ;;  %v616_v29 = vmul.f32 %v5238_v9, %v5232_v7  ;;  %v617_v30 = vmul.f32 %v5238_v9, %v597_v10  ;;  %v5277_v54 = vld [vmem:[#allocation2 + $0x48] sm:$0xff]  ;;  %v644_v55 = vld [vmem:[#allocation2 + $0x50] sm:$0x7f] }
  0x4d   : > { %v618_v31 = vmul.f32 %v5238_v9, %v5240_v11  ;;  %v619_v32 = vmul.f32 %v5238_v9, %v599_v12  ;;  %v620_v33 = vadd.f32 %v4887_v14, %v614_v21  ;;  %v621_v34 = vadd.f32 %v4887_v14, %v615_v22 }
  0x4e   : > { %v622_v36 = vadd.f32 %v4887_v14, %v616_v29  ;;  %v623_v37 = vadd.f32 %v4887_v14, %v617_v30  ;;  %v627_v38 = vmul.f32 %v5243_v13, %v594_v5  ;;  %v628_v39 = vmul.f32 %v5243_v13, %v595_v6 }
  0x4f   : > { %v624_v40 = vadd.f32 %v4887_v14, %v618_v31  ;;  %v625_v41 = vadd.f32 %v4887_v14, %v619_v32  ;;  %v629_v42 = vmul.f32 %v5243_v13, %v5232_v7  ;;  %v630_v43 = vmul.f32 %v5243_v13, %v597_v10 }
  0x50   : > { %v631_v45 = vmul.f32 %v5243_v13, %v5240_v11  ;;  %v632_v46 = vmul.f32 %v5243_v13, %v599_v12  ;;  %v633_v47 = vadd.f32 %v4888_v35, %v627_v38  ;;  %v634_v48 = vadd.f32 %v4888_v35, %v628_v39 }
  0x51   : > { %v635_v52 = vadd.f32 %v4888_v35, %v629_v42  ;;  %v636_v53 = vadd.f32 %v4888_v35, %v630_v43  ;;  %v5280_v56 = vperm.slane %v5223_v1, 1  ;;  %v5283_v57 = vperm.slane %v5225_v2, 1  ;;  %v5312_v42 = vld [vmem:[#allocation2 + $0x29] sm:$0xff]  ;;  %v687_v43 = vld [vmem:[#allocation2 + $0x31] sm:$0x7f] }
  0x52   : > { %v637_v58 = vadd.f32 %v4888_v35, %v631_v45  ;;  %v638_v59 = vadd.f32 %v4888_v35, %v632_v46  ;;  %v5286_v60 = vperm.slane %v5227_v3, 1  ;;  %v5289_v61 = vperm.slane %v5223_v1, 2  ;;  %v689_v45 = vld [vmem:[#allocation2 + $0x51] sm:$0x7f] }
  0x53   : > { %v646_v62 = vmul.f32 %v5280_v56, %v639_v44  ;;  %v647_v63 = vmul.f32 %v5280_v56, %v640_v49  ;;  %v648_v0 = vmul.f32 %v5280_v56, %v5275_v50  ;;  %v649_v4 = vmul.f32 %v5280_v56, %v642_v51 }
  0x54   : > { %7789 = vst [vmem:[#allocation24_spill] sm:$0xff] %v5289_v61  ;;  %v650_v5 = vmul.f32 %v5280_v56, %v5277_v54  ;;  %v651_v6 = vmul.f32 %v5280_v56, %v644_v55  ;;  %v659_v10 = vmul.f32 %v5283_v57, %v639_v44  ;;  %v660_v12 = vmul.f32 %v5283_v57, %v640_v49 }
  0x55   : > { %v652_v14 = vadd.f32 %v646_v62, %v607_v23  ;;  %v653_v15 = vadd.f32 %v647_v63, %v608_v24  ;;  %v654_v16 = vadd.f32 %v648_v0, %v609_v25  ;;  %v655_v17 = vadd.f32 %v649_v4, %v610_v26  ;;  %v684_v25 = vld [vmem:[#allocation2 + $0x9] sm:$0xff]  ;;  %v685_v26 = vld [vmem:[#allocation2 + $0x11] sm:$0x7f] }
  0x56   : > { %v656_v18 = vadd.f32 %v650_v5, %v611_v27  ;;  %v657_v19 = vadd.f32 %v651_v6, %v612_v28  ;;  %v661_v20 = vmul.f32 %v5283_v57, %v5275_v50  ;;  %v662_v21 = vmul.f32 %v5283_v57, %v642_v51 }
  0x57   : > { %v663_v22 = vmul.f32 %v5283_v57, %v5277_v54  ;;  %v664_v29 = vmul.f32 %v5283_v57, %v644_v55  ;;  %v665_v30 = vadd.f32 %v659_v10, %v620_v33  ;;  %v666_v31 = vadd.f32 %v660_v12, %v621_v34 }
  0x58   : > { %v667_v32 = vadd.f32 %v661_v20, %v622_v36  ;;  %v668_v35 = vadd.f32 %v662_v21, %v623_v37  ;;  %v672_v23 = vmul.f32 %v5286_v60, %v639_v44  ;;  %v673_v24 = vmul.f32 %v5286_v60, %v640_v49  ;;  %v5317_v44 = vld [vmem:[#allocation2 + $0x49] sm:$0xff] }
  0x59   : > { %v669_v27 = vadd.f32 %v663_v22, %v624_v40  ;;  %v670_v28 = vadd.f32 %v664_v29, %v625_v41  ;;  %v674_v38 = vmul.f32 %v5286_v60, %v5275_v50  ;;  %v675_v39 = vmul.f32 %v5286_v60, %v642_v51 }
  0x5a   : > { %v676_v33 = vmul.f32 %v5286_v60, %v5277_v54  ;;  %v677_v34 = vmul.f32 %v5286_v60, %v644_v55  ;;  %v678_v36 = vadd.f32 %v672_v23, %v633_v47  ;;  %v679_v37 = vadd.f32 %v673_v24, %v634_v48  ;;  %v729_v23 = vld [vmem:[#allocation2 + $0xa] sm:$0xff]  ;;  %v730_v24 = vld [vmem:[#allocation2 + $0x12] sm:$0x7f] }
  0x5b   : > { %v680_v40 = vadd.f32 %v674_v38, %v635_v52  ;;  %v681_v41 = vadd.f32 %v675_v39, %v636_v53  ;;  %v691_v46 = vmul.f32 %v5289_v61, %v684_v25  ;;  %v692_v49 = vmul.f32 %v5289_v61, %v685_v26 }
  0x5c   : > { %v682_v51 = vadd.f32 %v676_v33, %v637_v58  ;;  %v683_v62 = vadd.f32 %v677_v34, %v638_v59  ;;  %v693_v63 = vmul.f32 %v5289_v61, %v5312_v42  ;;  %v694_v0 = vmul.f32 %v5289_v61, %v687_v43 }
  0x5d   : > { %v695_v47 = vmul.f32 %v5289_v61, %v5317_v44  ;;  %v696_v48 = vmul.f32 %v5289_v61, %v689_v45  ;;  %v697_v55 = vadd.f32 %v691_v46, %v652_v14  ;;  %v698_v4 = vadd.f32 %v692_v49, %v653_v15  ;;  %v5352_v46 = vld [vmem:[#allocation2 + $0x2a] sm:$0xff]  ;;  %v732_v49 = vld [vmem:[#allocation2 + $0x32] sm:$0x7f] }
  0x5e   : > { %v699_v52 = vadd.f32 %v693_v63, %v654_v16  ;;  %v700_v53 = vadd.f32 %v694_v0, %v655_v17  ;;  %v5328_v5 = vperm.slane %v5225_v2, 2  ;;  %v5331_v58 = vperm.slane %v5227_v3, 2 }
  0x5f   : > { %v701_v59 = vadd.f32 %v695_v47, %v656_v18  ;;  %v702_v6 = vadd.f32 %v696_v48, %v657_v19  ;;  %v5334_v10 = vperm.slane %v5223_v1, 3  ;;  %v5337_v12 = vperm.slane %v5225_v2, 3 }
  0x60   : > { %7790 = vst [vmem:[#allocation25_spill] sm:$0xff] %v5328_v5  ;;  %v704_v20 = vmul.f32 %v5328_v5, %v684_v25  ;;  %v705_v14 = vmul.f32 %v5328_v5, %v685_v26  ;;  %v706_v15 = vmul.f32 %v5328_v5, %v5312_v42  ;;  %v707_v16 = vmul.f32 %v5328_v5, %v687_v43 }
  0x61   : > { %7791 = vst [vmem:[#allocation26_spill] sm:$0xff] %v5331_v58  ;;  %v708_v17 = vmul.f32 %v5328_v5, %v5317_v44  ;;  %v709_v18 = vmul.f32 %v5328_v5, %v689_v45  ;;  %v717_v1 = vmul.f32 %v5331_v58, %v684_v25  ;;  %v718_v19 = vmul.f32 %v5331_v58, %v685_v26  ;;  %v734_v26 = vld [vmem:[#allocation2 + $0x52] sm:$0x7f] }
  0x62   : > { %7792 = vst [vmem:[#allocation27_spill] sm:$0xff] %v5334_v10  ;;  %v710_v2 = vadd.f32 %v704_v20, %v665_v30  ;;  %v711_v21 = vadd.f32 %v705_v14, %v666_v31  ;;  %v712_v22 = vadd.f32 %v706_v15, %v667_v32  ;;  %v713_v29 = vadd.f32 %v707_v16, %v668_v35  ;;  %v5357_v35 = vld [vmem:[#allocation2 + $0x4a] sm:$0xff] }
  0x63   : > { %7793 = vst [vmem:[#allocation28_spill] sm:$0xff] %v5337_v12  ;;  %v714_v38 = vadd.f32 %v708_v17, %v669_v27  ;;  %v715_v39 = vadd.f32 %v709_v18, %v670_v28  ;;  %v719_v33 = vmul.f32 %v5331_v58, %v5312_v42  ;;  %v720_v34 = vmul.f32 %v5331_v58, %v687_v43  ;;  %v5373_v17 = vld [vmem:[#allocation8 + $0x4] sm:$0xf] }
  0x64   : > { %v721_v25 = vmul.f32 %v5331_v58, %v5317_v44  ;;  %v722_v30 = vmul.f32 %v5331_v58, %v689_v45  ;;  %v723_v31 = vadd.f32 %v717_v1, %v678_v36  ;;  %v724_v32 = vadd.f32 %v718_v19, %v679_v37 }
  0x65   : > { %v725_v27 = vadd.f32 %v719_v33, %v680_v40  ;;  %v726_v28 = vadd.f32 %v720_v34, %v681_v41  ;;  %v736_v63 = vmul.f32 %v5334_v10, %v729_v23  ;;  %v737_v0 = vmul.f32 %v5334_v10, %v730_v24  ;;  %v5367_v40 = vld [vmem:[#allocation4 + $0x4] sm:$0xf] }
  0x66   : > { %v727_v43 = vadd.f32 %v721_v25, %v682_v51  ;;  %v728_v47 = vadd.f32 %v722_v30, %v683_v62  ;;  %v738_v48 = vmul.f32 %v5334_v10, %v5352_v46  ;;  %v739_v20 = vmul.f32 %v5334_v10, %v732_v49  ;;  %v5371_v62 = vld [vmem:[#allocation6 + $0x4] sm:$0xf] }
  0x67   : > { %v740_v36 = vmul.f32 %v5334_v10, %v5357_v35  ;;  %v741_v37 = vmul.f32 %v5334_v10, %v734_v26  ;;  %v742_v45 = vadd.f32 %v736_v63, %v697_v55  ;;  %v743_v14 = vadd.f32 %v737_v0, %v698_v4  ;;  %v4336_v63 = vld [vmem:[#allocation2 + $0x2f] sm:$0x7f] }
  0x68   : > { %v744_v41 = vadd.f32 %v738_v48, %v699_v52  ;;  %v745_v15 = vadd.f32 %v739_v20, %v700_v53  ;;  %v749_v16 = vmul.f32 %v5337_v12, %v729_v23  ;;  %v750_v51 = vmul.f32 %v5337_v12, %v730_v24 }
  0x69   : > { %v746_v18 = vadd.f32 %v740_v36, %v701_v59  ;;  %v747_v1 = vadd.f32 %v741_v37, %v702_v6  ;;  %v751_v19 = vmul.f32 %v5337_v12, %v5352_v46  ;;  %v752_v55 = vmul.f32 %v5337_v12, %v732_v49  ;;  %v5401_v36 = vld [vmem:[#allocation2 + $0x67] sm:$0xff]  ;;  %v4340_v37 = vld [vmem:[#allocation2 + $0x6f] sm:$0x7f] }
  0x6a   : > { %v753_v4 = vmul.f32 %v5337_v12, %v5357_v35  ;;  %v754_v52 = vmul.f32 %v5337_v12, %v734_v26  ;;  %v755_v53 = vadd.f32 %v749_v16, %v710_v2  ;;  %v756_v33 = vadd.f32 %v750_v51, %v711_v21 }
  0x6b   : > { %v757_v34 = vadd.f32 %v751_v19, %v712_v22  ;;  %v758_v25 = vadd.f32 %v752_v55, %v713_v29  ;;  %v5382_v30 = vperm.slane %v5227_v3, 3  ;;  %v5385_v59 = vperm.slane %v5367_v40, 0  ;;  %v4338_v29 = vld [vmem:[#allocation2 + $0x4f] sm:$0x7f] }
  0x6c   : > { %v759_v6 = vadd.f32 %v753_v4, %v714_v38  ;;  %v760_v0 = vadd.f32 %v754_v52, %v715_v39  ;;  %v5388_v48 = vperm.slane %v5371_v62, 0  ;;  %v5391_v20 = vperm.slane %v5373_v17, 0 }
  0x6d   : > { %7794 = vst [vmem:[#allocation29_spill] sm:$0xff] %v5382_v30  ;;  %v762_v2 = vmul.f32 %v5382_v30, %v729_v23  ;;  %v763_v21 = vmul.f32 %v5382_v30, %v730_v24  ;;  %v764_v3 = vmul.f32 %v5382_v30, %v5352_v46  ;;  %v765_v22 = vmul.f32 %v5382_v30, %v732_v49 }
  0x6e   : > { %7795 = vst [vmem:[#allocation30_spill] sm:$0xff] %v5385_v59  ;;  %v766_v38 = vmul.f32 %v5382_v30, %v5357_v35  ;;  %v767_v39 = vmul.f32 %v5382_v30, %v734_v26  ;;  %v782_v16 = vmul.f32 %v5385_v59, %v5232_v7  ;;  %v783_v23 = vmul.f32 %v4336_v63, %v5385_v59 }
  0x6f   : > { %7796 = vst [vmem:[#allocation31_spill] sm:$0xff] %v5388_v48  ;;  %v768_v24 = vadd.f32 %v762_v2, %v723_v31  ;;  %v769_v51 = vadd.f32 %v763_v21, %v724_v32  ;;  %v770_v19 = vadd.f32 %v764_v3, %v725_v27  ;;  %v771_v55 = vadd.f32 %v765_v22, %v726_v28 }
  0x70   : > { %7797 = vst [vmem:[#allocation32_spill] sm:$0xff] %v5391_v20  ;;  %v772_v4 = vadd.f32 %v766_v38, %v727_v43  ;;  %v773_v49 = vadd.f32 %v767_v39, %v728_v47  ;;  %v784_v52 = vmul.f32 %v5385_v59, %v5240_v11  ;;  %v785_v12 = vmul.f32 %v4338_v29, %v5385_v59  ;;  %v4344_v39 = vld [vmem:[#allocation2 + $0x50] sm:$0x7f] }
  0x71   : > { %v786_v26 = vmul.f32 %v5401_v36, %v5385_v59  ;;  %v787_v30 = vmul.f32 %v4340_v37, %v5385_v59  ;;  %v788_v10 = vadd.f32 %v782_v16, %v742_v45  ;;  %v789_v58 = vadd.f32 %v783_v23, %v743_v14  ;;  %v5430_v23 = vld [vmem:[#allocation2 + $0x68] sm:$0xff] }
  0x72   : > { %v790_v5 = vadd.f32 %v784_v52, %v744_v41  ;;  %v791_v61 = vadd.f32 %v785_v12, %v745_v15  ;;  %v795_v31 = vmul.f32 %v5388_v48, %v5232_v7  ;;  %v796_v32 = vmul.f32 %v4336_v63, %v5388_v48 }
  0x73   : > { %v792_v27 = vadd.f32 %v786_v26, %v746_v18  ;;  %v793_v28 = vadd.f32 %v787_v30, %v747_v1  ;;  %v797_v43 = vmul.f32 %v5388_v48, %v5240_v11  ;;  %v798_v47 = vmul.f32 %v4338_v29, %v5388_v48 }
  0x74   : > { %v799_v2 = vmul.f32 %v5401_v36, %v5388_v48  ;;  %v800_v45 = vmul.f32 %v4340_v37, %v5388_v48  ;;  %v801_v14 = vadd.f32 %v795_v31, %v755_v53  ;;  %v802_v41 = vadd.f32 %v796_v32, %v756_v33 }
  0x75   : > { %v803_v12 = vadd.f32 %v797_v43, %v757_v34  ;;  %v804_v15 = vadd.f32 %v798_v47, %v758_v25  ;;  %v808_v21 = vmul.f32 %v5391_v20, %v5232_v7  ;;  %v809_v18 = vmul.f32 %v4336_v63, %v5391_v20  ;;  %v4342_v25 = vld [vmem:[#allocation2 + $0x30] sm:$0x7f] }
  0x76   : > { %v805_v1 = vadd.f32 %v799_v2, %v759_v6  ;;  %v806_v30 = vadd.f32 %v800_v45, %v760_v0  ;;  %v810_v3 = vmul.f32 %v5391_v20, %v5240_v11  ;;  %v811_v22 = vmul.f32 %v4338_v29, %v5391_v20  ;;  %v4346_v63 = vld [vmem:[#allocation2 + $0x70] sm:$0x7f] }
  0x77   : > { %v812_v38 = vmul.f32 %v5401_v36, %v5391_v20  ;;  %v813_v53 = vmul.f32 %v4340_v37, %v5391_v20  ;;  %v814_v33 = vadd.f32 %v808_v21, %v768_v24  ;;  %v815_v34 = vadd.f32 %v809_v18, %v769_v51 }
  0x78   : > { %v816_v16 = vadd.f32 %v810_v3, %v770_v19  ;;  %v817_v7 = vadd.f32 %v811_v22, %v771_v55  ;;  %v5433_v6 = vperm.slane %v5367_v40, 1  ;;  %v5436_v0 = vperm.slane %v5371_v62, 1 }
  0x79   : > { %v818_v29 = vadd.f32 %v812_v38, %v772_v4  ;;  %v819_v52 = vadd.f32 %v813_v53, %v773_v49  ;;  %v5439_v26 = vperm.slane %v5373_v17, 1  ;;  %v5442_v37 = vperm.slane %v5367_v40, 2 }
  0x7a   : > { %7798 = vst [vmem:[#allocation33_spill] sm:$0xff] %v5433_v6  ;;  %v827_v24 = vmul.f32 %v5433_v6, %v5275_v50  ;;  %v828_v51 = vmul.f32 %v4342_v25, %v5433_v6  ;;  %v829_v19 = vmul.f32 %v5433_v6, %v5277_v54  ;;  %v830_v55 = vmul.f32 %v4344_v39, %v5433_v6 }
  0x7b   : > { %7799 = vst [vmem:[#allocation34_spill] sm:$0xff] %v5436_v0  ;;  %v831_v4 = vmul.f32 %v5430_v23, %v5433_v6  ;;  %v832_v49 = vmul.f32 %v4346_v63, %v5433_v6  ;;  %v840_v31 = vmul.f32 %v5436_v0, %v5275_v50  ;;  %v841_v32 = vmul.f32 %v4342_v25, %v5436_v0 }
  0x7c   : > { %7800 = vst [vmem:[#allocation35_spill] sm:$0xff] %v5439_v26  ;;  %v833_v43 = vadd.f32 %v827_v24, %v788_v10  ;;  %v834_v47 = vadd.f32 %v828_v51, %v789_v58  ;;  %v835_v2 = vadd.f32 %v829_v19, %v790_v5  ;;  %v836_v45 = vadd.f32 %v830_v55, %v791_v61  ;;  %v4348_v58 = vld [vmem:[#allocation2 + $0x31] sm:$0x7f]  ;;  %v5471_v19 = vld [vmem:[#allocation2 + $0x69] sm:$0xff] }
  0x7d   : > { %7801 = vst [vmem:[#allocation36_spill] sm:$0xff] %v5442_v37  ;;  %v837_v21 = vadd.f32 %v831_v4, %v792_v27  ;;  %v838_v18 = vadd.f32 %v832_v49, %v793_v28  ;;  %v842_v3 = vmul.f32 %v5436_v0, %v5277_v54  ;;  %v843_v22 = vmul.f32 %v4344_v39, %v5436_v0  ;;  %v4350_v51 = vld [vmem:[#allocation2 + $0x51] sm:$0x7f] }
  0x7e   : > { %v844_v38 = vmul.f32 %v5430_v23, %v5436_v0  ;;  %v845_v53 = vmul.f32 %v4346_v63, %v5436_v0  ;;  %v846_v6 = vadd.f32 %v840_v31, %v801_v14  ;;  %v847_v20 = vadd.f32 %v841_v32, %v802_v41 }
  0x7f   : > { %v848_v48 = vadd.f32 %v842_v3, %v803_v12  ;;  %v849_v59 = vadd.f32 %v843_v22, %v804_v15  ;;  %v853_v5 = vmul.f32 %v5439_v26, %v5275_v50  ;;  %v854_v61 = vmul.f32 %v4342_v25, %v5439_v26  ;;  %v4352_v50 = vld [vmem:[#allocation2 + $0x71] sm:$0x7f] }
  0x80   : > { %v850_v10 = vadd.f32 %v844_v38, %v805_v1  ;;  %v851_v27 = vadd.f32 %v845_v53, %v806_v30  ;;  %v855_v28 = vmul.f32 %v5439_v26, %v5277_v54  ;;  %v856_v24 = vmul.f32 %v4344_v39, %v5439_v26 }
  0x81   : > { %v857_v14 = vmul.f32 %v5430_v23, %v5439_v26  ;;  %v858_v41 = vmul.f32 %v4346_v63, %v5439_v26  ;;  %v859_v12 = vadd.f32 %v853_v5, %v814_v33  ;;  %v860_v15 = vadd.f32 %v854_v61, %v815_v34 }
  0x82   : > { %v861_v25 = vadd.f32 %v855_v28, %v816_v16  ;;  %v862_v55 = vadd.f32 %v856_v24, %v817_v7  ;;  %v872_v1 = vmul.f32 %v5442_v37, %v5312_v42  ;;  %v873_v30 = vmul.f32 %v4348_v58, %v5442_v37 }
  0x83   : > { %v863_v4 = vadd.f32 %v857_v14, %v818_v29  ;;  %v864_v39 = vadd.f32 %v858_v41, %v819_v52  ;;  %v874_v49 = vmul.f32 %v5442_v37, %v5317_v44  ;;  %v875_v31 = vmul.f32 %v4350_v51, %v5442_v37  ;;  %v4354_v14 = vld [vmem:[#allocation2 + $0x32] sm:$0x7f] }
  0x84   : > { %v876_v33 = vmul.f32 %v5471_v19, %v5442_v37  ;;  %v877_v34 = vmul.f32 %v4352_v50, %v5442_v37  ;;  %v878_v63 = vadd.f32 %v872_v1, %v833_v43  ;;  %v879_v16 = vadd.f32 %v873_v30, %v834_v47 }
  0x85   : > { %v880_v7 = vadd.f32 %v874_v49, %v835_v2  ;;  %v881_v32 = vadd.f32 %v875_v31, %v836_v45  ;;  %v5483_v3 = vperm.slane %v5371_v62, 2  ;;  %v5486_v29 = vperm.slane %v5373_v17, 2  ;;  %v4356_v31 = vld [vmem:[#allocation2 + $0x52] sm:$0x7f] }
  0x86   : > { %v882_v52 = vadd.f32 %v876_v33, %v837_v21  ;;  %v883_v22 = vadd.f32 %v877_v34, %v838_v18  ;;  %v5489_v38 = vperm.slane %v5367_v40, 3  ;;  %v5492_v53 = vperm.slane %v5371_v62, 3 }
  0x87   : > { %7802 = vst [vmem:[#allocation37_spill] sm:$0xff] %v5483_v3  ;;  %v885_v43 = vmul.f32 %v5483_v3, %v5312_v42  ;;  %v886_v47 = vmul.f32 %v4348_v58, %v5483_v3  ;;  %v887_v2 = vmul.f32 %v5483_v3, %v5317_v44  ;;  %v888_v45 = vmul.f32 %v4350_v51, %v5483_v3 }
  0x88   : > { %7803 = vst [vmem:[#allocation38_spill] sm:$0xff] %v5486_v29  ;;  %v889_v21 = vmul.f32 %v5471_v19, %v5483_v3  ;;  %v890_v18 = vmul.f32 %v4352_v50, %v5483_v3  ;;  %v898_v40 = vmul.f32 %v5486_v29, %v5312_v42  ;;  %v899_v62 = vmul.f32 %v4348_v58, %v5486_v29 }
  0x89   : > { %7804 = vst [vmem:[#allocation39_spill] sm:$0xff] %v5489_v38  ;;  %v891_v5 = vadd.f32 %v885_v43, %v846_v6  ;;  %v892_v61 = vadd.f32 %v886_v47, %v847_v20  ;;  %v893_v28 = vadd.f32 %v887_v2, %v848_v48  ;;  %v894_v24 = vadd.f32 %v888_v45, %v849_v59  ;;  %v5512_v6 = vld [vmem:[#allocation2 + $0x6a] sm:$0xff]  ;;  %v4358_v48 = vld [vmem:[#allocation2 + $0x72] sm:$0x7f] }
  0x8a   : > { %7805 = vst [vmem:[#allocation40_spill] sm:$0xff] %v5492_v53  ;;  %v895_v41 = vadd.f32 %v889_v21, %v850_v10  ;;  %v896_v1 = vadd.f32 %v890_v18, %v851_v27  ;;  %v900_v30 = vmul.f32 %v5486_v29, %v5317_v44  ;;  %v901_v49 = vmul.f32 %v4350_v51, %v5486_v29  ;;  %v5528_v18 = vld [vmem:[#allocation6 + $0x8] sm:$0xf] }
  0x8b   : > { %v902_v33 = vmul.f32 %v5471_v19, %v5486_v29  ;;  %v903_v42 = vmul.f32 %v4352_v50, %v5486_v29  ;;  %v904_v34 = vadd.f32 %v898_v40, %v859_v12  ;;  %v905_v58 = vadd.f32 %v899_v62, %v860_v15  ;;  %v5530_v40 = vld [vmem:[#allocation8 + $0x8] sm:$0xf] }
  0x8c   : > { %v906_v59 = vadd.f32 %v900_v30, %v861_v25  ;;  %v907_v20 = vadd.f32 %v901_v49, %v862_v55  ;;  %v917_v10 = vmul.f32 %v5489_v38, %v5352_v46  ;;  %v918_v27 = vmul.f32 %v4354_v14, %v5489_v38  ;;  %v5523_v55 = vld [vmem:[#allocation4 + $0x8] sm:$0xf] }
  0x8d   : > { %v908_v43 = vadd.f32 %v902_v33, %v863_v4  ;;  %v909_v51 = vadd.f32 %v903_v42, %v864_v39  ;;  %v919_v47 = vmul.f32 %v5489_v38, %v5357_v35  ;;  %v920_v2 = vmul.f32 %v4356_v31, %v5489_v38 }
  0x8e   : > { %v921_v12 = vmul.f32 %v5512_v6, %v5489_v38  ;;  %v922_v15 = vmul.f32 %v4358_v48, %v5489_v38  ;;  %v923_v50 = vadd.f32 %v917_v10, %v878_v63  ;;  %v924_v25 = vadd.f32 %v918_v27, %v879_v16  ;;  %v5562_v38 = vld [vmem:[#allocation2 + $0x87] sm:$0xff] }
  0x8f   : > { %v925_v45 = vadd.f32 %v919_v47, %v880_v7  ;;  %v926_v21 = vadd.f32 %v920_v2, %v881_v32  ;;  %v930_v4 = vmul.f32 %v5492_v53, %v5352_v46  ;;  %v931_v39 = vmul.f32 %v4354_v14, %v5492_v53  ;;  %v4360_v47 = vld [vmem:[#allocation2 + $0x4f] sm:$0x7f] }
  0x90   : > { %v927_v62 = vadd.f32 %v921_v12, %v882_v52  ;;  %v928_v30 = vadd.f32 %v922_v15, %v883_v22  ;;  %v932_v49 = vmul.f32 %v5492_v53, %v5357_v35  ;;  %v933_v63 = vmul.f32 %v4356_v31, %v5492_v53 }
  0x91   : > { %v934_v16 = vmul.f32 %v5512_v6, %v5492_v53  ;;  %v935_v7 = vmul.f32 %v4358_v48, %v5492_v53  ;;  %v936_v32 = vadd.f32 %v930_v4, %v891_v5  ;;  %v937_v33 = vadd.f32 %v931_v39, %v892_v61  ;;  %v4364_v4 = vld [vmem:[#allocation2 + $0x8f] sm:$0x7f] }
  0x92   : > { %v938_v42 = vadd.f32 %v932_v49, %v893_v28  ;;  %v939_v10 = vadd.f32 %v933_v63, %v894_v24  ;;  %v5539_v27 = vperm.slane %v5373_v17, 3  ;;  %v5542_v52 = vperm.slane %v5523_v55, 0  ;;  %v4362_v24 = vld [vmem:[#allocation2 + $0x6f] sm:$0x7f] }
  0x93   : > { %v940_v22 = vadd.f32 %v934_v16, %v895_v41  ;;  %v941_v2 = vadd.f32 %v935_v7, %v896_v1  ;;  %v5545_v12 = vperm.slane %v5528_v18, 0  ;;  %v5548_v15 = vperm.slane %v5530_v40, 0 }
  0x94   : > { %7806 = vst [vmem:[#allocation41_spill] sm:$0xff] %v5539_v27  ;;  %v943_v5 = vmul.f32 %v5539_v27, %v5352_v46  ;;  %v944_v61 = vmul.f32 %v4354_v14, %v5539_v27  ;;  %v945_v17 = vmul.f32 %v5539_v27, %v5357_v35  ;;  %v946_v28 = vmul.f32 %v4356_v31, %v5539_v27 }
  0x95   : > { %7807 = vst [vmem:[#allocation42_spill] sm:$0xff] %v5542_v52  ;;  %v947_v41 = vmul.f32 %v5512_v6, %v5539_v27  ;;  %v948_v1 = vmul.f32 %v4358_v48, %v5539_v27  ;;  %v963_v39 = vmul.f32 %v5542_v52, %v5240_v11  ;;  %v964_v49 = vmul.f32 %v4360_v47, %v5542_v52 }
  0x96   : > { %7808 = vst [vmem:[#allocation43_spill] sm:$0xff] %v5545_v12  ;;  %v949_v46 = vadd.f32 %v943_v5, %v904_v34  ;;  %v950_v63 = vadd.f32 %v944_v61, %v905_v58  ;;  %v951_v14 = vadd.f32 %v945_v17, %v906_v59  ;;  %v952_v16 = vadd.f32 %v946_v28, %v907_v20 }
  0x97   : > { %7809 = vst [vmem:[#allocation44_spill] sm:$0xff] %v5548_v15  ;;  %v953_v7 = vadd.f32 %v947_v41, %v908_v43  ;;  %v954_v53 = vadd.f32 %v948_v1, %v909_v51  ;;  %v965_v31 = vmul.f32 %v5401_v36, %v5542_v52  ;;  %v966_v29 = vmul.f32 %v4362_v24, %v5542_v52 }
  0x98   : > { %v967_v48 = vmul.f32 %v5562_v38, %v5542_v52  ;;  %v968_v27 = vmul.f32 %v4364_v4, %v5542_v52  ;;  %v969_v3 = vadd.f32 %v963_v39, %v923_v50  ;;  %v970_v37 = vadd.f32 %v964_v49, %v924_v25  ;;  %v4368_v49 = vld [vmem:[#allocation2 + $0x70] sm:$0x7f] }
  0x99   : > { %v971_v34 = vadd.f32 %v965_v31, %v925_v45  ;;  %v972_v58 = vadd.f32 %v966_v29, %v926_v21  ;;  %v976_v59 = vmul.f32 %v5545_v12, %v5240_v11  ;;  %v977_v20 = vmul.f32 %v4360_v47, %v5545_v12 }
  0x9a   : > { %v973_v43 = vadd.f32 %v967_v48, %v927_v62  ;;  %v974_v51 = vadd.f32 %v968_v27, %v928_v30  ;;  %v978_v5 = vmul.f32 %v5401_v36, %v5545_v12  ;;  %v979_v61 = vmul.f32 %v4362_v24, %v5545_v12  ;;  %v4370_v48 = vld [vmem:[#allocation2 + $0x90] sm:$0x7f] }
  0x9b   : > { %v980_v17 = vmul.f32 %v5562_v38, %v5545_v12  ;;  %v981_v50 = vmul.f32 %v4364_v4, %v5545_v12  ;;  %v982_v25 = vadd.f32 %v976_v59, %v936_v32  ;;  %v983_v45 = vadd.f32 %v977_v20, %v937_v33 }
  0x9c   : > { %v984_v29 = vadd.f32 %v978_v5, %v938_v42  ;;  %v985_v21 = vadd.f32 %v979_v61, %v939_v10  ;;  %v989_v28 = vmul.f32 %v5548_v15, %v5240_v11  ;;  %v990_v62 = vmul.f32 %v4360_v47, %v5548_v15  ;;  %v4366_v10 = vld [vmem:[#allocation2 + $0x50] sm:$0x7f] }
  0x9d   : > { %v986_v30 = vadd.f32 %v980_v17, %v940_v22  ;;  %v987_v27 = vadd.f32 %v981_v50, %v941_v2  ;;  %v991_v41 = vmul.f32 %v5401_v36, %v5548_v15  ;;  %v992_v1 = vmul.f32 %v4362_v24, %v5548_v15 }
  0x9e   : > { %v993_v39 = vmul.f32 %v5562_v38, %v5548_v15  ;;  %v994_v32 = vmul.f32 %v4364_v4, %v5548_v15  ;;  %v995_v33 = vadd.f32 %v989_v28, %v949_v46  ;;  %v996_v42 = vadd.f32 %v990_v62, %v950_v63  ;;  %v5600_v46 = vld [vmem:[#allocation2 + $0x88] sm:$0xff] }
  0x9f   : > { %v997_v31 = vadd.f32 %v991_v41, %v951_v14  ;;  %v998_v11 = vadd.f32 %v992_v1, %v952_v16  ;;  %v5589_v47 = vperm.slane %v5523_v55, 1  ;;  %v5592_v22 = vperm.slane %v5528_v18, 1 }
  0xa0   : > { %v999_v2 = vadd.f32 %v993_v39, %v953_v7  ;;  %v1000_v24 = vadd.f32 %v994_v32, %v954_v53  ;;  %v5595_v59 = vperm.slane %v5530_v40, 1  ;;  %v5598_v4 = vperm.slane %v5523_v55, 2 }
  0xa1   : > { %7810 = vst [vmem:[#allocation45_spill] sm:$0xff] %v5589_v47  ;;  %v1008_v63 = vmul.f32 %v5589_v47, %v5277_v54  ;;  %v1009_v14 = vmul.f32 %v4366_v10, %v5589_v47  ;;  %v1010_v16 = vmul.f32 %v5430_v23, %v5589_v47  ;;  %v1011_v20 = vmul.f32 %v4368_v49, %v5589_v47 }
  0xa2   : > { %7811 = vst [vmem:[#allocation46_spill] sm:$0xff] %v5592_v22  ;;  %v1012_v53 = vmul.f32 %v5600_v46, %v5589_v47  ;;  %v1013_v7 = vmul.f32 %v4370_v48, %v5589_v47  ;;  %v1021_v5 = vmul.f32 %v5592_v22, %v5277_v54  ;;  %v1022_v61 = vmul.f32 %v4366_v10, %v5592_v22 }
  0xa3   : > { %7812 = vst [vmem:[#allocation47_spill] sm:$0xff] %v5595_v59  ;;  %v1014_v17 = vadd.f32 %v1008_v63, %v969_v3  ;;  %v1015_v50 = vadd.f32 %v1009_v14, %v970_v37  ;;  %v1016_v28 = vadd.f32 %v1010_v16, %v971_v34  ;;  %v1017_v62 = vadd.f32 %v1011_v20, %v972_v58  ;;  %v4372_v34 = vld [vmem:[#allocation2 + $0x51] sm:$0x7f] }
  0xa4   : > { %7813 = vst [vmem:[#allocation48_spill] sm:$0xff] %v5598_v4  ;;  %v1018_v41 = vadd.f32 %v1012_v53, %v973_v43  ;;  %v1019_v1 = vadd.f32 %v1013_v7, %v974_v51  ;;  %v1023_v39 = vmul.f32 %v5430_v23, %v5592_v22  ;;  %v1024_v32 = vmul.f32 %v4368_v49, %v5592_v22  ;;  %v4374_v14 = vld [vmem:[#allocation2 + $0x71] sm:$0x7f] }
  0xa5   : > { %v1025_v15 = vmul.f32 %v5600_v46, %v5592_v22  ;;  %v1026_v47 = vmul.f32 %v4370_v48, %v5592_v22  ;;  %v1027_v12 = vadd.f32 %v1021_v5, %v982_v25  ;;  %v1028_v52 = vadd.f32 %v1022_v61, %v983_v45  ;;  %v4376_v16 = vld [vmem:[#allocation2 + $0x91] sm:$0x7f] }
  0xa6   : > { %v1029_v26 = vadd.f32 %v1023_v39, %v984_v29  ;;  %v1030_v0 = vadd.f32 %v1024_v32, %v985_v21  ;;  %v1034_v37 = vmul.f32 %v5595_v59, %v5277_v54  ;;  %v1035_v3 = vmul.f32 %v4366_v10, %v5595_v59 }
  0xa7   : > { %v1031_v58 = vadd.f32 %v1025_v15, %v986_v30  ;;  %v1032_v43 = vadd.f32 %v1026_v47, %v987_v27  ;;  %v1036_v51 = vmul.f32 %v5430_v23, %v5595_v59  ;;  %v1037_v63 = vmul.f32 %v4368_v49, %v5595_v59  ;;  %v5632_v47 = vld [vmem:[#allocation2 + $0x89] sm:$0xff] }
  0xa8   : > { %v1038_v25 = vmul.f32 %v5600_v46, %v5595_v59  ;;  %v1039_v45 = vmul.f32 %v4370_v48, %v5595_v59  ;;  %v1040_v29 = vadd.f32 %v1034_v37, %v995_v33  ;;  %v1041_v21 = vadd.f32 %v1035_v3, %v996_v42 }
  0xa9   : > { %v1042_v54 = vadd.f32 %v1036_v51, %v997_v31  ;;  %v1043_v20 = vadd.f32 %v1037_v63, %v998_v11  ;;  %v1053_v15 = vmul.f32 %v5598_v4, %v5317_v44  ;;  %v1054_v30 = vmul.f32 %v4372_v34, %v5598_v4 }
  0xaa   : > { %v1044_v27 = vadd.f32 %v1038_v25, %v999_v2  ;;  %v1045_v10 = vadd.f32 %v1039_v45, %v1000_v24  ;;  %v1055_v49 = vmul.f32 %v5471_v19, %v5598_v4  ;;  %v1056_v53 = vmul.f32 %v4374_v14, %v5598_v4  ;;  %v4378_v25 = vld [vmem:[#allocation2 + $0x52] sm:$0x7f] }
  0xab   : > { %v1057_v33 = vmul.f32 %v5632_v47, %v5598_v4  ;;  %v1058_v42 = vmul.f32 %v4376_v16, %v5598_v4  ;;  %v1059_v31 = vadd.f32 %v1053_v15, %v1014_v17  ;;  %v1060_v11 = vadd.f32 %v1054_v30, %v1015_v50 }
  0xac   : > { %v1061_v48 = vadd.f32 %v1055_v49, %v1016_v28  ;;  %v1062_v7 = vadd.f32 %v1056_v53, %v1017_v62  ;;  %v5641_v5 = vperm.slane %v5528_v18, 2  ;;  %v5644_v2 = vperm.slane %v5530_v40, 2  ;;  %v4380_v53 = vld [vmem:[#allocation2 + $0x72] sm:$0x7f] }
  0xad   : > { %v1063_v24 = vadd.f32 %v1057_v33, %v1018_v41  ;;  %v1064_v61 = vadd.f32 %v1058_v42, %v1019_v1  ;;  %v5647_v39 = vperm.slane %v5523_v55, 3  ;;  %v5650_v32 = vperm.slane %v5528_v18, 3 }
  0xae   : > { %7814 = vst [vmem:[#allocation49_spill] sm:$0xff] %v5641_v5  ;;  %v1066_v17 = vmul.f32 %v5641_v5, %v5317_v44  ;;  %v1067_v50 = vmul.f32 %v4372_v34, %v5641_v5  ;;  %v1068_v28 = vmul.f32 %v5471_v19, %v5641_v5  ;;  %v1069_v62 = vmul.f32 %v4374_v14, %v5641_v5 }
  0xaf   : > { %7815 = vst [vmem:[#allocation50_spill] sm:$0xff] %v5644_v2  ;;  %v1070_v41 = vmul.f32 %v5632_v47, %v5641_v5  ;;  %v1071_v1 = vmul.f32 %v4376_v16, %v5641_v5  ;;  %v1079_v55 = vmul.f32 %v5644_v2, %v5317_v44  ;;  %v1080_v18 = vmul.f32 %v4372_v34, %v5644_v2 }
  0xb0   : > { %7816 = vst [vmem:[#allocation51_spill] sm:$0xff] %v5647_v39  ;;  %v1072_v37 = vadd.f32 %v1066_v17, %v1027_v12  ;;  %v1073_v3 = vadd.f32 %v1067_v50, %v1028_v52  ;;  %v1074_v51 = vadd.f32 %v1068_v28, %v1029_v26  ;;  %v1075_v63 = vadd.f32 %v1069_v62, %v1030_v0  ;;  %v4382_v12 = vld [vmem:[#allocation2 + $0x92] sm:$0x7f]  ;;  %v5673_v50 = vld [vmem:[#allocation2 + $0x8a] sm:$0xff] }
  0xb1   : > { %7817 = vst [vmem:[#allocation52_spill] sm:$0xff] %v5650_v32  ;;  %v1076_v45 = vadd.f32 %v1070_v41, %v1031_v58  ;;  %v1077_v15 = vadd.f32 %v1071_v1, %v1032_v43  ;;  %v1081_v30 = vmul.f32 %v5471_v19, %v5644_v2  ;;  %v1082_v49 = vmul.f32 %v4374_v14, %v5644_v2  ;;  %v5686_v1 = vld [vmem:[#allocation6 + $0xc] sm:$0xf] }
  0xb2   : > { %v1083_v33 = vmul.f32 %v5632_v47, %v5644_v2  ;;  %v1084_v44 = vmul.f32 %v4376_v16, %v5644_v2  ;;  %v1085_v42 = vadd.f32 %v1079_v55, %v1040_v29  ;;  %v1086_v34 = vadd.f32 %v1080_v18, %v1041_v21  ;;  %v5688_v55 = vld [vmem:[#allocation8 + $0xc] sm:$0xf] }
  0xb3   : > { %v1087_v52 = vadd.f32 %v1081_v30, %v1042_v54  ;;  %v1088_v26 = vadd.f32 %v1082_v49, %v1043_v20  ;;  %v1098_v0 = vmul.f32 %v5647_v39, %v5357_v35  ;;  %v1099_v58 = vmul.f32 %v4378_v25, %v5647_v39  ;;  %v5681_v20 = vld [vmem:[#allocation4 + $0xc] sm:$0xf] }
  0xb4   : > { %v1089_v43 = vadd.f32 %v1083_v33, %v1044_v27  ;;  %v1090_v17 = vadd.f32 %v1084_v44, %v1045_v10  ;;  %v1100_v14 = vmul.f32 %v5512_v6, %v5647_v39  ;;  %v1101_v28 = vmul.f32 %v4380_v53, %v5647_v39 }
  0xb5   : > { %v1102_v29 = vmul.f32 %v5673_v50, %v5647_v39  ;;  %v1103_v21 = vmul.f32 %v4382_v12, %v5647_v39  ;;  %v1104_v16 = vadd.f32 %v1098_v0, %v1059_v31  ;;  %v1105_v54 = vadd.f32 %v1099_v58, %v1060_v11  ;;  %v5720_v39 = vld [vmem:[#allocation2 + $0xa7] sm:$0xff] }
  0xb6   : > { %v1106_v62 = vadd.f32 %v1100_v14, %v1061_v48  ;;  %v1107_v41 = vadd.f32 %v1101_v28, %v1062_v7  ;;  %v1111_v27 = vmul.f32 %v5650_v32, %v5357_v35  ;;  %v1112_v10 = vmul.f32 %v4378_v25, %v5650_v32  ;;  %v4384_v14 = vld [vmem:[#allocation2 + $0x6f] sm:$0x7f] }
  0xb7   : > { %v1108_v18 = vadd.f32 %v1102_v29, %v1063_v24  ;;  %v1109_v30 = vadd.f32 %v1103_v21, %v1064_v61  ;;  %v1113_v49 = vmul.f32 %v5512_v6, %v5650_v32  ;;  %v1114_v31 = vmul.f32 %v4380_v53, %v5650_v32 }
  0xb8   : > { %v1115_v11 = vmul.f32 %v5673_v50, %v5650_v32  ;;  %v1116_v48 = vmul.f32 %v4382_v12, %v5650_v32  ;;  %v1117_v7 = vadd.f32 %v1111_v27, %v1072_v37  ;;  %v1118_v33 = vadd.f32 %v1112_v10, %v1073_v3  ;;  %v4388_v27 = vld [vmem:[#allocation2 + $0xaf] sm:$0x7f] }
  0xb9   : > { %v1119_v44 = vadd.f32 %v1113_v49, %v1074_v51  ;;  %v1120_v0 = vadd.f32 %v1114_v31, %v1075_v63  ;;  %v5697_v58 = vperm.slane %v5530_v40, 3  ;;  %v5700_v24 = vperm.slane %v5681_v20, 0  ;;  %v4386_v63 = vld [vmem:[#allocation2 + $0x8f] sm:$0x7f] }
  0xba   : > { %v1121_v61 = vadd.f32 %v1115_v11, %v1076_v45  ;;  %v1122_v28 = vadd.f32 %v1116_v48, %v1077_v15  ;;  %v5703_v29 = vperm.slane %v5686_v1, 0  ;;  %v5706_v21 = vperm.slane %v5688_v55, 0 }
  0xbb   : > { %7818 = vst [vmem:[#allocation53_spill] sm:$0xff] %v5697_v58  ;;  %v1124_v37 = vmul.f32 %v5697_v58, %v5357_v35  ;;  %v1125_v3 = vmul.f32 %v4378_v25, %v5697_v58  ;;  %v1126_v40 = vmul.f32 %v5512_v6, %v5697_v58  ;;  %v1127_v51 = vmul.f32 %v4380_v53, %v5697_v58 }
  0xbc   : > { %7819 = vst [vmem:[#allocation54_spill] sm:$0xff] %v5700_v24  ;;  %v1128_v45 = vmul.f32 %v5673_v50, %v5697_v58  ;;  %v1129_v15 = vmul.f32 %v4382_v12, %v5697_v58  ;;  %v1144_v10 = vmul.f32 %v5401_v36, %v5700_v24  ;;  %v1145_v49 = vmul.f32 %v4384_v14, %v5700_v24 }
  0xbd   : > { %7820 = vst [vmem:[#allocation55_spill] sm:$0xff] %v5703_v29  ;;  %v1130_v35 = vadd.f32 %v1124_v37, %v1085_v42  ;;  %v1131_v31 = vadd.f32 %v1125_v3, %v1086_v34  ;;  %v1132_v25 = vadd.f32 %v1126_v40, %v1087_v52  ;;  %v1133_v11 = vadd.f32 %v1127_v51, %v1088_v26 }
  0xbe   : > { %7821 = vst [vmem:[#allocation56_spill] sm:$0xff] %v5706_v21  ;;  %v1134_v48 = vadd.f32 %v1128_v45, %v1089_v43  ;;  %v1135_v32 = vadd.f32 %v1129_v15, %v1090_v17  ;;  %v1146_v53 = vmul.f32 %v5562_v38, %v5700_v24  ;;  %v1147_v2 = vmul.f32 %v4386_v63, %v5700_v24 }
  0xbf   : > { %v1148_v12 = vmul.f32 %v5720_v39, %v5700_v24  ;;  %v1149_v58 = vmul.f32 %v4388_v27, %v5700_v24  ;;  %v1150_v5 = vadd.f32 %v1144_v10, %v1104_v16  ;;  %v1151_v4 = vadd.f32 %v1145_v49, %v1105_v54  ;;  %v4392_v49 = vld [vmem:[#allocation2 + $0x90] sm:$0x7f] }
  0xc0   : > { %v1152_v42 = vadd.f32 %v1146_v53, %v1106_v62  ;;  %v1153_v34 = vadd.f32 %v1147_v2, %v1107_v41  ;;  %v1157_v52 = vmul.f32 %v5401_v36, %v5703_v29  ;;  %v1158_v26 = vmul.f32 %v4384_v14, %v5703_v29 }
  0xc1   : > { %v1154_v43 = vadd.f32 %v1148_v12, %v1108_v18  ;;  %v1155_v17 = vadd.f32 %v1149_v58, %v1109_v30  ;;  %v1159_v37 = vmul.f32 %v5562_v38, %v5703_v29  ;;  %v1160_v3 = vmul.f32 %v4386_v63, %v5703_v29  ;;  %v4394_v12 = vld [vmem:[#allocation2 + $0xb0] sm:$0x7f] }
  0xc2   : > { %v1161_v40 = vmul.f32 %v5720_v39, %v5703_v29  ;;  %v1162_v16 = vmul.f32 %v4388_v27, %v5703_v29  ;;  %v1163_v54 = vadd.f32 %v1157_v52, %v1117_v7  ;;  %v1164_v62 = vadd.f32 %v1158_v26, %v1118_v33 }
  0xc3   : > { %v1165_v2 = vadd.f32 %v1159_v37, %v1119_v44  ;;  %v1166_v41 = vadd.f32 %v1160_v3, %v1120_v0  ;;  %v1170_v51 = vmul.f32 %v5401_v36, %v5706_v21  ;;  %v1171_v18 = vmul.f32 %v4384_v14, %v5706_v21  ;;  %v4390_v0 = vld [vmem:[#allocation2 + $0x70] sm:$0x7f] }
  0xc4   : > { %v1167_v30 = vadd.f32 %v1161_v40, %v1121_v61  ;;  %v1168_v58 = vadd.f32 %v1162_v16, %v1122_v28  ;;  %v1172_v45 = vmul.f32 %v5562_v38, %v5706_v21  ;;  %v1173_v15 = vmul.f32 %v4386_v63, %v5706_v21 }
  0xc5   : > { %v1174_v10 = vmul.f32 %v5720_v39, %v5706_v21  ;;  %v1175_v7 = vmul.f32 %v4388_v27, %v5706_v21  ;;  %v1176_v33 = vadd.f32 %v1170_v51, %v1130_v35  ;;  %v1177_v44 = vadd.f32 %v1171_v18, %v1131_v31  ;;  %v5758_v35 = vld [vmem:[#allocation2 + $0xa8] sm:$0xff] }
  0xc6   : > { %v1178_v53 = vadd.f32 %v1172_v45, %v1132_v25  ;;  %v1179_v36 = vadd.f32 %v1173_v15, %v1133_v11  ;;  %v5747_v14 = vperm.slane %v5681_v20, 1  ;;  %v5750_v61 = vperm.slane %v5686_v1, 1 }
  0xc7   : > { %v1180_v28 = vadd.f32 %v1174_v10, %v1134_v48  ;;  %v1181_v63 = vadd.f32 %v1175_v7, %v1135_v32  ;;  %v5753_v52 = vperm.slane %v5688_v55, 1  ;;  %v5756_v27 = vperm.slane %v5681_v20, 2 }
  0xc8   : > { %7822 = vst [vmem:[#allocation57_spill] sm:$0xff] %v5747_v14  ;;  %v1189_v31 = vmul.f32 %v5430_v23, %v5747_v14  ;;  %v1190_v25 = vmul.f32 %v4390_v0, %v5747_v14  ;;  %v1191_v11 = vmul.f32 %v5600_v46, %v5747_v14  ;;  %v1192_v26 = vmul.f32 %v4392_v49, %v5747_v14 }
  0xc9   : > { %7823 = vst [vmem:[#allocation58_spill] sm:$0xff] %v5750_v61  ;;  %v1193_v32 = vmul.f32 %v5758_v35, %v5747_v14  ;;  %v1194_v48 = vmul.f32 %v4394_v12, %v5747_v14  ;;  %v1202_v37 = vmul.f32 %v5430_v23, %v5750_v61  ;;  %v1203_v3 = vmul.f32 %v4390_v0, %v5750_v61 }
  0xca   : > { %7824 = vst [vmem:[#allocation59_spill] sm:$0xff] %v5756_v27  ;;  %v1195_v40 = vadd.f32 %v1189_v31, %v1150_v5  ;;  %v1196_v16 = vadd.f32 %v1190_v25, %v1151_v4  ;;  %v1197_v51 = vadd.f32 %v1191_v11, %v1152_v42  ;;  %v1198_v18 = vadd.f32 %v1192_v26, %v1153_v34  ;;  %v4396_v42 = vld [vmem:[#allocation2 + $0x71] sm:$0x7f] }
  0xcb   : > { %v1199_v45 = vadd.f32 %v1193_v32, %v1154_v43  ;;  %v1200_v15 = vadd.f32 %v1194_v48, %v1155_v17  ;;  %v1204_v10 = vmul.f32 %v5600_v46, %v5750_v61  ;;  %v1205_v7 = vmul.f32 %v4392_v49, %v5750_v61  ;;  %v4398_v25 = vld [vmem:[#allocation2 + $0x91] sm:$0x7f] }
  0xcc   : > { %v1206_v21 = vmul.f32 %v5758_v35, %v5750_v61  ;;  %v1207_v14 = vmul.f32 %v4394_v12, %v5750_v61  ;;  %v1208_v29 = vadd.f32 %v1202_v37, %v1163_v54  ;;  %v1209_v24 = vadd.f32 %v1203_v3, %v1164_v62  ;;  %v4400_v11 = vld [vmem:[#allocation2 + $0xb1] sm:$0x7f] }
  0xcd   : > { %v1210_v59 = vadd.f32 %v1204_v10, %v1165_v2  ;;  %v1211_v22 = vadd.f32 %v1205_v7, %v1166_v41  ;;  %v1215_v4 = vmul.f32 %v5430_v23, %v5753_v52  ;;  %v1216_v5 = vmul.f32 %v4390_v0, %v5753_v52 }
  0xce   : > { %v1212_v34 = vadd.f32 %v1206_v21, %v1167_v30  ;;  %v1213_v43 = vadd.f32 %v1207_v14, %v1168_v58  ;;  %v1217_v17 = vmul.f32 %v5600_v46, %v5753_v52  ;;  %v1218_v31 = vmul.f32 %v4392_v49, %v5753_v52  ;;  %v5790_v14 = vld [vmem:[#allocation2 + $0xa9] sm:$0xff] }
  0xcf   : > { %v1219_v54 = vmul.f32 %v5758_v35, %v5753_v52  ;;  %v1220_v62 = vmul.f32 %v4394_v12, %v5753_v52  ;;  %v1221_v2 = vadd.f32 %v1215_v4, %v1176_v33  ;;  %v1222_v41 = vadd.f32 %v1216_v5, %v1177_v44 }
  0xd0   : > { %v1223_v23 = vadd.f32 %v1217_v17, %v1178_v53  ;;  %v1224_v26 = vadd.f32 %v1218_v31, %v1179_v36  ;;  %v1234_v21 = vmul.f32 %v5471_v19, %v5756_v27  ;;  %v1235_v30 = vmul.f32 %v4396_v42, %v5756_v27 }
  0xd1   : > { %v1225_v58 = vadd.f32 %v1219_v54, %v1180_v28  ;;  %v1226_v0 = vadd.f32 %v1220_v62, %v1181_v63  ;;  %v1236_v49 = vmul.f32 %v5632_v47, %v5756_v27  ;;  %v1237_v32 = vmul.f32 %v4398_v25, %v5756_v27  ;;  %v4402_v54 = vld [vmem:[#allocation2 + $0x72] sm:$0x7f] }
  0xd2   : > { %v1238_v33 = vmul.f32 %v5790_v14, %v5756_v27  ;;  %v1239_v44 = vmul.f32 %v4400_v11, %v5756_v27  ;;  %v1240_v53 = vadd.f32 %v1234_v21, %v1195_v40  ;;  %v1241_v36 = vadd.f32 %v1235_v30, %v1196_v16 }
  0xd3   : > { %v1242_v12 = vadd.f32 %v1236_v49, %v1197_v51  ;;  %v1243_v48 = vadd.f32 %v1237_v32, %v1198_v18  ;;  %v5799_v37 = vperm.slane %v5686_v1, 2  ;;  %v5802_v28 = vperm.slane %v5688_v55, 2  ;;  %v4404_v32 = vld [vmem:[#allocation2 + $0x92] sm:$0x7f] }
  0xd4   : > { %v1244_v63 = vadd.f32 %v1238_v33, %v1199_v45  ;;  %v1245_v3 = vadd.f32 %v1239_v44, %v1200_v15  ;;  %v5805_v10 = vperm.slane %v5681_v20, 3  ;;  %v5808_v7 = vperm.slane %v5686_v1, 3 }
  0xd5   : > { %7825 = vst [vmem:[#allocation60_spill] sm:$0xff] %v5799_v37  ;;  %v1247_v40 = vmul.f32 %v5471_v19, %v5799_v37  ;;  %v1248_v16 = vmul.f32 %v4396_v42, %v5799_v37  ;;  %v1249_v51 = vmul.f32 %v5632_v47, %v5799_v37  ;;  %v1250_v18 = vmul.f32 %v4398_v25, %v5799_v37 }
  0xd6   : > { %7826 = vst [vmem:[#allocation61_spill] sm:$0xff] %v5802_v28  ;;  %v1251_v45 = vmul.f32 %v5790_v14, %v5799_v37  ;;  %v1252_v15 = vmul.f32 %v4400_v11, %v5799_v37  ;;  %v1260_v20 = vmul.f32 %v5471_v19, %v5802_v28  ;;  %v1261_v1 = vmul.f32 %v4396_v42, %v5802_v28 }
  0xd7   : > { %7827 = vst [vmem:[#allocation62_spill] sm:$0xff] %v5805_v10  ;;  %v1253_v4 = vadd.f32 %v1247_v40, %v1208_v29  ;;  %v1254_v5 = vadd.f32 %v1248_v16, %v1209_v24  ;;  %v1255_v17 = vadd.f32 %v1249_v51, %v1210_v59  ;;  %v1256_v31 = vadd.f32 %v1250_v18, %v1211_v22  ;;  %v4406_v29 = vld [vmem:[#allocation2 + $0xb2] sm:$0x7f]  ;;  %v5831_v16 = vld [vmem:[#allocation2 + $0xaa] sm:$0xff] }
  0xd8   : > { %7828 = vst [vmem:[#allocation63_spill] sm:$0xff] %v5808_v7  ;;  %v1257_v62 = vadd.f32 %v1251_v45, %v1212_v34  ;;  %v1258_v21 = vadd.f32 %v1252_v15, %v1213_v43  ;;  %v1262_v30 = vmul.f32 %v5632_v47, %v5802_v28  ;;  %v1263_v49 = vmul.f32 %v4398_v25, %v5802_v28  ;;  %v5842_v45 = vld [vmem:[#allocation2 + $0x67] sm:$0xff] }
  0xd9   : > { %v1264_v33 = vmul.f32 %v5790_v14, %v5802_v28  ;;  %v1265_v19 = vmul.f32 %v4400_v11, %v5802_v28  ;;  %v1266_v44 = vadd.f32 %v1260_v20, %v1221_v2  ;;  %v1267_v42 = vadd.f32 %v1261_v1, %v1222_v41 }
  0xda   : > { %v1268_v24 = vadd.f32 %v1262_v30, %v1223_v23  ;;  %v1269_v59 = vadd.f32 %v1263_v49, %v1224_v26  ;;  %v1279_v22 = vmul.f32 %v5512_v6, %v5805_v10  ;;  %v1280_v34 = vmul.f32 %v4402_v54, %v5805_v10 }
  0xdb   : > { %v1270_v43 = vadd.f32 %v1264_v33, %v1225_v58  ;;  %v1271_v40 = vadd.f32 %v1265_v19, %v1226_v0  ;;  %v1281_v25 = vmul.f32 %v5673_v50, %v5805_v10  ;;  %v1282_v51 = vmul.f32 %v4404_v32, %v5805_v10 }
  0xdc   : > { %v1283_v2 = vmul.f32 %v5831_v16, %v5805_v10  ;;  %v1284_v41 = vmul.f32 %v4406_v29, %v5805_v10  ;;  %v1285_v11 = vadd.f32 %v1279_v22, %v1240_v53  ;;  %v1286_v23 = vadd.f32 %v1280_v34, %v1241_v36 }
  0xdd   : > { %v1287_v26 = vadd.f32 %v1281_v25, %v1242_v12  ;;  %v1288_v18 = vadd.f32 %v1282_v51, %v1243_v48  ;;  %v1292_v58 = vmul.f32 %v5512_v6, %v5808_v7  ;;  %v1293_v0 = vmul.f32 %v4402_v54, %v5808_v7 }
  0xde   : > { %v1289_v15 = vadd.f32 %v1283_v2, %v1244_v63  ;;  %v1290_v20 = vadd.f32 %v1284_v41, %v1245_v3  ;;  %v1294_v1 = vmul.f32 %v5673_v50, %v5808_v7  ;;  %v1295_v30 = vmul.f32 %v4404_v32, %v5808_v7 }
  0xdf   : > { %v1296_v53 = vmul.f32 %v5831_v16, %v5808_v7  ;;  %v1297_v36 = vmul.f32 %v4406_v29, %v5808_v7  ;;  %v1298_v12 = vadd.f32 %v1292_v58, %v1253_v4  ;;  %v1299_v48 = vadd.f32 %v1293_v0, %v1254_v5 }
  0xe0   : > { %v1300_v49 = vadd.f32 %v1294_v1, %v1255_v17  ;;  %v1301_v33 = vadd.f32 %v1295_v30, %v1256_v31  ;;  %v5851_v19 = vperm.slane %v5688_v55, 3  ;;  %v1341_v63 = vmul.f32 %v5842_v45, %v5235_v8  ;;  %v4410_v30 = vld [vmem:[#allocation2 + $0x8f] sm:$0x7f] }
  0xe1   : > { %v1302_v3 = vadd.f32 %v1296_v53, %v1257_v62  ;;  %v1303_v22 = vadd.f32 %v1297_v36, %v1258_v21  ;;  %v1317_v34 = vmul.f32 %v1298_v12, %v1285_v11  ;;  %v1318_v25 = vmul.f32 %v1299_v48, %v1286_v23 }
  0xe2   : > { %v1305_v51 = vmul.f32 %v5512_v6, %v5851_v19  ;;  %v1306_v2 = vmul.f32 %v4402_v54, %v5851_v19  ;;  %v1307_v4 = vmul.f32 %v5673_v50, %v5851_v19  ;;  %v1308_v5 = vmul.f32 %v4404_v32, %v5851_v19  ;;  %v4408_v6 = vld [vmem:[#allocation2 + $0x6f] sm:$0x7f] }
  0xe3   : > { %v1309_v55 = vmul.f32 %v5831_v16, %v5851_v19  ;;  %v1310_v17 = vmul.f32 %v4406_v29, %v5851_v19  ;;  %v1319_v31 = vmul.f32 %v1300_v49, %v1287_v26  ;;  %v1320_v62 = vmul.f32 %v1301_v33, %v1288_v18  ;;  %v4412_v32 = vld [vmem:[#allocation2 + $0xaf] sm:$0x7f] }
  0xe4   : > { %v1311_v21 = vadd.f32 %v1305_v51, %v1266_v44  ;;  %v1312_v41 = vadd.f32 %v1306_v2, %v1267_v42  ;;  %v1313_v11 = vadd.f32 %v1307_v4, %v1268_v24  ;;  %v1314_v23 = vadd.f32 %v1308_v5, %v1269_v59  ;;  %v4890_v4 = vld [vmem:[%s7607_s4] ss:$0 sm:$0xff] }
  0xe5   : > { %v1315_v58 = vadd.f32 %v1309_v55, %v1270_v43  ;;  %v1316_v54 = vadd.f32 %v1310_v17, %v1271_v40  ;;  %v1321_v0 = vmul.f32 %v1302_v3, %v1289_v15  ;;  %v1322_v1 = vmul.f32 %v1303_v22, %v1290_v20  ;;  %v4889_v40 = vld [vmem:[%s7605_s2] ss:$0 sm:$0xff] }
  0xe6   : > { %v1323_v53 = vadd.f32 %v1317_v34, %v1311_v21  ;;  %v1324_v36 = vadd.f32 %v1318_v25, %v1312_v41  ;;  %v1325_v12 = vadd.f32 %v1319_v31, %v1313_v11  ;;  %v1326_v48 = vadd.f32 %v1320_v62, %v1314_v23  ;;  %v4413_v21 = vld [vmem:[#allocation2 + $0x68] sm:$0xff]  ;;  %v4414_v41 = vld [vmem:[#allocation2 + $0x70] sm:$0x7f] }
  0xe7   : > { %v1327_v29 = vadd.f32 %v1321_v0, %v1315_v58  ;;  %v1328_v26 = vadd.f32 %v1322_v1, %v1316_v54  ;;  %v1342_v44 = vmul.f32 %v4408_v6, %v5235_v8  ;;  %v1343_v42 = vmul.f32 %v5562_v38, %v5235_v8 }
  0xe8   : > { %1329 = vst [vmem:[%s5172_s28] sm:$0xff] %v1323_v53  ;;  %v1344_v24 = vmul.f32 %v4410_v30, %v5235_v8  ;;  %v1345_v59 = vmul.f32 %v5720_v39, %v5235_v8  ;;  %v1346_v43 = vmul.f32 %v4412_v32, %v5235_v8  ;;  %v1347_v18 = vadd.f32 %v4889_v40, %v1341_v63 }
  0xe9   : > { %1330 = vst [vmem:[%s5172_s28 + $0x8] sm:$0x7f] %v1324_v36  ;;  %v1348_v15 = vadd.f32 %v4889_v40, %v1342_v44  ;;  %v1349_v20 = vadd.f32 %v4889_v40, %v1343_v42  ;;  %v1353_v49 = vmul.f32 %v5842_v45, %v5238_v9  ;;  %v1354_v33 = vmul.f32 %v4408_v6, %v5238_v9  ;;  %v4416_v36 = vld [vmem:[#allocation2 + $0x90] sm:$0x7f] }
  0xea   : > { %1331 = vst [vmem:[%s5172_s28 + $0x10] sm:$0xff] %v1325_v12  ;;  %v1350_v3 = vadd.f32 %v4889_v40, %v1344_v24  ;;  %v1351_v22 = vadd.f32 %v4889_v40, %v1345_v59  ;;  %v1352_v34 = vadd.f32 %v4889_v40, %v1346_v43  ;;  %v1355_v25 = vmul.f32 %v5562_v38, %v5238_v9  ;;  %v4418_v12 = vld [vmem:[#allocation2 + $0xb0] sm:$0x7f] }
  0xeb   : > { %1332 = vst [vmem:[%s5172_s28 + $0x18] sm:$0x7f] %v1326_v48  ;;  %v1356_v63 = vmul.f32 %v4410_v30, %v5238_v9  ;;  %v1357_v51 = vmul.f32 %v5720_v39, %v5238_v9  ;;  %v1358_v2 = vmul.f32 %v4412_v32, %v5238_v9  ;;  %v1359_v5 = vadd.f32 %v4890_v4, %v1353_v49 }
  0xec   : > { %1333 = vst [vmem:[%s5172_s28 + $0x20] sm:$0xff] %v1327_v29  ;;  %v1360_v55 = vadd.f32 %v4890_v4, %v1354_v33  ;;  %v1361_v17 = vadd.f32 %v4890_v4, %v1355_v25  ;;  %v1365_v31 = vmul.f32 %v5842_v45, %v5243_v13  ;;  %v1366_v62 = vmul.f32 %v4408_v6, %v5243_v13  ;;  %v4891_v45 = vld [vmem:[%s7609_s6] ss:$0 sm:$0xff] }
  0xed   : > { %1334 = vst [vmem:[%s5172_s28 + $0x28] sm:$0x7f] %v1328_v26  ;;  %v1362_v11 = vadd.f32 %v4890_v4, %v1356_v63  ;;  %v1363_v23 = vadd.f32 %v4890_v4, %v1357_v51  ;;  %v1364_v58 = vadd.f32 %v4890_v4, %v1358_v2  ;;  %v1367_v54 = vmul.f32 %v5562_v38, %v5243_v13 }
  0xee   : > { %v1368_v0 = vmul.f32 %v4410_v30, %v5243_v13  ;;  %v1369_v1 = vmul.f32 %v5720_v39, %v5243_v13  ;;  %v1370_v53 = vmul.f32 %v4412_v32, %v5243_v13  ;;  %v1371_v6 = vadd.f32 %v4891_v45, %v1365_v31 }
  0xef   : > { %v1372_v48 = vadd.f32 %v4891_v45, %v1366_v62  ;;  %v1373_v29 = vadd.f32 %v4891_v45, %v1367_v54  ;;  %v1383_v26 = vmul.f32 %v4413_v21, %v5280_v56  ;;  %v1384_v38 = vmul.f32 %v4414_v41, %v5280_v56 }
  0xf0   : > { %v1374_v44 = vadd.f32 %v4891_v45, %v1368_v0  ;;  %v1375_v30 = vadd.f32 %v4891_v45, %v1369_v1  ;;  %v1376_v42 = vadd.f32 %v4891_v45, %v1370_v53  ;;  %v1385_v24 = vmul.f32 %v5600_v46, %v5280_v56 }
  0xf1   : > { %v1386_v32 = vmul.f32 %v4416_v36, %v5280_v56  ;;  %v1387_v59 = vmul.f32 %v5758_v35, %v5280_v56  ;;  %v1388_v43 = vmul.f32 %v4418_v12, %v5280_v56  ;;  %v1389_v40 = vadd.f32 %v1383_v26, %v1347_v18 }
  0xf2   : > { %v1390_v49 = vadd.f32 %v1384_v38, %v1348_v15  ;;  %v1391_v33 = vadd.f32 %v1385_v24, %v1349_v20  ;;  %v1395_v25 = vmul.f32 %v4413_v21, %v5283_v57  ;;  %v1396_v63 = vmul.f32 %v4414_v41, %v5283_v57 }
  0xf3   : > { %v1392_v51 = vadd.f32 %v1386_v32, %v1350_v3  ;;  %v1393_v2 = vadd.f32 %v1387_v59, %v1351_v22  ;;  %v1394_v4 = vadd.f32 %v1388_v43, %v1352_v34  ;;  %v1397_v31 = vmul.f32 %v5600_v46, %v5283_v57  ;;  %v4419_v3 = vld [vmem:[#allocation2 + $0x69] sm:$0xff]  ;;  %v4420_v22 = vld [vmem:[#allocation2 + $0x71] sm:$0x7f] }
  0xf4   : > { %v1398_v62 = vmul.f32 %v4416_v36, %v5283_v57  ;;  %v1399_v54 = vmul.f32 %v5758_v35, %v5283_v57  ;;  %v1400_v0 = vmul.f32 %v4418_v12, %v5283_v57  ;;  %v1401_v18 = vadd.f32 %v1395_v25, %v1359_v5  ;;  %v7829_v43 = vld [vmem:[#allocation24_spill] sm:$0xff] }
  0xf5   : > { %v1402_v15 = vadd.f32 %v1396_v63, %v1360_v55  ;;  %v1403_v20 = vadd.f32 %v1397_v31, %v1361_v17  ;;  %v1407_v1 = vmul.f32 %v4413_v21, %v5286_v60  ;;  %v1408_v53 = vmul.f32 %v4414_v41, %v5286_v60  ;;  %v4422_v17 = vld [vmem:[#allocation2 + $0x91] sm:$0x7f] }
  0xf6   : > { %v1404_v34 = vadd.f32 %v1398_v62, %v1362_v11  ;;  %v1405_v45 = vadd.f32 %v1399_v54, %v1363_v23  ;;  %v1406_v26 = vadd.f32 %v1400_v0, %v1364_v58  ;;  %v1409_v38 = vmul.f32 %v5600_v46, %v5286_v60  ;;  %v4424_v21 = vld [vmem:[#allocation2 + $0xb1] sm:$0x7f]  ;;  %v7830_v62 = vld [vmem:[#allocation25_spill] sm:$0xff] }
  0xf7   : > { %v1410_v24 = vmul.f32 %v4416_v36, %v5286_v60  ;;  %v1411_v32 = vmul.f32 %v5758_v35, %v5286_v60  ;;  %v1412_v5 = vmul.f32 %v4418_v12, %v5286_v60  ;;  %v1413_v55 = vadd.f32 %v1407_v1, %v1371_v6 }
  0xf8   : > { %v1414_v59 = vadd.f32 %v1408_v53, %v1372_v48  ;;  %v1415_v41 = vadd.f32 %v1409_v38, %v1373_v29  ;;  %v1425_v25 = vmul.f32 %v4419_v3, %v7829_v43  ;;  %v1426_v11 = vmul.f32 %v4420_v22, %v7829_v43 }
  0xf9   : > { %v1416_v23 = vadd.f32 %v1410_v24, %v1374_v44  ;;  %v1417_v58 = vadd.f32 %v1411_v32, %v1375_v30  ;;  %v1418_v63 = vadd.f32 %v1412_v5, %v1376_v42  ;;  %v1427_v46 = vmul.f32 %v5632_v47, %v7829_v43  ;;  %v7831_v32 = vld [vmem:[#allocation26_spill] sm:$0xff] }
  0xfa   : > { %v1428_v36 = vmul.f32 %v4422_v17, %v7829_v43  ;;  %v1429_v12 = vmul.f32 %v5790_v14, %v7829_v43  ;;  %v1430_v6 = vmul.f32 %v4424_v21, %v7829_v43  ;;  %v1431_v31 = vadd.f32 %v1425_v25, %v1389_v40 }
  0xfb   : > { %v1432_v48 = vadd.f32 %v1426_v11, %v1390_v49  ;;  %v1433_v29 = vadd.f32 %v1427_v46, %v1391_v33  ;;  %v1437_v54 = vmul.f32 %v4419_v3, %v7830_v62  ;;  %v1438_v0 = vmul.f32 %v4420_v22, %v7830_v62 }
  0xfc   : > { %v1434_v44 = vadd.f32 %v1428_v36, %v1392_v51  ;;  %v1435_v30 = vadd.f32 %v1429_v12, %v1393_v2  ;;  %v1436_v42 = vadd.f32 %v1430_v6, %v1394_v4  ;;  %v1439_v1 = vmul.f32 %v5632_v47, %v7830_v62  ;;  %v4425_v51 = vld [vmem:[#allocation2 + $0x6a] sm:$0xff]  ;;  %v4426_v2 = vld [vmem:[#allocation2 + $0x72] sm:$0x7f] }
  0xfd   : > { %v1440_v53 = vmul.f32 %v4422_v17, %v7830_v62  ;;  %v1441_v38 = vmul.f32 %v5790_v14, %v7830_v62  ;;  %v1442_v24 = vmul.f32 %v4424_v21, %v7830_v62  ;;  %v1443_v40 = vadd.f32 %v1437_v54, %v1401_v18 }
  0xfe   : > { %v1444_v49 = vadd.f32 %v1438_v0, %v1402_v15  ;;  %v1445_v33 = vadd.f32 %v1439_v1, %v1403_v20  ;;  %v1449_v5 = vmul.f32 %v4419_v3, %v7831_v32  ;;  %v1450_v25 = vmul.f32 %v4420_v22, %v7831_v32  ;;  %v4428_v20 = vld [vmem:[#allocation2 + $0x92] sm:$0x7f]  ;;  %v7832_v0 = vld [vmem:[#allocation27_spill] sm:$0xff] }
  0xff   : > { %v1446_v4 = vadd.f32 %v1440_v53, %v1404_v34  ;;  %v1447_v11 = vadd.f32 %v1441_v38, %v1405_v45  ;;  %v1448_v46 = vadd.f32 %v1442_v24, %v1406_v26  ;;  %v1451_v36 = vmul.f32 %v5632_v47, %v7831_v32  ;;  %v4430_v3 = vld [vmem:[#allocation2 + $0xb2] sm:$0x7f] }
 0x100   : > { %v1452_v12 = vmul.f32 %v4422_v17, %v7831_v32  ;;  %v1453_v6 = vmul.f32 %v5790_v14, %v7831_v32  ;;  %v1454_v18 = vmul.f32 %v4424_v21, %v7831_v32  ;;  %v1455_v15 = vadd.f32 %v1449_v5, %v1413_v55  ;;  %v7833_v24 = vld [vmem:[#allocation28_spill] sm:$0xff] }
 0x101   : > { %v1456_v54 = vadd.f32 %v1450_v25, %v1414_v59  ;;  %v1457_v22 = vadd.f32 %v1451_v36, %v1415_v41  ;;  %v1467_v1 = vmul.f32 %v4425_v51, %v7832_v0  ;;  %v1468_v34 = vmul.f32 %v4426_v2, %v7832_v0 }
 0x102   : > { %v1458_v45 = vadd.f32 %v1452_v12, %v1416_v23  ;;  %v1459_v26 = vadd.f32 %v1453_v6, %v1417_v58  ;;  %v1460_v53 = vadd.f32 %v1454_v18, %v1418_v63  ;;  %v1469_v47 = vmul.f32 %v5673_v50, %v7832_v0 }
 0x103   : > { %v1470_v17 = vmul.f32 %v4428_v20, %v7832_v0  ;;  %v1471_v21 = vmul.f32 %v5831_v16, %v7832_v0  ;;  %v1472_v55 = vmul.f32 %v4430_v3, %v7832_v0  ;;  %v1473_v38 = vadd.f32 %v1467_v1, %v1431_v31  ;;  %v7834_v1 = vld [vmem:[#allocation29_spill] sm:$0xff] }
 0x104   : > { %v1474_v59 = vadd.f32 %v1468_v34, %v1432_v48  ;;  %v1475_v41 = vadd.f32 %v1469_v47, %v1433_v29  ;;  %v1479_v5 = vmul.f32 %v4425_v51, %v7833_v24  ;;  %v1480_v25 = vmul.f32 %v4426_v2, %v7833_v24 }
 0x105   : > { %v1476_v23 = vadd.f32 %v1470_v17, %v1434_v44  ;;  %v1477_v58 = vadd.f32 %v1471_v21, %v1435_v30  ;;  %v1478_v63 = vadd.f32 %v1472_v55, %v1436_v42  ;;  %v1481_v36 = vmul.f32 %v5673_v50, %v7833_v24  ;;  %v4431_v44 = vld [vmem:[#allocation2 + $0x87] sm:$0xff]  ;;  %v4432_v30 = vld [vmem:[#allocation2 + $0x8f] sm:$0x7f] }
 0x106   : > { %v1482_v12 = vmul.f32 %v4428_v20, %v7833_v24  ;;  %v1483_v6 = vmul.f32 %v5831_v16, %v7833_v24  ;;  %v1484_v18 = vmul.f32 %v4430_v3, %v7833_v24  ;;  %v1485_v31 = vadd.f32 %v1479_v5, %v1443_v40 }
 0x107   : > { %v1486_v48 = vadd.f32 %v1480_v25, %v1444_v49  ;;  %v1487_v29 = vadd.f32 %v1481_v36, %v1445_v33  ;;  %v1491_v34 = vmul.f32 %v4425_v51, %v7834_v1  ;;  %v1492_v47 = vmul.f32 %v4426_v2, %v7834_v1  ;;  %v4434_v33 = vld [vmem:[#allocation2 + $0xaf] sm:$0x7f]  ;;  %v5976_v51 = vld [vmem:[#allocation2 + $0xc7] sm:$0xff] }
 0x108   : > { %v1488_v42 = vadd.f32 %v1482_v12, %v1446_v4  ;;  %v1489_v17 = vadd.f32 %v1483_v6, %v1447_v11  ;;  %v1490_v21 = vadd.f32 %v1484_v18, %v1448_v46  ;;  %v1493_v55 = vmul.f32 %v5673_v50, %v7834_v1  ;;  %v4436_v2 = vld [vmem:[#allocation2 + $0xcf] sm:$0x7f]  ;;  %v7835_v4 = vld [vmem:[#allocation30_spill] sm:$0xff] }
 0x109   : > { %v1494_v0 = vmul.f32 %v4428_v20, %v7834_v1  ;;  %v1495_v24 = vmul.f32 %v5831_v16, %v7834_v1  ;;  %v1496_v40 = vmul.f32 %v4430_v3, %v7834_v1  ;;  %v1497_v49 = vadd.f32 %v1491_v34, %v1455_v15  ;;  %v7836_v34 = vld [vmem:[#allocation31_spill] sm:$0xff] }
 0x10a   : > { %v1498_v5 = vadd.f32 %v1492_v47, %v1456_v54  ;;  %v1499_v25 = vadd.f32 %v1493_v55, %v1457_v22  ;;  %v1510_v11 = vmul.f32 %v4431_v44, %v7835_v4  ;;  %v1511_v46 = vmul.f32 %v4432_v30, %v7835_v4 }
 0x10b   : > { %v1500_v36 = vadd.f32 %v1494_v0, %v1458_v45  ;;  %v1501_v50 = vadd.f32 %v1495_v24, %v1459_v26  ;;  %v1502_v12 = vadd.f32 %v1496_v40, %v1460_v53  ;;  %v1512_v20 = vmul.f32 %v5720_v39, %v7835_v4 }
 0x10c   : > { %v1513_v6 = vmul.f32 %v4434_v33, %v7835_v4  ;;  %v1514_v15 = vmul.f32 %v5976_v51, %v7835_v4  ;;  %v1515_v3 = vmul.f32 %v4436_v2, %v7835_v4  ;;  %v1516_v18 = vadd.f32 %v1510_v11, %v1473_v38  ;;  %v7837_v11 = vld [vmem:[#allocation32_spill] sm:$0xff] }
 0x10d   : > { %v1517_v54 = vadd.f32 %v1511_v46, %v1474_v59  ;;  %v1518_v22 = vadd.f32 %v1512_v20, %v1475_v41  ;;  %v1522_v47 = vmul.f32 %v4431_v44, %v7836_v34  ;;  %v1523_v55 = vmul.f32 %v4432_v30, %v7836_v34 }
 0x10e   : > { %v1519_v0 = vadd.f32 %v1513_v6, %v1476_v23  ;;  %v1520_v45 = vadd.f32 %v1514_v15, %v1477_v58  ;;  %v1521_v26 = vadd.f32 %v1515_v3, %v1478_v63  ;;  %v1524_v53 = vmul.f32 %v5720_v39, %v7836_v34  ;;  %v4437_v23 = vld [vmem:[#allocation2 + $0x88] sm:$0xff]  ;;  %v4438_v58 = vld [vmem:[#allocation2 + $0x90] sm:$0x7f] }
 0x10f   : > { %v1525_v24 = vmul.f32 %v4434_v33, %v7836_v34  ;;  %v1526_v40 = vmul.f32 %v5976_v51, %v7836_v34  ;;  %v1527_v4 = vmul.f32 %v4436_v2, %v7836_v34  ;;  %v1528_v38 = vadd.f32 %v1522_v47, %v1485_v31 }
 0x110   : > { %v1529_v59 = vadd.f32 %v1523_v55, %v1486_v48  ;;  %v1530_v41 = vadd.f32 %v1524_v53, %v1487_v29  ;;  %v1534_v46 = vmul.f32 %v4431_v44, %v7837_v11  ;;  %v1535_v20 = vmul.f32 %v4432_v30, %v7837_v11  ;;  %v4440_v29 = vld [vmem:[#allocation2 + $0xb0] sm:$0x7f]  ;;  %v6002_v44 = vld [vmem:[#allocation2 + $0xc8] sm:$0xff] }
 0x111   : > { %v1531_v63 = vadd.f32 %v1525_v24, %v1488_v42  ;;  %v1532_v6 = vadd.f32 %v1526_v40, %v1489_v17  ;;  %v1533_v15 = vadd.f32 %v1527_v4, %v1490_v21  ;;  %v1536_v3 = vmul.f32 %v5720_v39, %v7837_v11  ;;  %v4442_v30 = vld [vmem:[#allocation2 + $0xd0] sm:$0x7f]  ;;  %v7838_v42 = vld [vmem:[#allocation33_spill] sm:$0xff] }
 0x112   : > { %v1537_v1 = vmul.f32 %v4434_v33, %v7837_v11  ;;  %v1538_v34 = vmul.f32 %v5976_v51, %v7837_v11  ;;  %v1539_v31 = vmul.f32 %v4436_v2, %v7837_v11  ;;  %v1540_v48 = vadd.f32 %v1534_v46, %v1497_v49  ;;  %v7839_v46 = vld [vmem:[#allocation34_spill] sm:$0xff] }
 0x113   : > { %v1541_v47 = vadd.f32 %v1535_v20, %v1498_v5  ;;  %v1542_v55 = vadd.f32 %v1536_v3, %v1499_v25  ;;  %v1552_v17 = vmul.f32 %v4437_v23, %v7838_v42  ;;  %v1553_v21 = vmul.f32 %v4438_v58, %v7838_v42 }
 0x114   : > { %v1543_v4 = vadd.f32 %v1537_v1, %v1500_v36  ;;  %v1544_v39 = vadd.f32 %v1538_v34, %v1501_v50  ;;  %v1545_v53 = vadd.f32 %v1539_v31, %v1502_v12  ;;  %v1554_v33 = vmul.f32 %v5758_v35, %v7838_v42 }
 0x115   : > { %v1555_v24 = vmul.f32 %v4440_v29, %v7838_v42  ;;  %v1556_v49 = vmul.f32 %v6002_v44, %v7838_v42  ;;  %v1557_v2 = vmul.f32 %v4442_v30, %v7838_v42  ;;  %v1558_v40 = vadd.f32 %v1552_v17, %v1516_v18  ;;  %v7840_v17 = vld [vmem:[#allocation35_spill] sm:$0xff] }
 0x116   : > { %v1559_v5 = vadd.f32 %v1553_v21, %v1517_v54  ;;  %v1560_v25 = vadd.f32 %v1554_v33, %v1518_v22  ;;  %v1564_v20 = vmul.f32 %v4437_v23, %v7839_v46  ;;  %v1565_v3 = vmul.f32 %v4438_v58, %v7839_v46 }
 0x117   : > { %v1561_v1 = vadd.f32 %v1555_v24, %v1519_v0  ;;  %v1562_v36 = vadd.f32 %v1556_v49, %v1520_v45  ;;  %v1563_v50 = vadd.f32 %v1557_v2, %v1521_v26  ;;  %v1566_v12 = vmul.f32 %v5758_v35, %v7839_v46  ;;  %v4443_v0 = vld [vmem:[#allocation2 + $0x89] sm:$0xff]  ;;  %v4444_v45 = vld [vmem:[#allocation2 + $0x91] sm:$0x7f] }
 0x118   : > { %v1567_v34 = vmul.f32 %v4440_v29, %v7839_v46  ;;  %v1568_v31 = vmul.f32 %v6002_v44, %v7839_v46  ;;  %v1569_v42 = vmul.f32 %v4442_v30, %v7839_v46  ;;  %v1570_v18 = vadd.f32 %v1564_v20, %v1528_v38 }
 0x119   : > { %v1571_v54 = vadd.f32 %v1565_v3, %v1529_v59  ;;  %v1572_v22 = vadd.f32 %v1566_v12, %v1530_v41  ;;  %v1576_v21 = vmul.f32 %v4437_v23, %v7840_v17  ;;  %v1577_v33 = vmul.f32 %v4438_v58, %v7840_v17  ;;  %v4446_v41 = vld [vmem:[#allocation2 + $0xb1] sm:$0x7f]  ;;  %v6028_v23 = vld [vmem:[#allocation2 + $0xc9] sm:$0xff] }
 0x11a   : > { %v1573_v26 = vadd.f32 %v1567_v34, %v1531_v63  ;;  %v1574_v24 = vadd.f32 %v1568_v31, %v1532_v6  ;;  %v1575_v49 = vadd.f32 %v1569_v42, %v1533_v15  ;;  %v1578_v2 = vmul.f32 %v5758_v35, %v7840_v17  ;;  %v4448_v58 = vld [vmem:[#allocation2 + $0xd1] sm:$0x7f] }
 0x11b   : > { %v1579_v11 = vmul.f32 %v4440_v29, %v7840_v17  ;;  %v1580_v46 = vmul.f32 %v6002_v44, %v7840_v17  ;;  %v1581_v38 = vmul.f32 %v4442_v30, %v7840_v17  ;;  %v1582_v59 = vadd.f32 %v1576_v21, %v1540_v48  ;;  %v7841_v63 = vld [vmem:[#allocation36_spill] sm:$0xff]  ;;  %v7842_v21 = vld [vmem:[#allocation37_spill] sm:$0xff] }
 0x11c   : > { %v1583_v20 = vadd.f32 %v1577_v33, %v1541_v47  ;;  %v1584_v3 = vadd.f32 %v1578_v2, %v1542_v55  ;;  %v1594_v6 = vmul.f32 %v4443_v0, %v7841_v63  ;;  %v1595_v15 = vmul.f32 %v4444_v45, %v7841_v63 }
 0x11d   : > { %v1585_v42 = vadd.f32 %v1579_v11, %v1543_v4  ;;  %v1586_v35 = vadd.f32 %v1580_v46, %v1544_v39  ;;  %v1587_v12 = vadd.f32 %v1581_v38, %v1545_v53  ;;  %v1596_v29 = vmul.f32 %v5790_v14, %v7841_v63 }
 0x11e   : > { %v1597_v34 = vmul.f32 %v4446_v41, %v7841_v63  ;;  %v1598_v48 = vmul.f32 %v6028_v23, %v7841_v63  ;;  %v1599_v30 = vmul.f32 %v4448_v58, %v7841_v63  ;;  %v1600_v31 = vadd.f32 %v1594_v6, %v1558_v40  ;;  %v7843_v6 = vld [vmem:[#allocation38_spill] sm:$0xff] }
 0x11f   : > { %v1601_v47 = vadd.f32 %v1595_v15, %v1559_v5  ;;  %v1602_v55 = vadd.f32 %v1596_v29, %v1560_v25  ;;  %v1606_v33 = vmul.f32 %v4443_v0, %v7842_v21  ;;  %v1607_v2 = vmul.f32 %v4444_v45, %v7842_v21 }
 0x120   : > { %v1603_v11 = vadd.f32 %v1597_v34, %v1561_v1  ;;  %v1604_v4 = vadd.f32 %v1598_v48, %v1562_v36  ;;  %v1605_v39 = vadd.f32 %v1599_v30, %v1563_v50  ;;  %v1608_v53 = vmul.f32 %v5790_v14, %v7842_v21  ;;  %v4449_v1 = vld [vmem:[#allocation2 + $0x8a] sm:$0xff]  ;;  %v4450_v36 = vld [vmem:[#allocation2 + $0x92] sm:$0x7f] }
 0x121   : > { %v1609_v46 = vmul.f32 %v4446_v41, %v7842_v21  ;;  %v1610_v38 = vmul.f32 %v6028_v23, %v7842_v21  ;;  %v1611_v63 = vmul.f32 %v4448_v58, %v7842_v21  ;;  %v1612_v40 = vadd.f32 %v1606_v33, %v1570_v18 }
 0x122   : > { %v1613_v5 = vadd.f32 %v1607_v2, %v1571_v54  ;;  %v1614_v25 = vadd.f32 %v1608_v53, %v1572_v22  ;;  %v1618_v15 = vmul.f32 %v4443_v0, %v7843_v6  ;;  %v1619_v29 = vmul.f32 %v4444_v45, %v7843_v6  ;;  %v4452_v22 = vld [vmem:[#allocation2 + $0xb2] sm:$0x7f]  ;;  %v6054_v0 = vld [vmem:[#allocation2 + $0xca] sm:$0xff] }
 0x123   : > { %v1615_v50 = vadd.f32 %v1609_v46, %v1573_v26  ;;  %v1616_v34 = vadd.f32 %v1610_v38, %v1574_v24  ;;  %v1617_v48 = vadd.f32 %v1611_v63, %v1575_v49  ;;  %v1620_v30 = vmul.f32 %v5790_v14, %v7843_v6  ;;  %v4454_v45 = vld [vmem:[#allocation2 + $0xd2] sm:$0x7f]  ;;  %v7844_v26 = vld [vmem:[#allocation39_spill] sm:$0xff] }
 0x124   : > { %v1621_v17 = vmul.f32 %v4446_v41, %v7843_v6  ;;  %v1622_v21 = vmul.f32 %v6028_v23, %v7843_v6  ;;  %v1623_v18 = vmul.f32 %v4448_v58, %v7843_v6  ;;  %v1624_v54 = vadd.f32 %v1618_v15, %v1582_v59  ;;  %v7845_v15 = vld [vmem:[#allocation40_spill] sm:$0xff] }
 0x125   : > { %v1625_v33 = vadd.f32 %v1619_v29, %v1583_v20  ;;  %v1626_v2 = vadd.f32 %v1620_v30, %v1584_v3  ;;  %v1636_v24 = vmul.f32 %v4449_v1, %v7844_v26  ;;  %v1637_v49 = vmul.f32 %v4450_v36, %v7844_v26 }
 0x126   : > { %v1627_v63 = vadd.f32 %v1621_v17, %v1585_v42  ;;  %v1628_v14 = vadd.f32 %v1622_v21, %v1586_v35  ;;  %v1629_v53 = vadd.f32 %v1623_v18, %v1587_v12  ;;  %v1638_v41 = vmul.f32 %v5831_v16, %v7844_v26 }
 0x127   : > { %v1639_v46 = vmul.f32 %v4452_v22, %v7844_v26  ;;  %v1640_v59 = vmul.f32 %v6054_v0, %v7844_v26  ;;  %v1641_v58 = vmul.f32 %v4454_v45, %v7844_v26  ;;  %v1642_v38 = vadd.f32 %v1636_v24, %v1600_v31  ;;  %v7846_v24 = vld [vmem:[#allocation41_spill] sm:$0xff] }
 0x128   : > { %v1643_v20 = vadd.f32 %v1637_v49, %v1601_v47  ;;  %v1644_v3 = vadd.f32 %v1638_v41, %v1602_v55  ;;  %v1648_v29 = vmul.f32 %v4449_v1, %v7845_v15  ;;  %v1649_v30 = vmul.f32 %v4450_v36, %v7845_v15 }
 0x129   : > { %v1645_v17 = vadd.f32 %v1639_v46, %v1603_v11  ;;  %v1646_v42 = vadd.f32 %v1640_v59, %v1604_v4  ;;  %v1647_v35 = vadd.f32 %v1641_v58, %v1605_v39  ;;  %v1650_v12 = vmul.f32 %v5831_v16, %v7845_v15  ;;  %v4455_v11 = vld [vmem:[#allocation2 + $0xa7] sm:$0xff]  ;;  %v4456_v4 = vld [vmem:[#allocation2 + $0xaf] sm:$0x7f] }
 0x12a   : > { %v1651_v21 = vmul.f32 %v4452_v22, %v7845_v15  ;;  %v1652_v18 = vmul.f32 %v6054_v0, %v7845_v15  ;;  %v1653_v26 = vmul.f32 %v4454_v45, %v7845_v15  ;;  %v1654_v31 = vadd.f32 %v1648_v29, %v1612_v40 }
 0x12b   : > { %v1655_v47 = vadd.f32 %v1649_v30, %v1613_v5  ;;  %v1656_v55 = vadd.f32 %v1650_v12, %v1614_v25  ;;  %v1660_v49 = vmul.f32 %v4449_v1, %v7846_v24  ;;  %v1661_v41 = vmul.f32 %v4450_v36, %v7846_v24  ;;  %v4458_v25 = vld [vmem:[#allocation2 + $0xcf] sm:$0x7f]  ;;  %v7847_v30 = vld [vmem:[#allocation42_spill] sm:$0xff] }
 0x12c   : > { %v1657_v39 = vadd.f32 %v1651_v21, %v1615_v50  ;;  %v1658_v46 = vadd.f32 %v1652_v18, %v1616_v34  ;;  %v1659_v59 = vadd.f32 %v1653_v26, %v1617_v48  ;;  %v1662_v58 = vmul.f32 %v5831_v16, %v7846_v24  ;;  %v4460_v1 = vld [vmem:[#allocation2 + $0xef] sm:$0x7f]  ;;  %v6082_v16 = vld [vmem:[#allocation2 + $0xe7] sm:$0xff] }
 0x12d   : > { %v1663_v6 = vmul.f32 %v4452_v22, %v7846_v24  ;;  %v1664_v15 = vmul.f32 %v6054_v0, %v7846_v24  ;;  %v1665_v40 = vmul.f32 %v4454_v45, %v7846_v24  ;;  %v1666_v5 = vadd.f32 %v1660_v49, %v1624_v54  ;;  %v7848_v49 = vld [vmem:[#allocation43_spill] sm:$0xff] }
 0x12e   : > { %v1667_v29 = vadd.f32 %v1661_v41, %v1625_v33  ;;  %v1668_v36 = vadd.f32 %v1662_v58, %v1626_v2  ;;  %v1679_v12 = vmul.f32 %v4455_v11, %v7847_v30  ;;  %v1680_v50 = vmul.f32 %v4456_v4, %v7847_v30 }
 0x12f   : > { %v1669_v34 = vadd.f32 %v1663_v6, %v1627_v63  ;;  %v1670_v48 = vadd.f32 %v1664_v15, %v1628_v14  ;;  %v1671_v26 = vadd.f32 %v1665_v40, %v1629_v53  ;;  %v1681_v22 = vmul.f32 %v5976_v51, %v7847_v30 }
 0x130   : > { %v1682_v21 = vmul.f32 %v4458_v25, %v7847_v30  ;;  %v1683_v54 = vmul.f32 %v6082_v16, %v7847_v30  ;;  %v1684_v45 = vmul.f32 %v4460_v1, %v7847_v30  ;;  %v1685_v33 = vadd.f32 %v1679_v12, %v1642_v38  ;;  %v7849_v12 = vld [vmem:[#allocation44_spill] sm:$0xff] }
 0x131   : > { %v1686_v2 = vadd.f32 %v1680_v50, %v1643_v20  ;;  %v1687_v18 = vadd.f32 %v1681_v22, %v1644_v3  ;;  %v1691_v41 = vmul.f32 %v4455_v11, %v7848_v49  ;;  %v1692_v6 = vmul.f32 %v4456_v4, %v7848_v49 }
 0x132   : > { %v1688_v63 = vadd.f32 %v1682_v21, %v1645_v17  ;;  %v1689_v14 = vadd.f32 %v1683_v54, %v1646_v42  ;;  %v1690_v53 = vadd.f32 %v1684_v45, %v1647_v35  ;;  %v1693_v15 = vmul.f32 %v5976_v51, %v7848_v49  ;;  %v4461_v17 = vld [vmem:[#allocation2 + $0xa8] sm:$0xff]  ;;  %v4462_v42 = vld [vmem:[#allocation2 + $0xb0] sm:$0x7f] }
 0x133   : > { %v1694_v58 = vmul.f32 %v4458_v25, %v7848_v49  ;;  %v1695_v40 = vmul.f32 %v6082_v16, %v7848_v49  ;;  %v1696_v30 = vmul.f32 %v4460_v1, %v7848_v49  ;;  %v1697_v38 = vadd.f32 %v1691_v41, %v1654_v31 }
 0x134   : > { %v1698_v20 = vadd.f32 %v1692_v6, %v1655_v47  ;;  %v1699_v3 = vadd.f32 %v1693_v15, %v1656_v55  ;;  %v1703_v50 = vmul.f32 %v4455_v11, %v7849_v12  ;;  %v1704_v22 = vmul.f32 %v4456_v4, %v7849_v12  ;;  %v4464_v55 = vld [vmem:[#allocation2 + $0xd0] sm:$0x7f]  ;;  %v7850_v6 = vld [vmem:[#allocation45_spill] sm:$0xff] }
 0x135   : > { %v1700_v35 = vadd.f32 %v1694_v58, %v1657_v39  ;;  %v1701_v21 = vadd.f32 %v1695_v40, %v1658_v46  ;;  %v1702_v54 = vadd.f32 %v1696_v30, %v1659_v59  ;;  %v1705_v45 = vmul.f32 %v5976_v51, %v7849_v12  ;;  %v4466_v11 = vld [vmem:[#allocation2 + $0xf0] sm:$0x7f]  ;;  %v6108_v58 = vld [vmem:[#allocation2 + $0xe8] sm:$0xff] }
 0x136   : > { %v1706_v24 = vmul.f32 %v4458_v25, %v7849_v12  ;;  %v1707_v49 = vmul.f32 %v6082_v16, %v7849_v12  ;;  %v1708_v31 = vmul.f32 %v4460_v1, %v7849_v12  ;;  %v1709_v47 = vadd.f32 %v1703_v50, %v1666_v5 }
 0x137   : > { %v1710_v41 = vadd.f32 %v1704_v22, %v1667_v29  ;;  %v1711_v4 = vadd.f32 %v1705_v45, %v1668_v36  ;;  %v1721_v15 = vmul.f32 %v4461_v17, %v7850_v6  ;;  %v1722_v39 = vmul.f32 %v4462_v42, %v7850_v6  ;;  %v7851_v22 = vld [vmem:[#allocation46_spill] sm:$0xff] }
 0x138   : > { %v1712_v46 = vadd.f32 %v1706_v24, %v1669_v34  ;;  %v1713_v59 = vadd.f32 %v1707_v49, %v1670_v48  ;;  %v1714_v30 = vadd.f32 %v1708_v31, %v1671_v26  ;;  %v1723_v25 = vmul.f32 %v6002_v44, %v7850_v6 }
 0x139   : > { %v1724_v40 = vmul.f32 %v4464_v55, %v7850_v6  ;;  %v1725_v5 = vmul.f32 %v6108_v58, %v7850_v6  ;;  %v1726_v1 = vmul.f32 %v4466_v11, %v7850_v6  ;;  %v1727_v29 = vadd.f32 %v1721_v15, %v1685_v33  ;;  %v7852_v15 = vld [vmem:[#allocation47_spill] sm:$0xff] }
 0x13a   : > { %v1728_v36 = vadd.f32 %v1722_v39, %v1686_v2  ;;  %v1729_v50 = vadd.f32 %v1723_v25, %v1687_v18  ;;  %v1733_v45 = vmul.f32 %v4461_v17, %v7851_v22  ;;  %v1734_v24 = vmul.f32 %v4462_v42, %v7851_v22 }
 0x13b   : > { %v1730_v34 = vadd.f32 %v1724_v40, %v1688_v63  ;;  %v1731_v48 = vadd.f32 %v1725_v5, %v1689_v14  ;;  %v1732_v26 = vadd.f32 %v1726_v1, %v1690_v53  ;;  %v1735_v49 = vmul.f32 %v6002_v44, %v7851_v22  ;;  %v4467_v63 = vld [vmem:[#allocation2 + $0xa9] sm:$0xff]  ;;  %v4468_v14 = vld [vmem:[#allocation2 + $0xb1] sm:$0x7f] }
 0x13c   : > { %v1736_v31 = vmul.f32 %v4464_v55, %v7851_v22  ;;  %v1737_v12 = vmul.f32 %v6108_v58, %v7851_v22  ;;  %v1738_v6 = vmul.f32 %v4466_v11, %v7851_v22  ;;  %v1739_v33 = vadd.f32 %v1733_v45, %v1697_v38 }
 0x13d   : > { %v1740_v2 = vadd.f32 %v1734_v24, %v1698_v20  ;;  %v1741_v18 = vadd.f32 %v1735_v49, %v1699_v3  ;;  %v1745_v39 = vmul.f32 %v4461_v17, %v7852_v15  ;;  %v1746_v25 = vmul.f32 %v4462_v42, %v7852_v15  ;;  %v4470_v3 = vld [vmem:[#allocation2 + $0xd1] sm:$0x7f] }
 0x13e   : > { %v1742_v53 = vadd.f32 %v1736_v31, %v1700_v35  ;;  %v1743_v40 = vadd.f32 %v1737_v12, %v1701_v21  ;;  %v1744_v5 = vadd.f32 %v1738_v6, %v1702_v54  ;;  %v1747_v1 = vmul.f32 %v6002_v44, %v7852_v15  ;;  %v4472_v17 = vld [vmem:[#allocation2 + $0xf1] sm:$0x7f]  ;;  %v6134_v6 = vld [vmem:[#allocation2 + $0xe9] sm:$0xff] }
 0x13f   : > { %v1748_v32 = vmul.f32 %v4464_v55, %v7852_v15  ;;  %v1749_v22 = vmul.f32 %v6108_v58, %v7852_v15  ;;  %v1750_v38 = vmul.f32 %v4466_v11, %v7852_v15  ;;  %v1751_v20 = vadd.f32 %v1745_v39, %v1709_v47  ;;  %v7853_v24 = vld [vmem:[#allocation48_spill] sm:$0xff] }
 0x140   : > { %v1752_v45 = vadd.f32 %v1746_v25, %v1710_v41  ;;  %v1753_v42 = vadd.f32 %v1747_v1, %v1711_v4  ;;  %v1763_v49 = vmul.f32 %v4467_v63, %v7853_v24  ;;  %v1764_v12 = vmul.f32 %v4468_v14, %v7853_v24  ;;  %v7854_v25 = vld [vmem:[#allocation49_spill] sm:$0xff] }
 0x141   : > { %v1754_v35 = vadd.f32 %v1748_v32, %v1712_v46  ;;  %v1755_v21 = vadd.f32 %v1749_v22, %v1713_v59  ;;  %v1756_v54 = vadd.f32 %v1750_v38, %v1714_v30  ;;  %v1765_v55 = vmul.f32 %v6028_v23, %v7853_v24 }
 0x142   : > { %v1766_v31 = vmul.f32 %v4470_v3, %v7853_v24  ;;  %v1767_v47 = vmul.f32 %v6134_v6, %v7853_v24  ;;  %v1768_v11 = vmul.f32 %v4472_v17, %v7853_v24  ;;  %v1769_v41 = vadd.f32 %v1763_v49, %v1727_v29  ;;  %v7855_v49 = vld [vmem:[#allocation50_spill] sm:$0xff] }
 0x143   : > { %v1770_v4 = vadd.f32 %v1764_v12, %v1728_v36  ;;  %v1771_v39 = vadd.f32 %v1765_v55, %v1729_v50  ;;  %v1775_v1 = vmul.f32 %v4467_v63, %v7854_v25  ;;  %v1776_v32 = vmul.f32 %v4468_v14, %v7854_v25 }
 0x144   : > { %v1772_v46 = vadd.f32 %v1766_v31, %v1730_v34  ;;  %v1773_v59 = vadd.f32 %v1767_v47, %v1731_v48  ;;  %v1774_v30 = vadd.f32 %v1768_v11, %v1732_v26  ;;  %v1777_v22 = vmul.f32 %v6028_v23, %v7854_v25  ;;  %v4473_v34 = vld [vmem:[#allocation2 + $0xaa] sm:$0xff]  ;;  %v4474_v48 = vld [vmem:[#allocation2 + $0xb2] sm:$0x7f] }
 0x145   : > { %v1778_v38 = vmul.f32 %v4470_v3, %v7854_v25  ;;  %v1779_v15 = vmul.f32 %v6134_v6, %v7854_v25  ;;  %v1780_v24 = vmul.f32 %v4472_v17, %v7854_v25  ;;  %v1781_v29 = vadd.f32 %v1775_v1, %v1739_v33 }
 0x146   : > { %v1782_v36 = vadd.f32 %v1776_v32, %v1740_v2  ;;  %v1783_v50 = vadd.f32 %v1777_v22, %v1741_v18  ;;  %v1787_v12 = vmul.f32 %v4467_v63, %v7855_v49  ;;  %v1788_v55 = vmul.f32 %v4468_v14, %v7855_v49  ;;  %v4476_v18 = vld [vmem:[#allocation2 + $0xd2] sm:$0x7f]  ;;  %v7856_v32 = vld [vmem:[#allocation51_spill] sm:$0xff] }
 0x147   : > { %v1784_v26 = vadd.f32 %v1778_v38, %v1742_v53  ;;  %v1785_v31 = vadd.f32 %v1779_v15, %v1743_v40  ;;  %v1786_v47 = vadd.f32 %v1780_v24, %v1744_v5  ;;  %v1789_v11 = vmul.f32 %v6028_v23, %v7855_v49  ;;  %v4478_v63 = vld [vmem:[#allocation2 + $0xf2] sm:$0x7f]  ;;  %v6160_v24 = vld [vmem:[#allocation2 + $0xea] sm:$0xff] }
 0x148   : > { %v1790_v62 = vmul.f32 %v4470_v3, %v7855_v49  ;;  %v1791_v25 = vmul.f32 %v6134_v6, %v7855_v49  ;;  %v1792_v33 = vmul.f32 %v4472_v17, %v7855_v49  ;;  %v1793_v2 = vadd.f32 %v1787_v12, %v1751_v20 }
 0x149   : > { %v1794_v1 = vadd.f32 %v1788_v55, %v1752_v45  ;;  %v1795_v14 = vadd.f32 %v1789_v11, %v1753_v42  ;;  %v1805_v22 = vmul.f32 %v4473_v34, %v7856_v32  ;;  %v1806_v15 = vmul.f32 %v4474_v48, %v7856_v32  ;;  %v7857_v55 = vld [vmem:[#allocation52_spill] sm:$0xff] }
 0x14a   : > { %v1796_v53 = vadd.f32 %v1790_v62, %v1754_v35  ;;  %v1797_v40 = vadd.f32 %v1791_v25, %v1755_v21  ;;  %v1798_v5 = vadd.f32 %v1792_v33, %v1756_v54  ;;  %v1807_v3 = vmul.f32 %v6054_v0, %v7856_v32 }
 0x14b   : > { %v1808_v38 = vmul.f32 %v4476_v18, %v7856_v32  ;;  %v1809_v20 = vmul.f32 %v6160_v24, %v7856_v32  ;;  %v1810_v17 = vmul.f32 %v4478_v63, %v7856_v32  ;;  %v1811_v45 = vadd.f32 %v1805_v22, %v1769_v41  ;;  %v7858_v22 = vld [vmem:[#allocation53_spill] sm:$0xff] }
 0x14c   : > { %v1812_v42 = vadd.f32 %v1806_v15, %v1770_v4  ;;  %v1813_v12 = vadd.f32 %v1807_v3, %v1771_v39  ;;  %v1817_v11 = vmul.f32 %v4473_v34, %v7857_v55  ;;  %v1818_v62 = vmul.f32 %v4474_v48, %v7857_v55 }
 0x14d   : > { %v1814_v35 = vadd.f32 %v1808_v38, %v1772_v46  ;;  %v1815_v21 = vadd.f32 %v1809_v20, %v1773_v59  ;;  %v1816_v54 = vadd.f32 %v1810_v17, %v1774_v30  ;;  %v1819_v25 = vmul.f32 %v6054_v0, %v7857_v55  ;;  %v4480_v46 = vld [vmem:[#allocation2 + $0xcf] sm:$0x7f] }
 0x14e   : > { %v1820_v33 = vmul.f32 %v4476_v18, %v7857_v55  ;;  %v1821_v49 = vmul.f32 %v6160_v24, %v7857_v55  ;;  %v1822_v32 = vmul.f32 %v4478_v63, %v7857_v55  ;;  %v1823_v41 = vadd.f32 %v1817_v11, %v1781_v29  ;;  %v4484_v11 = vld [vmem:[#allocation2 + $0x10f] sm:$0x7f] }
 0x14f   : > { %v1824_v4 = vadd.f32 %v1818_v62, %v1782_v36  ;;  %v1825_v39 = vadd.f32 %v1819_v25, %v1783_v50  ;;  %v1829_v15 = vmul.f32 %v4473_v34, %v7858_v22  ;;  %v1830_v3 = vmul.f32 %v4474_v48, %v7858_v22  ;;  %v4482_v50 = vld [vmem:[#allocation2 + $0xef] sm:$0x7f]  ;;  %v7859_v48 = vld [vmem:[#allocation54_spill] sm:$0xff] }
 0x150   : > { %v1826_v59 = vadd.f32 %v1820_v33, %v1784_v26  ;;  %v1827_v30 = vadd.f32 %v1821_v49, %v1785_v31  ;;  %v1828_v38 = vadd.f32 %v1822_v32, %v1786_v47  ;;  %v1831_v20 = vmul.f32 %v6054_v0, %v7858_v22  ;;  %v6187_v25 = vld [vmem:[#allocation2 + $0x107] sm:$0xff] }
 0x151   : > { %v1832_v17 = vmul.f32 %v4476_v18, %v7858_v22  ;;  %v1833_v43 = vmul.f32 %v6160_v24, %v7858_v22  ;;  %v1834_v29 = vmul.f32 %v4478_v63, %v7858_v22  ;;  %v1835_v36 = vadd.f32 %v1829_v15, %v1793_v2 }
 0x152   : > { %v1836_v34 = vadd.f32 %v1830_v3, %v1794_v1  ;;  %v1837_v62 = vadd.f32 %v1831_v20, %v1795_v14  ;;  %v1848_v26 = vmul.f32 %v5976_v51, %v7859_v48  ;;  %v1849_v49 = vmul.f32 %v4480_v46, %v7859_v48  ;;  %v7860_v3 = vld [vmem:[#allocation55_spill] sm:$0xff] }
 0x153   : > { %v1838_v31 = vadd.f32 %v1832_v17, %v1796_v53  ;;  %v1839_v47 = vadd.f32 %v1833_v43, %v1797_v40  ;;  %v1840_v32 = vadd.f32 %v1834_v29, %v1798_v5  ;;  %v1850_v18 = vmul.f32 %v6082_v16, %v7859_v48 }
 0x154   : > { %v1851_v63 = vmul.f32 %v4482_v50, %v7859_v48  ;;  %v1852_v2 = vmul.f32 %v6187_v25, %v7859_v48  ;;  %v1853_v1 = vmul.f32 %v4484_v11, %v7859_v48  ;;  %v1854_v14 = vadd.f32 %v1848_v26, %v1811_v45 }
 0x155   : > { %v1855_v33 = vadd.f32 %v1849_v49, %v1812_v42  ;;  %v1856_v15 = vadd.f32 %v1850_v18, %v1813_v12  ;;  %v1860_v53 = vmul.f32 %v5976_v51, %v7860_v3  ;;  %v1861_v43 = vmul.f32 %v4480_v46, %v7860_v3  ;;  %v7861_v49 = vld [vmem:[#allocation56_spill] sm:$0xff] }
 0x156   : > { %v1857_v40 = vadd.f32 %v1851_v63, %v1814_v35  ;;  %v1858_v5 = vadd.f32 %v1852_v2, %v1815_v21  ;;  %v1859_v20 = vadd.f32 %v1853_v1, %v1816_v54  ;;  %v1862_v17 = vmul.f32 %v6082_v16, %v7860_v3  ;;  %v4486_v21 = vld [vmem:[#allocation2 + $0xd0] sm:$0x7f] }
 0x157   : > { %v1863_v29 = vmul.f32 %v4482_v50, %v7860_v3  ;;  %v1864_v22 = vmul.f32 %v6187_v25, %v7860_v3  ;;  %v1865_v45 = vmul.f32 %v4484_v11, %v7860_v3  ;;  %v1866_v42 = vadd.f32 %v1860_v53, %v1823_v41  ;;  %v4490_v53 = vld [vmem:[#allocation2 + $0x110] sm:$0x7f] }
 0x158   : > { %v1867_v12 = vadd.f32 %v1861_v43, %v1824_v4  ;;  %v1868_v26 = vadd.f32 %v1862_v17, %v1825_v39  ;;  %v1872_v18 = vmul.f32 %v5976_v51, %v7861_v49  ;;  %v1873_v35 = vmul.f32 %v4480_v46, %v7861_v49  ;;  %v4488_v39 = vld [vmem:[#allocation2 + $0xf0] sm:$0x7f]  ;;  %v7862_v46 = vld [vmem:[#allocation57_spill] sm:$0xff] }
 0x159   : > { %v1869_v54 = vadd.f32 %v1863_v29, %v1826_v59  ;;  %v1870_v63 = vadd.f32 %v1864_v22, %v1827_v30  ;;  %v1871_v2 = vadd.f32 %v1865_v45, %v1828_v38  ;;  %v1874_v1 = vmul.f32 %v6082_v16, %v7861_v49  ;;  %v6216_v29 = vld [vmem:[#allocation2 + $0x108] sm:$0xff] }
 0x15a   : > { %v1875_v48 = vmul.f32 %v4482_v50, %v7861_v49  ;;  %v1876_v3 = vmul.f32 %v6187_v25, %v7861_v49  ;;  %v1877_v41 = vmul.f32 %v4484_v11, %v7861_v49  ;;  %v1878_v4 = vadd.f32 %v1872_v18, %v1835_v36 }
 0x15b   : > { %v1879_v51 = vadd.f32 %v1873_v35, %v1836_v34  ;;  %v1880_v43 = vadd.f32 %v1874_v1, %v1837_v62  ;;  %v1890_v59 = vmul.f32 %v6002_v44, %v7862_v46  ;;  %v1891_v22 = vmul.f32 %v4486_v21, %v7862_v46 }
 0x15c   : > { %v1881_v30 = vadd.f32 %v1875_v48, %v1838_v31  ;;  %v1882_v38 = vadd.f32 %v1876_v3, %v1839_v47  ;;  %v1883_v17 = vadd.f32 %v1877_v41, %v1840_v32  ;;  %v1892_v50 = vmul.f32 %v6108_v58, %v7862_v46 }
 0x15d   : > { %v1893_v11 = vmul.f32 %v4488_v39, %v7862_v46  ;;  %v1894_v36 = vmul.f32 %v6216_v29, %v7862_v46  ;;  %v1895_v34 = vmul.f32 %v4490_v53, %v7862_v46  ;;  %v1896_v62 = vadd.f32 %v1890_v59, %v1854_v14 }
 0x15e   : > { %v1897_v45 = vadd.f32 %v1891_v22, %v1855_v33  ;;  %v1898_v18 = vadd.f32 %v1892_v50, %v1856_v15  ;;  %v1902_v48 = vmul.f32 %v6002_v44, %v5750_v61  ;;  %v1903_v31 = vmul.f32 %v4486_v21, %v5750_v61 }
 0x15f   : > { %v1899_v47 = vadd.f32 %v1893_v11, %v1857_v40  ;;  %v1900_v32 = vadd.f32 %v1894_v36, %v1858_v5  ;;  %v1901_v3 = vadd.f32 %v1895_v34, %v1859_v20  ;;  %v1904_v35 = vmul.f32 %v6108_v58, %v5750_v61  ;;  %v4492_v5 = vld [vmem:[#allocation2 + $0xd1] sm:$0x7f] }
 0x160   : > { %v1905_v1 = vmul.f32 %v4488_v39, %v5750_v61  ;;  %v1906_v41 = vmul.f32 %v6216_v29, %v5750_v61  ;;  %v1907_v14 = vmul.f32 %v4490_v53, %v5750_v61  ;;  %v1908_v33 = vadd.f32 %v1902_v48, %v1866_v42  ;;  %v4496_v48 = vld [vmem:[#allocation2 + $0x111] sm:$0x7f] }
 0x161   : > { %v1909_v15 = vadd.f32 %v1903_v31, %v1867_v12  ;;  %v1910_v59 = vadd.f32 %v1904_v35, %v1868_v26  ;;  %v1914_v22 = vmul.f32 %v6002_v44, %v5753_v52  ;;  %v1915_v40 = vmul.f32 %v4486_v21, %v5753_v52  ;;  %v4494_v26 = vld [vmem:[#allocation2 + $0xf1] sm:$0x7f] }
 0x162   : > { %v1911_v20 = vadd.f32 %v1905_v1, %v1869_v54  ;;  %v1912_v50 = vadd.f32 %v1906_v41, %v1870_v63  ;;  %v1913_v11 = vadd.f32 %v1907_v14, %v1871_v2  ;;  %v1916_v36 = vmul.f32 %v6108_v58, %v5753_v52  ;;  %v6245_v1 = vld [vmem:[#allocation2 + $0x109] sm:$0xff] }
 0x163   : > { %v1917_v34 = vmul.f32 %v4488_v39, %v5753_v52  ;;  %v1918_v61 = vmul.f32 %v6216_v29, %v5753_v52  ;;  %v1919_v42 = vmul.f32 %v4490_v53, %v5753_v52  ;;  %v1920_v12 = vadd.f32 %v1914_v22, %v1878_v4 }
 0x164   : > { %v1921_v44 = vadd.f32 %v1915_v40, %v1879_v51  ;;  %v1922_v31 = vadd.f32 %v1916_v36, %v1880_v43  ;;  %v1932_v21 = vmul.f32 %v6028_v23, %v5756_v27  ;;  %v1933_v54 = vmul.f32 %v4492_v5, %v5756_v27 }
 0x165   : > { %v1923_v63 = vadd.f32 %v1917_v34, %v1881_v30  ;;  %v1924_v2 = vadd.f32 %v1918_v61, %v1882_v38  ;;  %v1925_v35 = vadd.f32 %v1919_v42, %v1883_v17  ;;  %v1934_v39 = vmul.f32 %v6134_v6, %v5756_v27 }
 0x166   : > { %v1935_v53 = vmul.f32 %v4494_v26, %v5756_v27  ;;  %v1936_v4 = vmul.f32 %v6245_v1, %v5756_v27  ;;  %v1937_v51 = vmul.f32 %v4496_v48, %v5756_v27  ;;  %v1938_v43 = vadd.f32 %v1932_v21, %v1896_v62 }
 0x167   : > { %v1939_v41 = vadd.f32 %v1933_v54, %v1897_v45  ;;  %v1940_v14 = vadd.f32 %v1934_v39, %v1898_v18  ;;  %v1944_v30 = vmul.f32 %v6028_v23, %v5799_v37  ;;  %v1945_v61 = vmul.f32 %v4492_v5, %v5799_v37 }
 0x168   : > { %v1941_v38 = vadd.f32 %v1935_v53, %v1899_v47  ;;  %v1942_v17 = vadd.f32 %v1936_v4, %v1900_v32  ;;  %v1943_v22 = vadd.f32 %v1937_v51, %v1901_v3  ;;  %v1946_v40 = vmul.f32 %v6134_v6, %v5799_v37  ;;  %v4498_v32 = vld [vmem:[#allocation2 + $0xd2] sm:$0x7f] }
 0x169   : > { %v1947_v36 = vmul.f32 %v4494_v26, %v5799_v37  ;;  %v1948_v34 = vmul.f32 %v6245_v1, %v5799_v37  ;;  %v1949_v62 = vmul.f32 %v4496_v48, %v5799_v37  ;;  %v1950_v45 = vadd.f32 %v1944_v30, %v1908_v33  ;;  %v4502_v30 = vld [vmem:[#allocation2 + $0x112] sm:$0x7f] }
 0x16a   : > { %v1951_v18 = vadd.f32 %v1945_v61, %v1909_v15  ;;  %v1952_v42 = vadd.f32 %v1946_v40, %v1910_v59  ;;  %v1956_v21 = vmul.f32 %v6028_v23, %v5802_v28  ;;  %v1957_v47 = vmul.f32 %v4492_v5, %v5802_v28  ;;  %v4500_v59 = vld [vmem:[#allocation2 + $0xf2] sm:$0x7f] }
 0x16b   : > { %v1953_v3 = vadd.f32 %v1947_v36, %v1911_v20  ;;  %v1954_v54 = vadd.f32 %v1948_v34, %v1912_v50  ;;  %v1955_v39 = vadd.f32 %v1949_v62, %v1913_v11  ;;  %v1958_v53 = vmul.f32 %v6134_v6, %v5802_v28  ;;  %v6274_v36 = vld [vmem:[#allocation2 + $0x10a] sm:$0xff] }
 0x16c   : > { %v1959_v4 = vmul.f32 %v4494_v26, %v5802_v28  ;;  %v1960_v51 = vmul.f32 %v6245_v1, %v5802_v28  ;;  %v1961_v33 = vmul.f32 %v4496_v48, %v5802_v28  ;;  %v1962_v15 = vadd.f32 %v1956_v21, %v1920_v12 }
 0x16d   : > { %v1963_v23 = vadd.f32 %v1957_v47, %v1921_v44  ;;  %v1964_v61 = vadd.f32 %v1958_v53, %v1922_v31  ;;  %v1974_v5 = vmul.f32 %v6054_v0, %v5805_v10  ;;  %v1975_v20 = vmul.f32 %v4498_v32, %v5805_v10 }
 0x16e   : > { %v1965_v50 = vadd.f32 %v1959_v4, %v1923_v63  ;;  %v1966_v11 = vadd.f32 %v1960_v51, %v1924_v2  ;;  %v1967_v40 = vadd.f32 %v1961_v33, %v1925_v35  ;;  %v1976_v26 = vmul.f32 %v6160_v24, %v5805_v10 }
 0x16f   : > { %v1977_v48 = vmul.f32 %v4500_v59, %v5805_v10  ;;  %v1978_v12 = vmul.f32 %v6274_v36, %v5805_v10  ;;  %v1979_v44 = vmul.f32 %v4502_v30, %v5805_v10  ;;  %v1980_v31 = vadd.f32 %v1974_v5, %v1938_v43  ;;  %v4514_v10 = vld [vmem:[#allocation2 + $0x10f] sm:$0x7f] }
 0x170   : > { %v1981_v34 = vadd.f32 %v1975_v20, %v1939_v41  ;;  %v1982_v62 = vadd.f32 %v1976_v26, %v1940_v14  ;;  %v1986_v63 = vmul.f32 %v6054_v0, %v5808_v7  ;;  %v1987_v2 = vmul.f32 %v4498_v32, %v5808_v7 }
 0x171   : > { %v1983_v35 = vadd.f32 %v1977_v48, %v1941_v38  ;;  %v1984_v21 = vadd.f32 %v1978_v12, %v1942_v17  ;;  %v1985_v47 = vadd.f32 %v1979_v44, %v1943_v22  ;;  %v1988_v53 = vmul.f32 %v6160_v24, %v5808_v7 }
 0x172   : > { %v1989_v4 = vmul.f32 %v4500_v59, %v5808_v7  ;;  %v1990_v51 = vmul.f32 %v6274_v36, %v5808_v7  ;;  %v1991_v43 = vmul.f32 %v4502_v30, %v5808_v7  ;;  %v1992_v41 = vadd.f32 %v1986_v63, %v1950_v45  ;;  %v4512_v7 = vld [vmem:[#allocation2 + $0xef] sm:$0x7f] }
 0x173   : > { %v1993_v14 = vadd.f32 %v1987_v2, %v1951_v18  ;;  %v1994_v33 = vadd.f32 %v1988_v53, %v1952_v42  ;;  %v1998_v5 = vmul.f32 %v6054_v0, %v5851_v19  ;;  %v1999_v38 = vmul.f32 %v4498_v32, %v5851_v19  ;;  %v4509_v2 = vld [vmem:[#allocation2 + $0xc7] sm:$0xff]  ;;  %v4510_v32 = vld [vmem:[#allocation2 + $0xcf] sm:$0x7f] }
 0x174   : > { %v1995_v17 = vadd.f32 %v1989_v4, %v1953_v3  ;;  %v1996_v22 = vadd.f32 %v1990_v51, %v1954_v54  ;;  %v1997_v20 = vadd.f32 %v1991_v43, %v1955_v39  ;;  %v2000_v26 = vmul.f32 %v6160_v24, %v5851_v19 }
 0x175   : > { %v2001_v48 = vmul.f32 %v4500_v59, %v5851_v19  ;;  %v2002_v12 = vmul.f32 %v6274_v36, %v5851_v19  ;;  %v2003_v45 = vmul.f32 %v4502_v30, %v5851_v19  ;;  %v2004_v18 = vadd.f32 %v1998_v5, %v1962_v15 }
 0x176   : > { %v2005_v42 = vadd.f32 %v1999_v38, %v1963_v23  ;;  %v2006_v44 = vadd.f32 %v2000_v26, %v1964_v61  ;;  %v2010_v63 = vmul.f32 %v1992_v41, %v1980_v31  ;;  %v2011_v0 = vmul.f32 %v1993_v14, %v1981_v34 }
 0x177   : > { %v2007_v3 = vadd.f32 %v2001_v48, %v1965_v50  ;;  %v2008_v54 = vadd.f32 %v2002_v12, %v1966_v11  ;;  %v2009_v39 = vadd.f32 %v2003_v45, %v1967_v40  ;;  %v2012_v53 = vmul.f32 %v1994_v33, %v1982_v62  ;;  %v4893_v45 = vld [vmem:[%s7607_s4] ss:$0 sm:$0xff] }
 0x178   : > { %v2013_v4 = vmul.f32 %v1995_v17, %v1983_v35  ;;  %v2014_v59 = vmul.f32 %v1996_v22, %v1984_v21  ;;  %v2015_v51 = vmul.f32 %v1997_v20, %v1985_v47  ;;  %v2016_v43 = vadd.f32 %v2010_v63, %v2004_v18  ;;  %v4892_v21 = vld [vmem:[%s7605_s2] ss:$0 sm:$0xff] }
 0x179   : > { %v2017_v15 = vadd.f32 %v2011_v0, %v2005_v42  ;;  %v2018_v30 = vadd.f32 %v2012_v53, %v2006_v44  ;;  %v2035_v23 = vmul.f32 %v4509_v2, %v5235_v8  ;;  %v2036_v61 = vmul.f32 %v4510_v32, %v5235_v8 }
 0x17a   : > { %v2019_v31 = vadd.f32 %v2013_v4, %v2007_v3  ;;  %v2020_v50 = vadd.f32 %v2014_v59, %v2008_v54  ;;  %v2021_v11 = vadd.f32 %v2015_v51, %v2009_v39  ;;  %4503 = vst [vmem:[%s5172_s28 + $0x30] sm:$0xff] %v2016_v43  ;;  %v2037_v40 = vmul.f32 %v6082_v16, %v5235_v8  ;;  %v4515_v3 = vld [vmem:[#allocation2 + $0xc8] sm:$0xff]  ;;  %v4516_v54 = vld [vmem:[#allocation2 + $0xd0] sm:$0x7f] }
 0x17b   : > { %4504 = vst [vmem:[%s5172_s28 + $0x38] sm:$0x7f] %v2017_v15  ;;  %v2038_v34 = vmul.f32 %v4512_v7, %v5235_v8  ;;  %v2039_v62 = vmul.f32 %v6187_v25, %v5235_v8  ;;  %v2040_v35 = vmul.f32 %v4514_v10, %v5235_v8  ;;  %v2041_v47 = vadd.f32 %v4892_v21, %v2035_v23  ;;  %v4520_v23 = vld [vmem:[#allocation2 + $0x110] sm:$0x7f] }
 0x17c   : > { %4505 = vst [vmem:[%s5172_s28 + $0x40] sm:$0xff] %v2018_v30  ;;  %v2042_v41 = vadd.f32 %v4892_v21, %v2036_v61  ;;  %v2043_v14 = vadd.f32 %v4892_v21, %v2037_v40  ;;  %v2047_v33 = vmul.f32 %v4509_v2, %v5238_v9  ;;  %v2048_v5 = vmul.f32 %v4510_v32, %v5238_v9  ;;  %v4518_v30 = vld [vmem:[#allocation2 + $0xf0] sm:$0x7f] }
 0x17d   : > { %4506 = vst [vmem:[%s5172_s28 + $0x48] sm:$0x7f] %v2019_v31  ;;  %v2044_v38 = vadd.f32 %v4892_v21, %v2038_v34  ;;  %v2045_v17 = vadd.f32 %v4892_v21, %v2039_v62  ;;  %v2046_v22 = vadd.f32 %v4892_v21, %v2040_v35  ;;  %v2049_v20 = vmul.f32 %v6082_v16, %v5238_v9 }
 0x17e   : > { %4507 = vst [vmem:[%s5172_s28 + $0x50] sm:$0xff] %v2020_v50  ;;  %v2050_v26 = vmul.f32 %v4512_v7, %v5238_v9  ;;  %v2051_v48 = vmul.f32 %v6187_v25, %v5238_v9  ;;  %v2052_v12 = vmul.f32 %v4514_v10, %v5238_v9  ;;  %v2053_v18 = vadd.f32 %v4893_v45, %v2047_v33 }
 0x17f   : > { %4508 = vst [vmem:[%s5172_s28 + $0x58] sm:$0x7f] %v2021_v11  ;;  %v2054_v42 = vadd.f32 %v4893_v45, %v2048_v5  ;;  %v2055_v44 = vadd.f32 %v4893_v45, %v2049_v20  ;;  %v2059_v63 = vmul.f32 %v4509_v2, %v5243_v13  ;;  %v2060_v0 = vmul.f32 %v4510_v32, %v5243_v13  ;;  %v4894_v2 = vld [vmem:[%s7609_s6] ss:$0 sm:$0xff] }
 0x180   : > { %v2056_v39 = vadd.f32 %v4893_v45, %v2050_v26  ;;  %v2057_v53 = vadd.f32 %v4893_v45, %v2051_v48  ;;  %v2058_v4 = vadd.f32 %v4893_v45, %v2052_v12  ;;  %v2061_v59 = vmul.f32 %v6082_v16, %v5243_v13 }
 0x181   : > { %v2062_v51 = vmul.f32 %v4512_v7, %v5243_v13  ;;  %v2063_v43 = vmul.f32 %v6187_v25, %v5243_v13  ;;  %v2064_v15 = vmul.f32 %v4514_v10, %v5243_v13  ;;  %v2065_v32 = vadd.f32 %v4894_v2, %v2059_v63 }
 0x182   : > { %v2066_v61 = vadd.f32 %v4894_v2, %v2060_v0  ;;  %v2067_v31 = vadd.f32 %v4894_v2, %v2061_v59  ;;  %v2077_v50 = vmul.f32 %v4515_v3, %v5280_v56  ;;  %v2078_v16 = vmul.f32 %v4516_v54, %v5280_v56 }
 0x183   : > { %v2068_v11 = vadd.f32 %v4894_v2, %v2062_v51  ;;  %v2069_v7 = vadd.f32 %v4894_v2, %v2063_v43  ;;  %v2070_v40 = vadd.f32 %v4894_v2, %v2064_v15  ;;  %v2079_v34 = vmul.f32 %v6108_v58, %v5280_v56 }
 0x184   : > { %v2080_v10 = vmul.f32 %v4518_v30, %v5280_v56  ;;  %v2081_v62 = vmul.f32 %v6216_v29, %v5280_v56  ;;  %v2082_v35 = vmul.f32 %v4520_v23, %v5280_v56  ;;  %v2083_v21 = vadd.f32 %v2077_v50, %v2041_v47 }
 0x185   : > { %v2084_v33 = vadd.f32 %v2078_v16, %v2042_v41  ;;  %v2085_v5 = vadd.f32 %v2079_v34, %v2043_v14  ;;  %v2089_v20 = vmul.f32 %v4515_v3, %v5283_v57  ;;  %v2090_v26 = vmul.f32 %v4516_v54, %v5283_v57 }
 0x186   : > { %v2086_v48 = vadd.f32 %v2080_v10, %v2044_v38  ;;  %v2087_v12 = vadd.f32 %v2081_v62, %v2045_v17  ;;  %v2088_v45 = vadd.f32 %v2082_v35, %v2046_v22  ;;  %v2091_v63 = vmul.f32 %v6108_v58, %v5283_v57  ;;  %v4521_v38 = vld [vmem:[#allocation2 + $0xc9] sm:$0xff]  ;;  %v4522_v17 = vld [vmem:[#allocation2 + $0xd1] sm:$0x7f] }
 0x187   : > { %v2092_v0 = vmul.f32 %v4518_v30, %v5283_v57  ;;  %v2093_v59 = vmul.f32 %v6216_v29, %v5283_v57  ;;  %v2094_v51 = vmul.f32 %v4520_v23, %v5283_v57  ;;  %v2095_v47 = vadd.f32 %v2089_v20, %v2053_v18  ;;  %v7863_v35 = vld [vmem:[#allocation24_spill] sm:$0xff] }
 0x188   : > { %v2096_v41 = vadd.f32 %v2090_v26, %v2054_v42  ;;  %v2097_v14 = vadd.f32 %v2091_v63, %v2055_v44  ;;  %v2101_v43 = vmul.f32 %v4515_v3, %v5286_v60  ;;  %v2102_v15 = vmul.f32 %v4516_v54, %v5286_v60  ;;  %v4524_v44 = vld [vmem:[#allocation2 + $0xf1] sm:$0x7f] }
 0x189   : > { %v2098_v22 = vadd.f32 %v2092_v0, %v2056_v39  ;;  %v2099_v2 = vadd.f32 %v2093_v59, %v2057_v53  ;;  %v2100_v50 = vadd.f32 %v2094_v51, %v2058_v4  ;;  %v2103_v16 = vmul.f32 %v6108_v58, %v5286_v60  ;;  %v4526_v3 = vld [vmem:[#allocation2 + $0x111] sm:$0x7f]  ;;  %v7864_v0 = vld [vmem:[#allocation25_spill] sm:$0xff] }
 0x18a   : > { %v2104_v34 = vmul.f32 %v4518_v30, %v5286_v60  ;;  %v2105_v10 = vmul.f32 %v6216_v29, %v5286_v60  ;;  %v2106_v18 = vmul.f32 %v4520_v23, %v5286_v60  ;;  %v2107_v42 = vadd.f32 %v2101_v43, %v2065_v32 }
 0x18b   : > { %v2108_v62 = vadd.f32 %v2102_v15, %v2066_v61  ;;  %v2109_v54 = vadd.f32 %v2103_v16, %v2067_v31  ;;  %v2119_v20 = vmul.f32 %v4521_v38, %v7863_v35  ;;  %v2120_v39 = vmul.f32 %v4522_v17, %v7863_v35 }
 0x18c   : > { %v2110_v53 = vadd.f32 %v2104_v34, %v2068_v11  ;;  %v2111_v4 = vadd.f32 %v2105_v10, %v2069_v7  ;;  %v2112_v26 = vadd.f32 %v2106_v18, %v2070_v40  ;;  %v2121_v58 = vmul.f32 %v6134_v6, %v7863_v35  ;;  %v7865_v10 = vld [vmem:[#allocation26_spill] sm:$0xff] }
 0x18d   : > { %v2122_v30 = vmul.f32 %v4524_v44, %v7863_v35  ;;  %v2123_v23 = vmul.f32 %v6245_v1, %v7863_v35  ;;  %v2124_v32 = vmul.f32 %v4526_v3, %v7863_v35  ;;  %v2125_v63 = vadd.f32 %v2119_v20, %v2083_v21 }
 0x18e   : > { %v2126_v61 = vadd.f32 %v2120_v39, %v2084_v33  ;;  %v2127_v31 = vadd.f32 %v2121_v58, %v2085_v5  ;;  %v2131_v59 = vmul.f32 %v4521_v38, %v7864_v0  ;;  %v2132_v51 = vmul.f32 %v4522_v17, %v7864_v0 }
 0x18f   : > { %v2128_v11 = vadd.f32 %v2122_v30, %v2086_v48  ;;  %v2129_v7 = vadd.f32 %v2123_v23, %v2087_v12  ;;  %v2130_v40 = vadd.f32 %v2124_v32, %v2088_v45  ;;  %v2133_v43 = vmul.f32 %v6134_v6, %v7864_v0  ;;  %v4527_v48 = vld [vmem:[#allocation2 + $0xca] sm:$0xff]  ;;  %v4528_v12 = vld [vmem:[#allocation2 + $0xd2] sm:$0x7f] }
 0x190   : > { %v2134_v15 = vmul.f32 %v4524_v44, %v7864_v0  ;;  %v2135_v16 = vmul.f32 %v6245_v1, %v7864_v0  ;;  %v2136_v34 = vmul.f32 %v4526_v3, %v7864_v0  ;;  %v2137_v21 = vadd.f32 %v2131_v59, %v2095_v47 }
 0x191   : > { %v2138_v33 = vadd.f32 %v2132_v51, %v2096_v41  ;;  %v2139_v5 = vadd.f32 %v2133_v43, %v2097_v14  ;;  %v2143_v18 = vmul.f32 %v4521_v38, %v7865_v10  ;;  %v2144_v20 = vmul.f32 %v4522_v17, %v7865_v10  ;;  %v4530_v14 = vld [vmem:[#allocation2 + $0xf2] sm:$0x7f]  ;;  %v7866_v51 = vld [vmem:[#allocation27_spill] sm:$0xff] }
 0x192   : > { %v2140_v45 = vadd.f32 %v2134_v15, %v2098_v22  ;;  %v2141_v39 = vadd.f32 %v2135_v16, %v2099_v2  ;;  %v2142_v58 = vadd.f32 %v2136_v34, %v2100_v50  ;;  %v2145_v30 = vmul.f32 %v6134_v6, %v7865_v10  ;;  %v4532_v38 = vld [vmem:[#allocation2 + $0x112] sm:$0x7f] }
 0x193   : > { %v2146_v23 = vmul.f32 %v4524_v44, %v7865_v10  ;;  %v2147_v32 = vmul.f32 %v6245_v1, %v7865_v10  ;;  %v2148_v47 = vmul.f32 %v4526_v3, %v7865_v10  ;;  %v2149_v41 = vadd.f32 %v2143_v18, %v2107_v42  ;;  %v7867_v34 = vld [vmem:[#allocation28_spill] sm:$0xff] }
 0x194   : > { %v2150_v59 = vadd.f32 %v2144_v20, %v2108_v62  ;;  %v2151_v17 = vadd.f32 %v2145_v30, %v2109_v54  ;;  %v2161_v43 = vmul.f32 %v4527_v48, %v7866_v51  ;;  %v2162_v22 = vmul.f32 %v4528_v12, %v7866_v51 }
 0x195   : > { %v2152_v2 = vadd.f32 %v2146_v23, %v2110_v53  ;;  %v2153_v50 = vadd.f32 %v2147_v32, %v2111_v4  ;;  %v2154_v15 = vadd.f32 %v2148_v47, %v2112_v26  ;;  %v2163_v6 = vmul.f32 %v6160_v24, %v7866_v51 }
 0x196   : > { %v2164_v44 = vmul.f32 %v4530_v14, %v7866_v51  ;;  %v2165_v3 = vmul.f32 %v6274_v36, %v7866_v51  ;;  %v2166_v42 = vmul.f32 %v4532_v38, %v7866_v51  ;;  %v2167_v16 = vadd.f32 %v2161_v43, %v2125_v63  ;;  %v7868_v43 = vld [vmem:[#allocation29_spill] sm:$0xff] }
 0x197   : > { %v2168_v62 = vadd.f32 %v2162_v22, %v2126_v61  ;;  %v2169_v54 = vadd.f32 %v2163_v6, %v2127_v31  ;;  %v2173_v18 = vmul.f32 %v4527_v48, %v7867_v34  ;;  %v2174_v20 = vmul.f32 %v4528_v12, %v7867_v34 }
 0x198   : > { %v2170_v53 = vadd.f32 %v2164_v44, %v2128_v11  ;;  %v2171_v4 = vadd.f32 %v2165_v3, %v2129_v7  ;;  %v2172_v26 = vadd.f32 %v2166_v42, %v2130_v40  ;;  %v2175_v30 = vmul.f32 %v6160_v24, %v7867_v34  ;;  %v4533_v11 = vld [vmem:[#allocation2 + $0xe7] sm:$0xff]  ;;  %v4534_v7 = vld [vmem:[#allocation2 + $0xef] sm:$0x7f] }
 0x199   : > { %v2176_v23 = vmul.f32 %v4530_v14, %v7867_v34  ;;  %v2177_v32 = vmul.f32 %v6274_v36, %v7867_v34  ;;  %v2178_v47 = vmul.f32 %v4532_v38, %v7867_v34  ;;  %v2179_v63 = vadd.f32 %v2173_v18, %v2137_v21 }
 0x19a   : > { %v2180_v61 = vadd.f32 %v2174_v20, %v2138_v33  ;;  %v2181_v31 = vadd.f32 %v2175_v30, %v2139_v5  ;;  %v2185_v22 = vmul.f32 %v4527_v48, %v7868_v43  ;;  %v2186_v6 = vmul.f32 %v4528_v12, %v7868_v43  ;;  %v4536_v5 = vld [vmem:[#allocation2 + $0x10f] sm:$0x7f]  ;;  %v6411_v48 = vld [vmem:[#allocation2 + $0x127] sm:$0xff] }
 0x19b   : > { %v2182_v40 = vadd.f32 %v2176_v23, %v2140_v45  ;;  %v2183_v44 = vadd.f32 %v2177_v32, %v2141_v39  ;;  %v2184_v3 = vadd.f32 %v2178_v47, %v2142_v58  ;;  %v2187_v42 = vmul.f32 %v6160_v24, %v7868_v43  ;;  %v4538_v12 = vld [vmem:[#allocation2 + $0x12f] sm:$0x7f]  ;;  %v7869_v45 = vld [vmem:[#allocation30_spill] sm:$0xff] }
 0x19c   : > { %v2188_v51 = vmul.f32 %v4530_v14, %v7868_v43  ;;  %v2189_v34 = vmul.f32 %v6274_v36, %v7868_v43  ;;  %v2190_v21 = vmul.f32 %v4532_v38, %v7868_v43  ;;  %v2191_v33 = vadd.f32 %v2185_v22, %v2149_v41  ;;  %v7870_v22 = vld [vmem:[#allocation31_spill] sm:$0xff] }
 0x19d   : > { %v2192_v18 = vadd.f32 %v2186_v6, %v2150_v59  ;;  %v2193_v20 = vadd.f32 %v2187_v42, %v2151_v17  ;;  %v2204_v39 = vmul.f32 %v4533_v11, %v7869_v45  ;;  %v2205_v58 = vmul.f32 %v4534_v7, %v7869_v45 }
 0x19e   : > { %v2194_v30 = vadd.f32 %v2188_v51, %v2152_v2  ;;  %v2195_v24 = vadd.f32 %v2189_v34, %v2153_v50  ;;  %v2196_v23 = vadd.f32 %v2190_v21, %v2154_v15  ;;  %v2206_v14 = vmul.f32 %v6187_v25, %v7869_v45 }
 0x19f   : > { %v2207_v32 = vmul.f32 %v4536_v5, %v7869_v45  ;;  %v2208_v41 = vmul.f32 %v6411_v48, %v7869_v45  ;;  %v2209_v38 = vmul.f32 %v4538_v12, %v7869_v45  ;;  %v2210_v47 = vadd.f32 %v2204_v39, %v2167_v16  ;;  %v7871_v39 = vld [vmem:[#allocation32_spill] sm:$0xff] }
 0x1a0   : > { %v2211_v59 = vadd.f32 %v2205_v58, %v2168_v62  ;;  %v2212_v17 = vadd.f32 %v2206_v14, %v2169_v54  ;;  %v2216_v6 = vmul.f32 %v4533_v11, %v7870_v22  ;;  %v2217_v42 = vmul.f32 %v4534_v7, %v7870_v22 }
 0x1a1   : > { %v2213_v51 = vadd.f32 %v2207_v32, %v2170_v53  ;;  %v2214_v2 = vadd.f32 %v2208_v41, %v2171_v4  ;;  %v2215_v50 = vadd.f32 %v2209_v38, %v2172_v26  ;;  %v2218_v15 = vmul.f32 %v6187_v25, %v7870_v22  ;;  %v4539_v53 = vld [vmem:[#allocation2 + $0xe8] sm:$0xff]  ;;  %v4540_v4 = vld [vmem:[#allocation2 + $0xf0] sm:$0x7f] }
 0x1a2   : > { %v2219_v34 = vmul.f32 %v4536_v5, %v7870_v22  ;;  %v2220_v21 = vmul.f32 %v6411_v48, %v7870_v22  ;;  %v2221_v45 = vmul.f32 %v4538_v12, %v7870_v22  ;;  %v2222_v16 = vadd.f32 %v2216_v6, %v2179_v63 }
 0x1a3   : > { %v2223_v62 = vadd.f32 %v2217_v42, %v2180_v61  ;;  %v2224_v54 = vadd.f32 %v2218_v15, %v2181_v31  ;;  %v2228_v58 = vmul.f32 %v4533_v11, %v7871_v39  ;;  %v2229_v14 = vmul.f32 %v4534_v7, %v7871_v39  ;;  %v4542_v31 = vld [vmem:[#allocation2 + $0x110] sm:$0x7f]  ;;  %v6437_v11 = vld [vmem:[#allocation2 + $0x128] sm:$0xff] }
 0x1a4   : > { %v2225_v26 = vadd.f32 %v2219_v34, %v2182_v40  ;;  %v2226_v32 = vadd.f32 %v2220_v21, %v2183_v44  ;;  %v2227_v41 = vadd.f32 %v2221_v45, %v2184_v3  ;;  %v2230_v38 = vmul.f32 %v6187_v25, %v7871_v39  ;;  %v4544_v7 = vld [vmem:[#allocation2 + $0x130] sm:$0x7f]  ;;  %v7872_v40 = vld [vmem:[#allocation33_spill] sm:$0xff] }
 0x1a5   : > { %v2231_v43 = vmul.f32 %v4536_v5, %v7871_v39  ;;  %v2232_v22 = vmul.f32 %v6411_v48, %v7871_v39  ;;  %v2233_v63 = vmul.f32 %v4538_v12, %v7871_v39  ;;  %v2234_v61 = vadd.f32 %v2228_v58, %v2191_v33  ;;  %v7873_v58 = vld [vmem:[#allocation34_spill] sm:$0xff] }
 0x1a6   : > { %v2235_v6 = vadd.f32 %v2229_v14, %v2192_v18  ;;  %v2236_v42 = vadd.f32 %v2230_v38, %v2193_v20  ;;  %v2246_v44 = vmul.f32 %v4539_v53, %v7872_v40  ;;  %v2247_v3 = vmul.f32 %v4540_v4, %v7872_v40 }
 0x1a7   : > { %v2237_v45 = vadd.f32 %v2231_v43, %v2194_v30  ;;  %v2238_v25 = vadd.f32 %v2232_v22, %v2195_v24  ;;  %v2239_v15 = vadd.f32 %v2233_v63, %v2196_v23  ;;  %v2248_v5 = vmul.f32 %v6216_v29, %v7872_v40 }
 0x1a8   : > { %v2249_v34 = vmul.f32 %v4542_v31, %v7872_v40  ;;  %v2250_v33 = vmul.f32 %v6437_v11, %v7872_v40  ;;  %v2251_v12 = vmul.f32 %v4544_v7, %v7872_v40  ;;  %v2252_v21 = vadd.f32 %v2246_v44, %v2210_v47  ;;  %v7874_v44 = vld [vmem:[#allocation35_spill] sm:$0xff] }
 0x1a9   : > { %v2253_v18 = vadd.f32 %v2247_v3, %v2211_v59  ;;  %v2254_v20 = vadd.f32 %v2248_v5, %v2212_v17  ;;  %v2258_v14 = vmul.f32 %v4539_v53, %v7873_v58  ;;  %v2259_v38 = vmul.f32 %v4540_v4, %v7873_v58 }
 0x1aa   : > { %v2255_v43 = vadd.f32 %v2249_v34, %v2213_v51  ;;  %v2256_v30 = vadd.f32 %v2250_v33, %v2214_v2  ;;  %v2257_v24 = vadd.f32 %v2251_v12, %v2215_v50  ;;  %v2260_v23 = vmul.f32 %v6216_v29, %v7873_v58  ;;  %v4545_v51 = vld [vmem:[#allocation2 + $0xe9] sm:$0xff]  ;;  %v4546_v2 = vld [vmem:[#allocation2 + $0xf1] sm:$0x7f] }
 0x1ab   : > { %v2261_v22 = vmul.f32 %v4542_v31, %v7873_v58  ;;  %v2262_v63 = vmul.f32 %v6437_v11, %v7873_v58  ;;  %v2263_v40 = vmul.f32 %v4544_v7, %v7873_v58  ;;  %v2264_v47 = vadd.f32 %v2258_v14, %v2222_v16 }
 0x1ac   : > { %v2265_v59 = vadd.f32 %v2259_v38, %v2223_v62  ;;  %v2266_v17 = vadd.f32 %v2260_v23, %v2224_v54  ;;  %v2270_v3 = vmul.f32 %v4539_v53, %v7874_v44  ;;  %v2271_v5 = vmul.f32 %v4540_v4, %v7874_v44  ;;  %v4548_v54 = vld [vmem:[#allocation2 + $0x111] sm:$0x7f]  ;;  %v6463_v53 = vld [vmem:[#allocation2 + $0x129] sm:$0xff] }
 0x1ad   : > { %v2267_v50 = vadd.f32 %v2261_v22, %v2225_v26  ;;  %v2268_v34 = vadd.f32 %v2262_v63, %v2226_v32  ;;  %v2269_v33 = vadd.f32 %v2263_v40, %v2227_v41  ;;  %v2272_v12 = vmul.f32 %v6216_v29, %v7874_v44  ;;  %v4550_v4 = vld [vmem:[#allocation2 + $0x131] sm:$0x7f] }
 0x1ae   : > { %v2273_v39 = vmul.f32 %v4542_v31, %v7874_v44  ;;  %v2274_v58 = vmul.f32 %v6437_v11, %v7874_v44  ;;  %v2275_v16 = vmul.f32 %v4544_v7, %v7874_v44  ;;  %v2276_v62 = vadd.f32 %v2270_v3, %v2234_v61  ;;  %v7875_v26 = vld [vmem:[#allocation36_spill] sm:$0xff]  ;;  %v7876_v3 = vld [vmem:[#allocation37_spill] sm:$0xff] }
 0x1af   : > { %v2277_v14 = vadd.f32 %v2271_v5, %v2235_v6  ;;  %v2278_v38 = vadd.f32 %v2272_v12, %v2236_v42  ;;  %v2288_v32 = vmul.f32 %v4545_v51, %v7875_v26  ;;  %v2289_v41 = vmul.f32 %v4546_v2, %v7875_v26 }
 0x1b0   : > { %v2279_v40 = vadd.f32 %v2273_v39, %v2237_v45  ;;  %v2280_v29 = vadd.f32 %v2274_v58, %v2238_v25  ;;  %v2281_v23 = vadd.f32 %v2275_v16, %v2239_v15  ;;  %v2290_v31 = vmul.f32 %v6245_v1, %v7875_v26 }
 0x1b1   : > { %v2291_v22 = vmul.f32 %v4548_v54, %v7875_v26  ;;  %v2292_v61 = vmul.f32 %v6463_v53, %v7875_v26  ;;  %v2293_v7 = vmul.f32 %v4550_v4, %v7875_v26  ;;  %v2294_v63 = vadd.f32 %v2288_v32, %v2252_v21  ;;  %v7877_v32 = vld [vmem:[#allocation38_spill] sm:$0xff] }
 0x1b2   : > { %v2295_v6 = vadd.f32 %v2289_v41, %v2253_v18  ;;  %v2296_v42 = vadd.f32 %v2290_v31, %v2254_v20  ;;  %v2300_v5 = vmul.f32 %v4545_v51, %v7876_v3  ;;  %v2301_v12 = vmul.f32 %v4546_v2, %v7876_v3 }
 0x1b3   : > { %v2297_v39 = vadd.f32 %v2291_v22, %v2255_v43  ;;  %v2298_v45 = vadd.f32 %v2292_v61, %v2256_v30  ;;  %v2299_v25 = vadd.f32 %v2293_v7, %v2257_v24  ;;  %v2302_v15 = vmul.f32 %v6245_v1, %v7876_v3  ;;  %v4551_v43 = vld [vmem:[#allocation2 + $0xea] sm:$0xff]  ;;  %v4552_v30 = vld [vmem:[#allocation2 + $0xf2] sm:$0x7f] }
 0x1b4   : > { %v2303_v58 = vmul.f32 %v4548_v54, %v7876_v3  ;;  %v2304_v16 = vmul.f32 %v6463_v53, %v7876_v3  ;;  %v2305_v26 = vmul.f32 %v4550_v4, %v7876_v3  ;;  %v2306_v21 = vadd.f32 %v2300_v5, %v2264_v47 }
 0x1b5   : > { %v2307_v18 = vadd.f32 %v2301_v12, %v2265_v59  ;;  %v2308_v20 = vadd.f32 %v2302_v15, %v2266_v17  ;;  %v2312_v41 = vmul.f32 %v4545_v51, %v7877_v32  ;;  %v2313_v31 = vmul.f32 %v4546_v2, %v7877_v32  ;;  %v4554_v17 = vld [vmem:[#allocation2 + $0x112] sm:$0x7f]  ;;  %v6489_v51 = vld [vmem:[#allocation2 + $0x12a] sm:$0xff] }
 0x1b6   : > { %v2309_v24 = vadd.f32 %v2303_v58, %v2267_v50  ;;  %v2310_v22 = vadd.f32 %v2304_v16, %v2268_v34  ;;  %v2311_v61 = vadd.f32 %v2305_v26, %v2269_v33  ;;  %v2314_v7 = vmul.f32 %v6245_v1, %v7877_v32  ;;  %v4556_v2 = vld [vmem:[#allocation2 + $0x132] sm:$0x7f]  ;;  %v7878_v50 = vld [vmem:[#allocation39_spill] sm:$0xff] }
 0x1b7   : > { %v2315_v44 = vmul.f32 %v4548_v54, %v7877_v32  ;;  %v2316_v3 = vmul.f32 %v6463_v53, %v7877_v32  ;;  %v2317_v47 = vmul.f32 %v4550_v4, %v7877_v32  ;;  %v2318_v59 = vadd.f32 %v2312_v41, %v2276_v62  ;;  %v7879_v41 = vld [vmem:[#allocation40_spill] sm:$0xff] }
 0x1b8   : > { %v2319_v5 = vadd.f32 %v2313_v31, %v2277_v14  ;;  %v2320_v12 = vadd.f32 %v2314_v7, %v2278_v38  ;;  %v2330_v34 = vmul.f32 %v4551_v43, %v7878_v50  ;;  %v2331_v33 = vmul.f32 %v4552_v30, %v7878_v50 }
 0x1b9   : > { %v2321_v26 = vadd.f32 %v2315_v44, %v2279_v40  ;;  %v2322_v1 = vadd.f32 %v2316_v3, %v2280_v29  ;;  %v2323_v15 = vadd.f32 %v2317_v47, %v2281_v23  ;;  %v2332_v54 = vmul.f32 %v6274_v36, %v7878_v50 }
 0x1ba   : > { %v2333_v58 = vmul.f32 %v4554_v17, %v7878_v50  ;;  %v2334_v62 = vmul.f32 %v6489_v51, %v7878_v50  ;;  %v2335_v4 = vmul.f32 %v4556_v2, %v7878_v50  ;;  %v2336_v16 = vadd.f32 %v2330_v34, %v2294_v63  ;;  %v7880_v34 = vld [vmem:[#allocation41_spill] sm:$0xff] }
 0x1bb   : > { %v2337_v14 = vadd.f32 %v2331_v33, %v2295_v6  ;;  %v2338_v38 = vadd.f32 %v2332_v54, %v2296_v42  ;;  %v2342_v31 = vmul.f32 %v4551_v43, %v7879_v41  ;;  %v2343_v7 = vmul.f32 %v4552_v30, %v7879_v41 }
 0x1bc   : > { %v2339_v44 = vadd.f32 %v2333_v58, %v2297_v39  ;;  %v2340_v40 = vadd.f32 %v2334_v62, %v2298_v45  ;;  %v2341_v29 = vadd.f32 %v2335_v4, %v2299_v25  ;;  %v2344_v23 = vmul.f32 %v6274_v36, %v7879_v41  ;;  %v4557_v39 = vld [vmem:[#allocation2 + $0x107] sm:$0xff]  ;;  %v4558_v45 = vld [vmem:[#allocation2 + $0x10f] sm:$0x7f] }
 0x1bd   : > { %v2345_v3 = vmul.f32 %v4554_v17, %v7879_v41  ;;  %v2346_v47 = vmul.f32 %v6489_v51, %v7879_v41  ;;  %v2347_v50 = vmul.f32 %v4556_v2, %v7879_v41  ;;  %v2348_v63 = vadd.f32 %v2342_v31, %v2306_v21 }
 0x1be   : > { %v2349_v6 = vadd.f32 %v2343_v7, %v2307_v18  ;;  %v2350_v42 = vadd.f32 %v2344_v23, %v2308_v20  ;;  %v2354_v33 = vmul.f32 %v4551_v43, %v7880_v34  ;;  %v2355_v54 = vmul.f32 %v4552_v30, %v7880_v34  ;;  %v4560_v20 = vld [vmem:[#allocation2 + $0x12f] sm:$0x7f]  ;;  %v7881_v7 = vld [vmem:[#allocation42_spill] sm:$0xff] }
 0x1bf   : > { %v2351_v25 = vadd.f32 %v2345_v3, %v2309_v24  ;;  %v2352_v58 = vadd.f32 %v2346_v47, %v2310_v22  ;;  %v2353_v62 = vadd.f32 %v2347_v50, %v2311_v61  ;;  %v2356_v4 = vmul.f32 %v6274_v36, %v7880_v34  ;;  %v4562_v43 = vld [vmem:[#allocation2 + $0x14f] sm:$0x7f]  ;;  %v6517_v36 = vld [vmem:[#allocation2 + $0x147] sm:$0xff] }
 0x1c0   : > { %v2357_v32 = vmul.f32 %v4554_v17, %v7880_v34  ;;  %v2358_v41 = vmul.f32 %v6489_v51, %v7880_v34  ;;  %v2359_v21 = vmul.f32 %v4556_v2, %v7880_v34  ;;  %v2360_v18 = vadd.f32 %v2354_v33, %v2318_v59  ;;  %v7882_v33 = vld [vmem:[#allocation43_spill] sm:$0xff] }
 0x1c1   : > { %v2361_v31 = vadd.f32 %v2355_v54, %v2319_v5  ;;  %v2362_v30 = vadd.f32 %v2356_v4, %v2320_v12  ;;  %v2373_v23 = vmul.f32 %v4557_v39, %v7881_v7  ;;  %v2374_v24 = vmul.f32 %v4558_v45, %v7881_v7 }
 0x1c2   : > { %v2363_v22 = vadd.f32 %v2357_v32, %v2321_v26  ;;  %v2364_v61 = vadd.f32 %v2358_v41, %v2322_v1  ;;  %v2365_v50 = vadd.f32 %v2359_v21, %v2323_v15  ;;  %v2375_v17 = vmul.f32 %v6411_v48, %v7881_v7 }
 0x1c3   : > { %v2376_v3 = vmul.f32 %v4560_v20, %v7881_v7  ;;  %v2377_v59 = vmul.f32 %v6517_v36, %v7881_v7  ;;  %v2378_v2 = vmul.f32 %v4562_v43, %v7881_v7  ;;  %v2379_v5 = vadd.f32 %v2373_v23, %v2336_v16  ;;  %v7883_v23 = vld [vmem:[#allocation44_spill] sm:$0xff] }
 0x1c4   : > { %v2380_v12 = vadd.f32 %v2374_v24, %v2337_v14  ;;  %v2381_v47 = vadd.f32 %v2375_v17, %v2338_v38  ;;  %v2385_v54 = vmul.f32 %v4557_v39, %v7882_v33  ;;  %v2386_v32 = vmul.f32 %v4558_v45, %v7882_v33 }
 0x1c5   : > { %v2382_v26 = vadd.f32 %v2376_v3, %v2339_v44  ;;  %v2383_v1 = vadd.f32 %v2377_v59, %v2340_v40  ;;  %v2384_v15 = vadd.f32 %v2378_v2, %v2341_v29  ;;  %v2387_v41 = vmul.f32 %v6411_v48, %v7882_v33  ;;  %v4563_v44 = vld [vmem:[#allocation2 + $0x108] sm:$0xff]  ;;  %v4564_v40 = vld [vmem:[#allocation2 + $0x110] sm:$0x7f] }
 0x1c6   : > { %v2388_v4 = vmul.f32 %v4560_v20, %v7882_v33  ;;  %v2389_v21 = vmul.f32 %v6517_v36, %v7882_v33  ;;  %v2390_v7 = vmul.f32 %v4562_v43, %v7882_v33  ;;  %v2391_v16 = vadd.f32 %v2385_v54, %v2348_v63 }
 0x1c7   : > { %v2392_v14 = vadd.f32 %v2386_v32, %v2349_v6  ;;  %v2393_v38 = vadd.f32 %v2387_v41, %v2350_v42  ;;  %v2397_v24 = vmul.f32 %v4557_v39, %v7883_v23  ;;  %v2398_v17 = vmul.f32 %v4558_v45, %v7883_v23  ;;  %v4566_v42 = vld [vmem:[#allocation2 + $0x130] sm:$0x7f]  ;;  %v7884_v32 = vld [vmem:[#allocation45_spill] sm:$0xff] }
 0x1c8   : > { %v2394_v29 = vadd.f32 %v2388_v4, %v2351_v25  ;;  %v2395_v3 = vadd.f32 %v2389_v21, %v2352_v58  ;;  %v2396_v59 = vadd.f32 %v2390_v7, %v2353_v62  ;;  %v2399_v2 = vmul.f32 %v6411_v48, %v7883_v23  ;;  %v4568_v39 = vld [vmem:[#allocation2 + $0x150] sm:$0x7f]  ;;  %v6543_v4 = vld [vmem:[#allocation2 + $0x148] sm:$0xff] }
 0x1c9   : > { %v2400_v34 = vmul.f32 %v4560_v20, %v7883_v23  ;;  %v2401_v33 = vmul.f32 %v6517_v36, %v7883_v23  ;;  %v2402_v63 = vmul.f32 %v4562_v43, %v7883_v23  ;;  %v2403_v6 = vadd.f32 %v2397_v24, %v2360_v18 }
 0x1ca   : > { %v2404_v54 = vadd.f32 %v2398_v17, %v2361_v31  ;;  %v2405_v45 = vadd.f32 %v2399_v2, %v2362_v30  ;;  %v2415_v41 = vmul.f32 %v4563_v44, %v7884_v32  ;;  %v2416_v25 = vmul.f32 %v4564_v40, %v7884_v32  ;;  %v7885_v17 = vld [vmem:[#allocation46_spill] sm:$0xff] }
 0x1cb   : > { %v2406_v58 = vadd.f32 %v2400_v34, %v2363_v22  ;;  %v2407_v62 = vadd.f32 %v2401_v33, %v2364_v61  ;;  %v2408_v7 = vadd.f32 %v2402_v63, %v2365_v50  ;;  %v2417_v20 = vmul.f32 %v6437_v11, %v7884_v32 }
 0x1cc   : > { %v2418_v21 = vmul.f32 %v4566_v42, %v7884_v32  ;;  %v2419_v18 = vmul.f32 %v6543_v4, %v7884_v32  ;;  %v2420_v43 = vmul.f32 %v4568_v39, %v7884_v32  ;;  %v2421_v31 = vadd.f32 %v2415_v41, %v2379_v5  ;;  %v7886_v41 = vld [vmem:[#allocation47_spill] sm:$0xff] }
 0x1cd   : > { %v2422_v30 = vadd.f32 %v2416_v25, %v2380_v12  ;;  %v2423_v24 = vadd.f32 %v2417_v20, %v2381_v47  ;;  %v2427_v2 = vmul.f32 %v4563_v44, %v7885_v17  ;;  %v2428_v34 = vmul.f32 %v4564_v40, %v7885_v17 }
 0x1ce   : > { %v2424_v22 = vadd.f32 %v2418_v21, %v2382_v26  ;;  %v2425_v61 = vadd.f32 %v2419_v18, %v2383_v1  ;;  %v2426_v50 = vadd.f32 %v2420_v43, %v2384_v15  ;;  %v2429_v33 = vmul.f32 %v6437_v11, %v7885_v17  ;;  %v4569_v26 = vld [vmem:[#allocation2 + $0x109] sm:$0xff]  ;;  %v4570_v1 = vld [vmem:[#allocation2 + $0x111] sm:$0x7f] }
 0x1cf   : > { %v2430_v63 = vmul.f32 %v4566_v42, %v7885_v17  ;;  %v2431_v23 = vmul.f32 %v6543_v4, %v7885_v17  ;;  %v2432_v32 = vmul.f32 %v4568_v39, %v7885_v17  ;;  %v2433_v5 = vadd.f32 %v2427_v2, %v2391_v16 }
 0x1d0   : > { %v2434_v12 = vadd.f32 %v2428_v34, %v2392_v14  ;;  %v2435_v47 = vadd.f32 %v2429_v33, %v2393_v38  ;;  %v2439_v25 = vmul.f32 %v4563_v44, %v7886_v41  ;;  %v2440_v20 = vmul.f32 %v4564_v40, %v7886_v41  ;;  %v4572_v38 = vld [vmem:[#allocation2 + $0x131] sm:$0x7f] }
 0x1d1   : > { %v2436_v15 = vadd.f32 %v2430_v63, %v2394_v29  ;;  %v2437_v21 = vadd.f32 %v2431_v23, %v2395_v3  ;;  %v2438_v18 = vadd.f32 %v2432_v32, %v2396_v59  ;;  %v2441_v43 = vmul.f32 %v6437_v11, %v7886_v41  ;;  %v4574_v44 = vld [vmem:[#allocation2 + $0x151] sm:$0x7f]  ;;  %v6569_v32 = vld [vmem:[#allocation2 + $0x149] sm:$0xff] }
 0x1d2   : > { %v2442_v10 = vmul.f32 %v4566_v42, %v7886_v41  ;;  %v2443_v17 = vmul.f32 %v6543_v4, %v7886_v41  ;;  %v2444_v16 = vmul.f32 %v4568_v39, %v7886_v41  ;;  %v2445_v14 = vadd.f32 %v2439_v25, %v2403_v6  ;;  %v7887_v34 = vld [vmem:[#allocation48_spill] sm:$0xff] }
 0x1d3   : > { %v2446_v2 = vadd.f32 %v2440_v20, %v2404_v54  ;;  %v2447_v40 = vadd.f32 %v2441_v43, %v2405_v45  ;;  %v2457_v33 = vmul.f32 %v4569_v26, %v7887_v34  ;;  %v2458_v23 = vmul.f32 %v4570_v1, %v7887_v34  ;;  %v7888_v20 = vld [vmem:[#allocation49_spill] sm:$0xff] }
 0x1d4   : > { %v2448_v29 = vadd.f32 %v2442_v10, %v2406_v58  ;;  %v2449_v3 = vadd.f32 %v2443_v17, %v2407_v62  ;;  %v2450_v59 = vadd.f32 %v2444_v16, %v2408_v7  ;;  %v2459_v42 = vmul.f32 %v6463_v53, %v7887_v34 }
 0x1d5   : > { %v2460_v63 = vmul.f32 %v4572_v38, %v7887_v34  ;;  %v2461_v6 = vmul.f32 %v6569_v32, %v7887_v34  ;;  %v2462_v39 = vmul.f32 %v4574_v44, %v7887_v34  ;;  %v2463_v54 = vadd.f32 %v2457_v33, %v2421_v31  ;;  %v7889_v33 = vld [vmem:[#allocation50_spill] sm:$0xff] }
 0x1d6   : > { %v2464_v45 = vadd.f32 %v2458_v23, %v2422_v30  ;;  %v2465_v25 = vadd.f32 %v2459_v42, %v2423_v24  ;;  %v2469_v43 = vmul.f32 %v4569_v26, %v7888_v20  ;;  %v2470_v10 = vmul.f32 %v4570_v1, %v7888_v20 }
 0x1d7   : > { %v2466_v58 = vadd.f32 %v2460_v63, %v2424_v22  ;;  %v2467_v62 = vadd.f32 %v2461_v6, %v2425_v61  ;;  %v2468_v7 = vadd.f32 %v2462_v39, %v2426_v50  ;;  %v2471_v17 = vmul.f32 %v6463_v53, %v7888_v20  ;;  %v4575_v22 = vld [vmem:[#allocation2 + $0x10a] sm:$0xff]  ;;  %v4576_v61 = vld [vmem:[#allocation2 + $0x112] sm:$0x7f] }
 0x1d8   : > { %v2472_v16 = vmul.f32 %v4572_v38, %v7888_v20  ;;  %v2473_v41 = vmul.f32 %v6569_v32, %v7888_v20  ;;  %v2474_v34 = vmul.f32 %v4574_v44, %v7888_v20  ;;  %v2475_v31 = vadd.f32 %v2469_v43, %v2433_v5 }
 0x1d9   : > { %v2476_v30 = vadd.f32 %v2470_v10, %v2434_v12  ;;  %v2477_v24 = vadd.f32 %v2471_v17, %v2435_v47  ;;  %v2481_v23 = vmul.f32 %v4569_v26, %v7889_v33  ;;  %v2482_v42 = vmul.f32 %v4570_v1, %v7889_v33  ;;  %v4578_v47 = vld [vmem:[#allocation2 + $0x132] sm:$0x7f]  ;;  %v7890_v10 = vld [vmem:[#allocation51_spill] sm:$0xff] }
 0x1da   : > { %v2478_v50 = vadd.f32 %v2472_v16, %v2436_v15  ;;  %v2479_v63 = vadd.f32 %v2473_v41, %v2437_v21  ;;  %v2480_v6 = vadd.f32 %v2474_v34, %v2438_v18  ;;  %v2483_v39 = vmul.f32 %v6463_v53, %v7889_v33  ;;  %v4580_v26 = vld [vmem:[#allocation2 + $0x152] sm:$0x7f]  ;;  %v6595_v34 = vld [vmem:[#allocation2 + $0x14a] sm:$0xff] }
 0x1db   : > { %v2484_v0 = vmul.f32 %v4572_v38, %v7889_v33  ;;  %v2485_v20 = vmul.f32 %v6569_v32, %v7889_v33  ;;  %v2486_v5 = vmul.f32 %v4574_v44, %v7889_v33  ;;  %v2487_v12 = vadd.f32 %v2481_v23, %v2445_v14 }
 0x1dc   : > { %v2488_v43 = vadd.f32 %v2482_v42, %v2446_v2  ;;  %v2489_v1 = vadd.f32 %v2483_v39, %v2447_v40  ;;  %v2499_v17 = vmul.f32 %v4575_v22, %v7890_v10  ;;  %v2500_v41 = vmul.f32 %v4576_v61, %v7890_v10 }
 0x1dd   : > { %v2490_v15 = vadd.f32 %v2484_v0, %v2448_v29  ;;  %v2491_v21 = vadd.f32 %v2485_v20, %v2449_v3  ;;  %v2492_v18 = vadd.f32 %v2486_v5, %v2450_v59  ;;  %v2501_v38 = vmul.f32 %v6489_v51, %v7890_v10 }
 0x1de   : > { %v2502_v16 = vmul.f32 %v4578_v47, %v7890_v10  ;;  %v2503_v14 = vmul.f32 %v6595_v34, %v7890_v10  ;;  %v2504_v44 = vmul.f32 %v4580_v26, %v7890_v10  ;;  %v2505_v2 = vadd.f32 %v2499_v17, %v2463_v54  ;;  %v7891_v17 = vld [vmem:[#allocation53_spill] sm:$0xff] }
 0x1df   : > { %v2506_v40 = vadd.f32 %v2500_v41, %v2464_v45  ;;  %v2507_v23 = vadd.f32 %v2501_v38, %v2465_v25  ;;  %v2511_v42 = vmul.f32 %v4575_v22, %v7857_v55  ;;  %v2512_v0 = vmul.f32 %v4576_v61, %v7857_v55 }
 0x1e0   : > { %v2508_v29 = vadd.f32 %v2502_v16, %v2466_v58  ;;  %v2509_v3 = vadd.f32 %v2503_v14, %v2467_v62  ;;  %v2510_v59 = vadd.f32 %v2504_v44, %v2468_v7  ;;  %v2513_v20 = vmul.f32 %v6489_v51, %v7857_v55  ;;  %v4582_v58 = vld [vmem:[#allocation2 + $0x12f] sm:$0x7f] }
 0x1e1   : > { %v2514_v39 = vmul.f32 %v4578_v47, %v7857_v55  ;;  %v2515_v5 = vmul.f32 %v6595_v34, %v7857_v55  ;;  %v2516_v10 = vmul.f32 %v4580_v26, %v7857_v55  ;;  %v2517_v54 = vadd.f32 %v2511_v42, %v2475_v31  ;;  %v4586_v42 = vld [vmem:[#allocation2 + $0x16f] sm:$0x7f] }
 0x1e2   : > { %v2518_v45 = vadd.f32 %v2512_v0, %v2476_v30  ;;  %v2519_v25 = vadd.f32 %v2513_v20, %v2477_v24  ;;  %v2523_v41 = vmul.f32 %v4575_v22, %v7891_v17  ;;  %v2524_v38 = vmul.f32 %v4576_v61, %v7891_v17  ;;  %v4584_v24 = vld [vmem:[#allocation2 + $0x14f] sm:$0x7f]  ;;  %v7892_v61 = vld [vmem:[#allocation54_spill] sm:$0xff] }
 0x1e3   : > { %v2520_v62 = vadd.f32 %v2514_v39, %v2478_v50  ;;  %v2521_v7 = vadd.f32 %v2515_v5, %v2479_v63  ;;  %v2522_v16 = vadd.f32 %v2516_v10, %v2480_v6  ;;  %v2525_v14 = vmul.f32 %v6489_v51, %v7891_v17  ;;  %v6622_v39 = vld [vmem:[#allocation2 + $0x167] sm:$0xff] }
 0x1e4   : > { %v2526_v44 = vmul.f32 %v4578_v47, %v7891_v17  ;;  %v2527_v33 = vmul.f32 %v6595_v34, %v7891_v17  ;;  %v2528_v31 = vmul.f32 %v4580_v26, %v7891_v17  ;;  %v2529_v30 = vadd.f32 %v2523_v41, %v2487_v12 }
 0x1e5   : > { %v2530_v22 = vadd.f32 %v2524_v38, %v2488_v43  ;;  %v2531_v0 = vadd.f32 %v2525_v14, %v2489_v1  ;;  %v2542_v50 = vmul.f32 %v6411_v48, %v7892_v61  ;;  %v2543_v63 = vmul.f32 %v4582_v58, %v7892_v61  ;;  %v7893_v38 = vld [vmem:[#allocation55_spill] sm:$0xff] }
 0x1e6   : > { %v2532_v6 = vadd.f32 %v2526_v44, %v2490_v15  ;;  %v2533_v10 = vadd.f32 %v2527_v33, %v2491_v21  ;;  %v2534_v20 = vadd.f32 %v2528_v31, %v2492_v18  ;;  %v2544_v47 = vmul.f32 %v6517_v36, %v7892_v61 }
 0x1e7   : > { %v2545_v26 = vmul.f32 %v4584_v24, %v7892_v61  ;;  %v2546_v12 = vmul.f32 %v6622_v39, %v7892_v61  ;;  %v2547_v43 = vmul.f32 %v4586_v42, %v7892_v61  ;;  %v2548_v1 = vadd.f32 %v2542_v50, %v2505_v2 }
 0x1e8   : > { %v2549_v5 = vadd.f32 %v2543_v63, %v2506_v40  ;;  %v2550_v41 = vadd.f32 %v2544_v47, %v2507_v23  ;;  %v2554_v15 = vmul.f32 %v6411_v48, %v7893_v38  ;;  %v2555_v33 = vmul.f32 %v4582_v58, %v7893_v38 }
 0x1e9   : > { %v2551_v21 = vadd.f32 %v2545_v26, %v2508_v29  ;;  %v2552_v18 = vadd.f32 %v2546_v12, %v2509_v3  ;;  %v2553_v14 = vadd.f32 %v2547_v43, %v2510_v59  ;;  %v2556_v44 = vmul.f32 %v6517_v36, %v7893_v38  ;;  %v4588_v3 = vld [vmem:[#allocation2 + $0x130] sm:$0x7f] }
 0x1ea   : > { %v2557_v31 = vmul.f32 %v4584_v24, %v7893_v38  ;;  %v2558_v17 = vmul.f32 %v6622_v39, %v7893_v38  ;;  %v2559_v2 = vmul.f32 %v4586_v42, %v7893_v38  ;;  %v2560_v40 = vadd.f32 %v2554_v15, %v2517_v54  ;;  %v4592_v15 = vld [vmem:[#allocation2 + $0x170] sm:$0x7f] }
 0x1eb   : > { %v2561_v23 = vadd.f32 %v2555_v33, %v2518_v45  ;;  %v2562_v50 = vadd.f32 %v2556_v44, %v2519_v25  ;;  %v2566_v63 = vmul.f32 %v6411_v48, %v7861_v49  ;;  %v2567_v29 = vmul.f32 %v4582_v58, %v7861_v49  ;;  %v4590_v25 = vld [vmem:[#allocation2 + $0x150] sm:$0x7f]  ;;  %v6651_v44 = vld [vmem:[#allocation2 + $0x168] sm:$0xff] }
 0x1ec   : > { %v2563_v59 = vadd.f32 %v2557_v31, %v2520_v62  ;;  %v2564_v47 = vadd.f32 %v2558_v17, %v2521_v7  ;;  %v2565_v26 = vadd.f32 %v2559_v2, %v2522_v16  ;;  %v2568_v12 = vmul.f32 %v6517_v36, %v7861_v49 }
 0x1ed   : > { %v2569_v43 = vmul.f32 %v4584_v24, %v7861_v49  ;;  %v2570_v38 = vmul.f32 %v6622_v39, %v7861_v49  ;;  %v2571_v54 = vmul.f32 %v4586_v42, %v7861_v49  ;;  %v2572_v45 = vadd.f32 %v2566_v63, %v2529_v30  ;;  %v7894_v63 = vld [vmem:[#allocation58_spill] sm:$0xff] }
 0x1ee   : > { %v2573_v48 = vadd.f32 %v2567_v29, %v2530_v22  ;;  %v2574_v33 = vadd.f32 %v2568_v12, %v2531_v0  ;;  %v2584_v58 = vmul.f32 %v6437_v11, %v7862_v46  ;;  %v2585_v17 = vmul.f32 %v4588_v3, %v7862_v46 }
 0x1ef   : > { %v2575_v62 = vadd.f32 %v2569_v43, %v2532_v6  ;;  %v2576_v7 = vadd.f32 %v2570_v38, %v2533_v10  ;;  %v2577_v16 = vadd.f32 %v2571_v54, %v2534_v20  ;;  %v2586_v24 = vmul.f32 %v6543_v4, %v7862_v46 }
 0x1f0   : > { %v2587_v42 = vmul.f32 %v4590_v25, %v7862_v46  ;;  %v2588_v30 = vmul.f32 %v6651_v44, %v7862_v46  ;;  %v2589_v22 = vmul.f32 %v4592_v15, %v7862_v46  ;;  %v2590_v0 = vadd.f32 %v2584_v58, %v2548_v1 }
 0x1f1   : > { %v2591_v31 = vadd.f32 %v2585_v17, %v2549_v5  ;;  %v2592_v2 = vadd.f32 %v2586_v24, %v2550_v41  ;;  %v2596_v6 = vmul.f32 %v6437_v11, %v7894_v63  ;;  %v2597_v10 = vmul.f32 %v4588_v3, %v7894_v63 }
 0x1f2   : > { %v2593_v20 = vadd.f32 %v2587_v42, %v2551_v21  ;;  %v2594_v38 = vadd.f32 %v2588_v30, %v2552_v18  ;;  %v2595_v29 = vadd.f32 %v2589_v22, %v2553_v14  ;;  %v2598_v12 = vmul.f32 %v6543_v4, %v7894_v63  ;;  %v4594_v18 = vld [vmem:[#allocation2 + $0x131] sm:$0x7f] }
 0x1f3   : > { %v2599_v43 = vmul.f32 %v4590_v25, %v7894_v63  ;;  %v2600_v54 = vmul.f32 %v6651_v44, %v7894_v63  ;;  %v2601_v1 = vmul.f32 %v4592_v15, %v7894_v63  ;;  %v2602_v5 = vadd.f32 %v2596_v6, %v2560_v40  ;;  %v4598_v6 = vld [vmem:[#allocation2 + $0x171] sm:$0x7f] }
 0x1f4   : > { %v2603_v41 = vadd.f32 %v2597_v10, %v2561_v23  ;;  %v2604_v58 = vadd.f32 %v2598_v12, %v2562_v50  ;;  %v2608_v17 = vmul.f32 %v6437_v11, %v5753_v52  ;;  %v2609_v21 = vmul.f32 %v4588_v3, %v5753_v52  ;;  %v4596_v50 = vld [vmem:[#allocation2 + $0x151] sm:$0x7f] }
 0x1f5   : > { %v2605_v14 = vadd.f32 %v2599_v43, %v2563_v59  ;;  %v2606_v24 = vadd.f32 %v2600_v54, %v2564_v47  ;;  %v2607_v42 = vadd.f32 %v2601_v1, %v2565_v26  ;;  %v2610_v30 = vmul.f32 %v6543_v4, %v5753_v52  ;;  %v6680_v43 = vld [vmem:[#allocation2 + $0x169] sm:$0xff] }
 0x1f6   : > { %v2611_v22 = vmul.f32 %v4590_v25, %v5753_v52  ;;  %v2612_v63 = vmul.f32 %v6651_v44, %v5753_v52  ;;  %v2613_v40 = vmul.f32 %v4592_v15, %v5753_v52  ;;  %v2614_v23 = vadd.f32 %v2608_v17, %v2572_v45 }
 0x1f7   : > { %v2615_v11 = vadd.f32 %v2609_v21, %v2573_v48  ;;  %v2616_v10 = vadd.f32 %v2610_v30, %v2574_v33  ;;  %v2626_v3 = vmul.f32 %v6463_v53, %v5756_v27  ;;  %v2627_v59 = vmul.f32 %v4594_v18, %v5756_v27 }
 0x1f8   : > { %v2617_v47 = vadd.f32 %v2611_v22, %v2575_v62  ;;  %v2618_v26 = vadd.f32 %v2612_v63, %v2576_v7  ;;  %v2619_v12 = vadd.f32 %v2613_v40, %v2577_v16  ;;  %v2628_v25 = vmul.f32 %v6569_v32, %v5756_v27 }
 0x1f9   : > { %v2629_v15 = vmul.f32 %v4596_v50, %v5756_v27  ;;  %v2630_v45 = vmul.f32 %v6680_v43, %v5756_v27  ;;  %v2631_v48 = vmul.f32 %v4598_v6, %v5756_v27  ;;  %v2632_v33 = vadd.f32 %v2626_v3, %v2590_v0 }
 0x1fa   : > { %v2633_v54 = vadd.f32 %v2627_v59, %v2591_v31  ;;  %v2634_v1 = vadd.f32 %v2628_v25, %v2592_v2  ;;  %v2638_v62 = vmul.f32 %v6463_v53, %v5799_v37  ;;  %v2639_v7 = vmul.f32 %v4594_v18, %v5799_v37 }
 0x1fb   : > { %v2635_v16 = vadd.f32 %v2629_v15, %v2593_v20  ;;  %v2636_v63 = vadd.f32 %v2630_v45, %v2594_v38  ;;  %v2637_v17 = vadd.f32 %v2631_v48, %v2595_v29  ;;  %v2640_v21 = vmul.f32 %v6569_v32, %v5799_v37  ;;  %v4600_v38 = vld [vmem:[#allocation2 + $0x132] sm:$0x7f] }
 0x1fc   : > { %v2641_v30 = vmul.f32 %v4596_v50, %v5799_v37  ;;  %v2642_v22 = vmul.f32 %v6680_v43, %v5799_v37  ;;  %v2643_v0 = vmul.f32 %v4598_v6, %v5799_v37  ;;  %v2644_v31 = vadd.f32 %v2638_v62, %v2602_v5  ;;  %v4604_v62 = vld [vmem:[#allocation2 + $0x172] sm:$0x7f] }
 0x1fd   : > { %v2645_v2 = vadd.f32 %v2639_v7, %v2603_v41  ;;  %v2646_v40 = vadd.f32 %v2640_v21, %v2604_v58  ;;  %v2650_v3 = vmul.f32 %v6463_v53, %v5802_v28  ;;  %v2651_v20 = vmul.f32 %v4594_v18, %v5802_v28  ;;  %v4602_v58 = vld [vmem:[#allocation2 + $0x152] sm:$0x7f]  ;;  %v7895_v18 = vld [vmem:[#allocation62_spill] sm:$0xff] }
 0x1fe   : > { %v2647_v29 = vadd.f32 %v2641_v30, %v2605_v14  ;;  %v2648_v59 = vadd.f32 %v2642_v22, %v2606_v24  ;;  %v2649_v25 = vadd.f32 %v2643_v0, %v2607_v42  ;;  %v2652_v15 = vmul.f32 %v6569_v32, %v5802_v28  ;;  %v6709_v22 = vld [vmem:[#allocation2 + $0x16a] sm:$0xff] }
 0x1ff   : > { %v2653_v45 = vmul.f32 %v4596_v50, %v5802_v28  ;;  %v2654_v48 = vmul.f32 %v6680_v43, %v5802_v28  ;;  %v2655_v5 = vmul.f32 %v4598_v6, %v5802_v28  ;;  %v2656_v41 = vadd.f32 %v2650_v3, %v2614_v23  ;;  %v4616_v37 = vld [vmem:[#allocation2 + $0x16f] sm:$0x7f] }
 0x200   : > { %v2657_v53 = vadd.f32 %v2651_v20, %v2615_v11  ;;  %v2658_v7 = vadd.f32 %v2652_v15, %v2616_v10  ;;  %v2668_v14 = vmul.f32 %v6489_v51, %v7895_v18  ;;  %v2669_v24 = vmul.f32 %v4600_v38, %v7895_v18  ;;  %v7896_v20 = vld [vmem:[#allocation63_spill] sm:$0xff] }
 0x201   : > { %v2659_v42 = vadd.f32 %v2653_v45, %v2617_v47  ;;  %v2660_v21 = vadd.f32 %v2654_v48, %v2618_v26  ;;  %v2661_v30 = vadd.f32 %v2655_v5, %v2619_v12  ;;  %v2670_v50 = vmul.f32 %v6595_v34, %v7895_v18 }
 0x202   : > { %v2671_v6 = vmul.f32 %v4602_v58, %v7895_v18  ;;  %v2672_v23 = vmul.f32 %v6709_v22, %v7895_v18  ;;  %v2673_v11 = vmul.f32 %v4604_v62, %v7895_v18  ;;  %v2674_v10 = vadd.f32 %v2668_v14, %v2632_v33  ;;  %v4614_v18 = vld [vmem:[#allocation2 + $0x14f] sm:$0x7f] }
 0x203   : > { %v2675_v0 = vadd.f32 %v2669_v24, %v2633_v54  ;;  %v2676_v3 = vadd.f32 %v2670_v50, %v2634_v1  ;;  %v2680_v47 = vmul.f32 %v6489_v51, %v7896_v20  ;;  %v2681_v26 = vmul.f32 %v4600_v38, %v7896_v20 }
 0x204   : > { %v2677_v12 = vadd.f32 %v2671_v6, %v2635_v16  ;;  %v2678_v15 = vadd.f32 %v2672_v23, %v2636_v63  ;;  %v2679_v45 = vadd.f32 %v2673_v11, %v2637_v17  ;;  %v2682_v48 = vmul.f32 %v6595_v34, %v7896_v20 }
 0x205   : > { %v2683_v5 = vmul.f32 %v4602_v58, %v7896_v20  ;;  %v2684_v28 = vmul.f32 %v6709_v22, %v7896_v20  ;;  %v2685_v33 = vmul.f32 %v4604_v62, %v7896_v20  ;;  %v2686_v54 = vadd.f32 %v2680_v47, %v2644_v31 }
 0x206   : > { %v2687_v1 = vadd.f32 %v2681_v26, %v2645_v2  ;;  %v2688_v14 = vadd.f32 %v2682_v48, %v2646_v40  ;;  %v2692_v24 = vmul.f32 %v6489_v51, %v5851_v19  ;;  %v2693_v16 = vmul.f32 %v4600_v38, %v5851_v19  ;;  %v4611_v48 = vld [vmem:[#allocation2 + $0x127] sm:$0xff]  ;;  %v4612_v38 = vld [vmem:[#allocation2 + $0x12f] sm:$0x7f] }
 0x207   : > { %v2689_v63 = vadd.f32 %v2683_v5, %v2647_v29  ;;  %v2690_v17 = vadd.f32 %v2684_v28, %v2648_v59  ;;  %v2691_v50 = vadd.f32 %v2685_v33, %v2649_v25  ;;  %v2694_v6 = vmul.f32 %v6595_v34, %v5851_v19 }
 0x208   : > { %v2695_v23 = vmul.f32 %v4602_v58, %v5851_v19  ;;  %v2696_v11 = vmul.f32 %v6709_v22, %v5851_v19  ;;  %v2697_v31 = vmul.f32 %v4604_v62, %v5851_v19  ;;  %v2698_v2 = vadd.f32 %v2692_v24, %v2656_v41 }
 0x209   : > { %v2699_v40 = vadd.f32 %v2693_v16, %v2657_v53  ;;  %v2700_v47 = vadd.f32 %v2694_v6, %v2658_v7  ;;  %v2704_v26 = vmul.f32 %v2686_v54, %v2674_v10  ;;  %v2705_v51 = vmul.f32 %v2687_v1, %v2675_v0 }
 0x20a   : > { %v2701_v29 = vadd.f32 %v2695_v23, %v2659_v42  ;;  %v2702_v28 = vadd.f32 %v2696_v11, %v2660_v21  ;;  %v2703_v59 = vadd.f32 %v2697_v31, %v2661_v30  ;;  %v2706_v25 = vmul.f32 %v2688_v14, %v2676_v3  ;;  %v4896_v11 = vld [vmem:[%s7607_s4] ss:$0 sm:$0xff] }
 0x20b   : > { %v2707_v5 = vmul.f32 %v2689_v63, %v2677_v12  ;;  %v2708_v58 = vmul.f32 %v2690_v17, %v2678_v15  ;;  %v2709_v33 = vmul.f32 %v2691_v50, %v2679_v45  ;;  %v2710_v20 = vadd.f32 %v2704_v26, %v2698_v2  ;;  %v4895_v15 = vld [vmem:[%s7605_s2] ss:$0 sm:$0xff] }
 0x20c   : > { %v2711_v41 = vadd.f32 %v2705_v51, %v2699_v40  ;;  %v2712_v62 = vadd.f32 %v2706_v25, %v2700_v47  ;;  %v2729_v53 = vmul.f32 %v4611_v48, %v5235_v8  ;;  %v2730_v7 = vmul.f32 %v4612_v38, %v5235_v8  ;;  %v4617_v51 = vld [vmem:[#allocation2 + $0x128] sm:$0xff] }
 0x20d   : > { %v2713_v10 = vadd.f32 %v2707_v5, %v2701_v29  ;;  %v2714_v42 = vadd.f32 %v2708_v58, %v2702_v28  ;;  %v2715_v21 = vadd.f32 %v2709_v33, %v2703_v59  ;;  %4605 = vst [vmem:[%s5172_s28 + $0x60] sm:$0xff] %v2710_v20  ;;  %v2731_v30 = vmul.f32 %v6517_v36, %v5235_v8  ;;  %v4618_v29 = vld [vmem:[#allocation2 + $0x130] sm:$0x7f] }
 0x20e   : > { %4606 = vst [vmem:[%s5172_s28 + $0x68] sm:$0x7f] %v2711_v41  ;;  %v2732_v0 = vmul.f32 %v4614_v18, %v5235_v8  ;;  %v2733_v3 = vmul.f32 %v6622_v39, %v5235_v8  ;;  %v2734_v12 = vmul.f32 %v4616_v37, %v5235_v8  ;;  %v2735_v45 = vadd.f32 %v4895_v15, %v2729_v53  ;;  %v4622_v53 = vld [vmem:[#allocation2 + $0x170] sm:$0x7f] }
 0x20f   : > { %4607 = vst [vmem:[%s5172_s28 + $0x70] sm:$0xff] %v2712_v62  ;;  %v2736_v20 = vadd.f32 %v4895_v15, %v2730_v7  ;;  %v2737_v54 = vadd.f32 %v4895_v15, %v2731_v30  ;;  %v2741_v1 = vmul.f32 %v4611_v48, %v5238_v9  ;;  %v2742_v14 = vmul.f32 %v4612_v38, %v5238_v9  ;;  %v4620_v62 = vld [vmem:[#allocation2 + $0x150] sm:$0x7f] }
 0x210   : > { %4608 = vst [vmem:[%s5172_s28 + $0x78] sm:$0x7f] %v2713_v10  ;;  %v2738_v24 = vadd.f32 %v4895_v15, %v2732_v0  ;;  %v2739_v16 = vadd.f32 %v4895_v15, %v2733_v3  ;;  %v2740_v63 = vadd.f32 %v4895_v15, %v2734_v12  ;;  %v2743_v17 = vmul.f32 %v6517_v36, %v5238_v9 }
 0x211   : > { %4609 = vst [vmem:[%s5172_s28 + $0x80] sm:$0xff] %v2714_v42  ;;  %v2744_v50 = vmul.f32 %v4614_v18, %v5238_v9  ;;  %v2745_v6 = vmul.f32 %v6622_v39, %v5238_v9  ;;  %v2746_v23 = vmul.f32 %v4616_v37, %v5238_v9  ;;  %v2747_v31 = vadd.f32 %v4896_v11, %v2741_v1 }
 0x212   : > { %4610 = vst [vmem:[%s5172_s28 + $0x88] sm:$0x7f] %v2715_v21  ;;  %v2748_v2 = vadd.f32 %v4896_v11, %v2742_v14  ;;  %v2749_v40 = vadd.f32 %v4896_v11, %v2743_v17  ;;  %v2753_v47 = vmul.f32 %v4611_v48, %v5243_v13  ;;  %v2754_v26 = vmul.f32 %v4612_v38, %v5243_v13  ;;  %v4897_v48 = vld [vmem:[%s7609_s6] ss:$0 sm:$0xff] }
 0x213   : > { %v2750_v28 = vadd.f32 %v4896_v11, %v2744_v50  ;;  %v2751_v59 = vadd.f32 %v4896_v11, %v2745_v6  ;;  %v2752_v25 = vadd.f32 %v4896_v11, %v2746_v23  ;;  %v2755_v5 = vmul.f32 %v6517_v36, %v5243_v13 }
 0x214   : > { %v2756_v58 = vmul.f32 %v4614_v18, %v5243_v13  ;;  %v2757_v33 = vmul.f32 %v6622_v39, %v5243_v13  ;;  %v2758_v41 = vmul.f32 %v4616_v37, %v5243_v13  ;;  %v2759_v38 = vadd.f32 %v4897_v48, %v2753_v47 }
 0x215   : > { %v2760_v7 = vadd.f32 %v4897_v48, %v2754_v26  ;;  %v2761_v10 = vadd.f32 %v4897_v48, %v2755_v5  ;;  %v2771_v42 = vmul.f32 %v4617_v51, %v5280_v56  ;;  %v2772_v36 = vmul.f32 %v4618_v29, %v5280_v56 }
 0x216   : > { %v2762_v21 = vadd.f32 %v4897_v48, %v2756_v58  ;;  %v2763_v18 = vadd.f32 %v4897_v48, %v2757_v33  ;;  %v2764_v30 = vadd.f32 %v4897_v48, %v2758_v41  ;;  %v2773_v0 = vmul.f32 %v6543_v4, %v5280_v56 }
 0x217   : > { %v2774_v37 = vmul.f32 %v4620_v62, %v5280_v56  ;;  %v2775_v3 = vmul.f32 %v6651_v44, %v5280_v56  ;;  %v2776_v12 = vmul.f32 %v4622_v53, %v5280_v56  ;;  %v2777_v15 = vadd.f32 %v2771_v42, %v2735_v45 }
 0x218   : > { %v2778_v1 = vadd.f32 %v2772_v36, %v2736_v20  ;;  %v2779_v14 = vadd.f32 %v2773_v0, %v2737_v54  ;;  %v2783_v17 = vmul.f32 %v4617_v51, %v5283_v57  ;;  %v2784_v50 = vmul.f32 %v4618_v29, %v5283_v57 }
 0x219   : > { %v2780_v6 = vadd.f32 %v2774_v37, %v2738_v24  ;;  %v2781_v23 = vadd.f32 %v2775_v3, %v2739_v16  ;;  %v2782_v11 = vadd.f32 %v2776_v12, %v2740_v63  ;;  %v2785_v47 = vmul.f32 %v6543_v4, %v5283_v57  ;;  %v4623_v24 = vld [vmem:[#allocation2 + $0x129] sm:$0xff]  ;;  %v4624_v16 = vld [vmem:[#allocation2 + $0x131] sm:$0x7f] }
 0x21a   : > { %v2786_v26 = vmul.f32 %v4620_v62, %v5283_v57  ;;  %v2787_v5 = vmul.f32 %v6651_v44, %v5283_v57  ;;  %v2788_v58 = vmul.f32 %v4622_v53, %v5283_v57  ;;  %v2789_v45 = vadd.f32 %v2783_v17, %v2747_v31 }
 0x21b   : > { %v2790_v20 = vadd.f32 %v2784_v50, %v2748_v2  ;;  %v2791_v54 = vadd.f32 %v2785_v47, %v2749_v40  ;;  %v2795_v33 = vmul.f32 %v4617_v51, %v5286_v60  ;;  %v2796_v41 = vmul.f32 %v4618_v29, %v5286_v60  ;;  %v4626_v40 = vld [vmem:[#allocation2 + $0x151] sm:$0x7f]  ;;  %v7897_v47 = vld [vmem:[#allocation25_spill] sm:$0xff] }
 0x21c   : > { %v2792_v63 = vadd.f32 %v2786_v26, %v2750_v28  ;;  %v2793_v48 = vadd.f32 %v2787_v5, %v2751_v59  ;;  %v2794_v42 = vadd.f32 %v2788_v58, %v2752_v25  ;;  %v2797_v36 = vmul.f32 %v6543_v4, %v5286_v60  ;;  %v4628_v51 = vld [vmem:[#allocation2 + $0x171] sm:$0x7f] }
 0x21d   : > { %v2798_v0 = vmul.f32 %v4620_v62, %v5286_v60  ;;  %v2799_v37 = vmul.f32 %v6651_v44, %v5286_v60  ;;  %v2800_v31 = vmul.f32 %v4622_v53, %v5286_v60  ;;  %v2801_v2 = vadd.f32 %v2795_v33, %v2759_v38 }
 0x21e   : > { %v2802_v3 = vadd.f32 %v2796_v41, %v2760_v7  ;;  %v2803_v29 = vadd.f32 %v2797_v36, %v2761_v10  ;;  %v2813_v12 = vmul.f32 %v4623_v24, %v7863_v35  ;;  %v2814_v28 = vmul.f32 %v4624_v16, %v7863_v35 }
 0x21f   : > { %v2804_v59 = vadd.f32 %v2798_v0, %v2762_v21  ;;  %v2805_v25 = vadd.f32 %v2799_v37, %v2763_v18  ;;  %v2806_v17 = vadd.f32 %v2800_v31, %v2764_v30  ;;  %v2815_v4 = vmul.f32 %v6569_v32, %v7863_v35  ;;  %v7898_v0 = vld [vmem:[#allocation26_spill] sm:$0xff] }
 0x220   : > { %v2816_v62 = vmul.f32 %v4626_v40, %v7863_v35  ;;  %v2817_v53 = vmul.f32 %v6680_v43, %v7863_v35  ;;  %v2818_v38 = vmul.f32 %v4628_v51, %v7863_v35  ;;  %v2819_v50 = vadd.f32 %v2813_v12, %v2777_v15 }
 0x221   : > { %v2820_v7 = vadd.f32 %v2814_v28, %v2778_v1  ;;  %v2821_v10 = vadd.f32 %v2815_v4, %v2779_v14  ;;  %v2825_v26 = vmul.f32 %v4623_v24, %v7897_v47  ;;  %v2826_v5 = vmul.f32 %v4624_v16, %v7897_v47 }
 0x222   : > { %v2822_v21 = vadd.f32 %v2816_v62, %v2780_v6  ;;  %v2823_v18 = vadd.f32 %v2817_v53, %v2781_v23  ;;  %v2824_v30 = vadd.f32 %v2818_v38, %v2782_v11  ;;  %v2827_v58 = vmul.f32 %v6569_v32, %v7897_v47  ;;  %v4629_v6 = vld [vmem:[#allocation2 + $0x12a] sm:$0xff]  ;;  %v4630_v23 = vld [vmem:[#allocation2 + $0x132] sm:$0x7f] }
 0x223   : > { %v2828_v33 = vmul.f32 %v4626_v40, %v7897_v47  ;;  %v2829_v41 = vmul.f32 %v6680_v43, %v7897_v47  ;;  %v2830_v36 = vmul.f32 %v4628_v51, %v7897_v47  ;;  %v2831_v15 = vadd.f32 %v2825_v26, %v2789_v45  ;;  %v7899_v26 = vld [vmem:[#allocation27_spill] sm:$0xff] }
 0x224   : > { %v2832_v1 = vadd.f32 %v2826_v5, %v2790_v20  ;;  %v2833_v14 = vadd.f32 %v2827_v58, %v2791_v54  ;;  %v2837_v37 = vmul.f32 %v4623_v24, %v7898_v0  ;;  %v2838_v31 = vmul.f32 %v4624_v16, %v7898_v0  ;;  %v4632_v54 = vld [vmem:[#allocation2 + $0x152] sm:$0x7f] }
 0x225   : > { %v2834_v11 = vadd.f32 %v2828_v33, %v2792_v63  ;;  %v2835_v12 = vadd.f32 %v2829_v41, %v2793_v48  ;;  %v2836_v28 = vadd.f32 %v2830_v36, %v2794_v42  ;;  %v2839_v4 = vmul.f32 %v6569_v32, %v7898_v0  ;;  %v4634_v24 = vld [vmem:[#allocation2 + $0x172] sm:$0x7f] }
 0x226   : > { %v2840_v62 = vmul.f32 %v4626_v40, %v7898_v0  ;;  %v2841_v53 = vmul.f32 %v6680_v43, %v7898_v0  ;;  %v2842_v45 = vmul.f32 %v4628_v51, %v7898_v0  ;;  %v2843_v20 = vadd.f32 %v2837_v37, %v2801_v2  ;;  %v7900_v41 = vld [vmem:[#allocation28_spill] sm:$0xff] }
 0x227   : > { %v2844_v38 = vadd.f32 %v2838_v31, %v2802_v3  ;;  %v2845_v16 = vadd.f32 %v2839_v4, %v2803_v29  ;;  %v2855_v5 = vmul.f32 %v4629_v6, %v7899_v26  ;;  %v2856_v63 = vmul.f32 %v4630_v23, %v7899_v26 }
 0x228   : > { %v2846_v48 = vadd.f32 %v2840_v62, %v2804_v59  ;;  %v2847_v42 = vadd.f32 %v2841_v53, %v2805_v25  ;;  %v2848_v58 = vadd.f32 %v2842_v45, %v2806_v17  ;;  %v2857_v32 = vmul.f32 %v6595_v34, %v7899_v26  ;;  %v7901_v45 = vld [vmem:[#allocation29_spill] sm:$0xff] }
 0x229   : > { %v2858_v40 = vmul.f32 %v4632_v54, %v7899_v26  ;;  %v2859_v51 = vmul.f32 %v6709_v22, %v7899_v26  ;;  %v2860_v2 = vmul.f32 %v4634_v24, %v7899_v26  ;;  %v2861_v33 = vadd.f32 %v2855_v5, %v2819_v50 }
 0x22a   : > { %v2862_v3 = vadd.f32 %v2856_v63, %v2820_v7  ;;  %v2863_v29 = vadd.f32 %v2857_v32, %v2821_v10  ;;  %v2867_v36 = vmul.f32 %v4629_v6, %v7900_v41  ;;  %v2868_v37 = vmul.f32 %v4630_v23, %v7900_v41 }
 0x22b   : > { %v2864_v59 = vadd.f32 %v2858_v40, %v2822_v21  ;;  %v2865_v25 = vadd.f32 %v2859_v51, %v2823_v18  ;;  %v2866_v17 = vadd.f32 %v2860_v2, %v2824_v30  ;;  %v2869_v31 = vmul.f32 %v6595_v34, %v7900_v41  ;;  %v4635_v21 = vld [vmem:[#allocation2 + $0x147] sm:$0xff]  ;;  %v4636_v18 = vld [vmem:[#allocation2 + $0x14f] sm:$0x7f] }
 0x22c   : > { %v2870_v4 = vmul.f32 %v4632_v54, %v7900_v41  ;;  %v2871_v62 = vmul.f32 %v6709_v22, %v7900_v41  ;;  %v2872_v53 = vmul.f32 %v4634_v24, %v7900_v41  ;;  %v2873_v50 = vadd.f32 %v2867_v36, %v2831_v15 }
 0x22d   : > { %v2874_v7 = vadd.f32 %v2868_v37, %v2832_v1  ;;  %v2875_v10 = vadd.f32 %v2869_v31, %v2833_v14  ;;  %v2879_v5 = vmul.f32 %v4629_v6, %v7901_v45  ;;  %v2880_v63 = vmul.f32 %v4630_v23, %v7901_v45  ;;  %v4638_v14 = vld [vmem:[#allocation2 + $0x16f] sm:$0x7f]  ;;  %v6846_v6 = vld [vmem:[#allocation2 + $0x187] sm:$0xff] }
 0x22e   : > { %v2876_v30 = vadd.f32 %v2870_v4, %v2834_v11  ;;  %v2877_v32 = vadd.f32 %v2871_v62, %v2835_v12  ;;  %v2878_v40 = vadd.f32 %v2872_v53, %v2836_v28  ;;  %v2881_v51 = vmul.f32 %v6595_v34, %v7901_v45  ;;  %v4640_v23 = vld [vmem:[#allocation2 + $0x18f] sm:$0x7f]  ;;  %v7902_v11 = vld [vmem:[#allocation30_spill] sm:$0xff] }
 0x22f   : > { %v2882_v2 = vmul.f32 %v4632_v54, %v7901_v45  ;;  %v2883_v41 = vmul.f32 %v6709_v22, %v7901_v45  ;;  %v2884_v15 = vmul.f32 %v4634_v24, %v7901_v45  ;;  %v2885_v1 = vadd.f32 %v2879_v5, %v2843_v20  ;;  %v7903_v5 = vld [vmem:[#allocation31_spill] sm:$0xff] }
 0x230   : > { %v2886_v36 = vadd.f32 %v2880_v63, %v2844_v38  ;;  %v2887_v37 = vadd.f32 %v2881_v51, %v2845_v16  ;;  %v2898_v12 = vmul.f32 %v4635_v21, %v7902_v11  ;;  %v2899_v28 = vmul.f32 %v4636_v18, %v7902_v11 }
 0x231   : > { %v2888_v31 = vadd.f32 %v2882_v2, %v2846_v48  ;;  %v2889_v34 = vadd.f32 %v2883_v41, %v2847_v42  ;;  %v2890_v4 = vadd.f32 %v2884_v15, %v2848_v58  ;;  %v2900_v54 = vmul.f32 %v6622_v39, %v7902_v11 }
 0x232   : > { %v2901_v62 = vmul.f32 %v4638_v14, %v7902_v11  ;;  %v2902_v20 = vmul.f32 %v6846_v6, %v7902_v11  ;;  %v2903_v24 = vmul.f32 %v4640_v23, %v7902_v11  ;;  %v2904_v53 = vadd.f32 %v2898_v12, %v2861_v33  ;;  %v7904_v12 = vld [vmem:[#allocation32_spill] sm:$0xff] }
 0x233   : > { %v2905_v38 = vadd.f32 %v2899_v28, %v2862_v3  ;;  %v2906_v16 = vadd.f32 %v2900_v54, %v2863_v29  ;;  %v2910_v63 = vmul.f32 %v4635_v21, %v7903_v5  ;;  %v2911_v51 = vmul.f32 %v4636_v18, %v7903_v5 }
 0x234   : > { %v2907_v48 = vadd.f32 %v2901_v62, %v2864_v59  ;;  %v2908_v42 = vadd.f32 %v2902_v20, %v2865_v25  ;;  %v2909_v58 = vadd.f32 %v2903_v24, %v2866_v17  ;;  %v2912_v41 = vmul.f32 %v6622_v39, %v7903_v5  ;;  %v4641_v59 = vld [vmem:[#allocation2 + $0x148] sm:$0xff]  ;;  %v4642_v25 = vld [vmem:[#allocation2 + $0x150] sm:$0x7f] }
 0x235   : > { %v2913_v2 = vmul.f32 %v4638_v14, %v7903_v5  ;;  %v2914_v15 = vmul.f32 %v6846_v6, %v7903_v5  ;;  %v2915_v11 = vmul.f32 %v4640_v23, %v7903_v5  ;;  %v2916_v33 = vadd.f32 %v2910_v63, %v2873_v50 }
 0x236   : > { %v2917_v3 = vadd.f32 %v2911_v51, %v2874_v7  ;;  %v2918_v29 = vadd.f32 %v2912_v41, %v2875_v10  ;;  %v2922_v28 = vmul.f32 %v4635_v21, %v7904_v12  ;;  %v2923_v54 = vmul.f32 %v4636_v18, %v7904_v12  ;;  %v4644_v10 = vld [vmem:[#allocation2 + $0x170] sm:$0x7f]  ;;  %v6872_v21 = vld [vmem:[#allocation2 + $0x188] sm:$0xff] }
 0x237   : > { %v2919_v17 = vadd.f32 %v2913_v2, %v2876_v30  ;;  %v2920_v62 = vadd.f32 %v2914_v15, %v2877_v32  ;;  %v2921_v20 = vadd.f32 %v2915_v11, %v2878_v40  ;;  %v2924_v24 = vmul.f32 %v6622_v39, %v7904_v12  ;;  %v4646_v18 = vld [vmem:[#allocation2 + $0x190] sm:$0x7f]  ;;  %v7905_v30 = vld [vmem:[#allocation33_spill] sm:$0xff] }
 0x238   : > { %v2925_v45 = vmul.f32 %v4638_v14, %v7904_v12  ;;  %v2926_v5 = vmul.f32 %v6846_v6, %v7904_v12  ;;  %v2927_v50 = vmul.f32 %v4640_v23, %v7904_v12  ;;  %v2928_v7 = vadd.f32 %v2922_v28, %v2885_v1  ;;  %v7906_v28 = vld [vmem:[#allocation34_spill] sm:$0xff] }
 0x239   : > { %v2929_v63 = vadd.f32 %v2923_v54, %v2886_v36  ;;  %v2930_v51 = vadd.f32 %v2924_v24, %v2887_v37  ;;  %v2940_v32 = vmul.f32 %v4641_v59, %v7905_v30  ;;  %v2941_v40 = vmul.f32 %v4642_v25, %v7905_v30 }
 0x23a   : > { %v2931_v11 = vadd.f32 %v2925_v45, %v2888_v31  ;;  %v2932_v39 = vadd.f32 %v2926_v5, %v2889_v34  ;;  %v2933_v41 = vadd.f32 %v2927_v50, %v2890_v4  ;;  %v2942_v14 = vmul.f32 %v6651_v44, %v7905_v30 }
 0x23b   : > { %v2943_v2 = vmul.f32 %v4644_v10, %v7905_v30  ;;  %v2944_v1 = vmul.f32 %v6872_v21, %v7905_v30  ;;  %v2945_v23 = vmul.f32 %v4646_v18, %v7905_v30  ;;  %v2946_v15 = vadd.f32 %v2940_v32, %v2904_v53  ;;  %v7907_v32 = vld [vmem:[#allocation35_spill] sm:$0xff] }
 0x23c   : > { %v2947_v36 = vadd.f32 %v2941_v40, %v2905_v38  ;;  %v2948_v37 = vadd.f32 %v2942_v14, %v2906_v16  ;;  %v2952_v54 = vmul.f32 %v4641_v59, %v7906_v28  ;;  %v2953_v24 = vmul.f32 %v4642_v25, %v7906_v28 }
 0x23d   : > { %v2949_v45 = vadd.f32 %v2943_v2, %v2907_v48  ;;  %v2950_v31 = vadd.f32 %v2944_v1, %v2908_v42  ;;  %v2951_v34 = vadd.f32 %v2945_v23, %v2909_v58  ;;  %v2954_v4 = vmul.f32 %v6651_v44, %v7906_v28  ;;  %v4647_v48 = vld [vmem:[#allocation2 + $0x149] sm:$0xff]  ;;  %v4648_v42 = vld [vmem:[#allocation2 + $0x151] sm:$0x7f] }
 0x23e   : > { %v2955_v5 = vmul.f32 %v4644_v10, %v7906_v28  ;;  %v2956_v50 = vmul.f32 %v6872_v21, %v7906_v28  ;;  %v2957_v30 = vmul.f32 %v4646_v18, %v7906_v28  ;;  %v2958_v53 = vadd.f32 %v2952_v54, %v2916_v33 }
 0x23f   : > { %v2959_v38 = vadd.f32 %v2953_v24, %v2917_v3  ;;  %v2960_v16 = vadd.f32 %v2954_v4, %v2918_v29  ;;  %v2964_v40 = vmul.f32 %v4641_v59, %v7907_v32  ;;  %v2965_v14 = vmul.f32 %v4642_v25, %v7907_v32  ;;  %v4650_v29 = vld [vmem:[#allocation2 + $0x171] sm:$0x7f]  ;;  %v6898_v59 = vld [vmem:[#allocation2 + $0x189] sm:$0xff] }
 0x240   : > { %v2961_v58 = vadd.f32 %v2955_v5, %v2919_v17  ;;  %v2962_v2 = vadd.f32 %v2956_v50, %v2920_v62  ;;  %v2963_v1 = vadd.f32 %v2957_v30, %v2921_v20  ;;  %v2966_v23 = vmul.f32 %v6651_v44, %v7907_v32  ;;  %v4652_v25 = vld [vmem:[#allocation2 + $0x191] sm:$0x7f] }
 0x241   : > { %v2967_v12 = vmul.f32 %v4644_v10, %v7907_v32  ;;  %v2968_v28 = vmul.f32 %v6872_v21, %v7907_v32  ;;  %v2969_v33 = vmul.f32 %v4646_v18, %v7907_v32  ;;  %v2970_v3 = vadd.f32 %v2964_v40, %v2928_v7  ;;  %v7908_v17 = vld [vmem:[#allocation36_spill] sm:$0xff]  ;;  %v7909_v40 = vld [vmem:[#allocation37_spill] sm:$0xff] }
 0x242   : > { %v2971_v54 = vadd.f32 %v2965_v14, %v2929_v63  ;;  %v2972_v24 = vadd.f32 %v2966_v23, %v2930_v51  ;;  %v2982_v62 = vmul.f32 %v4647_v48, %v7908_v17  ;;  %v2983_v20 = vmul.f32 %v4648_v42, %v7908_v17 }
 0x243   : > { %v2973_v30 = vadd.f32 %v2967_v12, %v2931_v11  ;;  %v2974_v44 = vadd.f32 %v2968_v28, %v2932_v39  ;;  %v2975_v4 = vadd.f32 %v2969_v33, %v2933_v41  ;;  %v2984_v10 = vmul.f32 %v6680_v43, %v7908_v17 }
 0x244   : > { %v2985_v5 = vmul.f32 %v4650_v29, %v7908_v17  ;;  %v2986_v7 = vmul.f32 %v6898_v59, %v7908_v17  ;;  %v2987_v18 = vmul.f32 %v4652_v25, %v7908_v17  ;;  %v2988_v50 = vadd.f32 %v2982_v62, %v2946_v15  ;;  %v7910_v62 = vld [vmem:[#allocation38_spill] sm:$0xff] }
 0x245   : > { %v2989_v63 = vadd.f32 %v2983_v20, %v2947_v36  ;;  %v2990_v51 = vadd.f32 %v2984_v10, %v2948_v37  ;;  %v2994_v14 = vmul.f32 %v4647_v48, %v7909_v40  ;;  %v2995_v23 = vmul.f32 %v4648_v42, %v7909_v40 }
 0x246   : > { %v2991_v12 = vadd.f32 %v2985_v5, %v2949_v45  ;;  %v2992_v11 = vadd.f32 %v2986_v7, %v2950_v31  ;;  %v2993_v39 = vadd.f32 %v2987_v18, %v2951_v34  ;;  %v2996_v41 = vmul.f32 %v6680_v43, %v7909_v40  ;;  %v4653_v45 = vld [vmem:[#allocation2 + $0x14a] sm:$0xff]  ;;  %v4654_v31 = vld [vmem:[#allocation2 + $0x152] sm:$0x7f] }
 0x247   : > { %v2997_v28 = vmul.f32 %v4650_v29, %v7909_v40  ;;  %v2998_v33 = vmul.f32 %v6898_v59, %v7909_v40  ;;  %v2999_v17 = vmul.f32 %v4652_v25, %v7909_v40  ;;  %v3000_v15 = vadd.f32 %v2994_v14, %v2958_v53 }
 0x248   : > { %v3001_v36 = vadd.f32 %v2995_v23, %v2959_v38  ;;  %v3002_v37 = vadd.f32 %v2996_v41, %v2960_v16  ;;  %v3006_v20 = vmul.f32 %v4647_v48, %v7910_v62  ;;  %v3007_v10 = vmul.f32 %v4648_v42, %v7910_v62  ;;  %v4656_v16 = vld [vmem:[#allocation2 + $0x172] sm:$0x7f]  ;;  %v6924_v48 = vld [vmem:[#allocation2 + $0x18a] sm:$0xff] }
 0x249   : > { %v3003_v34 = vadd.f32 %v2997_v28, %v2961_v58  ;;  %v3004_v5 = vadd.f32 %v2998_v33, %v2962_v2  ;;  %v3005_v7 = vadd.f32 %v2999_v17, %v2963_v1  ;;  %v3008_v18 = vmul.f32 %v6680_v43, %v7910_v62  ;;  %v4658_v42 = vld [vmem:[#allocation2 + $0x192] sm:$0x7f]  ;;  %v7911_v58 = vld [vmem:[#allocation39_spill] sm:$0xff] }
 0x24a   : > { %v3009_v32 = vmul.f32 %v4650_v29, %v7910_v62  ;;  %v3010_v40 = vmul.f32 %v6898_v59, %v7910_v62  ;;  %v3011_v53 = vmul.f32 %v4652_v25, %v7910_v62  ;;  %v3012_v38 = vadd.f32 %v3006_v20, %v2970_v3  ;;  %v7912_v20 = vld [vmem:[#allocation40_spill] sm:$0xff] }
 0x24b   : > { %v3013_v14 = vadd.f32 %v3007_v10, %v2971_v54  ;;  %v3014_v23 = vadd.f32 %v3008_v18, %v2972_v24  ;;  %v3024_v2 = vmul.f32 %v4653_v45, %v7911_v58  ;;  %v3025_v1 = vmul.f32 %v4654_v31, %v7911_v58 }
 0x24c   : > { %v3015_v17 = vadd.f32 %v3009_v32, %v2973_v30  ;;  %v3016_v43 = vadd.f32 %v3010_v40, %v2974_v44  ;;  %v3017_v41 = vadd.f32 %v3011_v53, %v2975_v4  ;;  %v3026_v29 = vmul.f32 %v6709_v22, %v7911_v58 }
 0x24d   : > { %v3027_v28 = vmul.f32 %v4656_v16, %v7911_v58  ;;  %v3028_v3 = vmul.f32 %v6924_v48, %v7911_v58  ;;  %v3029_v25 = vmul.f32 %v4658_v42, %v7911_v58  ;;  %v3030_v33 = vadd.f32 %v3024_v2, %v2988_v50  ;;  %v7913_v2 = vld [vmem:[#allocation41_spill] sm:$0xff] }
 0x24e   : > { %v3031_v54 = vadd.f32 %v3025_v1, %v2989_v63  ;;  %v3032_v24 = vadd.f32 %v3026_v29, %v2990_v51  ;;  %v3036_v10 = vmul.f32 %v4653_v45, %v7912_v20  ;;  %v3037_v18 = vmul.f32 %v4654_v31, %v7912_v20 }
 0x24f   : > { %v3033_v32 = vadd.f32 %v3027_v28, %v2991_v12  ;;  %v3034_v30 = vadd.f32 %v3028_v3, %v2992_v11  ;;  %v3035_v44 = vadd.f32 %v3029_v25, %v2993_v39  ;;  %v3038_v4 = vmul.f32 %v6709_v22, %v7912_v20  ;;  %v4659_v12 = vld [vmem:[#allocation2 + $0x167] sm:$0xff]  ;;  %v4660_v11 = vld [vmem:[#allocation2 + $0x16f] sm:$0x7f] }
 0x250   : > { %v3039_v40 = vmul.f32 %v4656_v16, %v7912_v20  ;;  %v3040_v53 = vmul.f32 %v6924_v48, %v7912_v20  ;;  %v3041_v58 = vmul.f32 %v4658_v42, %v7912_v20  ;;  %v3042_v50 = vadd.f32 %v3036_v10, %v3000_v15 }
 0x251   : > { %v3043_v63 = vadd.f32 %v3037_v18, %v3001_v36  ;;  %v3044_v51 = vadd.f32 %v3038_v4, %v3002_v37  ;;  %v3048_v1 = vmul.f32 %v4653_v45, %v7913_v2  ;;  %v3049_v29 = vmul.f32 %v4654_v31, %v7913_v2  ;;  %v4662_v37 = vld [vmem:[#allocation2 + $0x18f] sm:$0x7f]  ;;  %v7914_v18 = vld [vmem:[#allocation42_spill] sm:$0xff] }
 0x252   : > { %v3045_v39 = vadd.f32 %v3039_v40, %v3003_v34  ;;  %v3046_v28 = vadd.f32 %v3040_v53, %v3004_v5  ;;  %v3047_v3 = vadd.f32 %v3041_v58, %v3005_v7  ;;  %v3050_v25 = vmul.f32 %v6709_v22, %v7913_v2  ;;  %v4664_v45 = vld [vmem:[#allocation2 + $0x1af] sm:$0x7f]  ;;  %v6952_v22 = vld [vmem:[#allocation2 + $0x1a7] sm:$0xff] }
 0x253   : > { %v3051_v62 = vmul.f32 %v4656_v16, %v7913_v2  ;;  %v3052_v20 = vmul.f32 %v6924_v48, %v7913_v2  ;;  %v3053_v15 = vmul.f32 %v4658_v42, %v7913_v2  ;;  %v3054_v36 = vadd.f32 %v3048_v1, %v3012_v38  ;;  %v7915_v1 = vld [vmem:[#allocation43_spill] sm:$0xff] }
 0x254   : > { %v3055_v10 = vadd.f32 %v3049_v29, %v3013_v14  ;;  %v3056_v31 = vadd.f32 %v3050_v25, %v3014_v23  ;;  %v3067_v4 = vmul.f32 %v4659_v12, %v7914_v18  ;;  %v3068_v34 = vmul.f32 %v4660_v11, %v7914_v18 }
 0x255   : > { %v3057_v5 = vadd.f32 %v3051_v62, %v3015_v17  ;;  %v3058_v7 = vadd.f32 %v3052_v20, %v3016_v43  ;;  %v3059_v58 = vadd.f32 %v3053_v15, %v3017_v41  ;;  %v3069_v16 = vmul.f32 %v6846_v6, %v7914_v18 }
 0x256   : > { %v3070_v40 = vmul.f32 %v4662_v37, %v7914_v18  ;;  %v3071_v38 = vmul.f32 %v6952_v22, %v7914_v18  ;;  %v3072_v42 = vmul.f32 %v4664_v45, %v7914_v18  ;;  %v3073_v14 = vadd.f32 %v3067_v4, %v3030_v33  ;;  %v7916_v4 = vld [vmem:[#allocation44_spill] sm:$0xff] }
 0x257   : > { %v3074_v23 = vadd.f32 %v3068_v34, %v3031_v54  ;;  %v3075_v53 = vadd.f32 %v3069_v16, %v3032_v24  ;;  %v3079_v29 = vmul.f32 %v4659_v12, %v7915_v1  ;;  %v3080_v62 = vmul.f32 %v4660_v11, %v7915_v1 }
 0x258   : > { %v3076_v17 = vadd.f32 %v3070_v40, %v3033_v32  ;;  %v3077_v43 = vadd.f32 %v3071_v38, %v3034_v30  ;;  %v3078_v41 = vadd.f32 %v3072_v42, %v3035_v44  ;;  %v3081_v20 = vmul.f32 %v6846_v6, %v7915_v1  ;;  %v4665_v32 = vld [vmem:[#allocation2 + $0x168] sm:$0xff]  ;;  %v4666_v30 = vld [vmem:[#allocation2 + $0x170] sm:$0x7f] }
 0x259   : > { %v3082_v25 = vmul.f32 %v4662_v37, %v7915_v1  ;;  %v3083_v15 = vmul.f32 %v6952_v22, %v7915_v1  ;;  %v3084_v18 = vmul.f32 %v4664_v45, %v7915_v1  ;;  %v3085_v33 = vadd.f32 %v3079_v29, %v3042_v50 }
 0x25a   : > { %v3086_v54 = vadd.f32 %v3080_v62, %v3043_v63  ;;  %v3087_v24 = vadd.f32 %v3081_v20, %v3044_v51  ;;  %v3091_v34 = vmul.f32 %v4659_v12, %v7916_v4  ;;  %v3092_v16 = vmul.f32 %v4660_v11, %v7916_v4  ;;  %v4668_v51 = vld [vmem:[#allocation2 + $0x190] sm:$0x7f]  ;;  %v7917_v62 = vld [vmem:[#allocation45_spill] sm:$0xff] }
 0x25b   : > { %v3088_v44 = vadd.f32 %v3082_v25, %v3045_v39  ;;  %v3089_v40 = vadd.f32 %v3083_v15, %v3046_v28  ;;  %v3090_v38 = vadd.f32 %v3084_v18, %v3047_v3  ;;  %v3093_v42 = vmul.f32 %v6846_v6, %v7916_v4  ;;  %v4670_v12 = vld [vmem:[#allocation2 + $0x1b0] sm:$0x7f]  ;;  %v6978_v25 = vld [vmem:[#allocation2 + $0x1a8] sm:$0xff] }
 0x25c   : > { %v3094_v2 = vmul.f32 %v4662_v37, %v7916_v4  ;;  %v3095_v1 = vmul.f32 %v6952_v22, %v7916_v4  ;;  %v3096_v50 = vmul.f32 %v4664_v45, %v7916_v4  ;;  %v3097_v63 = vadd.f32 %v3091_v34, %v3054_v36 }
 0x25d   : > { %v3098_v29 = vadd.f32 %v3092_v16, %v3055_v10  ;;  %v3099_v11 = vadd.f32 %v3093_v42, %v3056_v31  ;;  %v3109_v20 = vmul.f32 %v4665_v32, %v7917_v62  ;;  %v3110_v39 = vmul.f32 %v4666_v30, %v7917_v62  ;;  %v7918_v16 = vld [vmem:[#allocation46_spill] sm:$0xff] }
 0x25e   : > { %v3100_v28 = vadd.f32 %v3094_v2, %v3057_v5  ;;  %v3101_v3 = vadd.f32 %v3095_v1, %v3058_v7  ;;  %v3102_v18 = vadd.f32 %v3096_v50, %v3059_v58  ;;  %v3111_v37 = vmul.f32 %v6872_v21, %v7917_v62 }
 0x25f   : > { %v3112_v15 = vmul.f32 %v4668_v51, %v7917_v62  ;;  %v3113_v36 = vmul.f32 %v6978_v25, %v7917_v62  ;;  %v3114_v45 = vmul.f32 %v4670_v12, %v7917_v62  ;;  %v3115_v10 = vadd.f32 %v3109_v20, %v3073_v14  ;;  %v7919_v20 = vld [vmem:[#allocation47_spill] sm:$0xff] }
 0x260   : > { %v3116_v31 = vadd.f32 %v3110_v39, %v3074_v23  ;;  %v3117_v34 = vadd.f32 %v3111_v37, %v3075_v53  ;;  %v3121_v42 = vmul.f32 %v4665_v32, %v7918_v16  ;;  %v3122_v2 = vmul.f32 %v4666_v30, %v7918_v16 }
 0x261   : > { %v3118_v5 = vadd.f32 %v3112_v15, %v3076_v17  ;;  %v3119_v7 = vadd.f32 %v3113_v36, %v3077_v43  ;;  %v3120_v58 = vadd.f32 %v3114_v45, %v3078_v41  ;;  %v3123_v1 = vmul.f32 %v6872_v21, %v7918_v16  ;;  %v4671_v17 = vld [vmem:[#allocation2 + $0x169] sm:$0xff]  ;;  %v4672_v43 = vld [vmem:[#allocation2 + $0x171] sm:$0x7f] }
 0x262   : > { %v3124_v50 = vmul.f32 %v4668_v51, %v7918_v16  ;;  %v3125_v4 = vmul.f32 %v6978_v25, %v7918_v16  ;;  %v3126_v62 = vmul.f32 %v4670_v12, %v7918_v16  ;;  %v3127_v14 = vadd.f32 %v3121_v42, %v3085_v33 }
 0x263   : > { %v3128_v23 = vadd.f32 %v3122_v2, %v3086_v54  ;;  %v3129_v53 = vadd.f32 %v3123_v1, %v3087_v24  ;;  %v3133_v39 = vmul.f32 %v4665_v32, %v7919_v20  ;;  %v3134_v37 = vmul.f32 %v4666_v30, %v7919_v20  ;;  %v4674_v24 = vld [vmem:[#allocation2 + $0x191] sm:$0x7f] }
 0x264   : > { %v3130_v41 = vadd.f32 %v3124_v50, %v3088_v44  ;;  %v3131_v15 = vadd.f32 %v3125_v4, %v3089_v40  ;;  %v3132_v36 = vadd.f32 %v3126_v62, %v3090_v38  ;;  %v3135_v45 = vmul.f32 %v6872_v21, %v7919_v20  ;;  %v4676_v32 = vld [vmem:[#allocation2 + $0x1b1] sm:$0x7f]  ;;  %v7004_v62 = vld [vmem:[#allocation2 + $0x1a9] sm:$0xff] }
 0x265   : > { %v3136_v26 = vmul.f32 %v4668_v51, %v7919_v20  ;;  %v3137_v16 = vmul.f32 %v6978_v25, %v7919_v20  ;;  %v3138_v33 = vmul.f32 %v4670_v12, %v7919_v20  ;;  %v3139_v54 = vadd.f32 %v3133_v39, %v3097_v63  ;;  %v7920_v2 = vld [vmem:[#allocation48_spill] sm:$0xff] }
 0x266   : > { %v3140_v42 = vadd.f32 %v3134_v37, %v3098_v29  ;;  %v3141_v30 = vadd.f32 %v3135_v45, %v3099_v11  ;;  %v3151_v1 = vmul.f32 %v4671_v17, %v7920_v2  ;;  %v3152_v4 = vmul.f32 %v4672_v43, %v7920_v2  ;;  %v7921_v37 = vld [vmem:[#allocation49_spill] sm:$0xff] }
 0x267   : > { %v3142_v44 = vadd.f32 %v3136_v26, %v3100_v28  ;;  %v3143_v40 = vadd.f32 %v3137_v16, %v3101_v3  ;;  %v3144_v38 = vadd.f32 %v3138_v33, %v3102_v18  ;;  %v3153_v51 = vmul.f32 %v6898_v59, %v7920_v2 }
 0x268   : > { %v3154_v50 = vmul.f32 %v4674_v24, %v7920_v2  ;;  %v3155_v63 = vmul.f32 %v7004_v62, %v7920_v2  ;;  %v3156_v12 = vmul.f32 %v4676_v32, %v7920_v2  ;;  %v3157_v29 = vadd.f32 %v3151_v1, %v3115_v10  ;;  %v7922_v1 = vld [vmem:[#allocation50_spill] sm:$0xff] }
 0x269   : > { %v3158_v11 = vadd.f32 %v3152_v4, %v3116_v31  ;;  %v3159_v39 = vadd.f32 %v3153_v51, %v3117_v34  ;;  %v3163_v45 = vmul.f32 %v4671_v17, %v7921_v37  ;;  %v3164_v26 = vmul.f32 %v4672_v43, %v7921_v37 }
 0x26a   : > { %v3160_v28 = vadd.f32 %v3154_v50, %v3118_v5  ;;  %v3161_v3 = vadd.f32 %v3155_v63, %v3119_v7  ;;  %v3162_v18 = vadd.f32 %v3156_v12, %v3120_v58  ;;  %v3165_v16 = vmul.f32 %v6898_v59, %v7921_v37  ;;  %v4677_v5 = vld [vmem:[#allocation2 + $0x16a] sm:$0xff]  ;;  %v4678_v7 = vld [vmem:[#allocation2 + $0x172] sm:$0x7f] }
 0x26b   : > { %v3166_v33 = vmul.f32 %v4674_v24, %v7921_v37  ;;  %v3167_v20 = vmul.f32 %v7004_v62, %v7921_v37  ;;  %v3168_v2 = vmul.f32 %v4676_v32, %v7921_v37  ;;  %v3169_v10 = vadd.f32 %v3163_v45, %v3127_v14 }
 0x26c   : > { %v3170_v31 = vadd.f32 %v3164_v26, %v3128_v23  ;;  %v3171_v34 = vadd.f32 %v3165_v16, %v3129_v53  ;;  %v3175_v4 = vmul.f32 %v4671_v17, %v7922_v1  ;;  %v3176_v51 = vmul.f32 %v4672_v43, %v7922_v1  ;;  %v4680_v53 = vld [vmem:[#allocation2 + $0x192] sm:$0x7f]  ;;  %v7923_v26 = vld [vmem:[#allocation51_spill] sm:$0xff] }
 0x26d   : > { %v3172_v58 = vadd.f32 %v3166_v33, %v3130_v41  ;;  %v3173_v50 = vadd.f32 %v3167_v20, %v3131_v15  ;;  %v3174_v63 = vadd.f32 %v3168_v2, %v3132_v36  ;;  %v3177_v12 = vmul.f32 %v6898_v59, %v7922_v1  ;;  %v4682_v17 = vld [vmem:[#allocation2 + $0x1b2] sm:$0x7f]  ;;  %v7030_v2 = vld [vmem:[#allocation2 + $0x1aa] sm:$0xff] }
 0x26e   : > { %v3178_v0 = vmul.f32 %v4674_v24, %v7922_v1  ;;  %v3179_v37 = vmul.f32 %v7004_v62, %v7922_v1  ;;  %v3180_v14 = vmul.f32 %v4676_v32, %v7922_v1  ;;  %v3181_v23 = vadd.f32 %v3175_v4, %v3139_v54 }
 0x26f   : > { %v3182_v45 = vadd.f32 %v3176_v51, %v3140_v42  ;;  %v3183_v43 = vadd.f32 %v3177_v12, %v3141_v30  ;;  %v3193_v16 = vmul.f32 %v4677_v5, %v7923_v26  ;;  %v3194_v20 = vmul.f32 %v4678_v7, %v7923_v26 }
 0x270   : > { %v3184_v41 = vadd.f32 %v3178_v0, %v3142_v44  ;;  %v3185_v15 = vadd.f32 %v3179_v37, %v3143_v40  ;;  %v3186_v36 = vadd.f32 %v3180_v14, %v3144_v38  ;;  %v3195_v24 = vmul.f32 %v6924_v48, %v7923_v26 }
 0x271   : > { %v3196_v33 = vmul.f32 %v4680_v53, %v7923_v26  ;;  %v3197_v54 = vmul.f32 %v7030_v2, %v7923_v26  ;;  %v3198_v32 = vmul.f32 %v4682_v17, %v7923_v26  ;;  %v3199_v42 = vadd.f32 %v3193_v16, %v3157_v29  ;;  %v7924_v16 = vld [vmem:[#allocation53_spill] sm:$0xff] }
 0x272   : > { %v3200_v30 = vadd.f32 %v3194_v20, %v3158_v11  ;;  %v3201_v4 = vadd.f32 %v3195_v24, %v3159_v39  ;;  %v3205_v51 = vmul.f32 %v4677_v5, %v7857_v55  ;;  %v3206_v0 = vmul.f32 %v4678_v7, %v7857_v55 }
 0x273   : > { %v3202_v44 = vadd.f32 %v3196_v33, %v3160_v28  ;;  %v3203_v40 = vadd.f32 %v3197_v54, %v3161_v3  ;;  %v3204_v38 = vadd.f32 %v3198_v32, %v3162_v18  ;;  %v3207_v37 = vmul.f32 %v6924_v48, %v7857_v55  ;;  %v4684_v28 = vld [vmem:[#allocation2 + $0x18f] sm:$0x7f] }
 0x274   : > { %v3208_v12 = vmul.f32 %v4680_v53, %v7857_v55  ;;  %v3209_v14 = vmul.f32 %v7030_v2, %v7857_v55  ;;  %v3210_v26 = vmul.f32 %v4682_v17, %v7857_v55  ;;  %v3211_v29 = vadd.f32 %v3205_v51, %v3169_v10  ;;  %v4688_v51 = vld [vmem:[#allocation2 + $0x1cf] sm:$0x7f] }
 0x275   : > { %v3212_v11 = vadd.f32 %v3206_v0, %v3170_v31  ;;  %v3213_v39 = vadd.f32 %v3207_v37, %v3171_v34  ;;  %v3217_v20 = vmul.f32 %v4677_v5, %v7924_v16  ;;  %v3218_v24 = vmul.f32 %v4678_v7, %v7924_v16  ;;  %v4686_v34 = vld [vmem:[#allocation2 + $0x1af] sm:$0x7f]  ;;  %v7057_v37 = vld [vmem:[#allocation2 + $0x1c7] sm:$0xff] }
 0x276   : > { %v3214_v3 = vadd.f32 %v3208_v12, %v3172_v58  ;;  %v3215_v18 = vadd.f32 %v3209_v14, %v3173_v50  ;;  %v3216_v33 = vadd.f32 %v3210_v26, %v3174_v63  ;;  %v3219_v54 = vmul.f32 %v6924_v48, %v7924_v16 }
 0x277   : > { %v3220_v32 = vmul.f32 %v4680_v53, %v7924_v16  ;;  %v3221_v1 = vmul.f32 %v7030_v2, %v7924_v16  ;;  %v3222_v10 = vmul.f32 %v4682_v17, %v7924_v16  ;;  %v3223_v31 = vadd.f32 %v3217_v20, %v3181_v23  ;;  %v7925_v20 = vld [vmem:[#allocation55_spill] sm:$0xff] }
 0x278   : > { %v3224_v5 = vadd.f32 %v3218_v24, %v3182_v45  ;;  %v3225_v0 = vadd.f32 %v3219_v54, %v3183_v43  ;;  %v3236_v7 = vmul.f32 %v6846_v6, %v7892_v61  ;;  %v3237_v58 = vmul.f32 %v4684_v28, %v7892_v61 }
 0x279   : > { %v3226_v50 = vadd.f32 %v3220_v32, %v3184_v41  ;;  %v3227_v63 = vadd.f32 %v3221_v1, %v3185_v15  ;;  %v3228_v26 = vadd.f32 %v3222_v10, %v3186_v36  ;;  %v3238_v53 = vmul.f32 %v6952_v22, %v7892_v61 }
 0x27a   : > { %v3239_v17 = vmul.f32 %v4686_v34, %v7892_v61  ;;  %v3240_v23 = vmul.f32 %v7057_v37, %v7892_v61  ;;  %v3241_v45 = vmul.f32 %v4688_v51, %v7892_v61  ;;  %v3242_v43 = vadd.f32 %v3236_v7, %v3199_v42 }
 0x27b   : > { %v3243_v12 = vadd.f32 %v3237_v58, %v3200_v30  ;;  %v3244_v14 = vadd.f32 %v3238_v53, %v3201_v4  ;;  %v3248_v41 = vmul.f32 %v6846_v6, %v7925_v20  ;;  %v3249_v1 = vmul.f32 %v4684_v28, %v7925_v20 }
 0x27c   : > { %v3245_v15 = vadd.f32 %v3239_v17, %v3202_v44  ;;  %v3246_v36 = vadd.f32 %v3240_v23, %v3203_v40  ;;  %v3247_v24 = vadd.f32 %v3241_v45, %v3204_v38  ;;  %v3250_v54 = vmul.f32 %v6952_v22, %v7925_v20  ;;  %v4690_v40 = vld [vmem:[#allocation2 + $0x190] sm:$0x7f] }
 0x27d   : > { %v3251_v32 = vmul.f32 %v4686_v34, %v7925_v20  ;;  %v3252_v10 = vmul.f32 %v7057_v37, %v7925_v20  ;;  %v3253_v42 = vmul.f32 %v4688_v51, %v7925_v20  ;;  %v3254_v30 = vadd.f32 %v3248_v41, %v3211_v29  ;;  %v4694_v41 = vld [vmem:[#allocation2 + $0x1d0] sm:$0x7f] }
 0x27e   : > { %v3255_v4 = vadd.f32 %v3249_v1, %v3212_v11  ;;  %v3256_v7 = vadd.f32 %v3250_v54, %v3213_v39  ;;  %v3260_v58 = vmul.f32 %v6846_v6, %v7861_v49  ;;  %v3261_v44 = vmul.f32 %v4684_v28, %v7861_v49  ;;  %v4692_v39 = vld [vmem:[#allocation2 + $0x1b0] sm:$0x7f] }
 0x27f   : > { %v3257_v38 = vadd.f32 %v3251_v32, %v3214_v3  ;;  %v3258_v53 = vadd.f32 %v3252_v10, %v3215_v18  ;;  %v3259_v17 = vadd.f32 %v3253_v42, %v3216_v33  ;;  %v3262_v23 = vmul.f32 %v6952_v22, %v7861_v49  ;;  %v7086_v32 = vld [vmem:[#allocation2 + $0x1c8] sm:$0xff] }
 0x280   : > { %v3263_v45 = vmul.f32 %v4686_v34, %v7861_v49  ;;  %v3264_v20 = vmul.f32 %v7057_v37, %v7861_v49  ;;  %v3265_v29 = vmul.f32 %v4688_v51, %v7861_v49  ;;  %v3266_v11 = vadd.f32 %v3260_v58, %v3223_v31  ;;  %v7926_v58 = vld [vmem:[#allocation58_spill] sm:$0xff] }
 0x281   : > { %v3267_v6 = vadd.f32 %v3261_v44, %v3224_v5  ;;  %v3268_v1 = vadd.f32 %v3262_v23, %v3225_v0  ;;  %v3278_v28 = vmul.f32 %v6872_v21, %v7862_v46  ;;  %v3279_v3 = vmul.f32 %v4690_v40, %v7862_v46 }
 0x282   : > { %v3269_v18 = vadd.f32 %v3263_v45, %v3226_v50  ;;  %v3270_v33 = vadd.f32 %v3264_v20, %v3227_v63  ;;  %v3271_v54 = vadd.f32 %v3265_v29, %v3228_v26  ;;  %v3280_v34 = vmul.f32 %v6978_v25, %v7862_v46 }
 0x283   : > { %v3281_v51 = vmul.f32 %v4692_v39, %v7862_v46  ;;  %v3282_v31 = vmul.f32 %v7086_v32, %v7862_v46  ;;  %v3283_v5 = vmul.f32 %v4694_v41, %v7862_v46  ;;  %v3284_v0 = vadd.f32 %v3278_v28, %v3242_v43 }
 0x284   : > { %v3285_v10 = vadd.f32 %v3279_v3, %v3243_v12  ;;  %v3286_v42 = vadd.f32 %v3280_v34, %v3244_v14  ;;  %v3290_v50 = vmul.f32 %v6872_v21, %v7926_v58  ;;  %v3291_v63 = vmul.f32 %v4690_v40, %v7926_v58 }
 0x285   : > { %v3287_v26 = vadd.f32 %v3281_v51, %v3245_v15  ;;  %v3288_v20 = vadd.f32 %v3282_v31, %v3246_v36  ;;  %v3289_v44 = vadd.f32 %v3283_v5, %v3247_v24  ;;  %v3292_v23 = vmul.f32 %v6978_v25, %v7926_v58  ;;  %v4696_v36 = vld [vmem:[#allocation2 + $0x191] sm:$0x7f] }
 0x286   : > { %v3293_v45 = vmul.f32 %v4692_v39, %v7926_v58  ;;  %v3294_v29 = vmul.f32 %v7086_v32, %v7926_v58  ;;  %v3295_v43 = vmul.f32 %v4694_v41, %v7926_v58  ;;  %v3296_v12 = vadd.f32 %v3290_v50, %v3254_v30  ;;  %v4700_v50 = vld [vmem:[#allocation2 + $0x1d1] sm:$0x7f] }
 0x287   : > { %v3297_v14 = vadd.f32 %v3291_v63, %v3255_v4  ;;  %v3298_v28 = vadd.f32 %v3292_v23, %v3256_v7  ;;  %v3302_v3 = vmul.f32 %v6872_v21, %v5753_v52  ;;  %v3303_v15 = vmul.f32 %v4690_v40, %v5753_v52  ;;  %v4698_v7 = vld [vmem:[#allocation2 + $0x1b1] sm:$0x7f] }
 0x288   : > { %v3299_v24 = vadd.f32 %v3293_v45, %v3257_v38  ;;  %v3300_v34 = vadd.f32 %v3294_v29, %v3258_v53  ;;  %v3301_v51 = vadd.f32 %v3295_v43, %v3259_v17  ;;  %v3304_v31 = vmul.f32 %v6978_v25, %v5753_v52  ;;  %v7115_v45 = vld [vmem:[#allocation2 + $0x1c9] sm:$0xff] }
 0x289   : > { %v3305_v5 = vmul.f32 %v4692_v39, %v5753_v52  ;;  %v3306_v58 = vmul.f32 %v7086_v32, %v5753_v52  ;;  %v3307_v30 = vmul.f32 %v4694_v41, %v5753_v52  ;;  %v3308_v4 = vadd.f32 %v3302_v3, %v3266_v11  ;;  %v7927_v3 = vld [vmem:[#allocation60_spill] sm:$0xff] }
 0x28a   : > { %v3309_v21 = vadd.f32 %v3303_v15, %v3267_v6  ;;  %v3310_v63 = vadd.f32 %v3304_v31, %v3268_v1  ;;  %v3320_v40 = vmul.f32 %v6898_v59, %v5756_v27  ;;  %v3321_v38 = vmul.f32 %v4696_v36, %v5756_v27 }
 0x28b   : > { %v3311_v53 = vadd.f32 %v3305_v5, %v3269_v18  ;;  %v3312_v17 = vadd.f32 %v3306_v58, %v3270_v33  ;;  %v3313_v23 = vadd.f32 %v3307_v30, %v3271_v54  ;;  %v3322_v39 = vmul.f32 %v7004_v62, %v5756_v27 }
 0x28c   : > { %v3323_v41 = vmul.f32 %v4698_v7, %v5756_v27  ;;  %v3324_v11 = vmul.f32 %v7115_v45, %v5756_v27  ;;  %v3325_v6 = vmul.f32 %v4700_v50, %v5756_v27  ;;  %v3326_v1 = vadd.f32 %v3320_v40, %v3284_v0 }
 0x28d   : > { %v3327_v29 = vadd.f32 %v3321_v38, %v3285_v10  ;;  %v3328_v43 = vadd.f32 %v3322_v39, %v3286_v42  ;;  %v3332_v18 = vmul.f32 %v6898_v59, %v7927_v3  ;;  %v3333_v33 = vmul.f32 %v4696_v36, %v7927_v3  ;;  %v7928_v38 = vld [vmem:[#allocation61_spill] sm:$0xff] }
 0x28e   : > { %v3329_v54 = vadd.f32 %v3323_v41, %v3287_v26  ;;  %v3330_v58 = vadd.f32 %v3324_v11, %v3288_v20  ;;  %v3331_v15 = vadd.f32 %v3325_v6, %v3289_v44  ;;  %v3334_v31 = vmul.f32 %v7004_v62, %v7927_v3  ;;  %v4702_v20 = vld [vmem:[#allocation2 + $0x192] sm:$0x7f] }
 0x28f   : > { %v3335_v5 = vmul.f32 %v4698_v7, %v7927_v3  ;;  %v3336_v30 = vmul.f32 %v7115_v45, %v7927_v3  ;;  %v3337_v0 = vmul.f32 %v4700_v50, %v7927_v3  ;;  %v3338_v10 = vadd.f32 %v3332_v18, %v3296_v12  ;;  %v4706_v18 = vld [vmem:[#allocation2 + $0x1d2] sm:$0x7f] }
 0x290   : > { %v3339_v42 = vadd.f32 %v3333_v33, %v3297_v14  ;;  %v3340_v40 = vadd.f32 %v3334_v31, %v3298_v28  ;;  %v3344_v39 = vmul.f32 %v6898_v59, %v7928_v38  ;;  %v3345_v26 = vmul.f32 %v4696_v36, %v7928_v38  ;;  %v4704_v28 = vld [vmem:[#allocation2 + $0x1b2] sm:$0x7f]  ;;  %v7929_v36 = vld [vmem:[#allocation62_spill] sm:$0xff] }
 0x291   : > { %v3341_v44 = vadd.f32 %v3335_v5, %v3299_v24  ;;  %v3342_v41 = vadd.f32 %v3336_v30, %v3300_v34  ;;  %v3343_v11 = vadd.f32 %v3337_v0, %v3301_v51  ;;  %v3346_v6 = vmul.f32 %v7004_v62, %v7928_v38  ;;  %v7144_v30 = vld [vmem:[#allocation2 + $0x1ca] sm:$0xff] }
 0x292   : > { %v3347_v27 = vmul.f32 %v4698_v7, %v7928_v38  ;;  %v3348_v3 = vmul.f32 %v7115_v45, %v7928_v38  ;;  %v3349_v12 = vmul.f32 %v4700_v50, %v7928_v38  ;;  %v3350_v14 = vadd.f32 %v3344_v39, %v3308_v4 }
 0x293   : > { %v3351_v59 = vadd.f32 %v3345_v26, %v3309_v21  ;;  %v3352_v33 = vadd.f32 %v3346_v6, %v3310_v63  ;;  %v3362_v24 = vmul.f32 %v6924_v48, %v7929_v36  ;;  %v3363_v34 = vmul.f32 %v4702_v20, %v7929_v36  ;;  %v7930_v26 = vld [vmem:[#allocation63_spill] sm:$0xff] }
 0x294   : > { %v3353_v51 = vadd.f32 %v3347_v27, %v3311_v53  ;;  %v3354_v31 = vadd.f32 %v3348_v3, %v3312_v17  ;;  %v3355_v5 = vadd.f32 %v3349_v12, %v3313_v23  ;;  %v3364_v7 = vmul.f32 %v7030_v2, %v7929_v36 }
 0x295   : > { %v3365_v50 = vmul.f32 %v4704_v28, %v7929_v36  ;;  %v3366_v4 = vmul.f32 %v7144_v30, %v7929_v36  ;;  %v3367_v21 = vmul.f32 %v4706_v18, %v7929_v36  ;;  %v3368_v63 = vadd.f32 %v3362_v24, %v3326_v1  ;;  %v4716_v36 = vld [vmem:[#allocation2 + $0x1af] sm:$0x7f] }
 0x296   : > { %v3369_v0 = vadd.f32 %v3363_v34, %v3327_v29  ;;  %v3370_v39 = vadd.f32 %v3364_v7, %v3328_v43  ;;  %v3374_v27 = vmul.f32 %v6924_v48, %v7930_v26  ;;  %v3375_v53 = vmul.f32 %v4702_v20, %v7930_v26 }
 0x297   : > { %v3371_v17 = vadd.f32 %v3365_v50, %v3329_v54  ;;  %v3372_v23 = vadd.f32 %v3366_v4, %v3330_v58  ;;  %v3373_v3 = vadd.f32 %v3367_v21, %v3331_v15  ;;  %v3376_v6 = vmul.f32 %v7030_v2, %v7930_v26 }
 0x298   : > { %v3377_v12 = vmul.f32 %v4704_v28, %v7930_v26  ;;  %v3378_v38 = vmul.f32 %v7144_v30, %v7930_v26  ;;  %v3379_v1 = vmul.f32 %v4706_v18, %v7930_v26  ;;  %v3380_v29 = vadd.f32 %v3374_v27, %v3338_v10 }
 0x299   : > { %v3381_v43 = vadd.f32 %v3375_v53, %v3339_v42  ;;  %v3382_v24 = vadd.f32 %v3376_v6, %v3340_v40  ;;  %v3386_v34 = vmul.f32 %v6924_v48, %v5851_v19  ;;  %v3387_v54 = vmul.f32 %v4702_v20, %v5851_v19  ;;  %v4713_v6 = vld [vmem:[#allocation2 + $0x187] sm:$0xff]  ;;  %v4714_v20 = vld [vmem:[#allocation2 + $0x18f] sm:$0x7f] }
 0x29a   : > { %v3383_v58 = vadd.f32 %v3377_v12, %v3341_v44  ;;  %v3384_v15 = vadd.f32 %v3378_v38, %v3342_v41  ;;  %v3385_v7 = vadd.f32 %v3379_v1, %v3343_v11  ;;  %v3388_v50 = vmul.f32 %v7030_v2, %v5851_v19 }
 0x29b   : > { %v3389_v4 = vmul.f32 %v4704_v28, %v5851_v19  ;;  %v3390_v21 = vmul.f32 %v7144_v30, %v5851_v19  ;;  %v3391_v10 = vmul.f32 %v4706_v18, %v5851_v19  ;;  %v3392_v42 = vadd.f32 %v3386_v34, %v3350_v14  ;;  %v4718_v18 = vld [vmem:[#allocation2 + $0x1cf] sm:$0x7f] }
 0x29c   : > { %v3393_v40 = vadd.f32 %v3387_v54, %v3351_v59  ;;  %v3394_v27 = vadd.f32 %v3388_v50, %v3352_v33  ;;  %v3398_v53 = vmul.f32 %v3380_v29, %v3368_v63  ;;  %v3399_v48 = vmul.f32 %v3381_v43, %v3369_v0 }
 0x29d   : > { %v3395_v44 = vadd.f32 %v3389_v4, %v3353_v51  ;;  %v3396_v38 = vadd.f32 %v3390_v21, %v3354_v31  ;;  %v3397_v41 = vadd.f32 %v3391_v10, %v3355_v5  ;;  %v3400_v11 = vmul.f32 %v3382_v24, %v3370_v39  ;;  %v4899_v21 = vld [vmem:[%s7607_s4] ss:$0 sm:$0xff] }
 0x29e   : > { %v3401_v12 = vmul.f32 %v3383_v58, %v3371_v17  ;;  %v3402_v28 = vmul.f32 %v3384_v15, %v3372_v23  ;;  %v3403_v1 = vmul.f32 %v3385_v7, %v3373_v3  ;;  %v3404_v26 = vadd.f32 %v3398_v53, %v3392_v42  ;;  %v4898_v3 = vld [vmem:[%s7605_s2] ss:$0 sm:$0xff]  ;;  %v4719_v53 = vld [vmem:[#allocation2 + $0x188] sm:$0xff] }
 0x29f   : > { %v3405_v14 = vadd.f32 %v3399_v48, %v3393_v40  ;;  %v3406_v59 = vadd.f32 %v3400_v11, %v3394_v27  ;;  %v3423_v33 = vmul.f32 %v4713_v6, %v5235_v8  ;;  %v3424_v63 = vmul.f32 %v4714_v20, %v5235_v8  ;;  %v4720_v48 = vld [vmem:[#allocation2 + $0x190] sm:$0x7f] }
 0x2a0   : > { %v3407_v51 = vadd.f32 %v3401_v12, %v3395_v44  ;;  %v3408_v0 = vadd.f32 %v3402_v28, %v3396_v38  ;;  %4707 = vst [vmem:[%s5172_s28 + $0x90] sm:$0xff] %v3404_v26  ;;  %v3425_v31 = vmul.f32 %v6952_v22, %v5235_v8  ;;  %v3409_v5 = vadd.f32 %v3403_v1, %v3397_v41 }
 0x2a1   : > { %4708 = vst [vmem:[%s5172_s28 + $0x98] sm:$0x7f] %v3405_v14  ;;  %v3426_v39 = vmul.f32 %v4716_v36, %v5235_v8  ;;  %v3427_v17 = vmul.f32 %v7057_v37, %v5235_v8  ;;  %v3428_v23 = vmul.f32 %v4718_v18, %v5235_v8  ;;  %v3429_v26 = vadd.f32 %v4898_v3, %v3423_v33  ;;  %v4722_v14 = vld [vmem:[#allocation2 + $0x1b0] sm:$0x7f] }
 0x2a2   : > { %4709 = vst [vmem:[%s5172_s28 + $0xa0] sm:$0xff] %v3406_v59  ;;  %v3430_v29 = vadd.f32 %v4898_v3, %v3424_v63  ;;  %v3435_v43 = vmul.f32 %v4713_v6, %v5238_v9  ;;  %v3436_v24 = vmul.f32 %v4714_v20, %v5238_v9  ;;  %v3431_v34 = vadd.f32 %v4898_v3, %v3425_v31 }
 0x2a3   : > { %4710 = vst [vmem:[%s5172_s28 + $0xa8] sm:$0x7f] %v3407_v51  ;;  %v3432_v54 = vadd.f32 %v4898_v3, %v3426_v39  ;;  %v3433_v58 = vadd.f32 %v4898_v3, %v3427_v17  ;;  %v3437_v15 = vmul.f32 %v6952_v22, %v5238_v9  ;;  %v3434_v8 = vadd.f32 %v4898_v3, %v3428_v23 }
 0x2a4   : > { %4711 = vst [vmem:[%s5172_s28 + $0xb0] sm:$0xff] %v3408_v0  ;;  %v3438_v7 = vmul.f32 %v4716_v36, %v5238_v9  ;;  %v3439_v50 = vmul.f32 %v7057_v37, %v5238_v9  ;;  %v3440_v4 = vmul.f32 %v4718_v18, %v5238_v9  ;;  %v3441_v10 = vadd.f32 %v4899_v21, %v3435_v43 }
 0x2a5   : > { %4712 = vst [vmem:[%s5172_s28 + $0xb8] sm:$0x7f] %v3409_v5  ;;  %v3442_v42 = vadd.f32 %v4899_v21, %v3436_v24  ;;  %v3447_v40 = vmul.f32 %v4713_v6, %v5243_v13  ;;  %v3448_v27 = vmul.f32 %v4714_v20, %v5243_v13  ;;  %v3443_v44 = vadd.f32 %v4899_v21, %v3437_v15  ;;  %v4724_v6 = vld [vmem:[#allocation2 + $0x1d0] sm:$0x7f]  ;;  %v4900_v20 = vld [vmem:[%s7609_s6] ss:$0 sm:$0xff] }
 0x2a6   : > { %v3444_v38 = vadd.f32 %v4899_v21, %v3438_v7  ;;  %v3445_v41 = vadd.f32 %v4899_v21, %v3439_v50  ;;  %v3449_v11 = vmul.f32 %v6952_v22, %v5243_v13  ;;  %v3446_v9 = vadd.f32 %v4899_v21, %v3440_v4 }
 0x2a7   : > { %v3450_v12 = vmul.f32 %v4716_v36, %v5243_v13  ;;  %v3451_v28 = vmul.f32 %v7057_v37, %v5243_v13  ;;  %v3452_v1 = vmul.f32 %v4718_v18, %v5243_v13  ;;  %v3453_v59 = vadd.f32 %v4900_v20, %v3447_v40 }
 0x2a8   : > { %v3454_v33 = vadd.f32 %v4900_v20, %v3448_v27  ;;  %v3465_v63 = vmul.f32 %v4719_v53, %v5280_v56  ;;  %v3466_v22 = vmul.f32 %v4720_v48, %v5280_v56  ;;  %v3455_v51 = vadd.f32 %v4900_v20, %v3449_v11 }
 0x2a9   : > { %v3456_v0 = vadd.f32 %v4900_v20, %v3450_v12  ;;  %v3457_v36 = vadd.f32 %v4900_v20, %v3451_v28  ;;  %v3467_v31 = vmul.f32 %v6978_v25, %v5280_v56  ;;  %v3458_v5 = vadd.f32 %v4900_v20, %v3452_v1 }
 0x2aa   : > { %v3468_v13 = vmul.f32 %v4722_v14, %v5280_v56  ;;  %v3469_v18 = vmul.f32 %v7086_v32, %v5280_v56  ;;  %v3470_v39 = vmul.f32 %v4724_v6, %v5280_v56  ;;  %v3471_v17 = vadd.f32 %v3465_v63, %v3429_v26 }
 0x2ab   : > { %v3472_v23 = vadd.f32 %v3466_v22, %v3430_v29  ;;  %v3477_v3 = vmul.f32 %v4719_v53, %v5283_v57  ;;  %v3478_v43 = vmul.f32 %v4720_v48, %v5283_v57  ;;  %v3473_v24 = vadd.f32 %v3467_v31, %v3431_v34  ;;  %v4725_v34 = vld [vmem:[#allocation2 + $0x189] sm:$0xff] }
 0x2ac   : > { %v3474_v15 = vadd.f32 %v3468_v13, %v3432_v54  ;;  %v3475_v7 = vadd.f32 %v3469_v18, %v3433_v58  ;;  %v3479_v50 = vmul.f32 %v6978_v25, %v5283_v57  ;;  %v3476_v4 = vadd.f32 %v3470_v39, %v3434_v8  ;;  %v4726_v54 = vld [vmem:[#allocation2 + $0x191] sm:$0x7f] }
 0x2ad   : > { %v3480_v21 = vmul.f32 %v4722_v14, %v5283_v57  ;;  %v3481_v40 = vmul.f32 %v7086_v32, %v5283_v57  ;;  %v3482_v56 = vmul.f32 %v4724_v6, %v5283_v57  ;;  %v3483_v26 = vadd.f32 %v3477_v3, %v3441_v10 }
 0x2ae   : > { %v3484_v29 = vadd.f32 %v3478_v43, %v3442_v42  ;;  %v3489_v27 = vmul.f32 %v4719_v53, %v5286_v60  ;;  %v3490_v11 = vmul.f32 %v4720_v48, %v5286_v60  ;;  %v3485_v58 = vadd.f32 %v3479_v50, %v3443_v44  ;;  %v4728_v42 = vld [vmem:[#allocation2 + $0x1b1] sm:$0x7f]  ;;  %v7931_v50 = vld [vmem:[#allocation26_spill] sm:$0xff] }
 0x2af   : > { %v3486_v12 = vadd.f32 %v3480_v21, %v3444_v38  ;;  %v3487_v28 = vadd.f32 %v3481_v40, %v3445_v41  ;;  %v3491_v8 = vmul.f32 %v6978_v25, %v5286_v60  ;;  %v3488_v1 = vadd.f32 %v3482_v56, %v3446_v9  ;;  %v4730_v53 = vld [vmem:[#allocation2 + $0x1d1] sm:$0x7f] }
 0x2b0   : > { %v3492_v20 = vmul.f32 %v4722_v14, %v5286_v60  ;;  %v3493_v57 = vmul.f32 %v7086_v32, %v5286_v60  ;;  %v3494_v10 = vmul.f32 %v4724_v6, %v5286_v60  ;;  %v3495_v63 = vadd.f32 %v3489_v27, %v3453_v59 }
 0x2b1   : > { %v3496_v48 = vadd.f32 %v3490_v11, %v3454_v33  ;;  %v3507_v22 = vmul.f32 %v4725_v34, %v7863_v35  ;;  %v3508_v44 = vmul.f32 %v4726_v54, %v7863_v35  ;;  %v3497_v38 = vadd.f32 %v3491_v8, %v3455_v51 }
 0x2b2   : > { %v3498_v41 = vadd.f32 %v3492_v20, %v3456_v0  ;;  %v3499_v31 = vadd.f32 %v3493_v57, %v3457_v36  ;;  %v3509_v25 = vmul.f32 %v7004_v62, %v7863_v35  ;;  %v3500_v9 = vadd.f32 %v3494_v10, %v3458_v5  ;;  %v7932_v57 = vld [vmem:[#allocation27_spill] sm:$0xff] }
 0x2b3   : > { %v3510_v14 = vmul.f32 %v4728_v42, %v7863_v35  ;;  %v3511_v60 = vmul.f32 %v7115_v45, %v7863_v35  ;;  %v3512_v6 = vmul.f32 %v4730_v53, %v7863_v35  ;;  %v3513_v59 = vadd.f32 %v3507_v22, %v3471_v17 }
 0x2b4   : > { %v3514_v33 = vadd.f32 %v3508_v44, %v3472_v23  ;;  %v3519_v13 = vmul.f32 %v4725_v34, %v7897_v47  ;;  %v3520_v18 = vmul.f32 %v4726_v54, %v7897_v47  ;;  %v3515_v51 = vadd.f32 %v3509_v25, %v3473_v24  ;;  %v4731_v24 = vld [vmem:[#allocation2 + $0x18a] sm:$0xff] }
 0x2b5   : > { %v3516_v0 = vadd.f32 %v3510_v14, %v3474_v15  ;;  %v3517_v36 = vadd.f32 %v3511_v60, %v3475_v7  ;;  %v3521_v39 = vmul.f32 %v7004_v62, %v7897_v47  ;;  %v3518_v5 = vadd.f32 %v3512_v6, %v3476_v4  ;;  %v4732_v15 = vld [vmem:[#allocation2 + $0x192] sm:$0x7f] }
 0x2b6   : > { %v3522_v3 = vmul.f32 %v4728_v42, %v7897_v47  ;;  %v3523_v43 = vmul.f32 %v7115_v45, %v7897_v47  ;;  %v3524_v35 = vmul.f32 %v4730_v53, %v7897_v47  ;;  %v3525_v17 = vadd.f32 %v3519_v13, %v3483_v26  ;;  %v7933_v25 = vld [vmem:[#allocation28_spill] sm:$0xff] }
 0x2b7   : > { %v3526_v23 = vadd.f32 %v3520_v18, %v3484_v29  ;;  %v3531_v21 = vmul.f32 %v4725_v34, %v7931_v50  ;;  %v3532_v40 = vmul.f32 %v4726_v54, %v7931_v50  ;;  %v3527_v7 = vadd.f32 %v3521_v39, %v3485_v58  ;;  %v4734_v29 = vld [vmem:[#allocation2 + $0x1b2] sm:$0x7f] }
 0x2b8   : > { %v3528_v56 = vadd.f32 %v3522_v3, %v3486_v12  ;;  %v3529_v27 = vadd.f32 %v3523_v43, %v3487_v28  ;;  %v3533_v4 = vmul.f32 %v7004_v62, %v7931_v50  ;;  %v3530_v11 = vadd.f32 %v3524_v35, %v3488_v1  ;;  %v4736_v34 = vld [vmem:[#allocation2 + $0x1d2] sm:$0x7f] }
 0x2b9   : > { %v3534_v8 = vmul.f32 %v4728_v42, %v7931_v50  ;;  %v3535_v47 = vmul.f32 %v7115_v45, %v7931_v50  ;;  %v3536_v26 = vmul.f32 %v4730_v53, %v7931_v50  ;;  %v3537_v20 = vadd.f32 %v3531_v21, %v3495_v63  ;;  %v7934_v3 = vld [vmem:[#allocation29_spill] sm:$0xff] }
 0x2ba   : > { %v3538_v54 = vadd.f32 %v3532_v40, %v3496_v48  ;;  %v3549_v10 = vmul.f32 %v4731_v24, %v7932_v57  ;;  %v3550_v58 = vmul.f32 %v4732_v15, %v7932_v57  ;;  %v3539_v12 = vadd.f32 %v3533_v4, %v3497_v38 }
 0x2bb   : > { %v3540_v28 = vadd.f32 %v3534_v8, %v3498_v41  ;;  %v3541_v22 = vadd.f32 %v3535_v47, %v3499_v31  ;;  %v3551_v62 = vmul.f32 %v7030_v2, %v7932_v57  ;;  %v3542_v1 = vadd.f32 %v3536_v26, %v3500_v9 }
 0x2bc   : > { %v3552_v42 = vmul.f32 %v4734_v29, %v7932_v57  ;;  %v3553_v53 = vmul.f32 %v7144_v30, %v7932_v57  ;;  %v3554_v44 = vmul.f32 %v4736_v34, %v7932_v57  ;;  %v3555_v63 = vadd.f32 %v3549_v10, %v3513_v59 }
 0x2bd   : > { %v3556_v48 = vadd.f32 %v3550_v58, %v3514_v33  ;;  %v3561_v14 = vmul.f32 %v4731_v24, %v7933_v25  ;;  %v3562_v60 = vmul.f32 %v4732_v15, %v7933_v25  ;;  %v3557_v38 = vadd.f32 %v3551_v62, %v3515_v51  ;;  %v4737_v51 = vld [vmem:[#allocation2 + $0x1a7] sm:$0xff] }
 0x2be   : > { %v3558_v41 = vadd.f32 %v3552_v42, %v3516_v0  ;;  %v3559_v31 = vadd.f32 %v3553_v53, %v3517_v36  ;;  %v3563_v6 = vmul.f32 %v7030_v2, %v7933_v25  ;;  %v3560_v9 = vadd.f32 %v3554_v44, %v3518_v5  ;;  %v4738_v0 = vld [vmem:[#allocation2 + $0x1af] sm:$0x7f] }
 0x2bf   : > { %v3564_v13 = vmul.f32 %v4734_v29, %v7933_v25  ;;  %v3565_v18 = vmul.f32 %v7144_v30, %v7933_v25  ;;  %v3566_v39 = vmul.f32 %v4736_v34, %v7933_v25  ;;  %v3567_v59 = vadd.f32 %v3561_v14, %v3525_v17  ;;  %v7936_v42 = vld [vmem:[#allocation31_spill] sm:$0xff] }
 0x2c0   : > { %v3568_v33 = vadd.f32 %v3562_v60, %v3526_v23  ;;  %v3573_v43 = vmul.f32 %v4731_v24, %v7934_v3  ;;  %v3574_v35 = vmul.f32 %v4732_v15, %v7934_v3  ;;  %v3569_v36 = vadd.f32 %v3563_v6, %v3527_v7  ;;  %v4740_v23 = vld [vmem:[#allocation2 + $0x1cf] sm:$0x7f]  ;;  %v7281_v24 = vld [vmem:[#allocation2 + $0x1e7] sm:$0xff] }
 0x2c1   : > { %v3570_v50 = vadd.f32 %v3564_v13, %v3528_v56  ;;  %v3571_v21 = vadd.f32 %v3565_v18, %v3529_v27  ;;  %v3575_v5 = vmul.f32 %v7030_v2, %v7934_v3  ;;  %v3572_v40 = vadd.f32 %v3566_v39, %v3530_v11  ;;  %v4742_v15 = vld [vmem:[#allocation2 + $0x1ef] sm:$0x7f]  ;;  %v7935_v7 = vld [vmem:[#allocation30_spill] sm:$0xff] }
 0x2c2   : > { %v3576_v4 = vmul.f32 %v4734_v29, %v7934_v3  ;;  %v3577_v8 = vmul.f32 %v7144_v30, %v7934_v3  ;;  %v3578_v17 = vmul.f32 %v4736_v34, %v7934_v3  ;;  %v3579_v47 = vadd.f32 %v3573_v43, %v3537_v20  ;;  %v7937_v13 = vld [vmem:[#allocation32_spill] sm:$0xff] }
 0x2c3   : > { %v3580_v26 = vadd.f32 %v3574_v35, %v3538_v54  ;;  %v3592_v56 = vmul.f32 %v4737_v51, %v7935_v7  ;;  %v3593_v27 = vmul.f32 %v4738_v0, %v7935_v7  ;;  %v3581_v57 = vadd.f32 %v3575_v5, %v3539_v12 }
 0x2c4   : > { %v3582_v2 = vadd.f32 %v3576_v4, %v3540_v28  ;;  %v3583_v11 = vadd.f32 %v3577_v8, %v3541_v22  ;;  %v3594_v29 = vmul.f32 %v7057_v37, %v7935_v7  ;;  %v3584_v10 = vadd.f32 %v3578_v17, %v3542_v1 }
 0x2c5   : > { %v3595_v58 = vmul.f32 %v4740_v23, %v7935_v7  ;;  %v3596_v34 = vmul.f32 %v7281_v24, %v7935_v7  ;;  %v3597_v62 = vmul.f32 %v4742_v15, %v7935_v7  ;;  %v3598_v20 = vadd.f32 %v3592_v56, %v3555_v63 }
 0x2c6   : > { %v3599_v54 = vadd.f32 %v3593_v27, %v3556_v48  ;;  %v3604_v53 = vmul.f32 %v4737_v51, %v7936_v42  ;;  %v3605_v44 = vmul.f32 %v4738_v0, %v7936_v42  ;;  %v3600_v12 = vadd.f32 %v3594_v29, %v3557_v38  ;;  %v4743_v38 = vld [vmem:[#allocation2 + $0x1a8] sm:$0xff] }
 0x2c7   : > { %v3601_v28 = vadd.f32 %v3595_v58, %v3558_v41  ;;  %v3602_v22 = vadd.f32 %v3596_v34, %v3559_v31  ;;  %v3606_v25 = vmul.f32 %v7057_v37, %v7936_v42  ;;  %v3603_v1 = vadd.f32 %v3597_v62, %v3560_v9  ;;  %v4744_v41 = vld [vmem:[#allocation2 + $0x1b0] sm:$0x7f]  ;;  %v7939_v58 = vld [vmem:[#allocation34_spill] sm:$0xff] }
 0x2c8   : > { %v3607_v14 = vmul.f32 %v4740_v23, %v7936_v42  ;;  %v3608_v60 = vmul.f32 %v7281_v24, %v7936_v42  ;;  %v3609_v6 = vmul.f32 %v4742_v15, %v7936_v42  ;;  %v3610_v63 = vadd.f32 %v3604_v53, %v3567_v59 }
 0x2c9   : > { %v3611_v48 = vadd.f32 %v3605_v44, %v3568_v33  ;;  %v3616_v18 = vmul.f32 %v4737_v51, %v7937_v13  ;;  %v3617_v39 = vmul.f32 %v4738_v0, %v7937_v13  ;;  %v3612_v31 = vadd.f32 %v3606_v25, %v3569_v36  ;;  %v4746_v33 = vld [vmem:[#allocation2 + $0x1d0] sm:$0x7f]  ;;  %v7307_v51 = vld [vmem:[#allocation2 + $0x1e8] sm:$0xff]  ;;  %v7938_v36 = vld [vmem:[#allocation33_spill] sm:$0xff] }
 0x2ca   : > { %v3613_v3 = vadd.f32 %v3607_v14, %v3570_v50  ;;  %v3614_v43 = vadd.f32 %v3608_v60, %v3571_v21  ;;  %v3618_v9 = vmul.f32 %v7057_v37, %v7937_v13  ;;  %v3615_v35 = vadd.f32 %v3609_v6, %v3572_v40  ;;  %v4748_v0 = vld [vmem:[#allocation2 + $0x1f0] sm:$0x7f]  ;;  %v7940_v14 = vld [vmem:[#allocation35_spill] sm:$0xff] }
 0x2cb   : > { %v3619_v5 = vmul.f32 %v4740_v23, %v7937_v13  ;;  %v3620_v4 = vmul.f32 %v7281_v24, %v7937_v13  ;;  %v3621_v59 = vmul.f32 %v4742_v15, %v7937_v13  ;;  %v3622_v8 = vadd.f32 %v3616_v18, %v3579_v47 }
 0x2cc   : > { %v3623_v17 = vadd.f32 %v3617_v39, %v3580_v26  ;;  %v3634_v50 = vmul.f32 %v4743_v38, %v7938_v36  ;;  %v3635_v21 = vmul.f32 %v4744_v41, %v7938_v36  ;;  %v3624_v7 = vadd.f32 %v3618_v9, %v3581_v57 }
 0x2cd   : > { %v3625_v37 = vadd.f32 %v3619_v5, %v3582_v2  ;;  %v3626_v40 = vadd.f32 %v3620_v4, %v3583_v11  ;;  %v3636_v23 = vmul.f32 %v7086_v32, %v7938_v36  ;;  %v3627_v56 = vadd.f32 %v3621_v59, %v3584_v10 }
 0x2ce   : > { %v3637_v27 = vmul.f32 %v4746_v33, %v7938_v36  ;;  %v3638_v15 = vmul.f32 %v7307_v51, %v7938_v36  ;;  %v3639_v29 = vmul.f32 %v4748_v0, %v7938_v36  ;;  %v3640_v47 = vadd.f32 %v3634_v50, %v3598_v20 }
 0x2cf   : > { %v3641_v26 = vadd.f32 %v3635_v21, %v3599_v54  ;;  %v3646_v34 = vmul.f32 %v4743_v38, %v7939_v58  ;;  %v3647_v62 = vmul.f32 %v4744_v41, %v7939_v58  ;;  %v3642_v57 = vadd.f32 %v3636_v23, %v3600_v12  ;;  %v4749_v12 = vld [vmem:[#allocation2 + $0x1a9] sm:$0xff] }
 0x2d0   : > { %v3643_v2 = vadd.f32 %v3637_v27, %v3601_v28  ;;  %v3644_v11 = vadd.f32 %v3638_v15, %v3602_v22  ;;  %v3648_v42 = vmul.f32 %v7086_v32, %v7939_v58  ;;  %v3645_v10 = vadd.f32 %v3639_v29, %v3603_v1  ;;  %v4750_v28 = vld [vmem:[#allocation2 + $0x1b1] sm:$0x7f]  ;;  %v7942_v27 = vld [vmem:[#allocation37_spill] sm:$0xff] }
 0x2d1   : > { %v3649_v53 = vmul.f32 %v4746_v33, %v7939_v58  ;;  %v3650_v44 = vmul.f32 %v7307_v51, %v7939_v58  ;;  %v3651_v25 = vmul.f32 %v4748_v0, %v7939_v58  ;;  %v3652_v20 = vadd.f32 %v3646_v34, %v3610_v63 }
 0x2d2   : > { %v3653_v54 = vadd.f32 %v3647_v62, %v3611_v48  ;;  %v3658_v60 = vmul.f32 %v4743_v38, %v7940_v14  ;;  %v3659_v6 = vmul.f32 %v4744_v41, %v7940_v14  ;;  %v3654_v22 = vadd.f32 %v3648_v42, %v3612_v31  ;;  %v4752_v48 = vld [vmem:[#allocation2 + $0x1d1] sm:$0x7f]  ;;  %v7333_v38 = vld [vmem:[#allocation2 + $0x1e9] sm:$0xff] }
 0x2d3   : > { %v3655_v13 = vadd.f32 %v3649_v53, %v3613_v3  ;;  %v3656_v18 = vadd.f32 %v3650_v44, %v3614_v43  ;;  %v3660_v1 = vmul.f32 %v7086_v32, %v7940_v14  ;;  %v3657_v39 = vadd.f32 %v3651_v25, %v3615_v35  ;;  %v4754_v41 = vld [vmem:[#allocation2 + $0x1f1] sm:$0x7f]  ;;  %v7943_v53 = vld [vmem:[#allocation38_spill] sm:$0xff] }
 0x2d4   : > { %v3661_v9 = vmul.f32 %v4746_v33, %v7940_v14  ;;  %v3662_v5 = vmul.f32 %v7307_v51, %v7940_v14  ;;  %v3663_v63 = vmul.f32 %v4748_v0, %v7940_v14  ;;  %v3664_v4 = vadd.f32 %v3658_v60, %v3622_v8  ;;  %v7941_v31 = vld [vmem:[#allocation36_spill] sm:$0xff] }
 0x2d5   : > { %v3665_v59 = vadd.f32 %v3659_v6, %v3623_v17  ;;  %v3676_v3 = vmul.f32 %v4749_v12, %v7941_v31  ;;  %v3677_v43 = vmul.f32 %v4750_v28, %v7941_v31  ;;  %v3666_v36 = vadd.f32 %v3660_v1, %v3624_v7 }
 0x2d6   : > { %v3667_v32 = vadd.f32 %v3661_v9, %v3625_v37  ;;  %v3668_v35 = vadd.f32 %v3662_v5, %v3626_v40  ;;  %v3678_v33 = vmul.f32 %v7115_v45, %v7941_v31  ;;  %v3669_v50 = vadd.f32 %v3663_v63, %v3627_v56 }
 0x2d7   : > { %v3679_v21 = vmul.f32 %v4752_v48, %v7941_v31  ;;  %v3680_v0 = vmul.f32 %v7333_v38, %v7941_v31  ;;  %v3681_v23 = vmul.f32 %v4754_v41, %v7941_v31  ;;  %v3682_v8 = vadd.f32 %v3676_v3, %v3640_v47 }
 0x2d8   : > { %v3683_v17 = vadd.f32 %v3677_v43, %v3641_v26  ;;  %v3688_v15 = vmul.f32 %v4749_v12, %v7942_v27  ;;  %v3689_v29 = vmul.f32 %v4750_v28, %v7942_v27  ;;  %v3684_v7 = vadd.f32 %v3678_v33, %v3642_v57  ;;  %v4755_v57 = vld [vmem:[#allocation2 + $0x1aa] sm:$0xff] }
 0x2d9   : > { %v3685_v37 = vadd.f32 %v3679_v21, %v3643_v2  ;;  %v3686_v40 = vadd.f32 %v3680_v0, %v3644_v11  ;;  %v3690_v58 = vmul.f32 %v7115_v45, %v7942_v27  ;;  %v3687_v56 = vadd.f32 %v3681_v23, %v3645_v10  ;;  %v4756_v2 = vld [vmem:[#allocation2 + $0x1b2] sm:$0x7f] }
 0x2da   : > { %v3691_v34 = vmul.f32 %v4752_v48, %v7942_v27  ;;  %v3692_v62 = vmul.f32 %v7333_v38, %v7942_v27  ;;  %v3693_v42 = vmul.f32 %v4754_v41, %v7942_v27  ;;  %v3694_v47 = vadd.f32 %v3688_v15, %v3652_v20  ;;  %v7945_v21 = vld [vmem:[#allocation40_spill] sm:$0xff] }
 0x2db   : > { %v3695_v26 = vadd.f32 %v3689_v29, %v3653_v54  ;;  %v3700_v44 = vmul.f32 %v4749_v12, %v7943_v53  ;;  %v3701_v25 = vmul.f32 %v4750_v28, %v7943_v53  ;;  %v3696_v11 = vadd.f32 %v3690_v58, %v3654_v22  ;;  %v4758_v54 = vld [vmem:[#allocation2 + $0x1d2] sm:$0x7f]  ;;  %v7359_v12 = vld [vmem:[#allocation2 + $0x1ea] sm:$0xff] }
 0x2dc   : > { %v3697_v14 = vadd.f32 %v3691_v34, %v3655_v13  ;;  %v3698_v60 = vadd.f32 %v3692_v62, %v3656_v18  ;;  %v3702_v10 = vmul.f32 %v7115_v45, %v7943_v53  ;;  %v3699_v6 = vadd.f32 %v3693_v42, %v3657_v39  ;;  %v4760_v28 = vld [vmem:[#allocation2 + $0x1f2] sm:$0x7f]  ;;  %v7944_v22 = vld [vmem:[#allocation39_spill] sm:$0xff] }
 0x2dd   : > { %v3703_v1 = vmul.f32 %v4752_v48, %v7943_v53  ;;  %v3704_v9 = vmul.f32 %v7333_v38, %v7943_v53  ;;  %v3705_v20 = vmul.f32 %v4754_v41, %v7943_v53  ;;  %v3706_v5 = vadd.f32 %v3700_v44, %v3664_v4  ;;  %v7946_v34 = vld [vmem:[#allocation41_spill] sm:$0xff] }
 0x2de   : > { %v3707_v63 = vadd.f32 %v3701_v25, %v3665_v59  ;;  %v3718_v13 = vmul.f32 %v4755_v57, %v7944_v22  ;;  %v3719_v18 = vmul.f32 %v4756_v2, %v7944_v22  ;;  %v3708_v31 = vadd.f32 %v3702_v10, %v3666_v36 }
 0x2df   : > { %v3709_v45 = vadd.f32 %v3703_v1, %v3667_v32  ;;  %v3710_v39 = vadd.f32 %v3704_v9, %v3668_v35  ;;  %v3720_v48 = vmul.f32 %v7144_v30, %v7944_v22  ;;  %v3711_v3 = vadd.f32 %v3705_v20, %v3669_v50 }
 0x2e0   : > { %v3721_v43 = vmul.f32 %v4758_v54, %v7944_v22  ;;  %v3722_v41 = vmul.f32 %v7359_v12, %v7944_v22  ;;  %v3723_v33 = vmul.f32 %v4760_v28, %v7944_v22  ;;  %v3724_v4 = vadd.f32 %v3718_v13, %v3682_v8 }
 0x2e1   : > { %v3725_v59 = vadd.f32 %v3719_v18, %v3683_v17  ;;  %v3730_v0 = vmul.f32 %v4755_v57, %v7945_v21  ;;  %v3731_v23 = vmul.f32 %v4756_v2, %v7945_v21  ;;  %v3726_v36 = vadd.f32 %v3720_v48, %v3684_v7  ;;  %v4761_v7 = vld [vmem:[#allocation2 + $0x1c7] sm:$0xff] }
 0x2e2   : > { %v3727_v32 = vadd.f32 %v3721_v43, %v3685_v37  ;;  %v3728_v35 = vadd.f32 %v3722_v41, %v3686_v40  ;;  %v3732_v27 = vmul.f32 %v7144_v30, %v7945_v21  ;;  %v3729_v50 = vadd.f32 %v3723_v33, %v3687_v56  ;;  %v4762_v37 = vld [vmem:[#allocation2 + $0x1cf] sm:$0x7f] }
 0x2e3   : > { %v3733_v15 = vmul.f32 %v4758_v54, %v7945_v21  ;;  %v3734_v29 = vmul.f32 %v7359_v12, %v7945_v21  ;;  %v3735_v58 = vmul.f32 %v4760_v28, %v7945_v21  ;;  %v3736_v8 = vadd.f32 %v3730_v0, %v3694_v47  ;;  %v7948_v43 = vld [vmem:[#allocation43_spill] sm:$0xff] }
 0x2e4   : > { %v3737_v17 = vadd.f32 %v3731_v23, %v3695_v26  ;;  %v3742_v62 = vmul.f32 %v4755_v57, %v7946_v34  ;;  %v3743_v42 = vmul.f32 %v4756_v2, %v7946_v34  ;;  %v3738_v40 = vadd.f32 %v3732_v27, %v3696_v11  ;;  %v4764_v26 = vld [vmem:[#allocation2 + $0x1ef] sm:$0x7f]  ;;  %v7385_v57 = vld [vmem:[#allocation2 + $0x207] sm:$0xff] }
 0x2e5   : > { %v3739_v53 = vadd.f32 %v3733_v15, %v3697_v14  ;;  %v3740_v44 = vadd.f32 %v3734_v29, %v3698_v60  ;;  %v3744_v56 = vmul.f32 %v7144_v30, %v7946_v34  ;;  %v3741_v25 = vadd.f32 %v3735_v58, %v3699_v6  ;;  %v4766_v2 = vld [vmem:[#allocation2 + $0x20f] sm:$0x7f]  ;;  %v7947_v11 = vld [vmem:[#allocation42_spill] sm:$0xff] }
 0x2e6   : > { %v3745_v10 = vmul.f32 %v4758_v54, %v7946_v34  ;;  %v3746_v1 = vmul.f32 %v7359_v12, %v7946_v34  ;;  %v3747_v47 = vmul.f32 %v4760_v28, %v7946_v34  ;;  %v3748_v9 = vadd.f32 %v3742_v62, %v3706_v5  ;;  %v7949_v15 = vld [vmem:[#allocation44_spill] sm:$0xff] }
 0x2e7   : > { %v3749_v20 = vadd.f32 %v3743_v42, %v3707_v63  ;;  %v3761_v14 = vmul.f32 %v4761_v7, %v7947_v11  ;;  %v3762_v60 = vmul.f32 %v4762_v37, %v7947_v11  ;;  %v3750_v22 = vadd.f32 %v3744_v56, %v3708_v31 }
 0x2e8   : > { %v3751_v30 = vadd.f32 %v3745_v10, %v3709_v45  ;;  %v3752_v6 = vadd.f32 %v3746_v1, %v3710_v39  ;;  %v3763_v54 = vmul.f32 %v7281_v24, %v7947_v11  ;;  %v3753_v13 = vadd.f32 %v3747_v47, %v3711_v3 }
 0x2e9   : > { %v3764_v18 = vmul.f32 %v4764_v26, %v7947_v11  ;;  %v3765_v28 = vmul.f32 %v7385_v57, %v7947_v11  ;;  %v3766_v48 = vmul.f32 %v4766_v2, %v7947_v11  ;;  %v3767_v5 = vadd.f32 %v3761_v14, %v3724_v4 }
 0x2ea   : > { %v3768_v63 = vadd.f32 %v3762_v60, %v3725_v59  ;;  %v3773_v41 = vmul.f32 %v4761_v7, %v7948_v43  ;;  %v3774_v33 = vmul.f32 %v4762_v37, %v7948_v43  ;;  %v3769_v31 = vadd.f32 %v3763_v54, %v3726_v36  ;;  %v4767_v36 = vld [vmem:[#allocation2 + $0x1c8] sm:$0xff] }
 0x2eb   : > { %v3770_v45 = vadd.f32 %v3764_v18, %v3727_v32  ;;  %v3771_v39 = vadd.f32 %v3765_v28, %v3728_v35  ;;  %v3775_v21 = vmul.f32 %v7281_v24, %v7948_v43  ;;  %v3772_v3 = vadd.f32 %v3766_v48, %v3729_v50  ;;  %v4768_v32 = vld [vmem:[#allocation2 + $0x1d0] sm:$0x7f]  ;;  %v7951_v28 = vld [vmem:[#allocation46_spill] sm:$0xff] }
 0x2ec   : > { %v3776_v0 = vmul.f32 %v4764_v26, %v7948_v43  ;;  %v3777_v23 = vmul.f32 %v7385_v57, %v7948_v43  ;;  %v3778_v27 = vmul.f32 %v4766_v2, %v7948_v43  ;;  %v3779_v4 = vadd.f32 %v3773_v41, %v3736_v8 }
 0x2ed   : > { %v3780_v59 = vadd.f32 %v3774_v33, %v3737_v17  ;;  %v3785_v29 = vmul.f32 %v4761_v7, %v7949_v15  ;;  %v3786_v58 = vmul.f32 %v4762_v37, %v7949_v15  ;;  %v3781_v35 = vadd.f32 %v3775_v21, %v3738_v40  ;;  %v4770_v17 = vld [vmem:[#allocation2 + $0x1f0] sm:$0x7f]  ;;  %v7411_v7 = vld [vmem:[#allocation2 + $0x208] sm:$0xff]  ;;  %v7950_v40 = vld [vmem:[#allocation45_spill] sm:$0xff] }
 0x2ee   : > { %v3782_v34 = vadd.f32 %v3776_v0, %v3739_v53  ;;  %v3783_v62 = vadd.f32 %v3777_v23, %v3740_v44  ;;  %v3787_v50 = vmul.f32 %v7281_v24, %v7949_v15  ;;  %v3784_v42 = vadd.f32 %v3778_v27, %v3741_v25  ;;  %v4772_v37 = vld [vmem:[#allocation2 + $0x210] sm:$0x7f]  ;;  %v7952_v23 = vld [vmem:[#allocation47_spill] sm:$0xff] }
 0x2ef   : > { %v3788_v56 = vmul.f32 %v4764_v26, %v7949_v15  ;;  %v3789_v10 = vmul.f32 %v7385_v57, %v7949_v15  ;;  %v3790_v8 = vmul.f32 %v4766_v2, %v7949_v15  ;;  %v3791_v1 = vadd.f32 %v3785_v29, %v3748_v9 }
 0x2f0   : > { %v3792_v47 = vadd.f32 %v3786_v58, %v3749_v20  ;;  %v3803_v53 = vmul.f32 %v4767_v36, %v7950_v40  ;;  %v3804_v44 = vmul.f32 %v4768_v32, %v7950_v40  ;;  %v3793_v11 = vadd.f32 %v3787_v50, %v3750_v22 }
 0x2f1   : > { %v3794_v14 = vadd.f32 %v3788_v56, %v3751_v30  ;;  %v3795_v25 = vadd.f32 %v3789_v10, %v3752_v6  ;;  %v3805_v26 = vmul.f32 %v7307_v51, %v7950_v40  ;;  %v3796_v60 = vadd.f32 %v3790_v8, %v3753_v13 }
 0x2f2   : > { %v3806_v54 = vmul.f32 %v4770_v17, %v7950_v40  ;;  %v3807_v2 = vmul.f32 %v7411_v7, %v7950_v40  ;;  %v3808_v18 = vmul.f32 %v4772_v37, %v7950_v40  ;;  %v3809_v9 = vadd.f32 %v3803_v53, %v3767_v5 }
 0x2f3   : > { %v3810_v20 = vadd.f32 %v3804_v44, %v3768_v63  ;;  %v3815_v48 = vmul.f32 %v4767_v36, %v7951_v28  ;;  %v3816_v43 = vmul.f32 %v4768_v32, %v7951_v28  ;;  %v3811_v22 = vadd.f32 %v3805_v26, %v3769_v31  ;;  %v4773_v31 = vld [vmem:[#allocation2 + $0x1c9] sm:$0xff] }
 0x2f4   : > { %v3812_v30 = vadd.f32 %v3806_v54, %v3770_v45  ;;  %v3813_v6 = vadd.f32 %v3807_v2, %v3771_v39  ;;  %v3817_v41 = vmul.f32 %v7307_v51, %v7951_v28  ;;  %v3814_v13 = vadd.f32 %v3808_v18, %v3772_v3  ;;  %v4774_v45 = vld [vmem:[#allocation2 + $0x1d1] sm:$0x7f]  ;;  %v7954_v18 = vld [vmem:[#allocation49_spill] sm:$0xff] }
 0x2f5   : > { %v3818_v33 = vmul.f32 %v4770_v17, %v7951_v28  ;;  %v3819_v21 = vmul.f32 %v7411_v7, %v7951_v28  ;;  %v3820_v0 = vmul.f32 %v4772_v37, %v7951_v28  ;;  %v3821_v5 = vadd.f32 %v3815_v48, %v3779_v4 }
 0x2f6   : > { %v3822_v63 = vadd.f32 %v3816_v43, %v3780_v59  ;;  %v3827_v27 = vmul.f32 %v4767_v36, %v7952_v23  ;;  %v3828_v15 = vmul.f32 %v4768_v32, %v7952_v23  ;;  %v3823_v39 = vadd.f32 %v3817_v41, %v3781_v35  ;;  %v4776_v59 = vld [vmem:[#allocation2 + $0x1f1] sm:$0x7f]  ;;  %v7437_v36 = vld [vmem:[#allocation2 + $0x209] sm:$0xff] }
 0x2f7   : > { %v3824_v29 = vadd.f32 %v3818_v33, %v3782_v34  ;;  %v3825_v58 = vadd.f32 %v3819_v21, %v3783_v62  ;;  %v3829_v3 = vmul.f32 %v7307_v51, %v7952_v23  ;;  %v3826_v50 = vadd.f32 %v3820_v0, %v3784_v42  ;;  %v4778_v32 = vld [vmem:[#allocation2 + $0x211] sm:$0x7f]  ;;  %v7955_v0 = vld [vmem:[#allocation50_spill] sm:$0xff] }
 0x2f8   : > { %v3830_v56 = vmul.f32 %v4770_v17, %v7952_v23  ;;  %v3831_v10 = vmul.f32 %v7411_v7, %v7952_v23  ;;  %v3832_v4 = vmul.f32 %v4772_v37, %v7952_v23  ;;  %v3833_v8 = vadd.f32 %v3827_v27, %v3791_v1  ;;  %v7953_v35 = vld [vmem:[#allocation48_spill] sm:$0xff] }
 0x2f9   : > { %v3834_v40 = vadd.f32 %v3828_v15, %v3792_v47  ;;  %v3845_v34 = vmul.f32 %v4773_v31, %v7953_v35  ;;  %v3846_v62 = vmul.f32 %v4774_v45, %v7953_v35  ;;  %v3835_v53 = vadd.f32 %v3829_v3, %v3793_v11 }
 0x2fa   : > { %v3836_v44 = vadd.f32 %v3830_v56, %v3794_v14  ;;  %v3837_v42 = vadd.f32 %v3831_v10, %v3795_v25  ;;  %v3847_v17 = vmul.f32 %v7333_v38, %v7953_v35  ;;  %v3838_v26 = vadd.f32 %v3832_v4, %v3796_v60 }
 0x2fb   : > { %v3848_v54 = vmul.f32 %v4776_v59, %v7953_v35  ;;  %v3849_v37 = vmul.f32 %v7437_v36, %v7953_v35  ;;  %v3850_v2 = vmul.f32 %v4778_v32, %v7953_v35  ;;  %v3851_v1 = vadd.f32 %v3845_v34, %v3809_v9 }
 0x2fc   : > { %v3852_v47 = vadd.f32 %v3846_v62, %v3810_v20  ;;  %v3857_v28 = vmul.f32 %v4773_v31, %v7954_v18  ;;  %v3858_v48 = vmul.f32 %v4774_v45, %v7954_v18  ;;  %v3853_v11 = vadd.f32 %v3847_v17, %v3811_v22  ;;  %v4779_v22 = vld [vmem:[#allocation2 + $0x1ca] sm:$0xff] }
 0x2fd   : > { %v3854_v14 = vadd.f32 %v3848_v54, %v3812_v30  ;;  %v3855_v25 = vadd.f32 %v3849_v37, %v3813_v6  ;;  %v3859_v43 = vmul.f32 %v7333_v38, %v7954_v18  ;;  %v3856_v60 = vadd.f32 %v3850_v2, %v3814_v13  ;;  %v4780_v30 = vld [vmem:[#allocation2 + $0x1d2] sm:$0x7f] }
 0x2fe   : > { %v3860_v41 = vmul.f32 %v4776_v59, %v7954_v18  ;;  %v3861_v33 = vmul.f32 %v7437_v36, %v7954_v18  ;;  %v3862_v21 = vmul.f32 %v4778_v32, %v7954_v18  ;;  %v3863_v9 = vadd.f32 %v3857_v28, %v3821_v5 }
 0x2ff   : > { %v3864_v20 = vadd.f32 %v3858_v48, %v3822_v63  ;;  %v3869_v23 = vmul.f32 %v4773_v31, %v7955_v0  ;;  %v3870_v27 = vmul.f32 %v4774_v45, %v7955_v0  ;;  %v3865_v6 = vadd.f32 %v3859_v43, %v3823_v39  ;;  %v4782_v63 = vld [vmem:[#allocation2 + $0x1f2] sm:$0x7f]  ;;  %v7463_v31 = vld [vmem:[#allocation2 + $0x20a] sm:$0xff] }
 0x300   : > { %v3866_v15 = vadd.f32 %v3860_v41, %v3824_v29  ;;  %v3867_v3 = vadd.f32 %v3861_v33, %v3825_v58  ;;  %v3871_v13 = vmul.f32 %v7333_v38, %v7955_v0  ;;  %v3868_v56 = vadd.f32 %v3862_v21, %v3826_v50  ;;  %v4784_v45 = vld [vmem:[#allocation2 + $0x212] sm:$0x7f]  ;;  %v7956_v39 = vld [vmem:[#allocation51_spill] sm:$0xff] }
 0x301   : > { %v3872_v10 = vmul.f32 %v4776_v59, %v7955_v0  ;;  %v3873_v4 = vmul.f32 %v7437_v36, %v7955_v0  ;;  %v3874_v5 = vmul.f32 %v4778_v32, %v7955_v0  ;;  %v3875_v35 = vadd.f32 %v3869_v23, %v3833_v8 }
 0x302   : > { %v3876_v34 = vadd.f32 %v3870_v27, %v3834_v40  ;;  %v3887_v29 = vmul.f32 %v4779_v22, %v7956_v39  ;;  %v3888_v58 = vmul.f32 %v4780_v30, %v7956_v39  ;;  %v3877_v62 = vadd.f32 %v3871_v13, %v3835_v53 }
 0x303   : > { %v3878_v17 = vadd.f32 %v3872_v10, %v3836_v44  ;;  %v3879_v50 = vadd.f32 %v3873_v4, %v3837_v42  ;;  %v3889_v59 = vmul.f32 %v7359_v12, %v7956_v39  ;;  %v3880_v54 = vadd.f32 %v3874_v5, %v3838_v26 }
 0x304   : > { %v3890_v37 = vmul.f32 %v4782_v63, %v7956_v39  ;;  %v3891_v32 = vmul.f32 %v7463_v31, %v7956_v39  ;;  %v3892_v2 = vmul.f32 %v4784_v45, %v7956_v39  ;;  %v3893_v8 = vadd.f32 %v3887_v29, %v3851_v1 }
 0x305   : > { %v3894_v40 = vadd.f32 %v3888_v58, %v3852_v47  ;;  %v3899_v18 = vmul.f32 %v4779_v22, %v7857_v55  ;;  %v3900_v28 = vmul.f32 %v4780_v30, %v7857_v55  ;;  %v3895_v53 = vadd.f32 %v3889_v59, %v3853_v11  ;;  %v4786_v11 = vld [vmem:[#allocation2 + $0x1ef] sm:$0x7f] }
 0x306   : > { %v3896_v44 = vadd.f32 %v3890_v37, %v3854_v14  ;;  %v3897_v42 = vadd.f32 %v3891_v32, %v3855_v25  ;;  %v3901_v48 = vmul.f32 %v7359_v12, %v7857_v55  ;;  %v3898_v26 = vadd.f32 %v3892_v2, %v3856_v60  ;;  %v7957_v58 = vld [vmem:[#allocation55_spill] sm:$0xff] }
 0x307   : > { %v3902_v43 = vmul.f32 %v4782_v63, %v7857_v55  ;;  %v3903_v41 = vmul.f32 %v7463_v31, %v7857_v55  ;;  %v3904_v33 = vmul.f32 %v4784_v45, %v7857_v55  ;;  %v3905_v1 = vadd.f32 %v3899_v18, %v3863_v9  ;;  %v4788_v9 = vld [vmem:[#allocation2 + $0x20f] sm:$0x7f] }
 0x308   : > { %v3906_v47 = vadd.f32 %v3900_v28, %v3864_v20  ;;  %v3911_v21 = vmul.f32 %v4779_v22, %v7924_v16  ;;  %v3912_v0 = vmul.f32 %v4780_v30, %v7924_v16  ;;  %v3907_v14 = vadd.f32 %v3901_v48, %v3865_v6  ;;  %v4789_v20 = vld [vmem:[#allocation2 + $0x227] sm:$0xff]  ;;  %v4790_v22 = vld [vmem:[#allocation2 + $0x22f] sm:$0x7f] }
 0x309   : > { %v3908_v25 = vadd.f32 %v3902_v43, %v3866_v15  ;;  %v3909_v23 = vadd.f32 %v3903_v41, %v3867_v3  ;;  %v3913_v60 = vmul.f32 %v7359_v12, %v7924_v16  ;;  %v3910_v27 = vadd.f32 %v3904_v33, %v3868_v56 }
 0x30a   : > { %v3914_v13 = vmul.f32 %v4782_v63, %v7924_v16  ;;  %v3915_v10 = vmul.f32 %v7463_v31, %v7924_v16  ;;  %v3916_v55 = vmul.f32 %v4784_v45, %v7924_v16  ;;  %v3917_v4 = vadd.f32 %v3911_v21, %v3875_v35 }
 0x30b   : > { %v3918_v30 = vadd.f32 %v3912_v0, %v3876_v34  ;;  %v3930_v6 = vmul.f32 %v7281_v24, %v7892_v61  ;;  %v3931_v15 = vmul.f32 %v4786_v11, %v7892_v61  ;;  %v3919_v3 = vadd.f32 %v3913_v60, %v3877_v62  ;;  %v4796_v0 = vld [vmem:[#allocation2 + $0x230] sm:$0x7f] }
 0x30c   : > { %v3920_v5 = vadd.f32 %v3914_v13, %v3878_v17  ;;  %v3921_v56 = vadd.f32 %v3915_v10, %v3879_v50  ;;  %v3932_v63 = vmul.f32 %v7385_v57, %v7892_v61  ;;  %v3922_v39 = vadd.f32 %v3916_v55, %v3880_v54  ;;  %v4901_v55 = vld [vmem:[#allocation2 + $0x220] sm:$0xff] }
 0x30d   : > { %v3933_v29 = vmul.f32 %v4788_v9, %v7892_v61  ;;  %v3934_v16 = vmul.f32 %v4789_v20, %v7892_v61  ;;  %v3935_v45 = vmul.f32 %v4790_v22, %v7892_v61  ;;  %v3936_v35 = vadd.f32 %v3930_v6, %v3893_v8 }
 0x30e   : > { %v3937_v34 = vadd.f32 %v3931_v15, %v3894_v40  ;;  %v3942_v59 = vmul.f32 %v7281_v24, %v7957_v58  ;;  %v3943_v37 = vmul.f32 %v4786_v11, %v7957_v58  ;;  %v3938_v62 = vadd.f32 %v3932_v63, %v3895_v53  ;;  %v4792_v53 = vld [vmem:[#allocation2 + $0x1f0] sm:$0x7f] }
 0x30f   : > { %v3939_v17 = vadd.f32 %v3933_v29, %v3896_v44  ;;  %v3940_v50 = vadd.f32 %v3934_v16, %v3897_v42  ;;  %v3944_v32 = vmul.f32 %v7385_v57, %v7957_v58  ;;  %v3941_v54 = vadd.f32 %v3935_v45, %v3898_v26 }
 0x310   : > { %v3945_v2 = vmul.f32 %v4788_v9, %v7957_v58  ;;  %v3946_v18 = vmul.f32 %v4789_v20, %v7957_v58  ;;  %v3947_v61 = vmul.f32 %v4790_v22, %v7957_v58  ;;  %v3948_v8 = vadd.f32 %v3942_v59, %v3905_v1  ;;  %v4798_v58 = vld [vmem:[#allocation2 + $0x1f1] sm:$0x7f] }
 0x311   : > { %v3949_v40 = vadd.f32 %v3943_v37, %v3906_v47  ;;  %v3954_v28 = vmul.f32 %v7281_v24, %v7861_v49  ;;  %v3955_v48 = vmul.f32 %v4786_v11, %v7861_v49  ;;  %v3950_v44 = vadd.f32 %v3944_v32, %v3907_v14  ;;  %v4794_v47 = vld [vmem:[#allocation2 + $0x210] sm:$0x7f] }
 0x312   : > { %v3951_v42 = vadd.f32 %v3945_v2, %v3908_v25  ;;  %v3952_v43 = vadd.f32 %v3946_v18, %v3909_v23  ;;  %v3956_v26 = vmul.f32 %v7385_v57, %v7861_v49  ;;  %v3953_v41 = vadd.f32 %v3947_v61, %v3910_v27  ;;  %v4800_v18 = vld [vmem:[#allocation2 + $0x211] sm:$0x7f]  ;;  %v4801_v61 = vld [vmem:[#allocation2 + $0x229] sm:$0xff] }
 0x313   : > { %v3957_v33 = vmul.f32 %v4788_v9, %v7861_v49  ;;  %v3958_v21 = vmul.f32 %v4789_v20, %v7861_v49  ;;  %v3959_v1 = vmul.f32 %v4790_v22, %v7861_v49  ;;  %v3960_v60 = vadd.f32 %v3954_v28, %v3917_v4  ;;  %v7958_v4 = vld [vmem:[#allocation58_spill] sm:$0xff]  ;;  %v7959_v28 = vld [vmem:[#allocation59_spill] sm:$0xff] }
 0x314   : > { %v3961_v24 = vadd.f32 %v3955_v48, %v3918_v30  ;;  %v3972_v11 = vmul.f32 %v7307_v51, %v7862_v46  ;;  %v3973_v14 = vmul.f32 %v4792_v53, %v7862_v46  ;;  %v3962_v25 = vadd.f32 %v3956_v26, %v3919_v3 }
 0x315   : > { %v3963_v23 = vadd.f32 %v3957_v33, %v3920_v5  ;;  %v3964_v13 = vadd.f32 %v3958_v21, %v3921_v56  ;;  %v3974_v57 = vmul.f32 %v7411_v7, %v7862_v46  ;;  %v3965_v27 = vadd.f32 %v3959_v1, %v3922_v39 }
 0x316   : > { %v3975_v10 = vmul.f32 %v4794_v47, %v7862_v46  ;;  %v3976_v49 = vmul.f32 %v4901_v55, %v7862_v46  ;;  %v3977_v9 = vmul.f32 %v4796_v0, %v7862_v46  ;;  %v3978_v20 = vadd.f32 %v3972_v11, %v3936_v35 }
 0x317   : > { %v3979_v22 = vadd.f32 %v3973_v14, %v3937_v34  ;;  %v3984_v30 = vmul.f32 %v7307_v51, %v7958_v4  ;;  %v3985_v6 = vmul.f32 %v4792_v53, %v7958_v4  ;;  %v3980_v15 = vadd.f32 %v3974_v57, %v3938_v62 }
 0x318   : > { %v3981_v3 = vadd.f32 %v3975_v10, %v3939_v17  ;;  %v3982_v5 = vadd.f32 %v3976_v49, %v3940_v50  ;;  %v3986_v56 = vmul.f32 %v7411_v7, %v7958_v4  ;;  %v3983_v63 = vadd.f32 %v3977_v9, %v3941_v54  ;;  %v7961_v49 = vld [vmem:[#allocation61_spill] sm:$0xff] }
 0x319   : > { %v3987_v39 = vmul.f32 %v4794_v47, %v7958_v4  ;;  %v3988_v29 = vmul.f32 %v4901_v55, %v7958_v4  ;;  %v3989_v46 = vmul.f32 %v4796_v0, %v7958_v4  ;;  %v3990_v16 = vadd.f32 %v3984_v30, %v3948_v8  ;;  %v4802_v8 = vld [vmem:[#allocation2 + $0x231] sm:$0x7f] }
 0x31a   : > { %v3991_v45 = vadd.f32 %v3985_v6, %v3949_v40  ;;  %v3996_v35 = vmul.f32 %v7307_v51, %v5753_v52  ;;  %v3997_v34 = vmul.f32 %v4792_v53, %v5753_v52  ;;  %v3992_v59 = vadd.f32 %v3986_v56, %v3950_v44 }
 0x31b   : > { %v3993_v37 = vadd.f32 %v3987_v39, %v3951_v42  ;;  %v3994_v62 = vadd.f32 %v3988_v29, %v3952_v43  ;;  %v3998_v17 = vmul.f32 %v7411_v7, %v5753_v52  ;;  %v3995_v50 = vadd.f32 %v3989_v46, %v3953_v41  ;;  %v4806_v39 = vld [vmem:[#allocation2 + $0x212] sm:$0x7f]  ;;  %v4807_v29 = vld [vmem:[#allocation2 + $0x22a] sm:$0xff] }
 0x31c   : > { %v3999_v32 = vmul.f32 %v4794_v47, %v5753_v52  ;;  %v4000_v54 = vmul.f32 %v4901_v55, %v5753_v52  ;;  %v4001_v2 = vmul.f32 %v4796_v0, %v5753_v52  ;;  %v4002_v51 = vadd.f32 %v3996_v35, %v3960_v60  ;;  %v7960_v47 = vld [vmem:[#allocation60_spill] sm:$0xff] }
 0x31d   : > { %v4003_v40 = vadd.f32 %v3997_v34, %v3961_v24  ;;  %v4014_v48 = vmul.f32 %v7333_v38, %v7959_v28  ;;  %v4015_v53 = vmul.f32 %v4798_v58, %v7959_v28  ;;  %v4004_v44 = vadd.f32 %v3998_v17, %v3962_v25  ;;  %v4808_v46 = vld [vmem:[#allocation2 + $0x232] sm:$0x7f] }
 0x31e   : > { %v4005_v42 = vadd.f32 %v3999_v32, %v3963_v23  ;;  %v4006_v7 = vadd.f32 %v4000_v54, %v3964_v13  ;;  %v4016_v43 = vmul.f32 %v7437_v36, %v7959_v28  ;;  %v7542_v26 = vadd.f32 %v4001_v2, %v3965_v27 }
 0x31f   : > { %v4017_v52 = vmul.f32 %v4800_v18, %v7959_v28  ;;  %v4018_v41 = vmul.f32 %v4801_v61, %v7959_v28  ;;  %v4019_v33 = vmul.f32 %v4802_v8, %v7959_v28  ;;  %v4020_v21 = vadd.f32 %v4014_v48, %v3978_v20 }
 0x320   : > { %v4021_v1 = vadd.f32 %v4015_v53, %v3979_v22  ;;  %v4026_v0 = vmul.f32 %v7333_v38, %v7960_v47  ;;  %v4027_v60 = vmul.f32 %v4798_v58, %v7960_v47  ;;  %v4022_v24 = vadd.f32 %v4016_v43, %v3980_v15  ;;  %v4804_v22 = vld [vmem:[#allocation2 + $0x1f2] sm:$0x7f] }
 0x321   : > { %v4023_v11 = vadd.f32 %v4017_v52, %v3981_v3  ;;  %v4024_v14 = vadd.f32 %v4018_v41, %v3982_v5  ;;  %v4028_v25 = vmul.f32 %v7437_v36, %v7960_v47  ;;  %v4025_v23 = vadd.f32 %v4019_v33, %v3983_v63 }
 0x322   : > { %v4029_v13 = vmul.f32 %v4800_v18, %v7960_v47  ;;  %v4030_v57 = vmul.f32 %v4801_v61, %v7960_v47  ;;  %v4031_v27 = vmul.f32 %v4802_v8, %v7960_v47  ;;  %v4032_v10 = vadd.f32 %v4026_v0, %v3990_v16 }
 0x323   : > { %v4033_v55 = vadd.f32 %v4027_v60, %v3991_v45  ;;  %v4038_v9 = vmul.f32 %v7333_v38, %v7961_v49  ;;  %v4039_v20 = vmul.f32 %v4798_v58, %v7961_v49  ;;  %v4034_v4 = vadd.f32 %v4028_v25, %v3992_v59  ;;  %v7962_v45 = vld [vmem:[#allocation62_spill] sm:$0xff] }
 0x324   : > { %v4035_v30 = vadd.f32 %v4029_v13, %v3993_v37  ;;  %v4036_v6 = vadd.f32 %v4030_v57, %v3994_v62  ;;  %v4040_v15 = vmul.f32 %v7437_v36, %v7961_v49  ;;  %v4037_v3 = vadd.f32 %v4031_v27, %v3995_v50 }
 0x325   : > { %v4041_v5 = vmul.f32 %v4800_v18, %v7961_v49  ;;  %v4042_v56 = vmul.f32 %v4801_v61, %v7961_v49  ;;  %v4043_v63 = vmul.f32 %v4802_v8, %v7961_v49  ;;  %v4044_v38 = vadd.f32 %v4038_v9, %v4002_v51  ;;  %v7963_v18 = vld [vmem:[#allocation63_spill] sm:$0xff] }
 0x326   : > { %v4045_v16 = vadd.f32 %v4039_v20, %v4003_v40  ;;  %v4056_v35 = vmul.f32 %v7359_v12, %v7962_v45  ;;  %v4057_v34 = vmul.f32 %v4804_v22, %v7962_v45  ;;  %v4046_v58 = vadd.f32 %v4040_v15, %v4004_v44 }
 0x327   : > { %v4047_v59 = vadd.f32 %v4041_v5, %v4005_v42  ;;  %v4048_v36 = vadd.f32 %v4042_v56, %v4006_v7  ;;  %v4058_v37 = vmul.f32 %v7463_v31, %v7962_v45  ;;  %v4059_v62 = vmul.f32 %v4806_v39, %v7962_v45 }
 0x328   : > { %v4060_v17 = vmul.f32 %v4807_v29, %v7962_v45  ;;  %v4061_v50 = vmul.f32 %v4808_v46, %v7962_v45  ;;  %v4062_v32 = vadd.f32 %v4056_v35, %v4020_v21  ;;  %v4063_v54 = vadd.f32 %v4057_v34, %v4021_v1 }
 0x329   : > { %v4064_v2 = vadd.f32 %v4058_v37, %v4022_v24  ;;  %v4068_v61 = vmul.f32 %v7359_v12, %v7963_v18  ;;  %v4069_v8 = vmul.f32 %v4804_v22, %v7963_v18  ;;  %v4065_v51 = vadd.f32 %v4059_v62, %v4023_v11 }
 0x32a   : > { %v4066_v40 = vadd.f32 %v4060_v17, %v4024_v14  ;;  %v4067_v28 = vadd.f32 %v4061_v50, %v4025_v23  ;;  %v4070_v48 = vmul.f32 %v7463_v31, %v7963_v18  ;;  %v4071_v53 = vmul.f32 %v4806_v39, %v7963_v18 }
 0x32b   : > { %v4072_v44 = vmul.f32 %v4807_v29, %v7963_v18  ;;  %v4073_v42 = vmul.f32 %v4808_v46, %v7963_v18  ;;  %v4074_v7 = vadd.f32 %v4068_v61, %v4032_v10  ;;  %v4075_v43 = vadd.f32 %v4069_v8, %v4033_v55 }
 0x32c   : > { %v4076_v52 = vadd.f32 %v4070_v48, %v4034_v4  ;;  %v4080_v41 = vmul.f32 %v7359_v12, %v5851_v19  ;;  %v4081_v33 = vmul.f32 %v4804_v22, %v5851_v19  ;;  %v4077_v21 = vadd.f32 %v4071_v53, %v4035_v30 }
 0x32d   : > { %v4078_v1 = vadd.f32 %v4072_v44, %v4036_v6  ;;  %v4079_v47 = vadd.f32 %v4073_v42, %v4037_v3  ;;  %v4082_v0 = vmul.f32 %v7463_v31, %v5851_v19  ;;  %v4049_v60 = vadd.f32 %v4043_v63, %v7542_v26 }
 0x32e   : > { %v4083_v24 = vmul.f32 %v4806_v39, %v5851_v19  ;;  %v4084_v11 = vmul.f32 %v4807_v29, %v5851_v19  ;;  %v4086_v14 = vadd.f32 %v4080_v41, %v4044_v38  ;;  %v4087_v25 = vadd.f32 %v4081_v33, %v4045_v16 }
 0x32f   : > { %v4088_v23 = vadd.f32 %v4082_v0, %v4046_v58  ;;  %v4092_v13 = vmul.f32 %v4074_v7, %v4062_v32  ;;  %v4093_v12 = vmul.f32 %v4075_v43, %v4063_v54  ;;  %v4085_v57 = vmul.f32 %v4808_v46, %v5851_v19 }
 0x330   : > { %v4089_v27 = vadd.f32 %v4083_v24, %v4047_v59  ;;  %v4090_v10 = vadd.f32 %v4084_v11, %v4048_v36  ;;  %v4094_v31 = vmul.f32 %v4076_v52, %v4064_v2  ;;  %v4095_v26 = vmul.f32 %v4077_v21, %v4065_v51 }
 0x331   : > { %v4096_v55 = vmul.f32 %v4078_v1, %v4066_v40  ;;  %v4097_v49 = vmul.f32 %v4079_v47, %v4067_v28  ;;  %v4098_v9 = vadd.f32 %v4092_v13, %v4086_v14  ;;  %v4091_v20 = vadd.f32 %v4085_v57, %v4049_v60 }
 0x332   : > { %v4099_v22 = vadd.f32 %v4093_v12, %v4087_v25  ;;  %v4100_v4 = vadd.f32 %v4094_v31, %v4088_v23  ;;  %v4101_v30 = vadd.f32 %v4095_v26, %v4089_v27 }
 0x333   : > { %v4102_v6 = vadd.f32 %v4096_v55, %v4090_v10  ;;  %4809 = vst [vmem:[%s5172_s28 + $0xc0] sm:$0xff] %v4098_v9  ;;  %v4103_v15 = vadd.f32 %v4097_v49, %v4091_v20 }
 0x334   : > { %4810 = vst [vmem:[%s5172_s28 + $0xc8] sm:$0x7f] %v4099_v22 }
 0x335   : > { %4811 = vst [vmem:[%s5172_s28 + $0xd0] sm:$0xff] %v4100_v4 }
 0x336   : > { %4812 = vst [vmem:[%s5172_s28 + $0xd8] sm:$0x7f] %v4101_v30 }
 0x337   : > { %4813 = vst [vmem:[%s5172_s28 + $0xe0] sm:$0xff] %v4102_v6 }
 0x338   : > { %4814 = vst [vmem:[%s5172_s28 + $0xe8] sm:$0x7f] %v4103_v15 }
 0x339 PF: > { %s19_s26 = sadd.s32 1, %s5048_s26   ;;  %s7964_s24 = smov %s5044_s25 }
 0x33a   : > { %p16_p13 = scmp.ge.s32.totalorder %s19_s26, 4   ;;  %s7965_s25 = smov %s7967_s13 }
 0x33c   :  { %18 = sbr.rel (!%p16_p13) target bundleno = 3 (0x3), region = 182 }
 0x341   :  { %4143 = vsyncpa [#allocation5], 1 }
 0x342   :  { %4145 = vsyncpa [#allocation5 + $0x1], 1 }
 0x343   :  { %4146 = vsyncpa [#allocation7], 1 }
 0x344   :  { %4147 = vsyncmov [#allocation3] }
 0x347   :  { %s4148_s20 = vpop.sfrf %4147 }
 0x348   :  { %p4817_p0 = scmp.ne.s32.totalorder %s4148_s20, 0 }
 0x34a   :  { %4152 = shalt.err (%p4817_p0)  }
 0x34b   :  { %4154 = vsyncmov [#allocation3 + $0x1] }
 0x34e   :  { %s4155_s28 = vpop.sfrf %4154 }
 0x34f   :  { %p4818_p1 = scmp.ne.s32.totalorder %s4155_s28, 0 }
 0x351   :  { %4159 = shalt.err (%p4818_p1)  }
 0x352   :  { %4161 = vsyncmov [#allocation3 + $0x2] }
 0x355   :  { %s4162_s21 = vpop.sfrf %4161 }
 0x356   :  { %p4819_p2 = scmp.ne.s32.totalorder %s4162_s21, 0 }
 0x358   :  { %4166 = shalt.err (%p4819_p2)  }
 0x359   :  { %4168 = vsyncmov [#allocation3 + $0x3] }
 0x35c   :  { %s4169_s13 = vpop.sfrf %4168 }
 0x35d   :  { %p4820_p3 = scmp.ne.s32.totalorder %s4169_s13, 0 }
 0x35f   :  { %4173 = shalt.err (%p4820_p3)  }
 0x360   :  { %4175 = vsyncmov [#allocation3 + $0x4] }
 0x363   :  { %s4176_s0 = vpop.sfrf %4175 }
 0x364   :  { %p4821_p4 = scmp.ne.s32.totalorder %s4176_s0, 0 }
 0x366   :  { %4180 = shalt.err (%p4821_p4)  }
 0x367   :  { %4182 = vsyncmov [#allocation3 + $0x5] }
 0x36a   :  { %s4183_s1 = vpop.sfrf %4182 }
 0x36b   :  { %p4822_p5 = scmp.ne.s32.totalorder %s4183_s1, 0 }
 0x36d   :  { %4187 = shalt.err (%p4822_p5)  }

</bundles_post_ra>
